<compile_context>
chip_gen: v7x
topology: tpu7x:2x2x1
jax: 0.10.0
libtpu: 0.0.40
codegen_flags: <defaults>
</compile_context>

<pallas_src>
import functools

import jax
import jax.numpy as jnp
from jax import lax
from jax.experimental import pallas as pl
from jax.experimental.pallas import tpu as pltpu

EPS = 1e-5

# Matmul operand dtype (MXU fast path).  Accumulation (preferred_element_type)
# and all BatchNorm / ReLU / residual arithmetic stay float32.  Set to
# jnp.float32 for bit-tighter agreement with the f32 reference.
MM_DT = jnp.bfloat16

_PAR = pltpu.CompilerParams(dimension_semantics=("parallel",))


# ====================== Fused whole-block kernel (small M) ================== #

def _fused_block_kernel(x_ref, w1_ref, w2_ref, w3_ref,
                        g1_ref, be1_ref, g2_ref, be2_ref, g3_ref, be3_ref,
                        o_ref, *, n, hh, ww):
    """Entire bottleneck in one VMEM-resident kernel.

    x_ref:  (M, CP) f32, M = n*hh*ww (NHWC flattened, channels zero-padded)
    w1/w3:  (CP, CP) MM_DT   w2: (3, 3, CP, CP) MM_DT
    g*/be*: (1, CP) f32 BatchNorm affine params
    o_ref:  (M, CP) f32 = ReLU(BN3(conv3(ReLU(BN2(conv2(ReLU(BN1(conv1(x)))))))) + x)
    """
    m, cp = x_ref.shape

    def bn_scale_shift(y, g_ref, b_ref):
        # Training-mode batch statistics, centered variance (better conditioned
        # than E[y^2]-E[y]^2), folded into per-channel y*scale + shift.
        mean = jnp.mean(y, axis=0, keepdims=True)
        var = jnp.mean(jnp.square(y - mean), axis=0, keepdims=True)
        scale = g_ref[...] * lax.rsqrt(var + EPS)
        shift = b_ref[...] - mean * scale
        return scale, shift

    x = x_ref[...]

    # ---- stage 1: 1x1 conv + BN1 + ReLU (stays in VMEM / vregs) ----
    y1 = jnp.dot(x.astype(MM_DT), w1_ref[...],
                 preferred_element_type=jnp.float32)
    sc1, sh1 = bn_scale_shift(y1, g1_ref, be1_ref)
    z1 = jnp.maximum(y1 * sc1 + sh1, 0.0)

    # ---- stage 2: 3x3 conv (pad=1, stride=1) as 9 shifted matmuls ----
    # Source pixel for output (h, w) and tap (dh, dw) is (h+dh-1, w+dw-1), i.e.
    # a flat-row offset of (dh-1)*ww + (dw-1).  pltpu.roll along the sublane
    # axis provides the shift; a validity mask zeroes positions whose source
    # falls outside the image (also kills batch-boundary wraparound).
    h_idx = lax.broadcasted_iota(jnp.int32, (n, hh, ww, cp), 1).reshape(m, cp)
    w_idx = lax.broadcasted_iota(jnp.int32, (n, hh, ww, cp), 2).reshape(m, cp)
    acc = jnp.zeros((m, cp), jnp.float32)
    for dh in range(3):
        for dw in range(3):
            off = (dh - 1) * ww + (dw - 1)
            src = z1 if off == 0 else pltpu.roll(z1, (-off) % m, axis=0)
            hs = h_idx + (dh - 1)
            ws = w_idx + (dw - 1)
            valid = (hs >= 0) & (hs < hh) & (ws >= 0) & (ws < ww)
            src = jnp.where(valid, src, 0.0)
            acc = acc + jnp.dot(src.astype(MM_DT), w2_ref[dh, dw],
                                preferred_element_type=jnp.float32)

    sc2, sh2 = bn_scale_shift(acc, g2_ref, be2_ref)
    z2 = jnp.maximum(acc * sc2 + sh2, 0.0)

    # ---- stage 3: 1x1 conv + BN3, residual add, ReLU ----
    y3 = jnp.dot(z2.astype(MM_DT), w3_ref[...],
                 preferred_element_type=jnp.float32)
    sc3, sh3 = bn_scale_shift(y3, g3_ref, be3_ref)
    o_ref[...] = jnp.maximum(y3 * sc3 + sh3 + x, 0.0)


# ================= Streamed 4-stage fallback kernels (large M) ============== #

def _partial_sums(y):
    """(rows, CP) f32 -> ((8, CP) partial sum, (8, CP) partial sum of squares)."""
    r, cp = y.shape
    yg = y.reshape(r // 8, 8, cp)
    return jnp.sum(yg, axis=0), jnp.sum(yg * yg, axis=0)


def _mm_stats_kernel(x_ref, w_ref, y_ref, ps_ref, pss_ref):
    """y = x @ w (raw, pre-BN) + per-tile partial BN statistics."""
    y = jnp.dot(x_ref[...].astype(MM_DT), w_ref[...].astype(MM_DT),
                preferred_element_type=jnp.float32)
    y_ref[...] = y
    s, ss = _partial_sums(y)
    ps_ref[...] = s[None]
    pss_ref[...] = ss[None]


def _norm_relu_mm_stats_kernel(yin_ref, sc_ref, sh_ref, w_ref, y_ref, ps_ref, pss_ref):
    """z = ReLU(yin*scale + shift) (previous stage's BN+ReLU); y = z @ w + stats."""
    z = jnp.maximum(yin_ref[...] * sc_ref[...] + sh_ref[...], 0.0)
    y = jnp.dot(z.astype(MM_DT), w_ref[...].astype(MM_DT),
                preferred_element_type=jnp.float32)
    y_ref[...] = y
    s, ss = _partial_sums(y)
    ps_ref[...] = s[None]
    pss_ref[...] = ss[None]


def _conv3x3_norm_stats_kernel(ym_ref, yc_ref, yp_ref, sc_ref, sh_ref, w_ref,
                               y2_ref, ps_ref, pss_ref, zpad_ref):
    """Fused fallback stage 2: BN1+ReLU applied on the fly, 3x3 conv (pad=1,
    stride=1) as nine accumulated matmuls, raw output + partial BN statistics."""
    h = pl.program_id(0)
    n_rows = pl.num_programs(0)
    n, _, w_len, cp = yc_ref.shape          # block = (N, 1, W, CP)
    scale = sc_ref[...]
    shift = sh_ref[...]

    # Zero the +/-1 column halo of the scratch row buffer.
    zeros_col = jnp.zeros((n, 1, cp), jnp.float32)
    zpad_ref[:, 0:1, :] = zeros_col
    zpad_ref[:, w_len + 1:w_len + 2, :] = zeros_col

    acc = jnp.zeros((n * w_len, cp), jnp.float32)
    rows = (ym_ref, yc_ref, yp_ref)          # input rows h-1, h, h+1 (clamped)
    for dh in range(3):
        r = rows[dh][:, 0, :, :]                                # (N, W, CP)
        z = jnp.maximum(r * scale + shift, 0.0)                 # stage-1 BN + ReLU
        if dh != 1:                                             # row halo: zero outside image
            row_idx = h + (dh - 1)
            valid = jnp.logical_and(row_idx >= 0, row_idx < n_rows)
            z = jnp.where(valid, z, 0.0)
        zpad_ref[:, 1:w_len + 1, :] = z
        for dw in range(3):
            zw = zpad_ref[:, dw:dw + w_len, :].reshape(n * w_len, cp)
            acc = acc + jnp.dot(zw.astype(MM_DT), w_ref[dh, dw].astype(MM_DT),
                                preferred_element_type=jnp.float32)

    y2_ref[...] = acc.reshape(n, 1, w_len, cp)
    s, ss = _partial_sums(acc)
    ps_ref[...] = s[None]
    pss_ref[...] = ss[None]


def _norm_res_relu_kernel(y_ref, sc_ref, sh_ref, res_ref, o_ref):
    """out = ReLU(BN3(y) + residual)."""
    o_ref[...] = jnp.maximum(y_ref[...] * sc_ref[...] + sh_ref[...] + res_ref[...], 0.0)


# ----------------------------- Fallback stage wrappers ---------------------- #

def _stage_matmul(x_mat, w, tm, scale=None, shift=None):
    """1x1-conv stage: (M,CP)@(CP,CP) + partial BN stats; optionally applies the
    previous stage's BN+ReLU to the input tile first."""
    m, cp = x_mat.shape
    t = m // tm
    out_shape = (jax.ShapeDtypeStruct((m, cp), jnp.float32),
                 jax.ShapeDtypeStruct((t, 8, cp), jnp.float32),
                 jax.ShapeDtypeStruct((t, 8, cp), jnp.float32))
    out_specs = (pl.BlockSpec((tm, cp), lambda i: (i, 0)),
                 pl.BlockSpec((1, 8, cp), lambda i: (i, 0, 0)),
                 pl.BlockSpec((1, 8, cp), lambda i: (i, 0, 0)))
    if scale is None:
        return pl.pallas_call(
            _mm_stats_kernel,
            out_shape=out_shape,
            grid=(t,),
            in_specs=[pl.BlockSpec((tm, cp), lambda i: (i, 0)),
                      pl.BlockSpec((cp, cp), lambda i: (0, 0))],
            out_specs=out_specs,
            compiler_params=_PAR,
        )(x_mat, w)
    return pl.pallas_call(
        _norm_relu_mm_stats_kernel,
        out_shape=out_shape,
        grid=(t,),
        in_specs=[pl.BlockSpec((tm, cp), lambda i: (i, 0)),
                  pl.BlockSpec((1, cp), lambda i: (0, 0)),
                  pl.BlockSpec((1, cp), lambda i: (0, 0)),
                  pl.BlockSpec((cp, cp), lambda i: (0, 0))],
        out_specs=out_specs,
        compiler_params=_PAR,
    )(x_mat, scale, shift, w)


def _stage_conv3x3(y1_mat, scale, shift, w2, n, h_img, w_img, cp):
    """Fallback 3x3-conv stage: grid over output rows; three shifted row specs
    give the row halo; VMEM scratch gives the column halo."""
    y1_img = y1_mat.reshape(n, h_img, w_img, cp)

    def row_spec(dh):
        off = dh - 1

        def imap(i):
            r = jnp.minimum(jnp.maximum(i + off, 0), h_img - 1)
            return (0, r, 0, 0)

        return pl.BlockSpec((n, 1, w_img, cp), imap)

    y2, ps, pss = pl.pallas_call(
        _conv3x3_norm_stats_kernel,
        out_shape=(jax.ShapeDtypeStruct((n, h_img, w_img, cp), jnp.float32),
                   jax.ShapeDtypeStruct((h_img, 8, cp), jnp.float32),
                   jax.ShapeDtypeStruct((h_img, 8, cp), jnp.float32)),
        grid=(h_img,),
        in_specs=[row_spec(0), row_spec(1), row_spec(2),
                  pl.BlockSpec((1, cp), lambda i: (0, 0)),
                  pl.BlockSpec((1, cp), lambda i: (0, 0)),
                  pl.BlockSpec((3, 3, cp, cp), lambda i: (0, 0, 0, 0))],
        out_specs=(pl.BlockSpec((n, 1, w_img, cp), lambda i: (0, i, 0, 0)),
                   pl.BlockSpec((1, 8, cp), lambda i: (i, 0, 0)),
                   pl.BlockSpec((1, 8, cp), lambda i: (i, 0, 0))),
        scratch_shapes=[pltpu.VMEM((n, w_img + 2, cp), jnp.float32)],
        compiler_params=_PAR,
    )(y1_img, y1_img, y1_img, scale, shift, w2)
    return y2.reshape(n * h_img * w_img, cp), ps, pss


def _stage_final(y3, scale, shift, res, tm):
    """BN3 + residual add + ReLU, streamed tile by tile; residual buffer aliased
    to the output (saves one HBM pass on a memory-bound epilogue)."""
    m, cp = y3.shape
    t = m // tm
    return pl.pallas_call(
        _norm_res_relu_kernel,
        out_shape=jax.ShapeDtypeStruct((m, cp), jnp.float32),
        grid=(t,),
        in_specs=[pl.BlockSpec((tm, cp), lambda i: (i, 0)),
                  pl.BlockSpec((1, cp), lambda i: (0, 0)),
                  pl.BlockSpec((1, cp), lambda i: (0, 0)),
                  pl.BlockSpec((tm, cp), lambda i: (i, 0))],
        out_specs=pl.BlockSpec((tm, cp), lambda i: (i, 0)),
        input_output_aliases={3: 0},
        compiler_params=_PAR,
    )(y3, scale, shift, res)


def _bn_scale_shift(ps, pss, count, gamma_row, beta_row):
    """Fold batch stats + affine into per-channel (scale, shift): y*scale + shift."""
    s = jnp.sum(ps, axis=(0, 1))
    ss = jnp.sum(pss, axis=(0, 1))
    mean = s / count
    var = jnp.maximum(ss / count - mean * mean, 0.0)
    scale = gamma_row[0] * lax.rsqrt(var + EPS)
    shift = beta_row[0] - mean * scale
    return scale.reshape(1, -1), shift.reshape(1, -1)


# ----------------------------- Param prep & forward ------------------------- #

def prepare_params(params, cp=None):
    """One-time weight layout prep (outside the hot path): pad channels to a
    lane-dense CP (>=128), reshape convs to matmul weights, store them in the
    MXU operand dtype.  Conv biases are intentionally dropped: with
    training-mode BatchNorm right after each conv, the bias cancels exactly in
    the mean subtraction."""
    c_mid, c_in = params["w1"].shape[:2]
    c_out = params["w3"].shape[0]
    if cp is None:
        cp = 128 * pl.cdiv(max(c_in, c_mid, c_out, 128), 128)
    f32 = jnp.float32

    def pad_mat(mat):
        p = jnp.pad(mat.astype(f32), ((0, cp - mat.shape[0]), (0, cp - mat.shape[1])))
        return p.astype(MM_DT)

    def pad_row(v):
        return jnp.pad(v.astype(f32), (0, cp - v.shape[0])).reshape(1, cp)

    w1 = pad_mat(params["w1"].reshape(c_mid, c_in).T)              # (CP, CP): in x out
    w3 = pad_mat(params["w3"].reshape(c_out, c_mid).T)
    w2 = jnp.transpose(params["w2"], (2, 3, 1, 0)).astype(f32)     # (3, 3, in, out)
    w2 = jnp.pad(w2, ((0, 0), (0, 0), (0, cp - c_mid), (0, cp - c_mid))).astype(MM_DT)
    return {
        "W1": w1, "W2": w2, "W3": w3,
        "g1": pad_row(params["g1"]), "be1": pad_row(params["be1"]),
        "g2": pad_row(params["g2"]), "be2": pad_row(params["be2"]),
        "g3": pad_row(params["g3"]), "be3": pad_row(params["be3"]),
    }


def _pick_row_tile(m, target):
    for t in (target, 2048, 1024, 512, 256, 128, 64, 32, 16, 8):
        if t <= m and m % t == 0:
            return t
    return m


@functools.partial(jax.jit, static_argnames=("c_out", "stride", "row_tile"))
def my_res_block_forward(x_nchw, prepped, *, c_out, stride=1, row_tile=1024):
    """Pallas forward of My_Res_Block (downsample=None => stride must be 1)."""
    # TODO(synk): downsample branch / stride > 1 not implemented (the module is
    # used with downsample=None, which requires stride == 1 and in_planes == 4*out_planes).
    assert stride == 1, "stride != 1 requires a downsample branch"
    n, c_in, h, w = x_nchw.shape
    cp = prepped["W1"].shape[0]
    assert c_in == c_out, "residual add requires c_in == c_out when downsample is None"
    m = n * h * w
    assert m % 8 == 0

    x_nhwc = jnp.transpose(x_nchw, (0, 2, 3, 1)).astype(jnp.float32)
    x_mat = jnp.pad(x_nhwc, ((0, 0), (0, 0), (0, 0), (0, cp - c_in))).reshape(m, cp)

    if m * cp * 4 <= 512 * 1024:
        # Small-activation fast path: whole bottleneck in one VMEM-resident
        # kernel (a handful of (M, CP) f32 temporaries + ~0.4 MiB of bf16
        # weights -- comfortably within every generation's scoped VMEM budget).
        kernel = functools.partial(_fused_block_kernel, n=n, hh=h, ww=w)
        out_mat = pl.pallas_call(
            kernel,
            out_shape=jax.ShapeDtypeStruct((m, cp), jnp.float32),
        )(x_mat, prepped["W1"], prepped["W2"], prepped["W3"],
          prepped["g1"], prepped["be1"], prepped["g2"], prepped["be2"],
          prepped["g3"], prepped["be3"])
    else:
        # Large-M fallback: streamed 4-stage pipeline, every intermediate
        # crosses HBM exactly once each way, BN of stage k applied inside stage
        # k+1's kernel.
        assert (n * w) % 8 == 0
        tm = _pick_row_tile(m, row_tile)

        # stage 1: 1x1 conv (raw) + BN1 stats; BN1+ReLU is applied inside stage 2.
        y1, ps1, pss1 = _stage_matmul(x_mat, prepped["W1"], tm)
        sc1, sh1 = _bn_scale_shift(ps1, pss1, m, prepped["g1"], prepped["be1"])

        # stage 2: fused BN1+ReLU + 3x3 conv (pad=1) + BN2 stats.
        y2, ps2, pss2 = _stage_conv3x3(y1, sc1, sh1, prepped["W2"], n, h, w, cp)
        sc2, sh2 = _bn_scale_shift(ps2, pss2, m, prepped["g2"], prepped["be2"])

        # stage 3: fused BN2+ReLU + 1x1 conv + BN3 stats.
        y3, ps3, pss3 = _stage_matmul(y2, prepped["W3"], tm, scale=sc2, shift=sh2)
        sc3, sh3 = _bn_scale_shift(ps3, pss3, m, prepped["g3"], prepped["be3"])

        # final: BN3 + residual + ReLU.
        out_mat = _stage_final(y3, sc3, sh3, x_mat, tm)

    out = out_mat.reshape(n, h, w, cp)[..., :c_out]
    return jnp.transpose(out, (0, 3, 1, 2))  # back to NCHW


# ----------------------------- Reference (pure JAX) ------------------------- #

def reference_forward(x, p, stride=1):
    def bn(y):
        mean = jnp.mean(y, axis=(0, 2, 3), keepdims=True)
        var = jnp.mean(jnp.square(y - mean), axis=(0, 2, 3), keepdims=True)
        return (y - mean) / jnp.sqrt(var + EPS)

    def conv(x, w, b, stride=1, pad=0):
        out = lax.conv_general_dilated(
            x, w, (stride, stride), [(pad, pad), (pad, pad)],
            dimension_numbers=("NCHW", "OIHW", "NCHW"))
        return out + b[None, :, None, None]

    y = jax.nn.relu(bn(conv(x, p["w1"], p["b1"])))
    y = jax.nn.relu(bn(conv(y, p["w2"], p["b2"], stride=stride, pad=1)))
    y = bn(conv(y, p["w3"], p["b3"]))
    return jax.nn.relu(y + x)


# ----------------------------- Main ----------------------------------------- #

if __name__ == "__main__":
    out_planes = 8
    in_planes = out_planes * 4      # 32, so the residual add is valid (downsample=None)
    stride = 1
    N, H, W = 2, 16, 16

    key = jax.random.PRNGKey(0)
    k = jax.random.split(key, 8)

    params = {
        "w1": 0.1 * jax.random.normal(k[0], (out_planes, in_planes, 1, 1), jnp.float32),
        "b1": 0.1 * jax.random.normal(k[1], (out_planes,), jnp.float32),
        "g1": jnp.ones((out_planes,), jnp.float32),
        "be1": jnp.zeros((out_planes,), jnp.float32),
        "w2": 0.1 * jax.random.normal(k[2], (out_planes, out_planes, 3, 3), jnp.float32),
        "b2": 0.1 * jax.random.normal(k[3], (out_planes,), jnp.float32),
        "g2": jnp.ones((out_planes,), jnp.float32),
        "be2": jnp.zeros((out_planes,), jnp.float32),
        "w3": 0.1 * jax.random.normal(k[4], (4 * out_planes, out_planes, 1, 1), jnp.float32),
        "b3": 0.1 * jax.random.normal(k[5], (4 * out_planes,), jnp.float32),
        "g3": jnp.ones((4 * out_planes,), jnp.float32),
        "be3": jnp.zeros((4 * out_planes,), jnp.float32),
    }

    x = jax.random.normal(k[6], (N, in_planes, H, W), jnp.float32)

    prepped = prepare_params(params)
    out = my_res_block_forward(x, prepped, c_out=4 * out_planes, stride=stride)
    out = jax.block_until_ready(out)

    ref = jax.block_until_ready(reference_forward(x, params, stride=stride))
    assert out.shape == ref.shape == (N, 4 * out_planes, H, W)
    tol = 5e-2 if MM_DT == jnp.bfloat16 else 2e-2
    max_diff = float(jnp.max(jnp.abs(out - ref)))
    assert jnp.allclose(out, ref, atol=tol, rtol=tol), f"max abs diff {max_diff}"

    print("KERNEL_OK")
</pallas_src>

<mosaic_0001>
module attributes {stable_mosaic.version = 11 : i64} {
  func.func @_fused_block_kernel(%arg0: memref<512x128xf32, #tpu.memory_space<vmem>>, %arg1: memref<128x128xbf16, #tpu.memory_space<vmem>>, %arg2: memref<3x3x128x128xbf16, #tpu.memory_space<vmem>>, %arg3: memref<128x128xbf16, #tpu.memory_space<vmem>>, %arg4: memref<1x128xf32, #tpu.memory_space<vmem>>, %arg5: memref<1x128xf32, #tpu.memory_space<vmem>>, %arg6: memref<1x128xf32, #tpu.memory_space<vmem>>, %arg7: memref<1x128xf32, #tpu.memory_space<vmem>>, %arg8: memref<1x128xf32, #tpu.memory_space<vmem>>, %arg9: memref<1x128xf32, #tpu.memory_space<vmem>>, %arg10: memref<512x128xf32, #tpu.memory_space<vmem>>) attributes {dimension_semantics = [], scalar_prefetch = 0 : i64, scratch_operands = 0 : i64, tpu.core_type = #tpu.core_type<tc>} {
    %c0 = arith.constant 0 : index
    %c0_0 = arith.constant 0 : index
    %0 = vector.load %arg0[%c0, %c0_0] : memref<512x128xf32, #tpu.memory_space<vmem>>, vector<512x128xf32>
    %1 = arith.truncf %0 : vector<512x128xf32> to vector<512x128xbf16>
    %c0_1 = arith.constant 0 : index
    %c0_2 = arith.constant 0 : index
    %2 = vector.load %arg1[%c0_1, %c0_2] : memref<128x128xbf16, #tpu.memory_space<vmem>>, vector<128x128xbf16>
    %cst = arith.constant dense<0.000000e+00> : vector<512x128xf32>
    %3 = tpu.matmul %1, %2, %cst {dimension_numbers = #tpu.dot_dimension_numbers<[1], [0], [0], [1], [0, 0, 1, 1], [], []>} : vector<512x128xbf16>, vector<128x128xbf16>, vector<512x128xf32> -> vector<512x128xf32>
    %cst_3 = arith.constant dense<0.000000e+00> : vector<128xf32>
    %4 = vector.multi_reduction <add>, %3, %cst_3 [0] : vector<512x128xf32> to vector<128xf32>
    %5 = vector.shape_cast %4 : vector<128xf32> to vector<1x128xf32>
    %cst_4 = arith.constant 5.120000e+02 : f32
    %6 = vector.broadcast %cst_4 : f32 to vector<1x128xf32>
    %7 = arith.divf %5, %6 : vector<1x128xf32>
    %8 = vector.broadcast %7 : vector<1x128xf32> to vector<512x128xf32>
    %9 = arith.subf %3, %8 : vector<512x128xf32>
    %10 = arith.mulf %9, %9 : vector<512x128xf32>
    %cst_5 = arith.constant dense<0.000000e+00> : vector<128xf32>
    %11 = vector.multi_reduction <add>, %10, %cst_5 [0] : vector<512x128xf32> to vector<128xf32>
    %12 = vector.shape_cast %11 : vector<128xf32> to vector<1x128xf32>
    %cst_6 = arith.constant 5.120000e+02 : f32
    %13 = vector.broadcast %cst_6 : f32 to vector<1x128xf32>
    %14 = arith.divf %12, %13 : vector<1x128xf32>
    %c0_7 = arith.constant 0 : index
    %c0_8 = arith.constant 0 : index
    %15 = vector.load %arg4[%c0_7, %c0_8] : memref<1x128xf32, #tpu.memory_space<vmem>>, vector<1x128xf32>
    %cst_9 = arith.constant 9.99999974E-6 : f32
    %16 = vector.broadcast %cst_9 : f32 to vector<1x128xf32>
    %17 = arith.addf %14, %16 : vector<1x128xf32>
    %18 = math.rsqrt %17 : vector<1x128xf32>
    %19 = arith.mulf %15, %18 : vector<1x128xf32>
    %c0_10 = arith.constant 0 : index
    %c0_11 = arith.constant 0 : index
    %20 = vector.load %arg5[%c0_10, %c0_11] : memref<1x128xf32, #tpu.memory_space<vmem>>, vector<1x128xf32>
    %21 = arith.mulf %7, %19 : vector<1x128xf32>
    %22 = arith.subf %20, %21 : vector<1x128xf32>
    %23 = vector.broadcast %19 : vector<1x128xf32> to vector<512x128xf32>
    %24 = arith.mulf %3, %23 : vector<512x128xf32>
    %25 = vector.broadcast %22 : vector<1x128xf32> to vector<512x128xf32>
    %26 = arith.addf %24, %25 : vector<512x128xf32>
    %cst_12 = arith.constant 0.000000e+00 : f32
    %27 = vector.broadcast %cst_12 : f32 to vector<512x128xf32>
    %28 = arith.maximumf %26, %27 : vector<512x128xf32>
    %29 = tpu.iota {dimensions = array<i32: 1>} : vector<2x16x16x128xi32>
    %30 = vector.shape_cast %29 : vector<2x16x16x128xi32> to vector<512x128xi32>
    %31 = tpu.iota {dimensions = array<i32: 2>} : vector<2x16x16x128xi32>
    %32 = vector.shape_cast %31 : vector<2x16x16x128xi32> to vector<512x128xi32>
    %cst_13 = arith.constant 0.000000e+00 : f32
    %33 = vector.broadcast %cst_13 : f32 to vector<512x128xf32>
    %c17_i32 = arith.constant 17 : i32
    %34 = tpu.dynamic_rotate %28 by %c17_i32 dim 0 : vector<512x128xf32>, i32 -> vector<512x128xf32>
    %c-1_i32 = arith.constant -1 : i32
    %35 = vector.broadcast %c-1_i32 : i32 to vector<512x128xi32>
    %36 = arith.addi %30, %35 : vector<512x128xi32>
    %c-1_i32_14 = arith.constant -1 : i32
    %37 = vector.broadcast %c-1_i32_14 : i32 to vector<512x128xi32>
    %38 = arith.addi %32, %37 : vector<512x128xi32>
    %c0_i32 = arith.constant 0 : i32
    %39 = vector.broadcast %c0_i32 : i32 to vector<512x128xi32>
    %40 = arith.cmpi sge, %36, %39 : vector<512x128xi32>
    %c16_i32 = arith.constant 16 : i32
    %41 = vector.broadcast %c16_i32 : i32 to vector<512x128xi32>
    %42 = arith.cmpi slt, %36, %41 : vector<512x128xi32>
    %43 = arith.andi %40, %42 : vector<512x128xi1>
    %c0_i32_15 = arith.constant 0 : i32
    %44 = vector.broadcast %c0_i32_15 : i32 to vector<512x128xi32>
    %45 = arith.cmpi sge, %38, %44 : vector<512x128xi32>
    %46 = arith.andi %43, %45 : vector<512x128xi1>
    %c16_i32_16 = arith.constant 16 : i32
    %47 = vector.broadcast %c16_i32_16 : i32 to vector<512x128xi32>
    %48 = arith.cmpi slt, %38, %47 : vector<512x128xi32>
    %49 = arith.andi %46, %48 : vector<512x128xi1>
    %cst_17 = arith.constant 0.000000e+00 : f32
    %50 = vector.broadcast %cst_17 : f32 to vector<512x128xf32>
    %51 = arith.select %49, %34, %50 : vector<512x128xi1>, vector<512x128xf32>
    %52 = arith.truncf %51 : vector<512x128xf32> to vector<512x128xbf16>
    %c0_18 = arith.constant 0 : index
    %c0_19 = arith.constant 0 : index
    %c0_20 = arith.constant 0 : index
    %c0_21 = arith.constant 0 : index
    %53 = vector.load %arg2[%c0_18, %c0_19, %c0_20, %c0_21] : memref<3x3x128x128xbf16, #tpu.memory_space<vmem>>, vector<1x1x128x128xbf16>
    %54 = vector.shape_cast %53 : vector<1x1x128x128xbf16> to vector<128x128xbf16>
    %cst_22 = arith.constant dense<0.000000e+00> : vector<512x128xf32>
    %55 = tpu.matmul %52, %54, %cst_22 {dimension_numbers = #tpu.dot_dimension_numbers<[1], [0], [0], [1], [0, 0, 1, 1], [], []>} : vector<512x128xbf16>, vector<128x128xbf16>, vector<512x128xf32> -> vector<512x128xf32>
    %56 = arith.addf %33, %55 : vector<512x128xf32>
    %c16_i32_23 = arith.constant 16 : i32
    %57 = tpu.dynamic_rotate %28 by %c16_i32_23 dim 0 : vector<512x128xf32>, i32 -> vector<512x128xf32>
    %c-1_i32_24 = arith.constant -1 : i32
    %58 = vector.broadcast %c-1_i32_24 : i32 to vector<512x128xi32>
    %59 = arith.addi %30, %58 : vector<512x128xi32>
    %c0_i32_25 = arith.constant 0 : i32
    %60 = vector.broadcast %c0_i32_25 : i32 to vector<512x128xi32>
    %61 = arith.addi %32, %60 : vector<512x128xi32>
    %c0_i32_26 = arith.constant 0 : i32
    %62 = vector.broadcast %c0_i32_26 : i32 to vector<512x128xi32>
    %63 = arith.cmpi sge, %59, %62 : vector<512x128xi32>
    %c16_i32_27 = arith.constant 16 : i32
    %64 = vector.broadcast %c16_i32_27 : i32 to vector<512x128xi32>
    %65 = arith.cmpi slt, %59, %64 : vector<512x128xi32>
    %66 = arith.andi %63, %65 : vector<512x128xi1>
    %c0_i32_28 = arith.constant 0 : i32
    %67 = vector.broadcast %c0_i32_28 : i32 to vector<512x128xi32>
    %68 = arith.cmpi sge, %61, %67 : vector<512x128xi32>
    %69 = arith.andi %66, %68 : vector<512x128xi1>
    %c16_i32_29 = arith.constant 16 : i32
    %70 = vector.broadcast %c16_i32_29 : i32 to vector<512x128xi32>
    %71 = arith.cmpi slt, %61, %70 : vector<512x128xi32>
    %72 = arith.andi %69, %71 : vector<512x128xi1>
    %cst_30 = arith.constant 0.000000e+00 : f32
    %73 = vector.broadcast %cst_30 : f32 to vector<512x128xf32>
    %74 = arith.select %72, %57, %73 : vector<512x128xi1>, vector<512x128xf32>
    %75 = arith.truncf %74 : vector<512x128xf32> to vector<512x128xbf16>
    %c0_31 = arith.constant 0 : index
    %c1 = arith.constant 1 : index
    %c0_32 = arith.constant 0 : index
    %c0_33 = arith.constant 0 : index
    %76 = vector.load %arg2[%c0_31, %c1, %c0_32, %c0_33] : memref<3x3x128x128xbf16, #tpu.memory_space<vmem>>, vector<1x1x128x128xbf16>
    %77 = vector.shape_cast %76 : vector<1x1x128x128xbf16> to vector<128x128xbf16>
    %cst_34 = arith.constant dense<0.000000e+00> : vector<512x128xf32>
    %78 = tpu.matmul %75, %77, %cst_34 {dimension_numbers = #tpu.dot_dimension_numbers<[1], [0], [0], [1], [0, 0, 1, 1], [], []>} : vector<512x128xbf16>, vector<128x128xbf16>, vector<512x128xf32> -> vector<512x128xf32>
    %79 = arith.addf %56, %78 : vector<512x128xf32>
    %c15_i32 = arith.constant 15 : i32
    %80 = tpu.dynamic_rotate %28 by %c15_i32 dim 0 : vector<512x128xf32>, i32 -> vector<512x128xf32>
    %c-1_i32_35 = arith.constant -1 : i32
    %81 = vector.broadcast %c-1_i32_35 : i32 to vector<512x128xi32>
    %82 = arith.addi %30, %81 : vector<512x128xi32>
    %c1_i32 = arith.constant 1 : i32
    %83 = vector.broadcast %c1_i32 : i32 to vector<512x128xi32>
    %84 = arith.addi %32, %83 : vector<512x128xi32>
    %c0_i32_36 = arith.constant 0 : i32
    %85 = vector.broadcast %c0_i32_36 : i32 to vector<512x128xi32>
    %86 = arith.cmpi sge, %82, %85 : vector<512x128xi32>
    %c16_i32_37 = arith.constant 16 : i32
    %87 = vector.broadcast %c16_i32_37 : i32 to vector<512x128xi32>
    %88 = arith.cmpi slt, %82, %87 : vector<512x128xi32>
    %89 = arith.andi %86, %88 : vector<512x128xi1>
    %c0_i32_38 = arith.constant 0 : i32
    %90 = vector.broadcast %c0_i32_38 : i32 to vector<512x128xi32>
    %91 = arith.cmpi sge, %84, %90 : vector<512x128xi32>
    %92 = arith.andi %89, %91 : vector<512x128xi1>
    %c16_i32_39 = arith.constant 16 : i32
    %93 = vector.broadcast %c16_i32_39 : i32 to vector<512x128xi32>
    %94 = arith.cmpi slt, %84, %93 : vector<512x128xi32>
    %95 = arith.andi %92, %94 : vector<512x128xi1>
    %cst_40 = arith.constant 0.000000e+00 : f32
    %96 = vector.broadcast %cst_40 : f32 to vector<512x128xf32>
    %97 = arith.select %95, %80, %96 : vector<512x128xi1>, vector<512x128xf32>
    %98 = arith.truncf %97 : vector<512x128xf32> to vector<512x128xbf16>
    %c0_41 = arith.constant 0 : index
    %c2 = arith.constant 2 : index
    %c0_42 = arith.constant 0 : index
    %c0_43 = arith.constant 0 : index
    %99 = vector.load %arg2[%c0_41, %c2, %c0_42, %c0_43] : memref<3x3x128x128xbf16, #tpu.memory_space<vmem>>, vector<1x1x128x128xbf16>
    %100 = vector.shape_cast %99 : vector<1x1x128x128xbf16> to vector<128x128xbf16>
    %cst_44 = arith.constant dense<0.000000e+00> : vector<512x128xf32>
    %101 = tpu.matmul %98, %100, %cst_44 {dimension_numbers = #tpu.dot_dimension_numbers<[1], [0], [0], [1], [0, 0, 1, 1], [], []>} : vector<512x128xbf16>, vector<128x128xbf16>, vector<512x128xf32> -> vector<512x128xf32>
    %102 = arith.addf %79, %101 : vector<512x128xf32>
    %c1_i32_45 = arith.constant 1 : i32
    %103 = tpu.dynamic_rotate %28 by %c1_i32_45 dim 0 : vector<512x128xf32>, i32 -> vector<512x128xf32>
    %c0_i32_46 = arith.constant 0 : i32
    %104 = vector.broadcast %c0_i32_46 : i32 to vector<512x128xi32>
    %105 = arith.addi %30, %104 : vector<512x128xi32>
    %c-1_i32_47 = arith.constant -1 : i32
    %106 = vector.broadcast %c-1_i32_47 : i32 to vector<512x128xi32>
    %107 = arith.addi %32, %106 : vector<512x128xi32>
    %c0_i32_48 = arith.constant 0 : i32
    %108 = vector.broadcast %c0_i32_48 : i32 to vector<512x128xi32>
    %109 = arith.cmpi sge, %105, %108 : vector<512x128xi32>
    %c16_i32_49 = arith.constant 16 : i32
    %110 = vector.broadcast %c16_i32_49 : i32 to vector<512x128xi32>
    %111 = arith.cmpi slt, %105, %110 : vector<512x128xi32>
    %112 = arith.andi %109, %111 : vector<512x128xi1>
    %c0_i32_50 = arith.constant 0 : i32
    %113 = vector.broadcast %c0_i32_50 : i32 to vector<512x128xi32>
    %114 = arith.cmpi sge, %107, %113 : vector<512x128xi32>
    %115 = arith.andi %112, %114 : vector<512x128xi1>
    %c16_i32_51 = arith.constant 16 : i32
    %116 = vector.broadcast %c16_i32_51 : i32 to vector<512x128xi32>
    %117 = arith.cmpi slt, %107, %116 : vector<512x128xi32>
    %118 = arith.andi %115, %117 : vector<512x128xi1>
    %cst_52 = arith.constant 0.000000e+00 : f32
    %119 = vector.broadcast %cst_52 : f32 to vector<512x128xf32>
    %120 = arith.select %118, %103, %119 : vector<512x128xi1>, vector<512x128xf32>
    %121 = arith.truncf %120 : vector<512x128xf32> to vector<512x128xbf16>
    %c1_53 = arith.constant 1 : index
    %c0_54 = arith.constant 0 : index
    %c0_55 = arith.constant 0 : index
    %c0_56 = arith.constant 0 : index
    %122 = vector.load %arg2[%c1_53, %c0_54, %c0_55, %c0_56] : memref<3x3x128x128xbf16, #tpu.memory_space<vmem>>, vector<1x1x128x128xbf16>
    %123 = vector.shape_cast %122 : vector<1x1x128x128xbf16> to vector<128x128xbf16>
    %cst_57 = arith.constant dense<0.000000e+00> : vector<512x128xf32>
    %124 = tpu.matmul %121, %123, %cst_57 {dimension_numbers = #tpu.dot_dimension_numbers<[1], [0], [0], [1], [0, 0, 1, 1], [], []>} : vector<512x128xbf16>, vector<128x128xbf16>, vector<512x128xf32> -> vector<512x128xf32>
    %125 = arith.addf %102, %124 : vector<512x128xf32>
    %c0_i32_58 = arith.constant 0 : i32
    %126 = vector.broadcast %c0_i32_58 : i32 to vector<512x128xi32>
    %127 = arith.addi %30, %126 : vector<512x128xi32>
    %c0_i32_59 = arith.constant 0 : i32
    %128 = vector.broadcast %c0_i32_59 : i32 to vector<512x128xi32>
    %129 = arith.addi %32, %128 : vector<512x128xi32>
    %c0_i32_60 = arith.constant 0 : i32
    %130 = vector.broadcast %c0_i32_60 : i32 to vector<512x128xi32>
    %131 = arith.cmpi sge, %127, %130 : vector<512x128xi32>
    %c16_i32_61 = arith.constant 16 : i32
    %132 = vector.broadcast %c16_i32_61 : i32 to vector<512x128xi32>
    %133 = arith.cmpi slt, %127, %132 : vector<512x128xi32>
    %134 = arith.andi %131, %133 : vector<512x128xi1>
    %c0_i32_62 = arith.constant 0 : i32
    %135 = vector.broadcast %c0_i32_62 : i32 to vector<512x128xi32>
    %136 = arith.cmpi sge, %129, %135 : vector<512x128xi32>
    %137 = arith.andi %134, %136 : vector<512x128xi1>
    %c16_i32_63 = arith.constant 16 : i32
    %138 = vector.broadcast %c16_i32_63 : i32 to vector<512x128xi32>
    %139 = arith.cmpi slt, %129, %138 : vector<512x128xi32>
    %140 = arith.andi %137, %139 : vector<512x128xi1>
    %cst_64 = arith.constant 0.000000e+00 : f32
    %141 = vector.broadcast %cst_64 : f32 to vector<512x128xf32>
    %142 = arith.select %140, %28, %141 : vector<512x128xi1>, vector<512x128xf32>
    %143 = arith.truncf %142 : vector<512x128xf32> to vector<512x128xbf16>
    %c1_65 = arith.constant 1 : index
    %c1_66 = arith.constant 1 : index
    %c0_67 = arith.constant 0 : index
    %c0_68 = arith.constant 0 : index
    %144 = vector.load %arg2[%c1_65, %c1_66, %c0_67, %c0_68] : memref<3x3x128x128xbf16, #tpu.memory_space<vmem>>, vector<1x1x128x128xbf16>
    %145 = vector.shape_cast %144 : vector<1x1x128x128xbf16> to vector<128x128xbf16>
    %cst_69 = arith.constant dense<0.000000e+00> : vector<512x128xf32>
    %146 = tpu.matmul %143, %145, %cst_69 {dimension_numbers = #tpu.dot_dimension_numbers<[1], [0], [0], [1], [0, 0, 1, 1], [], []>} : vector<512x128xbf16>, vector<128x128xbf16>, vector<512x128xf32> -> vector<512x128xf32>
    %147 = arith.addf %125, %146 : vector<512x128xf32>
    %c511_i32 = arith.constant 511 : i32
    %148 = tpu.dynamic_rotate %28 by %c511_i32 dim 0 : vector<512x128xf32>, i32 -> vector<512x128xf32>
    %c0_i32_70 = arith.constant 0 : i32
    %149 = vector.broadcast %c0_i32_70 : i32 to vector<512x128xi32>
    %150 = arith.addi %30, %149 : vector<512x128xi32>
    %c1_i32_71 = arith.constant 1 : i32
    %151 = vector.broadcast %c1_i32_71 : i32 to vector<512x128xi32>
    %152 = arith.addi %32, %151 : vector<512x128xi32>
    %c0_i32_72 = arith.constant 0 : i32
    %153 = vector.broadcast %c0_i32_72 : i32 to vector<512x128xi32>
    %154 = arith.cmpi sge, %150, %153 : vector<512x128xi32>
    %c16_i32_73 = arith.constant 16 : i32
    %155 = vector.broadcast %c16_i32_73 : i32 to vector<512x128xi32>
    %156 = arith.cmpi slt, %150, %155 : vector<512x128xi32>
    %157 = arith.andi %154, %156 : vector<512x128xi1>
    %c0_i32_74 = arith.constant 0 : i32
    %158 = vector.broadcast %c0_i32_74 : i32 to vector<512x128xi32>
    %159 = arith.cmpi sge, %152, %158 : vector<512x128xi32>
    %160 = arith.andi %157, %159 : vector<512x128xi1>
    %c16_i32_75 = arith.constant 16 : i32
    %161 = vector.broadcast %c16_i32_75 : i32 to vector<512x128xi32>
    %162 = arith.cmpi slt, %152, %161 : vector<512x128xi32>
    %163 = arith.andi %160, %162 : vector<512x128xi1>
    %cst_76 = arith.constant 0.000000e+00 : f32
    %164 = vector.broadcast %cst_76 : f32 to vector<512x128xf32>
    %165 = arith.select %163, %148, %164 : vector<512x128xi1>, vector<512x128xf32>
    %166 = arith.truncf %165 : vector<512x128xf32> to vector<512x128xbf16>
    %c1_77 = arith.constant 1 : index
    %c2_78 = arith.constant 2 : index
    %c0_79 = arith.constant 0 : index
    %c0_80 = arith.constant 0 : index
    %167 = vector.load %arg2[%c1_77, %c2_78, %c0_79, %c0_80] : memref<3x3x128x128xbf16, #tpu.memory_space<vmem>>, vector<1x1x128x128xbf16>
    %168 = vector.shape_cast %167 : vector<1x1x128x128xbf16> to vector<128x128xbf16>
    %cst_81 = arith.constant dense<0.000000e+00> : vector<512x128xf32>
    %169 = tpu.matmul %166, %168, %cst_81 {dimension_numbers = #tpu.dot_dimension_numbers<[1], [0], [0], [1], [0, 0, 1, 1], [], []>} : vector<512x128xbf16>, vector<128x128xbf16>, vector<512x128xf32> -> vector<512x128xf32>
    %170 = arith.addf %147, %169 : vector<512x128xf32>
    %c497_i32 = arith.constant 497 : i32
    %171 = tpu.dynamic_rotate %28 by %c497_i32 dim 0 : vector<512x128xf32>, i32 -> vector<512x128xf32>
    %c1_i32_82 = arith.constant 1 : i32
    %172 = vector.broadcast %c1_i32_82 : i32 to vector<512x128xi32>
    %173 = arith.addi %30, %172 : vector<512x128xi32>
    %c-1_i32_83 = arith.constant -1 : i32
    %174 = vector.broadcast %c-1_i32_83 : i32 to vector<512x128xi32>
    %175 = arith.addi %32, %174 : vector<512x128xi32>
    %c0_i32_84 = arith.constant 0 : i32
    %176 = vector.broadcast %c0_i32_84 : i32 to vector<512x128xi32>
    %177 = arith.cmpi sge, %173, %176 : vector<512x128xi32>
    %c16_i32_85 = arith.constant 16 : i32
    %178 = vector.broadcast %c16_i32_85 : i32 to vector<512x128xi32>
    %179 = arith.cmpi slt, %173, %178 : vector<512x128xi32>
    %180 = arith.andi %177, %179 : vector<512x128xi1>
    %c0_i32_86 = arith.constant 0 : i32
    %181 = vector.broadcast %c0_i32_86 : i32 to vector<512x128xi32>
    %182 = arith.cmpi sge, %175, %181 : vector<512x128xi32>
    %183 = arith.andi %180, %182 : vector<512x128xi1>
    %c16_i32_87 = arith.constant 16 : i32
    %184 = vector.broadcast %c16_i32_87 : i32 to vector<512x128xi32>
    %185 = arith.cmpi slt, %175, %184 : vector<512x128xi32>
    %186 = arith.andi %183, %185 : vector<512x128xi1>
    %cst_88 = arith.constant 0.000000e+00 : f32
    %187 = vector.broadcast %cst_88 : f32 to vector<512x128xf32>
    %188 = arith.select %186, %171, %187 : vector<512x128xi1>, vector<512x128xf32>
    %189 = arith.truncf %188 : vector<512x128xf32> to vector<512x128xbf16>
    %c2_89 = arith.constant 2 : index
    %c0_90 = arith.constant 0 : index
    %c0_91 = arith.constant 0 : index
    %c0_92 = arith.constant 0 : index
    %190 = vector.load %arg2[%c2_89, %c0_90, %c0_91, %c0_92] : memref<3x3x128x128xbf16, #tpu.memory_space<vmem>>, vector<1x1x128x128xbf16>
    %191 = vector.shape_cast %190 : vector<1x1x128x128xbf16> to vector<128x128xbf16>
    %cst_93 = arith.constant dense<0.000000e+00> : vector<512x128xf32>
    %192 = tpu.matmul %189, %191, %cst_93 {dimension_numbers = #tpu.dot_dimension_numbers<[1], [0], [0], [1], [0, 0, 1, 1], [], []>} : vector<512x128xbf16>, vector<128x128xbf16>, vector<512x128xf32> -> vector<512x128xf32>
    %193 = arith.addf %170, %192 : vector<512x128xf32>
    %c496_i32 = arith.constant 496 : i32
    %194 = tpu.dynamic_rotate %28 by %c496_i32 dim 0 : vector<512x128xf32>, i32 -> vector<512x128xf32>
    %c1_i32_94 = arith.constant 1 : i32
    %195 = vector.broadcast %c1_i32_94 : i32 to vector<512x128xi32>
    %196 = arith.addi %30, %195 : vector<512x128xi32>
    %c0_i32_95 = arith.constant 0 : i32
    %197 = vector.broadcast %c0_i32_95 : i32 to vector<512x128xi32>
    %198 = arith.addi %32, %197 : vector<512x128xi32>
    %c0_i32_96 = arith.constant 0 : i32
    %199 = vector.broadcast %c0_i32_96 : i32 to vector<512x128xi32>
    %200 = arith.cmpi sge, %196, %199 : vector<512x128xi32>
    %c16_i32_97 = arith.constant 16 : i32
    %201 = vector.broadcast %c16_i32_97 : i32 to vector<512x128xi32>
    %202 = arith.cmpi slt, %196, %201 : vector<512x128xi32>
    %203 = arith.andi %200, %202 : vector<512x128xi1>
    %c0_i32_98 = arith.constant 0 : i32
    %204 = vector.broadcast %c0_i32_98 : i32 to vector<512x128xi32>
    %205 = arith.cmpi sge, %198, %204 : vector<512x128xi32>
    %206 = arith.andi %203, %205 : vector<512x128xi1>
    %c16_i32_99 = arith.constant 16 : i32
    %207 = vector.broadcast %c16_i32_99 : i32 to vector<512x128xi32>
    %208 = arith.cmpi slt, %198, %207 : vector<512x128xi32>
    %209 = arith.andi %206, %208 : vector<512x128xi1>
    %cst_100 = arith.constant 0.000000e+00 : f32
    %210 = vector.broadcast %cst_100 : f32 to vector<512x128xf32>
    %211 = arith.select %209, %194, %210 : vector<512x128xi1>, vector<512x128xf32>
    %212 = arith.truncf %211 : vector<512x128xf32> to vector<512x128xbf16>
    %c2_101 = arith.constant 2 : index
    %c1_102 = arith.constant 1 : index
    %c0_103 = arith.constant 0 : index
    %c0_104 = arith.constant 0 : index
    %213 = vector.load %arg2[%c2_101, %c1_102, %c0_103, %c0_104] : memref<3x3x128x128xbf16, #tpu.memory_space<vmem>>, vector<1x1x128x128xbf16>
    %214 = vector.shape_cast %213 : vector<1x1x128x128xbf16> to vector<128x128xbf16>
    %cst_105 = arith.constant dense<0.000000e+00> : vector<512x128xf32>
    %215 = tpu.matmul %212, %214, %cst_105 {dimension_numbers = #tpu.dot_dimension_numbers<[1], [0], [0], [1], [0, 0, 1, 1], [], []>} : vector<512x128xbf16>, vector<128x128xbf16>, vector<512x128xf32> -> vector<512x128xf32>
    %216 = arith.addf %193, %215 : vector<512x128xf32>
    %c495_i32 = arith.constant 495 : i32
    %217 = tpu.dynamic_rotate %28 by %c495_i32 dim 0 : vector<512x128xf32>, i32 -> vector<512x128xf32>
    %c1_i32_106 = arith.constant 1 : i32
    %218 = vector.broadcast %c1_i32_106 : i32 to vector<512x128xi32>
    %219 = arith.addi %30, %218 : vector<512x128xi32>
    %c1_i32_107 = arith.constant 1 : i32
    %220 = vector.broadcast %c1_i32_107 : i32 to vector<512x128xi32>
    %221 = arith.addi %32, %220 : vector<512x128xi32>
    %c0_i32_108 = arith.constant 0 : i32
    %222 = vector.broadcast %c0_i32_108 : i32 to vector<512x128xi32>
    %223 = arith.cmpi sge, %219, %222 : vector<512x128xi32>
    %c16_i32_109 = arith.constant 16 : i32
    %224 = vector.broadcast %c16_i32_109 : i32 to vector<512x128xi32>
    %225 = arith.cmpi slt, %219, %224 : vector<512x128xi32>
    %226 = arith.andi %223, %225 : vector<512x128xi1>
    %c0_i32_110 = arith.constant 0 : i32
    %227 = vector.broadcast %c0_i32_110 : i32 to vector<512x128xi32>
    %228 = arith.cmpi sge, %221, %227 : vector<512x128xi32>
    %229 = arith.andi %226, %228 : vector<512x128xi1>
    %c16_i32_111 = arith.constant 16 : i32
    %230 = vector.broadcast %c16_i32_111 : i32 to vector<512x128xi32>
    %231 = arith.cmpi slt, %221, %230 : vector<512x128xi32>
    %232 = arith.andi %229, %231 : vector<512x128xi1>
    %cst_112 = arith.constant 0.000000e+00 : f32
    %233 = vector.broadcast %cst_112 : f32 to vector<512x128xf32>
    %234 = arith.select %232, %217, %233 : vector<512x128xi1>, vector<512x128xf32>
    %235 = arith.truncf %234 : vector<512x128xf32> to vector<512x128xbf16>
    %c2_113 = arith.constant 2 : index
    %c2_114 = arith.constant 2 : index
    %c0_115 = arith.constant 0 : index
    %c0_116 = arith.constant 0 : index
    %236 = vector.load %arg2[%c2_113, %c2_114, %c0_115, %c0_116] : memref<3x3x128x128xbf16, #tpu.memory_space<vmem>>, vector<1x1x128x128xbf16>
    %237 = vector.shape_cast %236 : vector<1x1x128x128xbf16> to vector<128x128xbf16>
    %cst_117 = arith.constant dense<0.000000e+00> : vector<512x128xf32>
    %238 = tpu.matmul %235, %237, %cst_117 {dimension_numbers = #tpu.dot_dimension_numbers<[1], [0], [0], [1], [0, 0, 1, 1], [], []>} : vector<512x128xbf16>, vector<128x128xbf16>, vector<512x128xf32> -> vector<512x128xf32>
    %239 = arith.addf %216, %238 : vector<512x128xf32>
    %cst_118 = arith.constant dense<0.000000e+00> : vector<128xf32>
    %240 = vector.multi_reduction <add>, %239, %cst_118 [0] : vector<512x128xf32> to vector<128xf32>
    %241 = vector.shape_cast %240 : vector<128xf32> to vector<1x128xf32>
    %cst_119 = arith.constant 5.120000e+02 : f32
    %242 = vector.broadcast %cst_119 : f32 to vector<1x128xf32>
    %243 = arith.divf %241, %242 : vector<1x128xf32>
    %244 = vector.broadcast %243 : vector<1x128xf32> to vector<512x128xf32>
    %245 = arith.subf %239, %244 : vector<512x128xf32>
    %246 = arith.mulf %245, %245 : vector<512x128xf32>
    %cst_120 = arith.constant dense<0.000000e+00> : vector<128xf32>
    %247 = vector.multi_reduction <add>, %246, %cst_120 [0] : vector<512x128xf32> to vector<128xf32>
    %248 = vector.shape_cast %247 : vector<128xf32> to vector<1x128xf32>
    %cst_121 = arith.constant 5.120000e+02 : f32
    %249 = vector.broadcast %cst_121 : f32 to vector<1x128xf32>
    %250 = arith.divf %248, %249 : vector<1x128xf32>
    %c0_122 = arith.constant 0 : index
    %c0_123 = arith.constant 0 : index
    %251 = vector.load %arg6[%c0_122, %c0_123] : memref<1x128xf32, #tpu.memory_space<vmem>>, vector<1x128xf32>
    %cst_124 = arith.constant 9.99999974E-6 : f32
    %252 = vector.broadcast %cst_124 : f32 to vector<1x128xf32>
    %253 = arith.addf %250, %252 : vector<1x128xf32>
    %254 = math.rsqrt %253 : vector<1x128xf32>
    %255 = arith.mulf %251, %254 : vector<1x128xf32>
    %c0_125 = arith.constant 0 : index
    %c0_126 = arith.constant 0 : index
    %256 = vector.load %arg7[%c0_125, %c0_126] : memref<1x128xf32, #tpu.memory_space<vmem>>, vector<1x128xf32>
    %257 = arith.mulf %243, %255 : vector<1x128xf32>
    %258 = arith.subf %256, %257 : vector<1x128xf32>
    %259 = vector.broadcast %255 : vector<1x128xf32> to vector<512x128xf32>
    %260 = arith.mulf %239, %259 : vector<512x128xf32>
    %261 = vector.broadcast %258 : vector<1x128xf32> to vector<512x128xf32>
    %262 = arith.addf %260, %261 : vector<512x128xf32>
    %cst_127 = arith.constant 0.000000e+00 : f32
    %263 = vector.broadcast %cst_127 : f32 to vector<512x128xf32>
    %264 = arith.maximumf %262, %263 : vector<512x128xf32>
    %265 = arith.truncf %264 : vector<512x128xf32> to vector<512x128xbf16>
    %c0_128 = arith.constant 0 : index
    %c0_129 = arith.constant 0 : index
    %266 = vector.load %arg3[%c0_128, %c0_129] : memref<128x128xbf16, #tpu.memory_space<vmem>>, vector<128x128xbf16>
    %cst_130 = arith.constant dense<0.000000e+00> : vector<512x128xf32>
    %267 = tpu.matmul %265, %266, %cst_130 {dimension_numbers = #tpu.dot_dimension_numbers<[1], [0], [0], [1], [0, 0, 1, 1], [], []>} : vector<512x128xbf16>, vector<128x128xbf16>, vector<512x128xf32> -> vector<512x128xf32>
    %cst_131 = arith.constant dense<0.000000e+00> : vector<128xf32>
    %268 = vector.multi_reduction <add>, %267, %cst_131 [0] : vector<512x128xf32> to vector<128xf32>
    %269 = vector.shape_cast %268 : vector<128xf32> to vector<1x128xf32>
    %cst_132 = arith.constant 5.120000e+02 : f32
    %270 = vector.broadcast %cst_132 : f32 to vector<1x128xf32>
    %271 = arith.divf %269, %270 : vector<1x128xf32>
    %272 = vector.broadcast %271 : vector<1x128xf32> to vector<512x128xf32>
    %273 = arith.subf %267, %272 : vector<512x128xf32>
    %274 = arith.mulf %273, %273 : vector<512x128xf32>
    %cst_133 = arith.constant dense<0.000000e+00> : vector<128xf32>
    %275 = vector.multi_reduction <add>, %274, %cst_133 [0] : vector<512x128xf32> to vector<128xf32>
    %276 = vector.shape_cast %275 : vector<128xf32> to vector<1x128xf32>
    %cst_134 = arith.constant 5.120000e+02 : f32
    %277 = vector.broadcast %cst_134 : f32 to vector<1x128xf32>
    %278 = arith.divf %276, %277 : vector<1x128xf32>
    %c0_135 = arith.constant 0 : index
    %c0_136 = arith.constant 0 : index
    %279 = vector.load %arg8[%c0_135, %c0_136] : memref<1x128xf32, #tpu.memory_space<vmem>>, vector<1x128xf32>
    %cst_137 = arith.constant 9.99999974E-6 : f32
    %280 = vector.broadcast %cst_137 : f32 to vector<1x128xf32>
    %281 = arith.addf %278, %280 : vector<1x128xf32>
    %282 = math.rsqrt %281 : vector<1x128xf32>
    %283 = arith.mulf %279, %282 : vector<1x128xf32>
    %c0_138 = arith.constant 0 : index
    %c0_139 = arith.constant 0 : index
    %284 = vector.load %arg9[%c0_138, %c0_139] : memref<1x128xf32, #tpu.memory_space<vmem>>, vector<1x128xf32>
    %285 = arith.mulf %271, %283 : vector<1x128xf32>
    %286 = arith.subf %284, %285 : vector<1x128xf32>
    %287 = vector.broadcast %283 : vector<1x128xf32> to vector<512x128xf32>
    %288 = arith.mulf %267, %287 : vector<512x128xf32>
    %289 = vector.broadcast %286 : vector<1x128xf32> to vector<512x128xf32>
    %290 = arith.addf %288, %289 : vector<512x128xf32>
    %291 = arith.addf %290, %0 : vector<512x128xf32>
    %cst_140 = arith.constant 0.000000e+00 : f32
    %292 = vector.broadcast %cst_140 : f32 to vector<512x128xf32>
    %293 = arith.maximumf %291, %292 : vector<512x128xf32>
    %c0_141 = arith.constant 0 : index
    %c0_142 = arith.constant 0 : index
    %294 = vector.load %arg10[%c0_141, %c0_142] : memref<512x128xf32, #tpu.memory_space<vmem>>, vector<512x128xf32>
    tpu.vector_store %arg10[%c0_141, %c0_142], %293 {strides = array<i32>} : memref<512x128xf32, #tpu.memory_space<vmem>>, vector<512x128xf32>,
    return
  }
}

</mosaic_0001>

<bundles_post_ra>
// kernel: my_res_block_forward.1
= control target key start
LH: loop header
LB: loop body
LE: loop exit
PB: predicated region body
PF: predicated region fallthrough
CT: control target
= control target key end

     0   :  { %vm9430_vm3 = vmmov 1   ;;  %s15209_s1 = inlined_call_operand.vmem [shape: bf16[128,128], index: 1, kind: input, shape index: {}]   ;;  %s15210_s0 = inlined_call_operand.vmem [shape: f32[512,128], index: 0, kind: input, shape index: {}]   ;;  %s15211_s2 = inlined_call_operand.vmem [shape: bf16[3,3,128,128], index: 2, kind: input, shape index: {}]   ;;  %s15212_s4 = inlined_call_operand.vmem [shape: f32[1,128], index: 4, kind: input, shape index: {}]   ;;  %s15213_s5 = inlined_call_operand.vmem [shape: f32[1,128], index: 5, kind: input, shape index: {}]   ;;  %s15214_s3 = inlined_call_operand.vmem [shape: bf16[128,128], index: 3, kind: input, shape index: {}]   ;;  %s15215_s6 = inlined_call_operand.vmem [shape: f32[1,128], index: 6, kind: input, shape index: {}]   ;;  %s15216_s7 = inlined_call_operand.vmem [shape: f32[1,128], index: 7, kind: input, shape index: {}]   ;;  %s15217_s8 = inlined_call_operand.vmem [shape: f32[1,128], index: 8, kind: input, shape index: {}]   ;;  %s15218_s9 = inlined_call_operand.vmem [shape: f32[1,128], index: 9, kind: input, shape index: {}]   ;;  %s15219_s10 = inlined_call_operand.vmem [shape: f32[512,128], index: 10, kind: output, shape index: {}]  }
   0x1   :  { %v9263_v0 = vld [vmem:[%s15209_s1] sm:$0xff]   ;;  %v9264_v1 = vld [vmem:[%s15209_s1 + $0x8] sm:$0xff]   ;;  %v9265_v2 = vld [vmem:[%s15209_s1 + $0x10] sm:$0xff]  }
   0x2   :  { %7853 = vmatprep.subr.bf16.mxu0 %v9263_v0  ;;  %v9266_v3 = vld [vmem:[%s15209_s1 + $0x18] sm:$0xff]   ;;  %v36_v4 = vld [vmem:[%s15210_s0] sm:$0xff]  ;;  %v37_v5 = vld [vmem:[%s15210_s0 + $0x8] sm:$0xff] }
   0x3   :  { %7854 = vmatpush3.bf16.msra.mxu0 %v9263_v0  ;;  %v100_v6 = vpack.c.bf16 %v37_v5, %v36_v4  ;;  %v9267_v7 = vld [vmem:[%s15209_s1 + $0x20] sm:$0xff]   ;;  %v9268_v8 = vld [vmem:[%s15209_s1 + $0x28] sm:$0xff]   ;;  %v9269_v9 = vld [vmem:[%s15209_s1 + $0x30] sm:$0xff]  }
   0x4   :  { %7855 = vmatprep.subr.bf16.mxu0 %v9264_v1  ;;  %v9270_v10 = vld [vmem:[%s15209_s1 + $0x38] sm:$0xff]   ;;  %v38_v11 = vld [vmem:[%s15210_s0 + $0x10] sm:$0xff]  ;;  %v40_v13 = vld [vmem:[%s15210_s0 + $0x20] sm:$0xff] }
   0x5   :  { %7869 = vmatprep.mubr.bf16.mxu0 %v100_v6  ;;  %v39_v12 = vld [vmem:[%s15210_s0 + $0x18] sm:$0xff]  ;;  %v41_v14 = vld [vmem:[%s15210_s0 + $0x28] sm:$0xff]  ;;  %v42_v17 = vld [vmem:[%s15210_s0 + $0x30] sm:$0xff] }
   0x6   :  { %v101_v15 = vpack.c.bf16 %v39_v12, %v38_v11  ;;  %v102_v16 = vpack.c.bf16 %v41_v14, %v40_v13  ;;  %v43_v18 = vld [vmem:[%s15210_s0 + $0x38] sm:$0xff]  ;;  %v44_v19 = vld [vmem:[%s15210_s0 + $0x40] sm:$0xff]  ;;  %v45_v20 = vld [vmem:[%s15210_s0 + $0x48] sm:$0xff] }
   0x7   :  { %7856 = vmatpush3.bf16.msra.mxu0 %v9264_v1  ;;  %v103_v21 = vpack.c.bf16 %v43_v18, %v42_v17  ;;  %v104_v22 = vpack.c.bf16 %v45_v20, %v44_v19  ;;  %v46_v23 = vld [vmem:[%s15210_s0 + $0x50] sm:$0xff]  ;;  %v47_v24 = vld [vmem:[%s15210_s0 + $0x58] sm:$0xff]  ;;  %v48_v25 = vld [vmem:[%s15210_s0 + $0x60] sm:$0xff] }
   0x8   :  { %7857 = vmatprep.subr.bf16.mxu0 %v9265_v2  ;;  %v49_v26 = vld [vmem:[%s15210_s0 + $0x68] sm:$0xff]  ;;  %v105_v27 = vpack.c.bf16 %v47_v24, %v46_v23  ;;  %v50_v29 = vld [vmem:[%s15210_s0 + $0x70] sm:$0xff]  ;;  %v51_v30 = vld [vmem:[%s15210_s0 + $0x78] sm:$0xff] }
   0x9   :  { %v106_v28 = vpack.c.bf16 %v49_v26, %v48_v25  ;;  %v52_v31 = vld [vmem:[%s15210_s0 + $0x80] sm:$0xff]  ;;  %v53_v32 = vld [vmem:[%s15210_s0 + $0x88] sm:$0xff]  ;;  %v107_v33 = vpack.c.bf16 %v51_v30, %v50_v29  ;;  %v54_v35 = vld [vmem:[%s15210_s0 + $0x90] sm:$0xff] }
   0xa   :  { %v108_v34 = vpack.c.bf16 %v53_v32, %v52_v31  ;;  %v55_v36 = vld [vmem:[%s15210_s0 + $0x98] sm:$0xff]  ;;  %v56_v37 = vld [vmem:[%s15210_s0 + $0xa0] sm:$0xff]  ;;  %v57_v38 = vld [vmem:[%s15210_s0 + $0xa8] sm:$0xff] }
   0xb   :  { %7858 = vmatpush3.bf16.msra.mxu0 %v9265_v2  ;;  %v109_v39 = vpack.c.bf16 %v55_v36, %v54_v35  ;;  %v110_v40 = vpack.c.bf16 %v57_v38, %v56_v37  ;;  %v58_v41 = vld [vmem:[%s15210_s0 + $0xb0] sm:$0xff]  ;;  %v59_v42 = vld [vmem:[%s15210_s0 + $0xb8] sm:$0xff]  ;;  %v60_v43 = vld [vmem:[%s15210_s0 + $0xc0] sm:$0xff] }
   0xc   :  { %7859 = vmatprep.subr.bf16.mxu0 %v9266_v3  ;;  %v61_v44 = vld [vmem:[%s15210_s0 + $0xc8] sm:$0xff]  ;;  %v111_v45 = vpack.c.bf16 %v59_v42, %v58_v41  ;;  %v62_v47 = vld [vmem:[%s15210_s0 + $0xd0] sm:$0xff]  ;;  %v63_v48 = vld [vmem:[%s15210_s0 + $0xd8] sm:$0xff] }
   0xd   :  { %v112_v46 = vpack.c.bf16 %v61_v44, %v60_v43  ;;  %v64_v49 = vld [vmem:[%s15210_s0 + $0xe0] sm:$0xff]  ;;  %v65_v50 = vld [vmem:[%s15210_s0 + $0xe8] sm:$0xff]  ;;  %v113_v51 = vpack.c.bf16 %v63_v48, %v62_v47  ;;  %v66_v53 = vld [vmem:[%s15210_s0 + $0xf0] sm:$0xff] }
   0xe   :  { %v114_v52 = vpack.c.bf16 %v65_v50, %v64_v49  ;;  %v67_v54 = vld [vmem:[%s15210_s0 + $0xf8] sm:$0xff]  ;;  %v68_v55 = vld [vmem:[%s15210_s0 + $0x100] sm:$0xff]  ;;  %v69_v56 = vld [vmem:[%s15210_s0 + $0x108] sm:$0xff] }
   0xf   :  { %7860 = vmatpush3.bf16.msra.mxu0 %v9266_v3  ;;  %v115_v57 = vpack.c.bf16 %v67_v54, %v66_v53  ;;  %v116_v58 = vpack.c.bf16 %v69_v56, %v68_v55  ;;  %v70_v59 = vld [vmem:[%s15210_s0 + $0x110] sm:$0xff]  ;;  %v71_v60 = vld [vmem:[%s15210_s0 + $0x118] sm:$0xff]  ;;  %v72_v61 = vld [vmem:[%s15210_s0 + $0x120] sm:$0xff] }
  0x10   :  { %7861 = vmatprep.subr.bf16.mxu0 %v9267_v7  ;;  %v73_v62 = vld [vmem:[%s15210_s0 + $0x128] sm:$0xff]  ;;  %v117_v63 = vpack.c.bf16 %v71_v60, %v70_v59  ;;  %v74_v1 = vld [vmem:[%s15210_s0 + $0x130] sm:$0xff]  ;;  %v75_v2 = vld [vmem:[%s15210_s0 + $0x138] sm:$0xff] }
  0x11   :  { %v118_v0 = vpack.c.bf16 %v73_v62, %v72_v61  ;;  %v76_v3 = vld [vmem:[%s15210_s0 + $0x140] sm:$0xff]  ;;  %v77_v4 = vld [vmem:[%s15210_s0 + $0x148] sm:$0xff]  ;;  %v119_v5 = vpack.c.bf16 %v75_v2, %v74_v1  ;;  %v82_v13 = vld [vmem:[%s15210_s0 + $0x170] sm:$0xff] }
  0x12   :  { %v120_v6 = vpack.c.bf16 %v77_v4, %v76_v3  ;;  %v83_v14 = vld [vmem:[%s15210_s0 + $0x178] sm:$0xff]  ;;  %v86_v19 = vld [vmem:[%s15210_s0 + $0x190] sm:$0xff] }
  0x13   :  { %7862 = vmatpush3.bf16.msra.mxu0 %v9267_v7  ;;  %v78_v7 = vld [vmem:[%s15210_s0 + $0x150] sm:$0xff]  ;;  %v123_v17 = vpack.c.bf16 %v83_v14, %v82_v13  ;;  %v87_v20 = vld [vmem:[%s15210_s0 + $0x198] sm:$0xff] }
  0x14   :  { %7863 = vmatprep.subr.bf16.mxu0 %v9268_v8  ;;  %v125_v23 = vpack.c.bf16 %v87_v20, %v86_v19  ;;  %v90_v25 = vld [vmem:[%s15210_s0 + $0x1b0] sm:$0xff]  ;;  %v91_v26 = vld [vmem:[%s15210_s0 + $0x1b8] sm:$0xff] }
  0x15   :  { %v127_v29 = vpack.c.bf16 %v91_v26, %v90_v25  ;;  %v94_v31 = vld [vmem:[%s15210_s0 + $0x1d0] sm:$0xff]  ;;  %v95_v32 = vld [vmem:[%s15210_s0 + $0x1d8] sm:$0xff] }
  0x16   :  { %v129_v35 = vpack.c.bf16 %v95_v32, %v94_v31  ;;  %v98_v37 = vld [vmem:[%s15210_s0 + $0x1f0] sm:$0xff]  ;;  %v99_v38 = vld [vmem:[%s15210_s0 + $0x1f8] sm:$0xff] }
  0x17   :  { %7864 = vmatpush3.bf16.msra.mxu0 %v9268_v8  ;;  %v79_v8 = vld [vmem:[%s15210_s0 + $0x158] sm:$0xff] }
  0x18   :  { %7865 = vmatprep.subr.bf16.mxu0 %v9269_v9  ;;  %v121_v11 = vpack.c.bf16 %v79_v8, %v78_v7 }
  0x1b   :  { %7866 = vmatpush3.bf16.msra.mxu0 %v9269_v9  ;;  %v80_v9 = vld [vmem:[%s15210_s0 + $0x160] sm:$0xff] }
  0x1c   :  { %7867 = vmatprep.subr.bf16.mxu0 %v9270_v10 }
  0x1f   :  { %7868 = vmatpush3.bf16.msra.mxu0 %v9270_v10  ;;  %v81_v10 = vld [vmem:[%s15210_s0 + $0x168] sm:$0xff] }
  0x20   :  { %v122_v12 = vpack.c.bf16 %v81_v10, %v80_v9 }
  0x22   :  { %7870 = vmatmul.mubr.bf16.vlgmr.msra.gmra.mrb[0].mxu0 %v101_v15  ;;  %v84_v15 = vld [vmem:[%s15210_s0 + $0x180] sm:$0xff] }
  0x23   :  { %7873 = vmatprep.mubr.bf16.mxu0 %v102_v16  ;;  %v85_v16 = vld [vmem:[%s15210_s0 + $0x188] sm:$0xff] }
  0x24   :  { %v124_v18 = vpack.c.bf16 %v85_v16, %v84_v15 }
  0x2a   :  { %7874 = vmatmul.mubr.bf16.gmra.mrb[4].mxu0 %v103_v21  ;;  %v88_v21 = vld [vmem:[%s15210_s0 + $0x1a0] sm:$0xff] }
  0x2b   :  { %7877 = vmatprep.mubr.bf16.mxu0 %v104_v22  ;;  %v89_v22 = vld [vmem:[%s15210_s0 + $0x1a8] sm:$0xff] }
  0x2c   :  { %v126_v24 = vpack.c.bf16 %v89_v22, %v88_v21 }
  0x32   :  { %7878 = vmatmul.mubr.bf16.gmra.mrb[8].mxu0 %v105_v27  ;;  %v92_v27 = vld [vmem:[%s15210_s0 + $0x1c0] sm:$0xff] }
  0x33   :  { %7881 = vmatprep.mubr.bf16.mxu0 %v106_v28  ;;  %v93_v28 = vld [vmem:[%s15210_s0 + $0x1c8] sm:$0xff] }
  0x34   :  { %v128_v30 = vpack.c.bf16 %v93_v28, %v92_v27 }
  0x3a   :  { %7882 = vmatmul.mubr.bf16.gmra.mrb[12].mxu0 %v107_v33  ;;  %v96_v33 = vld [vmem:[%s15210_s0 + $0x1e0] sm:$0xff] }
  0x3b   :  { %7885 = vmatprep.mubr.bf16.mxu0 %v108_v34  ;;  %v97_v34 = vld [vmem:[%s15210_s0 + $0x1e8] sm:$0xff] }
  0x3c   :  { %v130_v36 = vpack.c.bf16 %v97_v34, %v96_v33 }
  0x42   :  { %7886 = vmatmul.mubr.bf16.gmra.mrb[16].mxu0 %v109_v39  ;;  %v131_v39 = vpack.c.bf16 %v99_v38, %v98_v37 }
  0x43   :  { %7889 = vmatprep.mubr.bf16.mxu0 %v110_v40 }
  0x4a   :  { %7890 = vmatmul.mubr.bf16.gmra.mrb[20].mxu0 %v111_v45 }
  0x4b   :  { %7893 = vmatprep.mubr.bf16.mxu0 %v112_v46 }
  0x52   :  { %7894 = vmatmul.mubr.bf16.gmra.mrb[24].mxu0 %v113_v51 }
  0x53   :  { %7897 = vmatprep.mubr.bf16.mxu0 %v114_v52 }
  0x5a   :  { %7898 = vmatmul.mubr.bf16.gmra.mrb[28].mxu0 %v115_v57 }
  0x5b   :  { %7901 = vmatprep.mubr.bf16.mxu0 %v116_v58 }
  0x62   :  { %7902 = vmatmul.mubr.bf16.gmra.mrb[32].mxu0 %v117_v63 }
  0x63   :  { %7905 = vmatprep.mubr.bf16.mxu0 %v118_v0 }
  0x6a   :  { %7906 = vmatmul.mubr.bf16.gmra.mrb[36].mxu0 %v119_v5 }
  0x6b   :  { %7909 = vmatprep.mubr.bf16.mxu0 %v120_v6 }
  0x72   :  { %7910 = vmatmul.mubr.bf16.gmra.mrb[40].mxu0 %v121_v11 }
  0x73   :  { %7913 = vmatprep.mubr.bf16.mxu0 %v122_v12 }
  0x7a   :  { %7914 = vmatmul.mubr.bf16.gmra.mrb[44].mxu0 %v123_v17 }
  0x7b   :  { %7917 = vmatprep.mubr.bf16.mxu0 %v124_v18 }
  0x82   :  { %7918 = vmatmul.mubr.bf16.gmra.mrb[48].mxu0 %v125_v23 }
  0x83   :  { %7921 = vmatprep.mubr.bf16.mxu0 %v126_v24 }
  0x8a   :  { %7922 = vmatmul.mubr.bf16.gmra.mrb[52].mxu0 %v127_v29 }
  0x8b   :  { %7925 = vmatprep.mubr.bf16.mxu0 %v128_v30 }
  0x92   :  { %7926 = vmatmul.mubr.bf16.gmra.mrb[56].mxu0 %v129_v35 }
  0x93   :  { %7929 = vmatprep.mubr.bf16.mxu0 %v130_v36 }
  0x9a   :  { %7930 = vmatmul.mubr.bf16.gmra.mrb[60].mxu0 %v131_v39 }
  0xf5   :  { %v9702_v40 = vpop.f32.mrb[0].mxu0 }
  0xf6   :  { %15541 = vst [vmem:[#allocation2_spill] sm:$0xff] %v9702_v40  ;;  %v9704_v41 = vpop.f32.mrb[1].mxu0 }
  0xf7   :  { %v9706_v42 = vpop.f32.mrb[2].mxu0 }
  0xf8   :  { %15542 = vst [vmem:[#allocation3_spill] sm:$0xff] %v9706_v42  ;;  %v9708_v43 = vpop.f32.mrb[3].mxu0 }
  0xf9   :  { %15543 = vst [vmem:[#allocation4_spill] sm:$0xff] %v9708_v43  ;;  %v485_v44 = vadd.f32 %v9708_v43, %v9704_v41 }
  0xfb   :  { %v486_v45 = vadd.f32 %v9702_v40, %v485_v44 }
  0xfd   :  { %v9713_v46 = vpop.f32.mrb[4].mxu0  ;;  %v487_v47 = vadd.f32 %v9706_v42, %v486_v45 }
  0xfe   :  { %v9716_v48 = vpop.f32.mrb[5].mxu0 }
  0xff   :  { %15544 = vst [vmem:[#allocation5_spill] sm:$0xff] %v9716_v48  ;;  %v488_v49 = vadd.f32 %v487_v47, %v9716_v48  ;;  %v9719_v50 = vpop.f32.mrb[6].mxu0 }
 0x100   :  { %v9721_v51 = vpop.f32.mrb[7].mxu0 }
 0x101   :  { %v489_v52 = vadd.f32 %v488_v49, %v9721_v51 }
 0x103   :  { %v490_v53 = vadd.f32 %v9713_v46, %v489_v52 }
 0x105   :  { %v9725_v54 = vpop.f32.mrb[8].mxu0  ;;  %v491_v55 = vadd.f32 %v9719_v50, %v490_v53 }
 0x106   :  { %v9728_v56 = vpop.f32.mrb[9].mxu0 }
 0x107   :  { %v492_v57 = vadd.f32 %v491_v55, %v9728_v56  ;;  %v9731_v58 = vpop.f32.mrb[10].mxu0 }
 0x108   :  { %v9733_v59 = vpop.f32.mrb[11].mxu0 }
 0x109   :  { %v493_v60 = vadd.f32 %v492_v57, %v9733_v59 }
 0x10b   :  { %v494_v61 = vadd.f32 %v9725_v54, %v493_v60 }
 0x10d   :  { %v9737_v62 = vpop.f32.mrb[12].mxu0  ;;  %v495_v63 = vadd.f32 %v9731_v58, %v494_v61 }
 0x10e   :  { %v9740_v0 = vpop.f32.mrb[13].mxu0 }
 0x10f   :  { %v496_v1 = vadd.f32 %v495_v63, %v9740_v0  ;;  %v9743_v2 = vpop.f32.mrb[14].mxu0 }
 0x110   :  { %v9745_v3 = vpop.f32.mrb[15].mxu0 }
 0x111   :  { %v497_v4 = vadd.f32 %v496_v1, %v9745_v3 }
 0x113   :  { %v498_v5 = vadd.f32 %v9737_v62, %v497_v4 }
 0x115   :  { %v9749_v6 = vpop.f32.mrb[16].mxu0  ;;  %v499_v7 = vadd.f32 %v9743_v2, %v498_v5 }
 0x116   :  { %v9752_v8 = vpop.f32.mrb[17].mxu0 }
 0x117   :  { %v500_v9 = vadd.f32 %v499_v7, %v9752_v8  ;;  %v9755_v10 = vpop.f32.mrb[18].mxu0 }
 0x118   :  { %v9757_v11 = vpop.f32.mrb[19].mxu0 }
 0x119   :  { %v501_v12 = vadd.f32 %v500_v9, %v9757_v11 }
 0x11b   :  { %v502_v13 = vadd.f32 %v9749_v6, %v501_v12 }
 0x11d   :  { %v9761_v14 = vpop.f32.mrb[20].mxu0  ;;  %v503_v15 = vadd.f32 %v9755_v10, %v502_v13 }
 0x11e   :  { %v9764_v16 = vpop.f32.mrb[21].mxu0 }
 0x11f   :  { %v504_v17 = vadd.f32 %v503_v15, %v9764_v16  ;;  %v9767_v18 = vpop.f32.mrb[22].mxu0 }
 0x120   :  { %v9769_v19 = vpop.f32.mrb[23].mxu0 }
 0x121   :  { %v505_v20 = vadd.f32 %v504_v17, %v9769_v19 }
 0x123   :  { %v506_v21 = vadd.f32 %v9761_v14, %v505_v20 }
 0x125   :  { %v9773_v22 = vpop.f32.mrb[24].mxu0  ;;  %v507_v23 = vadd.f32 %v9767_v18, %v506_v21 }
 0x126   :  { %v9776_v24 = vpop.f32.mrb[25].mxu0 }
 0x127   :  { %v508_v25 = vadd.f32 %v507_v23, %v9776_v24  ;;  %v9779_v26 = vpop.f32.mrb[26].mxu0 }
 0x128   :  { %v9781_v27 = vpop.f32.mrb[27].mxu0 }
 0x129   :  { %v509_v28 = vadd.f32 %v508_v25, %v9781_v27 }
 0x12b   :  { %v510_v29 = vadd.f32 %v9773_v22, %v509_v28 }
 0x12d   :  { %v9785_v30 = vpop.f32.mrb[28].mxu0  ;;  %v511_v31 = vadd.f32 %v9779_v26, %v510_v29 }
 0x12e   :  { %v9788_v32 = vpop.f32.mrb[29].mxu0 }
 0x12f   :  { %v512_v33 = vadd.f32 %v511_v31, %v9788_v32  ;;  %v9791_v34 = vpop.f32.mrb[30].mxu0 }
 0x130   :  { %v9793_v35 = vpop.f32.mrb[31].mxu0 }
 0x131   :  { %v513_v36 = vadd.f32 %v512_v33, %v9793_v35 }
 0x133   :  { %v514_v37 = vadd.f32 %v9785_v30, %v513_v36 }
 0x135   :  { %v9797_v38 = vpop.f32.mrb[32].mxu0  ;;  %v515_v39 = vadd.f32 %v9791_v34, %v514_v37 }
 0x136   :  { %v9800_v44 = vpop.f32.mrb[33].mxu0 }
 0x137   :  { %v516_v45 = vadd.f32 %v515_v39, %v9800_v44  ;;  %v9803_v47 = vpop.f32.mrb[34].mxu0 }
 0x138   :  { %v9805_v49 = vpop.f32.mrb[35].mxu0 }
 0x139   :  { %v517_v52 = vadd.f32 %v516_v45, %v9805_v49 }
 0x13b   :  { %v518_v53 = vadd.f32 %v9797_v38, %v517_v52 }
 0x13d   :  { %v9809_v55 = vpop.f32.mrb[36].mxu0  ;;  %v519_v57 = vadd.f32 %v9803_v47, %v518_v53 }
 0x13e   :  { %v9812_v60 = vpop.f32.mrb[37].mxu0 }
 0x13f   :  { %v520_v61 = vadd.f32 %v519_v57, %v9812_v60  ;;  %v9815_v63 = vpop.f32.mrb[38].mxu0 }
 0x140   :  { %v9817_v1 = vpop.f32.mrb[39].mxu0 }
 0x141   :  { %v521_v4 = vadd.f32 %v520_v61, %v9817_v1 }
 0x143   :  { %v522_v5 = vadd.f32 %v9809_v55, %v521_v4 }
 0x145   :  { %v9821_v7 = vpop.f32.mrb[40].mxu0  ;;  %v523_v9 = vadd.f32 %v9815_v63, %v522_v5 }
 0x146   :  { %v9824_v12 = vpop.f32.mrb[41].mxu0 }
 0x147   :  { %v524_v13 = vadd.f32 %v523_v9, %v9824_v12  ;;  %v9827_v15 = vpop.f32.mrb[42].mxu0 }
 0x148   :  { %15545 = vst [vmem:[#allocation6_spill] sm:$0xff] %v9827_v15  ;;  %v9829_v17 = vpop.f32.mrb[43].mxu0 }
 0x149   :  { %v525_v20 = vadd.f32 %v524_v13, %v9829_v17 }
 0x14b   :  { %v526_v21 = vadd.f32 %v9821_v7, %v525_v20 }
 0x14d   :  { %v9833_v23 = vpop.f32.mrb[44].mxu0  ;;  %v527_v25 = vadd.f32 %v9827_v15, %v526_v21 }
 0x14e   :  { %15546 = vst [vmem:[#allocation7_spill] sm:$0xff] %v9833_v23  ;;  %v9836_v28 = vpop.f32.mrb[45].mxu0 }
 0x14f   :  { %15547 = vst [vmem:[#allocation8_spill] sm:$0xff] %v9836_v28  ;;  %v528_v29 = vadd.f32 %v527_v25, %v9836_v28  ;;  %v9839_v31 = vpop.f32.mrb[46].mxu0 }
 0x150   :  { %15548 = vst [vmem:[#allocation9_spill] sm:$0xff] %v9839_v31  ;;  %v9841_v33 = vpop.f32.mrb[47].mxu0 }
 0x151   :  { %15549 = vst [vmem:[#allocation10_spill] sm:$0xff] %v9841_v33  ;;  %v529_v36 = vadd.f32 %v528_v29, %v9841_v33 }
 0x153   :  { %v530_v37 = vadd.f32 %v9833_v23, %v529_v36 }
 0x155   :  { %v9845_v39 = vpop.f32.mrb[48].mxu0  ;;  %v531_v45 = vadd.f32 %v9839_v31, %v530_v37 }
 0x156   :  { %15550 = vst [vmem:[#allocation11_spill] sm:$0xff] %v9845_v39  ;;  %v9848_v52 = vpop.f32.mrb[49].mxu0 }
 0x157   :  { %15551 = vst [vmem:[#allocation12_spill] sm:$0xff] %v9848_v52  ;;  %v532_v53 = vadd.f32 %v531_v45, %v9848_v52  ;;  %v9851_v57 = vpop.f32.mrb[50].mxu0 }
 0x158   :  { %15552 = vst [vmem:[#allocation13_spill] sm:$0xff] %v9851_v57  ;;  %v9853_v61 = vpop.f32.mrb[51].mxu0 }
 0x159   :  { %15553 = vst [vmem:[#allocation14_spill] sm:$0xff] %v9853_v61  ;;  %v533_v4 = vadd.f32 %v532_v53, %v9853_v61 }
 0x15b   :  { %v534_v5 = vadd.f32 %v9845_v39, %v533_v4 }
 0x15d   :  { %v9857_v9 = vpop.f32.mrb[52].mxu0  ;;  %v535_v13 = vadd.f32 %v9851_v57, %v534_v5 }
 0x15e   :  { %15554 = vst [vmem:[#allocation15_spill] sm:$0xff] %v9857_v9  ;;  %v9860_v20 = vpop.f32.mrb[53].mxu0 }
 0x15f   :  { %15555 = vst [vmem:[#allocation16_spill] sm:$0xff] %v9860_v20  ;;  %v536_v21 = vadd.f32 %v535_v13, %v9860_v20  ;;  %v9863_v25 = vpop.f32.mrb[54].mxu0 }
 0x160   :  { %15556 = vst [vmem:[#allocation17_spill] sm:$0xff] %v9863_v25  ;;  %v9865_v29 = vpop.f32.mrb[55].mxu0 }
 0x161   :  { %15557 = vst [vmem:[#allocation18_spill] sm:$0xff] %v9865_v29  ;;  %v537_v36 = vadd.f32 %v536_v21, %v9865_v29 }
 0x163   :  { %v538_v37 = vadd.f32 %v9857_v9, %v537_v36 }
 0x165   :  { %v9869_v45 = vpop.f32.mrb[56].mxu0  ;;  %v539_v53 = vadd.f32 %v9863_v25, %v538_v37 }
 0x166   :  { %15558 = vst [vmem:[#allocation19_spill] sm:$0xff] %v9869_v45  ;;  %v9872_v4 = vpop.f32.mrb[57].mxu0 }
 0x167   :  { %15559 = vst [vmem:[#allocation20_spill] sm:$0xff] %v9872_v4  ;;  %v540_v5 = vadd.f32 %v539_v53, %v9872_v4  ;;  %v9875_v57 = vpop.f32.mrb[58].mxu0 }
 0x168   :  { %15560 = vst [vmem:[#allocation21_spill] sm:$0xff] %v9875_v57  ;;  %v9877_v39 = vpop.f32.mrb[59].mxu0 }
 0x169   :  { %15561 = vst [vmem:[#allocation22_spill] sm:$0xff] %v9877_v39  ;;  %v541_v13 = vadd.f32 %v540_v5, %v9877_v39 }
 0x16b   :  { %v542_v20 = vadd.f32 %v9869_v45, %v541_v13 }
 0x16d   :  { %v9881_v61 = vpop.f32.mrb[60].mxu0  ;;  %v543_v21 = vadd.f32 %v9875_v57, %v542_v20 }
 0x16e   :  { %15562 = vst [vmem:[#allocation23_spill] sm:$0xff] %v9881_v61  ;;  %v9884_v36 = vpop.f32.mrb[61].mxu0 }
 0x16f   :  { %15563 = vst [vmem:[#allocation24_spill] sm:$0xff] %v9884_v36  ;;  %v544_v37 = vadd.f32 %v543_v21, %v9884_v36  ;;  %v9887_v25 = vpop.f32.mrb[62].mxu0 }
 0x170   :  { %15564 = vst [vmem:[#allocation25_spill] sm:$0xff] %v9887_v25  ;;  %v9889_v9 = vpop.f32.mrb[63].mxu0 }
 0x171   :  { %v545_v53 = vadd.f32 %v544_v37, %v9889_v9 }
 0x173   :  { %v546_v4 = vadd.f32 %v9881_v61, %v545_v53 }
 0x175   :  { %v547_v5 = vadd.f32 %v9887_v25, %v546_v4 }
 0x177   :  { %v548_v39 = vrot.slane %v547_v5, 4 }
 0x179   :  { %v549_v13 = vadd.f32 %v548_v39, %v547_v5 }
 0x17b   :  { %v550_v45 = vrot.slane %v549_v13, 2 }
 0x17d   :  { %v551_v29 = vadd.f32 %v550_v45, %v549_v13 }
 0x17f   :  { %v552_v52 = vrot.slane %v551_v29, 1 }
 0x181   :  { %v553_v20 = vadd.f32 %v552_v52, %v551_v29 }
 0x183   :  { %v9894_v57 = vmul.f32 0.001953125, %v553_v20 }
 0x185   :  { %v556_v21 = vsub.f32 %v9704_v41, %v9894_v57  ;;  %v557_v36 = vsub.f32 %v9708_v43, %v9894_v57  ;;  %v558_v37 = vsub.f32 %v9702_v40, %v9894_v57  ;;  %v559_v39 = vsub.f32 %v9706_v42, %v9894_v57 }
 0x186   :  { %v560_v45 = vsub.f32 %v9716_v48, %v9894_v57  ;;  %v561_v4 = vsub.f32 %v9721_v51, %v9894_v57  ;;  %v562_v20 = vsub.f32 %v9713_v46, %v9894_v57  ;;  %v564_v48 = vsub.f32 %v9728_v56, %v9894_v57 }
 0x187   :  { %v620_v53 = vmul.f32 %v556_v21, %v556_v21  ;;  %v621_v61 = vmul.f32 %v557_v36, %v557_v36  ;;  %v622_v52 = vmul.f32 %v558_v37, %v558_v37  ;;  %v623_v5 = vmul.f32 %v559_v39, %v559_v39 }
 0x188   :  { %v624_v43 = vmul.f32 %v560_v45, %v560_v45  ;;  %v563_v36 = vsub.f32 %v9719_v50, %v9894_v57  ;;  %v625_v21 = vmul.f32 %v561_v4, %v561_v4  ;;  %v626_v37 = vmul.f32 %v562_v20, %v562_v20 }
 0x189   :  { %v684_v29 = vadd.f32 %v621_v61, %v620_v53  ;;  %v565_v53 = vsub.f32 %v9733_v59, %v9894_v57  ;;  %v628_v45 = vmul.f32 %v564_v48, %v564_v48 }
 0x18a   :  { %v627_v39 = vmul.f32 %v563_v36, %v563_v36 }
 0x18b   :  { %v685_v13 = vadd.f32 %v684_v29, %v622_v52  ;;  %v566_v29 = vsub.f32 %v9725_v54, %v9894_v57  ;;  %v629_v4 = vmul.f32 %v565_v53, %v565_v53 }
 0x18d   :  { %v686_v40 = vadd.f32 %v685_v13, %v623_v5  ;;  %v567_v13 = vsub.f32 %v9731_v58, %v9894_v57  ;;  %v630_v20 = vmul.f32 %v566_v29, %v566_v29 }
 0x18f   :  { %v687_v42 = vadd.f32 %v686_v40, %v624_v43  ;;  %v568_v43 = vsub.f32 %v9740_v0, %v9894_v57  ;;  %v631_v36 = vmul.f32 %v567_v13, %v567_v13 }
 0x191   :  { %v688_v61 = vadd.f32 %v687_v42, %v625_v21  ;;  %v569_v21 = vsub.f32 %v9745_v3, %v9894_v57  ;;  %v632_v48 = vmul.f32 %v568_v43, %v568_v43 }
 0x193   :  { %v689_v52 = vadd.f32 %v688_v61, %v626_v37  ;;  %v570_v61 = vsub.f32 %v9737_v62, %v9894_v57  ;;  %v633_v53 = vmul.f32 %v569_v21, %v569_v21 }
 0x195   :  { %v690_v5 = vadd.f32 %v689_v52, %v627_v39  ;;  %v571_v52 = vsub.f32 %v9743_v2, %v9894_v57  ;;  %v634_v29 = vmul.f32 %v570_v61, %v570_v61 }
 0x197   :  { %v691_v40 = vadd.f32 %v690_v5, %v628_v45  ;;  %v572_v5 = vsub.f32 %v9752_v8, %v9894_v57  ;;  %v635_v13 = vmul.f32 %v571_v52, %v571_v52 }
 0x199   :  { %v692_v42 = vadd.f32 %v691_v40, %v629_v4  ;;  %v573_v40 = vsub.f32 %v9757_v11, %v9894_v57  ;;  %v636_v43 = vmul.f32 %v572_v5, %v572_v5 }
 0x19b   :  { %v693_v37 = vadd.f32 %v692_v42, %v630_v20  ;;  %v574_v42 = vsub.f32 %v9749_v6, %v9894_v57  ;;  %v637_v21 = vmul.f32 %v573_v40, %v573_v40 }
 0x19d   :  { %v694_v39 = vadd.f32 %v693_v37, %v631_v36  ;;  %v575_v37 = vsub.f32 %v9755_v10, %v9894_v57  ;;  %v638_v61 = vmul.f32 %v574_v42, %v574_v42 }
 0x19f   :  { %v695_v45 = vadd.f32 %v694_v39, %v632_v48  ;;  %v576_v39 = vsub.f32 %v9764_v16, %v9894_v57  ;;  %v639_v52 = vmul.f32 %v575_v37, %v575_v37 }
 0x1a1   :  { %v696_v4 = vadd.f32 %v695_v45, %v633_v53  ;;  %v577_v45 = vsub.f32 %v9769_v19, %v9894_v57  ;;  %v640_v5 = vmul.f32 %v576_v39, %v576_v39 }
 0x1a3   :  { %v697_v20 = vadd.f32 %v696_v4, %v634_v29  ;;  %v578_v4 = vsub.f32 %v9761_v14, %v9894_v57  ;;  %v641_v40 = vmul.f32 %v577_v45, %v577_v45 }
 0x1a5   :  { %v698_v36 = vadd.f32 %v697_v20, %v635_v13  ;;  %v579_v20 = vsub.f32 %v9767_v18, %v9894_v57  ;;  %v642_v42 = vmul.f32 %v578_v4, %v578_v4 }
 0x1a7   :  { %v699_v48 = vadd.f32 %v698_v36, %v636_v43  ;;  %v580_v36 = vsub.f32 %v9776_v24, %v9894_v57  ;;  %v643_v37 = vmul.f32 %v579_v20, %v579_v20 }
 0x1a9   :  { %v700_v53 = vadd.f32 %v699_v48, %v637_v21  ;;  %v581_v48 = vsub.f32 %v9781_v27, %v9894_v57  ;;  %v644_v39 = vmul.f32 %v580_v36, %v580_v36 }
 0x1ab   :  { %v701_v29 = vadd.f32 %v700_v53, %v638_v61  ;;  %v582_v53 = vsub.f32 %v9773_v22, %v9894_v57  ;;  %v645_v45 = vmul.f32 %v581_v48, %v581_v48 }
 0x1ad   :  { %v702_v13 = vadd.f32 %v701_v29, %v639_v52  ;;  %v583_v29 = vsub.f32 %v9779_v26, %v9894_v57  ;;  %v646_v4 = vmul.f32 %v582_v53, %v582_v53 }
 0x1af   :  { %v703_v43 = vadd.f32 %v702_v13, %v640_v5  ;;  %v584_v13 = vsub.f32 %v9788_v32, %v9894_v57  ;;  %v647_v20 = vmul.f32 %v583_v29, %v583_v29 }
 0x1b1   :  { %v704_v21 = vadd.f32 %v703_v43, %v641_v40  ;;  %v585_v43 = vsub.f32 %v9793_v35, %v9894_v57  ;;  %v648_v36 = vmul.f32 %v584_v13, %v584_v13 }
 0x1b3   :  { %v705_v61 = vadd.f32 %v704_v21, %v642_v42  ;;  %v586_v21 = vsub.f32 %v9785_v30, %v9894_v57  ;;  %v649_v48 = vmul.f32 %v585_v43, %v585_v43  ;;  %v9271_v43 = vld [vmem:[%s15211_s2 + $0x40] sm:$0xff]  }
 0x1b4   :  { %7933 = vmatprep.subr.bf16.mxu0 %v9271_v43 }
 0x1b5   :  { %v706_v52 = vadd.f32 %v705_v61, %v643_v37  ;;  %v587_v61 = vsub.f32 %v9791_v34, %v9894_v57  ;;  %v650_v53 = vmul.f32 %v586_v21, %v586_v21  ;;  %7934 = vmatpush3.bf16.msra.mxu0 %v9271_v43  ;;  %v596_v43 = vsub.f32 %v9824_v12, %v9894_v57 }
 0x1b7   :  { %v707_v5 = vadd.f32 %v706_v52, %v644_v39  ;;  %v588_v52 = vsub.f32 %v9800_v44, %v9894_v57  ;;  %v651_v29 = vmul.f32 %v587_v61, %v587_v61 }
 0x1b9   :  { %v708_v40 = vadd.f32 %v707_v5, %v645_v45  ;;  %v589_v5 = vsub.f32 %v9805_v49, %v9894_v57  ;;  %v652_v13 = vmul.f32 %v588_v52, %v588_v52 }
 0x1bb   :  { %v709_v42 = vadd.f32 %v708_v40, %v646_v4  ;;  %v590_v40 = vsub.f32 %v9797_v38, %v9894_v57 }
 0x1bd   :  { %v710_v37 = vadd.f32 %v709_v42, %v647_v20  ;;  %v591_v42 = vsub.f32 %v9803_v47, %v9894_v57  ;;  %v654_v61 = vmul.f32 %v590_v40, %v590_v40 }
 0x1bf   :  { %v711_v39 = vadd.f32 %v710_v37, %v648_v36  ;;  %v653_v36 = vmul.f32 %v589_v5, %v589_v5  ;;  %v592_v37 = vsub.f32 %v9812_v60, %v9894_v57  ;;  %v655_v52 = vmul.f32 %v591_v42, %v591_v42 }
 0x1c0   :  { %v595_v5 = vsub.f32 %v9815_v63, %v9894_v57 }
 0x1c1   :  { %v712_v45 = vadd.f32 %v711_v39, %v649_v48  ;;  %v593_v39 = vsub.f32 %v9817_v1, %v9894_v57 }
 0x1c2   :  { %v659_v42 = vmul.f32 %v595_v5, %v595_v5  ;;  %v9272_v5 = vld [vmem:[%s15211_s2 + $0xc0] sm:$0xff]  }
 0x1c3   :  { %v713_v4 = vadd.f32 %v712_v45, %v650_v53  ;;  %v594_v45 = vsub.f32 %v9809_v55, %v9894_v57  ;;  %8733 = vmatprep.subr.bf16.mxu1 %v9272_v5 }
 0x1c4   :  { %8741 = vmatpush3.bf16.msra.mxu1 %v9272_v5  ;;  %v9276_v5 = vld [vmem:[%s15211_s2 + $0xd0] sm:$0xff]  }
 0x1c5   :  { %v714_v20 = vadd.f32 %v713_v4, %v651_v29  ;;  %v656_v29 = vmul.f32 %v592_v37, %v592_v37  ;;  %v658_v40 = vmul.f32 %v594_v45, %v594_v45  ;;  %v660_v37 = vmul.f32 %v596_v43, %v596_v43 }
 0x1c6   :  { %v601_v43 = vsub.f32 %v9841_v33, %v9894_v57 }
 0x1c7   :  { %v715_v21 = vadd.f32 %v714_v20, %v652_v13  ;;  %v657_v13 = vmul.f32 %v593_v39, %v593_v39 }
 0x1c9   :  { %v716_v48 = vadd.f32 %v715_v21, %v653_v36  ;;  %v597_v21 = vsub.f32 %v9829_v17, %v9894_v57 }
 0x1cb   :  { %v717_v53 = vadd.f32 %v716_v48, %v654_v61  ;;  %v598_v48 = vsub.f32 %v9821_v7, %v9894_v57  ;;  %v661_v39 = vmul.f32 %v597_v21, %v597_v21  ;;  %v602_v21 = vsub.f32 %v9833_v23, %v9894_v57 }
 0x1cd   :  { %v718_v4 = vadd.f32 %v717_v53, %v655_v52  ;;  %v599_v53 = vsub.f32 %v9827_v15, %v9894_v57  ;;  %v662_v45 = vmul.f32 %v598_v48, %v598_v48  ;;  %v9274_v48 = vld [vmem:[%s15211_s2 + $0xc8] sm:$0xff]   ;;  %v762_v15 = vlaneseq }
 0x1ce   :  { %8734 = vmatprep.subr.bf16.mxu1 %v9274_v48 }
 0x1cf   :  { %v719_v20 = vadd.f32 %v718_v4, %v656_v29  ;;  %v600_v4 = vsub.f32 %v9836_v28, %v9894_v57  ;;  %8742 = vmatpush3.bf16.msra.mxu1 %v9274_v48 }
 0x1d0   :  { %8735 = vmatprep.subr.bf16.mxu1 %v9276_v5 }
 0x1d1   :  { %v720_v36 = vadd.f32 %v719_v20, %v657_v13  ;;  %v9273_v20 = vld [vmem:[%s15211_s2 + $0x48] sm:$0xff]  }
 0x1d2   :  { %7935 = vmatprep.subr.bf16.mxu0 %v9273_v20 }
 0x1d3   :  { %v721_v61 = vadd.f32 %v720_v36, %v658_v40  ;;  %v663_v40 = vmul.f32 %v599_v53, %v599_v53  ;;  %7936 = vmatpush3.bf16.msra.mxu0 %v9273_v20  ;;  %v665_v53 = vmul.f32 %v601_v43, %v601_v43  ;;  %v9277_v20 = vld [vmem:[%s15211_s2 + $0x58] sm:$0xff]   ;;  %v15566_v43 = vld [vmem:[#allocation14_spill] sm:$0xff]  ;;  %8743 = vmatpush3.bf16.msra.mxu1 %v9276_v5 }
 0x1d5   :  { %v722_v52 = vadd.f32 %v721_v61, %v659_v42  ;;  %v664_v42 = vmul.f32 %v600_v4, %v600_v4 }
 0x1d7   :  { %v723_v29 = vadd.f32 %v722_v52, %v660_v37  ;;  %v9275_v37 = vld [vmem:[%s15211_s2 + $0x50] sm:$0xff]   ;;  %v603_v52 = vsub.f32 %v9839_v31, %v9894_v57 }
 0x1d8   :  { %7937 = vmatprep.subr.bf16.mxu0 %v9275_v37 }
 0x1d9   :  { %v724_v13 = vadd.f32 %v723_v29, %v661_v39  ;;  %v15565_v29 = vld [vmem:[#allocation12_spill] sm:$0xff]  ;;  %7938 = vmatpush3.bf16.msra.mxu0 %v9275_v37 }
 0x1da   :  { %v604_v4 = vsub.f32 %v15565_v29, %v9894_v57  ;;  %7939 = vmatprep.subr.bf16.mxu0 %v9277_v20 }
 0x1db   :  { %v725_v36 = vadd.f32 %v724_v13, %v662_v45  ;;  %v666_v45 = vmul.f32 %v602_v21, %v602_v21  ;;  %v15567_v21 = vld [vmem:[#allocation11_spill] sm:$0xff] }
 0x1dc   :  { %v668_v48 = vmul.f32 %v604_v4, %v604_v4  ;;  %v15569_v4 = vld [vmem:[#allocation16_spill] sm:$0xff] }
 0x1dd   :  { %v726_v61 = vadd.f32 %v725_v36, %v663_v40  ;;  %v605_v40 = vsub.f32 %v15566_v43, %v9894_v57  ;;  %v667_v36 = vmul.f32 %v603_v52, %v603_v52  ;;  %7940 = vmatpush3.bf16.msra.mxu0 %v9277_v20  ;;  %v15568_v52 = vld [vmem:[#allocation13_spill] sm:$0xff] }
 0x1df   :  { %v727_v39 = vadd.f32 %v726_v61, %v664_v42  ;;  %v606_v61 = vsub.f32 %v15567_v21, %v9894_v57  ;;  %v9281_v21 = vld [vmem:[%s15211_s2 + $0x68] sm:$0xff]  }
 0x1e1   :  { %v728_v13 = vadd.f32 %v727_v39, %v665_v53  ;;  %v9278_v53 = vld [vmem:[%s15211_s2 + $0xd8] sm:$0xff]   ;;  %v9279_v39 = vld [vmem:[%s15211_s2 + $0x60] sm:$0xff]   ;;  %v670_v5 = vmul.f32 %v606_v61, %v606_v61  ;;  %v15571_v61 = vld [vmem:[#allocation15_spill] sm:$0xff] }
 0x1e2   :  { %8736 = vmatprep.subr.bf16.mxu1 %v9278_v53  ;;  %7941 = vmatprep.subr.bf16.mxu0 %v9279_v39 }
 0x1e3   :  { %v729_v42 = vadd.f32 %v728_v13, %v666_v45  ;;  %v607_v45 = vsub.f32 %v15568_v52, %v9894_v57  ;;  %v669_v13 = vmul.f32 %v605_v40, %v605_v40  ;;  %8744 = vmatpush3.bf16.msra.mxu1 %v9278_v53  ;;  %7942 = vmatpush3.bf16.msra.mxu0 %v9279_v39  ;;  %v15570_v40 = vld [vmem:[#allocation18_spill] sm:$0xff] }
 0x1e4   :  { %7943 = vmatprep.subr.bf16.mxu0 %v9281_v21 }
 0x1e5   :  { %v730_v37 = vadd.f32 %v729_v42, %v667_v36  ;;  %v608_v36 = vsub.f32 %v15569_v4, %v9894_v57  ;;  %v9280_v42 = vld [vmem:[%s15211_s2 + $0xe0] sm:$0xff]   ;;  %v9283_v4 = vld [vmem:[%s15211_s2 + $0x70] sm:$0xff]  }
 0x1e6   :  { %8737 = vmatprep.subr.bf16.mxu1 %v9280_v42 }
 0x1e7   :  { %v731_v43 = vadd.f32 %v730_v37, %v668_v48  ;;  %v609_v48 = vsub.f32 %v15570_v40, %v9894_v57  ;;  %v671_v37 = vmul.f32 %v607_v45, %v607_v45  ;;  %v672_v53 = vmul.f32 %v608_v36, %v608_v36  ;;  %8745 = vmatpush3.bf16.msra.mxu1 %v9280_v42  ;;  %v15572_v45 = vld [vmem:[#allocation17_spill] sm:$0xff]  ;;  %v15573_v36 = vld [vmem:[#allocation20_spill] sm:$0xff] }
 0x1e8   :  { %7944 = vmatpush3.bf16.msra.mxu0 %v9281_v21 }
 0x1e9   :  { %v732_v20 = vadd.f32 %v731_v43, %v669_v13  ;;  %v610_v43 = vsub.f32 %v15571_v61, %v9894_v57  ;;  %v9282_v13 = vld [vmem:[%s15211_s2 + $0xe8] sm:$0xff]   ;;  %7945 = vmatprep.subr.bf16.mxu0 %v9283_v4  ;;  %v9285_v61 = vld [vmem:[%s15211_s2 + $0x78] sm:$0xff]  }
 0x1ea   :  { %8738 = vmatprep.subr.bf16.mxu1 %v9282_v13 }
 0x1eb   :  { %v733_v52 = vadd.f32 %v732_v20, %v670_v5  ;;  %v611_v5 = vsub.f32 %v15572_v45, %v9894_v57  ;;  %v673_v20 = vmul.f32 %v609_v48, %v609_v48  ;;  %v674_v42 = vmul.f32 %v610_v43, %v610_v43  ;;  %8746 = vmatpush3.bf16.msra.mxu1 %v9282_v13  ;;  %v15574_v48 = vld [vmem:[#allocation22_spill] sm:$0xff]  ;;  %v15575_v43 = vld [vmem:[#allocation19_spill] sm:$0xff] }
 0x1ec   :  { %7946 = vmatpush3.bf16.msra.mxu0 %v9283_v4 }
 0x1ed   :  { %v734_v39 = vadd.f32 %v733_v52, %v671_v37  ;;  %v612_v52 = vsub.f32 %v15573_v36, %v9894_v57  ;;  %v9284_v37 = vld [vmem:[%s15211_s2 + $0xf0] sm:$0xff]   ;;  %7947 = vmatprep.subr.bf16.mxu0 %v9285_v61  ;;  %v15576_v36 = vld [vmem:[#allocation21_spill] sm:$0xff] }
 0x1ee   :  { %8739 = vmatprep.subr.bf16.mxu1 %v9284_v37  ;;  %v615_v29 = vsub.f32 %v15576_v36, %v9894_v57 }
 0x1ef   :  { %v735_v40 = vadd.f32 %v734_v39, %v672_v53  ;;  %v613_v53 = vsub.f32 %v15574_v48, %v9894_v57  ;;  %v675_v39 = vmul.f32 %v611_v5, %v611_v5  ;;  %v676_v13 = vmul.f32 %v612_v52, %v612_v52  ;;  %8747 = vmatpush3.bf16.msra.mxu1 %v9284_v37 }
 0x1f0   :  { %7948 = vmatpush3.bf16.msra.mxu0 %v9285_v61  ;;  %v15253_v5 = vmov 0.0|0.0   ;;  %v617_v61 = vsub.f32 %v9889_v9, %v9894_v57  ;;  %v679_v37 = vmul.f32 %v615_v29, %v615_v29 }
 0x1f1   :  { %v736_v21 = vadd.f32 %v735_v40, %v673_v20  ;;  %v614_v40 = vsub.f32 %v15575_v43, %v9894_v57  ;;  %v9286_v20 = vld [vmem:[%s15211_s2 + $0xf8] sm:$0xff]   ;;  %v677_v31 = vmul.f32 %v613_v53, %v613_v53  ;;  %7949 = vmatprep.mubr.bf16.mxu0 %v15253_v5  ;;  %v15578_v43 = vld [vmem:[#allocation23_spill] sm:$0xff] }
 0x1f2   :  { %8740 = vmatprep.subr.bf16.mxu1 %v9286_v20  ;;  %v618_v36 = vsub.f32 %v15578_v43, %v9894_v57 }
 0x1f3   :  { %v737_v45 = vadd.f32 %v736_v21, %v674_v42  ;;  %v15577_v42 = vld [vmem:[#allocation24_spill] sm:$0xff]  ;;  %v678_v52 = vmul.f32 %v614_v40, %v614_v40  ;;  %8748 = vmatpush3.bf16.msra.mxu1 %v9286_v20  ;;  %v619_v40 = vsub.f32 %v9887_v25, %v9894_v57  ;;  %v10079_v25 = vshrl.u32 %v762_v15, 7 }
 0x1f4   :  { %v616_v21 = vsub.f32 %v15577_v42, %v9894_v57  ;;  %v682_v20 = vmul.f32 %v618_v36, %v618_v36  ;;  %v754_v36 = vld [vmem:[%s15212_s4] sm:$0x1] }
 0x1f5   :  { %v738_v4 = vadd.f32 %v737_v45, %v675_v39  ;;  %15580 = vst [vmem:[#allocation27_spill] sm:$0xff] %v10079_v25 }
 0x1f6   :  { %v680_v53 = vmul.f32 %v616_v21, %v616_v21 }
 0x1f7   :  { %v739_v48 = vadd.f32 %v738_v4, %v676_v13  ;;  %v10074_v4 = vld [vmem:[%s15211_s2 + $0x100] sm:$0xff]  }
 0x1f8   :  { %15579 = vst [vmem:[#allocation26_spill] sm:$0xff] %v10074_v4  ;;  %8253 = vmatprep.subr.bf16.mxu1 %v10074_v4  ;;  %v15601_v4 = vld [vmem:[#allocation15_spill] sm:$0xff] }
 0x1f9   :  { %v740_v45 = vadd.f32 %v739_v48, %v677_v31  ;;  %v681_v31 = vmul.f32 %v617_v61, %v617_v61  ;;  %v10085_v61 = vsub.s32 0, %v10079_v25  ;;  %v15605_v25 = vld [vmem:[#allocation20_spill] sm:$0xff] }
 0x1fb   :  { %v741_v39 = vadd.f32 %v740_v45, %v678_v52  ;;  %v683_v52 = vmul.f32 %v619_v40, %v619_v40  ;;  %15581 = vst [vmem:[#allocation28_spill] sm:$0xff] %v10085_v61 }
 0x1fd   :  { %v742_v13 = vadd.f32 %v741_v39, %v679_v37 }
 0x1ff   :  { %v743_v48 = vadd.f32 %v742_v13, %v680_v53 }
 0x201   :  { %v744_v29 = vadd.f32 %v743_v48, %v681_v31  ;;  %v15583_v31 = vld [vmem:[#allocation2_spill] sm:$0xff] }
 0x203   :  { %v745_v45 = vadd.f32 %v744_v29, %v682_v20  ;;  %v15585_v29 = vld [vmem:[#allocation5_spill] sm:$0xff] }
 0x205   :  { %v746_v5 = vadd.f32 %v745_v45, %v683_v52 }
 0x207   :  { %v747_v43 = vrot.slane %v746_v5, 4 }
 0x209   :  { %v748_v21 = vadd.f32 %v747_v43, %v746_v5  ;;  %v758_v43 = vld [vmem:[%s15213_s5] sm:$0x1] }
 0x20b   :  { %v749_v37 = vrot.slane %v748_v21, 2 }
 0x20d   :  { %v750_v39 = vadd.f32 %v749_v37, %v748_v21 }
 0x20f   :  { %v751_v42 = vrot.slane %v750_v39, 1 }
 0x211   :  { %v752_v23 = vadd.f32 %v751_v42, %v750_v39  ;;  %v15582_v42 = vld [vmem:[#allocation4_spill] sm:$0xff] }
 0x213   :  { %v753_v33 = vmul.f32 0.001953125, %v752_v23 }
 0x215   :  { %v755_v28 = vadd.f32 1e-05, %v753_v33 }
 0x217   :  { %9351 = vrsqrt.f32 %v755_v28 }
 0x221   :  { %v9352_v53 = vpop.eup %9351 }
 0x222   :  { %v757_v13 = vmul.f32 %v9352_v53, %v754_v36 }
 0x224   :  { %v759_v23 = vmul.f32 %v757_v13, %v9894_v57  ;;  %v10092_v28 = vrot.slane %v757_v13, %v10085_v61  ;;  %v15584_v57 = vld [vmem:[#allocation3_spill] sm:$0xff]  ;;  %v15587_v13 = vld [vmem:[#allocation6_spill] sm:$0xff] }
 0x226   :  { %v760_v15 = vsub.f32 %v758_v43, %v759_v23  ;;  %v828_v33 = vmul.f32 %v10092_v28, %v9889_v9  ;;  %v10098_v5 = vmul.f32 %v10092_v28, %v9704_v41  ;;  %v10102_v40 = vmul.f32 %v10092_v28, %v15582_v42  ;;  %v15588_v43 = vld [vmem:[#allocation8_spill] sm:$0xff]  ;;  %v15589_v23 = vld [vmem:[#allocation10_spill] sm:$0xff] }
 0x227   :  { %v10106_v48 = vmul.f32 %v15583_v31, %v10092_v28  ;;  %v10110_v20 = vmul.f32 %v15584_v57, %v10092_v28  ;;  %v10114_v52 = vmul.f32 %v10092_v28, %v15585_v29  ;;  %v10118_v41 = vmul.f32 %v10092_v28, %v9721_v51  ;;  %v15592_v42 = vld [vmem:[#allocation12_spill] sm:$0xff]  ;;  %v15593_v57 = vld [vmem:[#allocation14_spill] sm:$0xff] }
 0x228   :  { %v10121_v9 = vrot.slane %v760_v15, %v10085_v61  ;;  %v10125_v45 = vmul.f32 %v9713_v46, %v10092_v28  ;;  %v10129_v21 = vmul.f32 %v9719_v50, %v10092_v28  ;;  %v10133_v37 = vmul.f32 %v10092_v28, %v9728_v56  ;;  %v15590_v15 = vld [vmem:[#allocation7_spill] sm:$0xff]  ;;  %v15599_v61 = vld [vmem:[#allocation18_spill] sm:$0xff] }
 0x229   :  { %v10137_v39 = vmul.f32 %v10092_v28, %v9733_v59  ;;  %v10141_v51 = vmul.f32 %v9725_v54, %v10092_v28  ;;  %v10145_v46 = vmul.f32 %v9731_v58, %v10092_v28  ;;  %v10149_v50 = vmul.f32 %v10092_v28, %v9740_v0 }
 0x22a   :  { %v898_v36 = vadd.f32 %v10121_v9, %v828_v33  ;;  %v10154_v56 = vmul.f32 %v10092_v28, %v9745_v3  ;;  %v10158_v59 = vmul.f32 %v9737_v62, %v10092_v28  ;;  %v10162_v54 = vmul.f32 %v9743_v2, %v10092_v28  ;;  %v15591_v33 = vld [vmem:[#allocation9_spill] sm:$0xff] }
 0x22b   :  { %v10166_v58 = vmul.f32 %v10092_v28, %v9752_v8  ;;  %v10170_v0 = vmul.f32 %v10092_v28, %v9757_v11  ;;  %v10174_v3 = vmul.f32 %v9749_v6, %v10092_v28  ;;  %v10178_v62 = vmul.f32 %v9755_v10, %v10092_v28 }
 0x22c   :  { %v10182_v2 = vmul.f32 %v10092_v28, %v9764_v16  ;;  %v10186_v8 = vmul.f32 %v10092_v28, %v9769_v19  ;;  %v10190_v11 = vmul.f32 %v9761_v14, %v10092_v28  ;;  %v10194_v6 = vmul.f32 %v9767_v18, %v10092_v28 }
 0x22d   :  { %v10198_v10 = vmul.f32 %v10092_v28, %v9776_v24  ;;  %v10202_v16 = vmul.f32 %v10092_v28, %v9781_v27  ;;  %v10206_v19 = vmul.f32 %v9773_v22, %v10092_v28  ;;  %v10208_v53 = vmax.f32 %v898_v36, 0.0  ;;  %v15594_v36 = vld [vmem:[#allocation11_spill] sm:$0xff] }
 0x22e   :  { %v10212_v14 = vmul.f32 %v9779_v26, %v10092_v28  ;;  %v10216_v18 = vmul.f32 %v10092_v28, %v9788_v32  ;;  %v10220_v24 = vmul.f32 %v10092_v28, %v9793_v35  ;;  %v10224_v27 = vmul.f32 %v9785_v30, %v10092_v28 }
 0x22f   :  { %15586 = vst [vmem:[#allocation4_spill] sm:$0xff] %v10208_v53  ;;  %v10228_v22 = vmul.f32 %v9791_v34, %v10092_v28  ;;  %v10232_v26 = vmul.f32 %v10092_v28, %v9800_v44  ;;  %v10236_v32 = vmul.f32 %v10092_v28, %v9805_v49  ;;  %v10240_v35 = vmul.f32 %v9797_v38, %v10092_v28  ;;  %v15603_v53 = vld [vmem:[#allocation17_spill] sm:$0xff] }
 0x230   :  { %v10244_v30 = vmul.f32 %v9803_v47, %v10092_v28  ;;  %v10248_v34 = vmul.f32 %v10092_v28, %v9812_v60  ;;  %v10252_v44 = vmul.f32 %v10092_v28, %v9817_v1  ;;  %v10256_v49 = vmul.f32 %v9809_v55, %v10092_v28 }
 0x231   :  { %v10260_v38 = vmul.f32 %v9815_v63, %v10092_v28  ;;  %v10264_v47 = vmul.f32 %v10092_v28, %v9824_v12  ;;  %v10268_v60 = vmul.f32 %v10092_v28, %v9829_v17  ;;  %v10272_v1 = vmul.f32 %v9821_v7, %v10092_v28 }
 0x232   :  { %v10276_v55 = vmul.f32 %v15587_v13, %v10092_v28  ;;  %v10280_v63 = vmul.f32 %v10092_v28, %v15588_v43  ;;  %v10284_v12 = vmul.f32 %v10092_v28, %v15589_v23  ;;  %v10288_v17 = vmul.f32 %v15590_v15, %v10092_v28  ;;  %v15595_v43 = vld [vmem:[#allocation13_spill] sm:$0xff]  ;;  %v15597_v15 = vld [vmem:[#allocation16_spill] sm:$0xff] }
 0x233   :  { %v10292_v7 = vmul.f32 %v15591_v33, %v10092_v28  ;;  %v10296_v31 = vmul.f32 %v10092_v28, %v15592_v42  ;;  %v10300_v29 = vmul.f32 %v10092_v28, %v15593_v57  ;;  %v10304_v13 = vmul.f32 %v15594_v36, %v10092_v28 }
 0x234   :  { %v10308_v23 = vmul.f32 %v15595_v43, %v10092_v28  ;;  %v10312_v33 = vmul.f32 %v10092_v28, %v15597_v15  ;;  %v10316_v42 = vmul.f32 %v10092_v28, %v15599_v61  ;;  %v10320_v57 = vmul.f32 %v15601_v4, %v10092_v28 }
 0x235   :  { %v10324_v36 = vmul.f32 %v15603_v53, %v10092_v28  ;;  %v10328_v43 = vmul.f32 %v10092_v28, %v15605_v25 }
 0x236   :  { %15596 = vst [vmem:[#allocation2_spill] sm:$0xff] %v10308_v23  ;;  %15598 = vst [vmem:[#allocation3_spill] sm:$0xff] %v10312_v33  ;;  %v15607_v23 = vld [vmem:[#allocation22_spill] sm:$0xff]  ;;  %v15608_v33 = vld [vmem:[#allocation19_spill] sm:$0xff] }
 0x237   :  { %15600 = vst [vmem:[#allocation5_spill] sm:$0xff] %v10316_v42  ;;  %15602 = vst [vmem:[#allocation6_spill] sm:$0xff] %v10320_v57  ;;  %v10332_v15 = vmul.f32 %v10092_v28, %v15607_v23  ;;  %v10336_v61 = vmul.f32 %v15608_v33, %v10092_v28  ;;  %v15609_v42 = vld [vmem:[#allocation21_spill] sm:$0xff]  ;;  %v15610_v57 = vld [vmem:[#allocation24_spill] sm:$0xff]  ;;  %v10356_v33 = vadd.f32 %v10121_v9, %v10098_v5 }
 0x238   :  { %15604 = vst [vmem:[#allocation8_spill] sm:$0xff] %v10324_v36  ;;  %15606 = vst [vmem:[#allocation10_spill] sm:$0xff] %v10328_v43  ;;  %v10340_v4 = vmul.f32 %v15609_v42, %v10092_v28  ;;  %v10344_v53 = vmul.f32 %v10092_v28, %v15610_v57  ;;  %v15611_v36 = vld [vmem:[#allocation23_spill] sm:$0xff]  ;;  %v15612_v43 = vld [vmem:[#allocation25_spill] sm:$0xff]  ;;  %v10360_v42 = vadd.f32 %v10121_v9, %v10102_v40 }
 0x239   :  { %v10348_v25 = vmul.f32 %v15611_v36, %v10092_v28  ;;  %v10352_v23 = vmul.f32 %v15612_v43, %v10092_v28  ;;  %v10364_v57 = vadd.f32 %v10121_v9, %v10106_v48  ;;  %v10368_v36 = vadd.f32 %v10121_v9, %v10110_v20 }
 0x23a   :  { %v10372_v28 = vadd.f32 %v10121_v9, %v10114_v52  ;;  %v10376_v5 = vadd.f32 %v10121_v9, %v10118_v41  ;;  %v10380_v40 = vadd.f32 %v10121_v9, %v10125_v45  ;;  %v10384_v48 = vadd.f32 %v10121_v9, %v10129_v21 }
 0x23b   :  { %v10388_v20 = vadd.f32 %v10121_v9, %v10133_v37  ;;  %v10392_v52 = vadd.f32 %v10121_v9, %v10137_v39  ;;  %v10396_v41 = vadd.f32 %v10121_v9, %v10141_v51  ;;  %v10400_v45 = vadd.f32 %v10121_v9, %v10145_v46 }
 0x23c   :  { %v10404_v21 = vadd.f32 %v10121_v9, %v10149_v50  ;;  %v10408_v37 = vadd.f32 %v10121_v9, %v10154_v56  ;;  %v10412_v39 = vadd.f32 %v10121_v9, %v10158_v59  ;;  %v10416_v51 = vadd.f32 %v10121_v9, %v10162_v54 }
 0x23d   :  { %v10420_v46 = vadd.f32 %v10121_v9, %v10166_v58  ;;  %v10424_v50 = vadd.f32 %v10121_v9, %v10170_v0  ;;  %v10428_v56 = vadd.f32 %v10121_v9, %v10174_v3  ;;  %v10432_v59 = vadd.f32 %v10121_v9, %v10178_v62  ;;  %v15618_v43 = vld [vmem:[#allocation2_spill] sm:$0xff] }
 0x23e   :  { %v10436_v54 = vadd.f32 %v10121_v9, %v10182_v2  ;;  %v10440_v58 = vadd.f32 %v10121_v9, %v10186_v8  ;;  %v10444_v0 = vadd.f32 %v10121_v9, %v10190_v11  ;;  %v10448_v3 = vadd.f32 %v10121_v9, %v10194_v6 }
 0x23f   :  { %v10452_v62 = vadd.f32 %v10121_v9, %v10198_v10  ;;  %v10456_v2 = vadd.f32 %v10121_v9, %v10202_v16  ;;  %v10460_v8 = vadd.f32 %v10121_v9, %v10206_v19  ;;  %v10464_v11 = vadd.f32 %v10121_v9, %v10212_v14 }
 0x240   :  { %v10468_v6 = vadd.f32 %v10121_v9, %v10216_v18  ;;  %v10472_v10 = vadd.f32 %v10121_v9, %v10220_v24  ;;  %v10476_v16 = vadd.f32 %v10121_v9, %v10224_v27  ;;  %v10480_v19 = vadd.f32 %v10121_v9, %v10228_v22 }
 0x241   :  { %v10484_v14 = vadd.f32 %v10121_v9, %v10232_v26  ;;  %v10488_v18 = vadd.f32 %v10121_v9, %v10236_v32  ;;  %v10492_v24 = vadd.f32 %v10121_v9, %v10240_v35  ;;  %v10496_v27 = vadd.f32 %v10121_v9, %v10244_v30 }
 0x242   :  { %v10500_v22 = vadd.f32 %v10121_v9, %v10248_v34  ;;  %v10504_v26 = vadd.f32 %v10121_v9, %v10252_v44  ;;  %v10508_v32 = vadd.f32 %v10121_v9, %v10256_v49  ;;  %v10512_v35 = vadd.f32 %v10121_v9, %v10260_v38 }
 0x243   :  { %v10516_v30 = vadd.f32 %v10121_v9, %v10264_v47  ;;  %v10520_v34 = vadd.f32 %v10121_v9, %v10268_v60  ;;  %v10524_v44 = vadd.f32 %v10121_v9, %v10272_v1  ;;  %v10528_v49 = vadd.f32 %v10121_v9, %v10276_v55 }
 0x244   :  { %v10532_v38 = vadd.f32 %v10121_v9, %v10280_v63  ;;  %v10536_v47 = vadd.f32 %v10121_v9, %v10284_v12  ;;  %v10540_v60 = vadd.f32 %v10121_v9, %v10288_v17  ;;  %v10544_v1 = vadd.f32 %v10121_v9, %v10292_v7 }
 0x245   :  { %v10548_v55 = vadd.f32 %v10121_v9, %v10296_v31  ;;  %v10552_v63 = vadd.f32 %v10121_v9, %v10300_v29  ;;  %v10556_v12 = vadd.f32 %v10121_v9, %v10304_v13  ;;  %v10560_v17 = vadd.f32 %v10121_v9, %v15618_v43 }
 0x246   :  { %15613 = vst [vmem:[#allocation7_spill] sm:$0xff] %v10540_v60  ;;  %15614 = vst [vmem:[#allocation9_spill] sm:$0xff] %v10544_v1  ;;  %v15619_v60 = vld [vmem:[#allocation3_spill] sm:$0xff]  ;;  %v15620_v1 = vld [vmem:[#allocation5_spill] sm:$0xff] }
 0x247   :  { %15615 = vst [vmem:[#allocation12_spill] sm:$0xff] %v10548_v55  ;;  %15616 = vst [vmem:[#allocation14_spill] sm:$0xff] %v10552_v63  ;;  %v10564_v7 = vadd.f32 %v10121_v9, %v15619_v60  ;;  %v10568_v31 = vadd.f32 %v10121_v9, %v15620_v1  ;;  %v15621_v55 = vld [vmem:[#allocation6_spill] sm:$0xff]  ;;  %v15622_v63 = vld [vmem:[#allocation8_spill] sm:$0xff]  ;;  %v10584_v60 = vadd.f32 %v10121_v9, %v10332_v15 }
 0x248   :  { %15617 = vst [vmem:[#allocation11_spill] sm:$0xff] %v10556_v12  ;;  %v10572_v29 = vadd.f32 %v10121_v9, %v15621_v55  ;;  %v10576_v13 = vadd.f32 %v10121_v9, %v15622_v63  ;;  %v15623_v12 = vld [vmem:[#allocation10_spill] sm:$0xff]  ;;  %v10588_v1 = vadd.f32 %v10121_v9, %v10336_v61  ;;  %v10592_v55 = vadd.f32 %v10121_v9, %v10340_v4 }
 0x249   :  { %v10580_v43 = vadd.f32 %v10121_v9, %v15623_v12  ;;  %15625 = vst [vmem:[#allocation16_spill] sm:$0xff] %v10584_v60  ;;  %v10596_v63 = vadd.f32 %v10121_v9, %v10344_v53  ;;  %v10600_v12 = vadd.f32 %v10121_v9, %v10348_v25  ;;  %v10604_v15 = vadd.f32 %v10121_v9, %v10352_v23  ;;  %v15629_v60 = vld [vmem:[#allocation27_spill] sm:$0xff] }
 0x24a   :  { %15626 = vst [vmem:[#allocation18_spill] sm:$0xff] %v10588_v1  ;;  %15627 = vst [vmem:[#allocation15_spill] sm:$0xff] %v10592_v55  ;;  %v10612_v55 = vmax.f32 %v10356_v33, 0.0  ;;  %v10615_v53 = vmax.f32 %v10360_v42, 0.0  ;;  %v10618_v25 = vmax.f32 %v10364_v57, 0.0  ;;  %v10624_v9 = vmax.f32 %v10372_v28, 0.0 }
 0x24b   :  { %15624 = vst [vmem:[#allocation13_spill] sm:$0xff] %v10580_v43  ;;  %15628 = vst [vmem:[#allocation17_spill] sm:$0xff] %v10600_v12  ;;  %v10607_v43 = vadd.s32 4294967295, %v15629_v60  ;;  %v10621_v12 = vmax.f32 %v10368_v36, 0.0  ;;  %v10627_v23 = vmax.f32 %v10376_v5, 0.0  ;;  %v10630_v4 = vmax.f32 %v10380_v40, 0.0 }
 0x24c   :  { %15632 = vst [vmem:[#allocation22_spill] sm:$0xff] %v10612_v55  ;;  %15633 = vst [vmem:[#allocation19_spill] sm:$0xff] %v10615_v53  ;;  %v10633_v33 = vmax.f32 %v10384_v48, 0.0  ;;  %v10636_v42 = vmax.f32 %v10388_v20, 0.0  ;;  %v10639_v57 = vmax.f32 %v10392_v52, 0.0  ;;  %v10642_v36 = vmax.f32 %v10396_v41, 0.0 }
 0x24d   :  { %15630 = vst [vmem:[#allocation20_spill] sm:$0xff] %v10607_v43  ;;  %15634 = vst [vmem:[#allocation21_spill] sm:$0xff] %v10618_v25  ;;  %v10645_v28 = vmax.f32 %v10400_v45, 0.0  ;;  %v10648_v5 = vmax.f32 %v10404_v21, 0.0  ;;  %v10651_v40 = vmax.f32 %v10408_v37, 0.0  ;;  %v10654_v48 = vmax.f32 %v10412_v39, 0.0 }
 0x24e   :  { %15635 = vst [vmem:[#allocation24_spill] sm:$0xff] %v10624_v9  ;;  %15636 = vst [vmem:[#allocation23_spill] sm:$0xff] %v10630_v4  ;;  %v10657_v20 = vmax.f32 %v10416_v51, 0.0  ;;  %v10660_v52 = vmax.f32 %v10420_v46, 0.0  ;;  %v10663_v41 = vmax.f32 %v10424_v50, 0.0  ;;  %v10666_v45 = vmax.f32 %v10428_v56, 0.0 }
 0x24f   :  { %15637 = vst [vmem:[#allocation25_spill] sm:$0xff] %v10633_v33  ;;  %15638 = vst [vmem:[#allocation2_spill] sm:$0xff] %v10642_v36  ;;  %v10669_v21 = vmax.f32 %v10432_v59, 0.0  ;;  %v10672_v37 = vmax.f32 %v10436_v54, 0.0  ;;  %v10675_v39 = vmax.f32 %v10440_v58, 0.0  ;;  %v10678_v51 = vmax.f32 %v10444_v0, 0.0 }
 0x250   :  { %15639 = vst [vmem:[#allocation3_spill] sm:$0xff] %v10645_v28  ;;  %15640 = vst [vmem:[#allocation5_spill] sm:$0xff] %v10648_v5  ;;  %v10681_v46 = vmax.f32 %v10448_v3, 0.0  ;;  %v10684_v50 = vmax.f32 %v10452_v62, 0.0  ;;  %v10687_v56 = vmax.f32 %v10456_v2, 0.0  ;;  %v10690_v59 = vmax.f32 %v10460_v8, 0.0 }
 0x251   :  { %15641 = vst [vmem:[#allocation6_spill] sm:$0xff] %v10651_v40  ;;  %15642 = vst [vmem:[#allocation8_spill] sm:$0xff] %v10654_v48  ;;  %v10693_v54 = vmax.f32 %v10464_v11, 0.0  ;;  %v10696_v58 = vmax.f32 %v10468_v6, 0.0  ;;  %v10699_v0 = vmax.f32 %v10472_v10, 0.0  ;;  %v10702_v3 = vmax.f32 %v10476_v16, 0.0 }
 0x252   :  { %15643 = vst [vmem:[#allocation10_spill] sm:$0xff] %v10657_v20  ;;  %15644 = vst [vmem:[#allocation27_spill] sm:$0xff] %v10666_v45  ;;  %v10705_v62 = vmax.f32 %v10480_v19, 0.0  ;;  %v10708_v2 = vmax.f32 %v10484_v14, 0.0  ;;  %v10711_v8 = vmax.f32 %v10488_v18, 0.0  ;;  %v10714_v11 = vmax.f32 %v10492_v24, 0.0 }
 0x253   :  { %15645 = vst [vmem:[#allocation29_spill] sm:$0xff] %v10672_v37  ;;  %15646 = vst [vmem:[#allocation30_spill] sm:$0xff] %v10675_v39  ;;  %v10717_v6 = vmax.f32 %v10496_v27, 0.0  ;;  %v10720_v10 = vmax.f32 %v10500_v22, 0.0  ;;  %v10723_v16 = vmax.f32 %v10504_v26, 0.0  ;;  %v10726_v19 = vmax.f32 %v10508_v32, 0.0 }
 0x254   :  { %15647 = vst [vmem:[#allocation31_spill] sm:$0xff] %v10678_v51  ;;  %15648 = vst [vmem:[#allocation32_spill] sm:$0xff] %v10681_v46  ;;  %v10729_v14 = vmax.f32 %v10512_v35, 0.0  ;;  %v10732_v18 = vmax.f32 %v10516_v30, 0.0  ;;  %v10735_v24 = vmax.f32 %v10520_v34, 0.0  ;;  %v10738_v27 = vmax.f32 %v10524_v44, 0.0 }
 0x255   :  { %15649 = vst [vmem:[#allocation33_spill] sm:$0xff] %v10684_v50  ;;  %15650 = vst [vmem:[#allocation34_spill] sm:$0xff] %v10687_v56  ;;  %v10741_v22 = vmax.f32 %v10528_v49, 0.0  ;;  %v10744_v26 = vmax.f32 %v10532_v38, 0.0  ;;  %v10747_v32 = vmax.f32 %v10536_v47, 0.0  ;;  %v15663_v35 = vld [vmem:[#allocation7_spill] sm:$0xff] }
 0x256   :  { %15651 = vst [vmem:[#allocation35_spill] sm:$0xff] %v10690_v59  ;;  %15652 = vst [vmem:[#allocation36_spill] sm:$0xff] %v10693_v54  ;;  %v10750_v1 = vmax.f32 %v15663_v35, 0.0  ;;  %v15665_v30 = vld [vmem:[#allocation9_spill] sm:$0xff]  ;;  %v15667_v34 = vld [vmem:[#allocation12_spill] sm:$0xff]  ;;  %v10765_v38 = vmax.f32 %v10560_v17, 0.0 }
 0x257   :  { %15653 = vst [vmem:[#allocation37_spill] sm:$0xff] %v10696_v58  ;;  %15654 = vst [vmem:[#allocation38_spill] sm:$0xff] %v10699_v0  ;;  %v10753_v61 = vmax.f32 %v15665_v30, 0.0  ;;  %v15668_v44 = vld [vmem:[#allocation14_spill] sm:$0xff]  ;;  %v15670_v49 = vld [vmem:[#allocation11_spill] sm:$0xff]  ;;  %v10768_v47 = vmax.f32 %v10564_v7, 0.0 }
 0x258   :  { %15655 = vst [vmem:[#allocation39_spill] sm:$0xff] %v10702_v3  ;;  %15656 = vst [vmem:[#allocation40_spill] sm:$0xff] %v10705_v62  ;;  %v10756_v62 = vmax.f32 %v15667_v34, 0.0  ;;  %v10771_v35 = vmax.f32 %v10568_v31, 0.0  ;;  %v10776_v30 = vld [vmem:[%s15211_s2] sm:$0xff]   ;;  %v10779_v34 = vmax.f32 %v10572_v29, 0.0 }
 0x259   :  { %15657 = vst [vmem:[#allocation41_spill] sm:$0xff] %v10708_v2  ;;  %15658 = vst [vmem:[#allocation42_spill] sm:$0xff] %v10711_v8  ;;  %v10759_v8 = vmax.f32 %v15668_v44, 0.0  ;;  %v10762_v2 = vmax.f32 %v15670_v49, 0.0  ;;  %v10782_v44 = vmax.f32 %v10576_v13, 0.0  ;;  %v15677_v49 = vld [vmem:[#allocation13_spill] sm:$0xff]  ;;  %8013 = vmatprep.subr.bf16.mxu0 %v10776_v30 }
 0x25a   :  { %15659 = vst [vmem:[#allocation43_spill] sm:$0xff] %v10738_v27  ;;  %15660 = vst [vmem:[#allocation44_spill] sm:$0xff] %v10741_v22  ;;  %v10785_v17 = vmax.f32 %v15677_v49, 0.0  ;;  %v15679_v3 = vld [vmem:[#allocation16_spill] sm:$0xff]  ;;  %v15681_v43 = vld [vmem:[#allocation18_spill] sm:$0xff]  ;;  %vm1030_vm0 = vcmp.lt.s32.totalorder %v15629_v60, 1 }
 0x25b   :  { %15661 = vst [vmem:[#allocation45_spill] sm:$0xff] %v10744_v26  ;;  %15662 = vst [vmem:[#allocation46_spill] sm:$0xff] %v10747_v32  ;;  %v10788_v7 = vmax.f32 %v15679_v3, 0.0  ;;  %v10791_v31 = vmax.f32 %v15681_v43, 0.0  ;;  %v15686_v29 = vld [vmem:[#allocation17_spill] sm:$0xff]  ;;  %v10805_v13 = vmax.f32 %v10604_v15, 0.0 }
 0x25c   :  { %15664 = vst [vmem:[#allocation7_spill] sm:$0xff] %v10750_v1  ;;  %15666 = vst [vmem:[#allocation9_spill] sm:$0xff] %v10753_v61  ;;  %v968_v3 = vrot.slane %v10612_v55, 7  ;;  %vm2055_vm1 = vcmp.lt.s32.totalorder %v15629_v60, 7  ;;  %v9301_v49 = vld [vmem:[%s15211_s2 + $0x18] sm:$0xff]   ;;  %v9302_v32 = vld [vmem:[%s15211_s2 + $0x20] sm:$0xff]  }
 0x25d   :  { %15669 = vst [vmem:[#allocation12_spill] sm:$0xff] %v10759_v8  ;;  %15671 = vst [vmem:[#allocation14_spill] sm:$0xff] %v10762_v2  ;;  %v15695_v22 = vrot.slane %v10805_v13, 7  ;;  %v9304_v54 = vld [vmem:[%s15211_s2 + $0x28] sm:$0xff]   ;;  %v15716_v59 = vrot.slane %v10714_v11, 7 }
 0x25e   :  { %15672 = vst [vmem:[#allocation11_spill] sm:$0xff] %v10765_v38  ;;  %15673 = vst [vmem:[#allocation47_spill] sm:$0xff] %v10768_v47  ;;  %v10797_v38 = vmax.f32 %v10596_v63, 0.0 }
 0x25f   :  { %15674 = vst [vmem:[#allocation48_spill] sm:$0xff] %v10771_v35  ;;  %15675 = vst [vmem:[#allocation49_spill] sm:$0xff] %v10779_v34  ;;  %v15683_v35 = vld [vmem:[#allocation15_spill] sm:$0xff]  ;;  %v10800_v34 = vmax.f32 %v15686_v29, 0.0  ;;  %v15689_v29 = vrot.slane %v10615_v53, 7  ;;  %v1090_v27 = vsel %vm1030_vm0, %v15695_v22, %v968_v3  ;;  %v15700_v22 = vld [vmem:[#allocation20_spill] sm:$0xff] }
 0x260   :  { %15676 = vst [vmem:[#allocation50_spill] sm:$0xff] %v10782_v44  ;;  %15678 = vst [vmem:[#allocation13_spill] sm:$0xff] %v10785_v17  ;;  %v10794_v47 = vmax.f32 %v15683_v35, 0.0  ;;  %vm1093_vm2 = vcmp.ge.s32.totalorder %v15700_v22, 0  ;;  %v15710_v35 = vrot.slane %v10624_v9, 1 }
 0x261   :  { %15680 = vst [vmem:[#allocation16_spill] sm:$0xff] %v10788_v7  ;;  %15682 = vst [vmem:[#allocation18_spill] sm:$0xff] %v10791_v31  ;;  %v9299_v31 = vld [vmem:[%s15211_s2 + $0x8] sm:$0xff]   ;;  %v15705_v0 = vld [vmem:[#allocation44_spill] sm:$0xff] }
 0x262   :  { %15684 = vst [vmem:[#allocation15_spill] sm:$0xff] %v10794_v47  ;;  %15685 = vst [vmem:[#allocation51_spill] sm:$0xff] %v10797_v38  ;;  %v10858_v47 = vpack.c.bf16 %v10615_v53, %v10612_v55  ;;  %v15704_v1 = vld [vmem:[#allocation43_spill] sm:$0xff]  ;;  %v15707_v61 = vld [vmem:[#allocation46_spill] sm:$0xff]  ;;  %v10960_v53 = vpack.c.bf16 %v10621_v12, %v10618_v25  ;;  %v15715_v55 = vrot.slane %v10717_v6, 7 }
 0x263   :  { %15687 = vst [vmem:[#allocation17_spill] sm:$0xff] %v10800_v34  ;;  %15688 = vst [vmem:[#allocation52_spill] sm:$0xff] %v10805_v13  ;;  %v1089_v34 = vsel %vm1030_vm0, %v968_v3, %v15689_v29  ;;  %v9300_v3 = vld [vmem:[%s15211_s2 + $0x10] sm:$0xff]   ;;  %v15703_v29 = vld [vmem:[#allocation42_spill] sm:$0xff] }
 0x264   :  { %15690 = vst [vmem:[#allocation53_spill] sm:$0xff] %v10858_v47  ;;  %7950 = vmatmul.mubr.bf16.vlgmr.msra.gmra.mrb[64].mxu0 %v10858_v47  ;;  %v10878_v38 = vpack.c.bf16 %v1089_v34, %v1090_v27  ;;  %v1996_v34 = vrot.slane %v10621_v12, 1  ;;  %v15706_v13 = vld [vmem:[#allocation45_spill] sm:$0xff]  ;;  %v15708_v27 = vld [vmem:[#allocation7_spill] sm:$0xff]  ;;  %15712 = vst [vmem:[#allocation20_spill] sm:$0xff] %v10960_v53  ;;  %v1057_v56 = vsel %vm1030_vm0, %v15716_v59, %v15715_v55 }
 0x265   :  { %v15691_v15 = vld [vmem:[#allocation11_spill] sm:$0xff]  ;;  %8014 = vmatpush3.bf16.msra.mxu0 %v10776_v30  ;;  %v15713_v30 = vld [vmem:[#allocation40_spill] sm:$0xff]  ;;  %7953 = vmatprep.mubr.bf16.mxu0 %v10960_v53  ;;  %v10992_v59 = vpack.c.bf16 %v10627_v23, %v10624_v9  ;;  %vm11001_vm4 = vmpackc.low %vm9430_vm3, %vm1093_vm2  ;;  %v15728_v53 = vrot.slane %v10729_v14, 7 }
 0x266   :  { %v15692_v63 = vld [vmem:[#allocation47_spill] sm:$0xff]  ;;  %15696 = vst [vmem:[#allocation54_spill] sm:$0xff] %v10878_v38  ;;  %8015 = vmatprep.subr.bf16.mxu0 %v9299_v31  ;;  %v15702_v38 = vld [vmem:[#allocation41_spill] sm:$0xff] }
 0x267   :  { %v999_v43 = vrot.slane %v15702_v38, 7  ;;  %15722 = vst [vmem:[#allocation42_spill] sm:$0xff] %v10992_v59 }
 0x269   :  { %8016 = vmatpush3.bf16.msra.mxu0 %v9299_v31  ;;  %v15711_v31 = vrot.slane %v10618_v25, 1  ;;  %v15721_v25 = vmov %v15715_v55 }
 0x26a   :  { %8017 = vmatprep.subr.bf16.mxu0 %v9300_v3 }
 0x26b   :  { %v2113_v47 = vsel %vm2055_vm1, %v15711_v31, %v1996_v34  ;;  %v15718_v31 = vrot.slane %v10720_v10, 7 }
 0x26c   :  { %7954 = vmatmul.mubr.bf16.gmra.mrb[68].mxu0 %v10992_v59  ;;  %v15746_v59 = vrot.slane %v15707_v61, 7 }
 0x26d   :  { %8018 = vmatpush3.bf16.msra.mxu0 %v9300_v3  ;;  %v15709_v3 = vld [vmem:[#allocation9_spill] sm:$0xff] }
 0x26e   :  { %8019 = vmatprep.subr.bf16.mxu0 %v9301_v49 }
 0x271   :  { %8020 = vmatpush3.bf16.msra.mxu0 %v9301_v49  ;;  %v2112_v49 = vsel %vm2055_vm1, %v1996_v34, %v15710_v35  ;;  %v1000_v35 = vrot.slane %v15703_v29, 7  ;;  %v15717_v34 = vrot.slane %v10723_v16, 7 }
 0x272   :  { %8021 = vmatprep.subr.bf16.mxu0 %v9302_v32  ;;  %v10964_v26 = vpack.c.bf16 %v2112_v49, %v2113_v47  ;;  %v15719_v47 = vrot.slane %v15713_v30, 7 }
 0x273   :  { %v1055_v58 = vsel %vm1030_vm0, %v15718_v31, %v15717_v34  ;;  %v9338_v34 = vld [vmem:[%s15211_s2 + $0x218] sm:$0xff]  }
 0x274   :  { %15714 = vst [vmem:[#allocation41_spill] sm:$0xff] %v10964_v26  ;;  %v1060_v49 = vsel %vm1030_vm0, %v15719_v47, %v999_v43  ;;  %v15720_v26 = vmov %v15718_v31  ;;  %v1059_v31 = vsel %vm1030_vm0, %v999_v43, %v1000_v35 }
 0x275   :  { %8022 = vmatpush3.bf16.msra.mxu0 %v9302_v32  ;;  %v1056_v55 = vsel %vm1030_vm0, %v15721_v25, %v15720_v26  ;;  %v10996_v32 = vpack.c.bf16 %v10633_v33, %v10630_v4  ;;  %v15726_v25 = vrot.slane %v10714_v11, 7  ;;  %v15729_v4 = vrot.slane %v10726_v19, 7 }
 0x276   :  { %v11011_v47 = vpack.c.bf16 %v1055_v58, %v1056_v55  ;;  %8023 = vmatprep.subr.bf16.mxu0 %v9304_v54  ;;  %v11019_v33 = vpack.c.bf16 %v1059_v31, %v1060_v49  ;;  %v15734_v55 = vrot.slane %v10735_v24, 7  ;;  %v15738_v31 = vrot.slane %v10729_v14, 7 }
 0x277   :  { %15723 = vst [vmem:[#allocation43_spill] sm:$0xff] %v10996_v32  ;;  %v1058_v26 = vsel %vm1030_vm0, %v1000_v35, %v15726_v25  ;;  %v1053_v22 = vsel %vm1030_vm0, %v15729_v4, %v15728_v53  ;;  %v15732_v43 = vmov %v15729_v4  ;;  %v15733_v35 = vrot.slane %v10723_v16, 7  ;;  %7957 = vmatprep.mubr.bf16.mxu0 %v10996_v32  ;;  %v9288_v53 = vld [vmem:[%s15211_s2 + $0x108] sm:$0xff]  }
 0x278   :  { %15727 = vst [vmem:[#allocation44_spill] sm:$0xff] %v11011_v47  ;;  %15730 = vst [vmem:[#allocation45_spill] sm:$0xff] %v11019_v33  ;;  %v11021_v9 = vpack.c.bf16 %v1057_v56, %v1058_v26  ;;  %v15735_v25 = vrot.slane %v10732_v18, 7  ;;  %8221 = vmatprep.mubr.msk.bf16.mxu1 %vm11001_vm4, %v11019_v33  ;;  %v15747_v33 = vrot.slane %v15706_v13, 7 }
 0x279   :  { %v1054_v58 = vsel %vm1030_vm0, %v15733_v35, %v15732_v43  ;;  %v11050_v43 = vpack.c.bf16 %v10639_v57, %v10636_v42  ;;  %v11054_v35 = vpack.c.bf16 %v10645_v28, %v10642_v36  ;;  %v15764_v36 = vrot.slane %v15709_v3, 7  ;;  %8024 = vmatpush3.bf16.msra.mxu0 %v9304_v54  ;;  %v15777_v54 = vld [vmem:[#allocation49_spill] sm:$0xff] }
 0x27a   :  { %15731 = vst [vmem:[#allocation46_spill] sm:$0xff] %v11021_v9  ;;  %v1051_v4 = vsel %vm1030_vm0, %v15735_v25, %v15734_v55  ;;  %v11040_v56 = vpack.c.bf16 %v1053_v22, %v1054_v58  ;;  %v15737_v49 = vmov %v15735_v25  ;;  %v15742_v58 = vrot.slane %v15705_v0, 7  ;;  %8222 = vmatmul.mubr.msk.bf16.vlgmr.msra.gmra.mrb[0].mxu1 %vm11001_vm4, %v11021_v9  ;;  %v15754_v9 = vld [vmem:[#allocation26_spill] sm:$0xff] }
 0x27b   :  { %v1052_v26 = vsel %vm1030_vm0, %v15738_v31, %v15737_v49  ;;  %15739 = vst [vmem:[#allocation40_spill] sm:$0xff] %v11050_v43  ;;  %15740 = vst [vmem:[#allocation55_spill] sm:$0xff] %v11054_v35  ;;  %v15743_v55 = vrot.slane %v15704_v1, 7  ;;  %v15745_v31 = vrot.slane %v10735_v24, 7  ;;  %8254 = vmatpush3.bf16.msra.mxu1 %v15754_v9  ;;  %8225 = vmatprep.mubr.msk.bf16.mxu1 %vm11001_vm4, %v11011_v47  ;;  %v15762_v47 = vrot.slane %v10756_v62, 7 }
 0x27c   :  { %15736 = vst [vmem:[#allocation7_spill] sm:$0xff] %v11040_v56  ;;  %v11059_v22 = vpack.c.bf16 %v1051_v4, %v1052_v26  ;;  %v1047_v4 = vsel %vm1030_vm0, %v15747_v33, %v15746_v59  ;;  %v9305_v59 = vld [vmem:[%s15211_s2 + $0x30] sm:$0xff]   ;;  %8255 = vmatprep.subr.bf16.mxu1 %v9288_v53  ;;  %7958 = vmatmul.mubr.bf16.gmra.mrb[72].mxu0 %v11050_v43  ;;  %v15785_v43 = vrot.slane %v10788_v7, 7 }
 0x27d   :  { %v1049_v25 = vsel %vm1030_vm0, %v15743_v55, %v15742_v58  ;;  %v15744_v49 = vmov %v15743_v55  ;;  %v15749_v58 = vmov %v15747_v33  ;;  %v15750_v55 = vrot.slane %v15705_v0, 7  ;;  %8025 = vmatprep.subr.bf16.mxu0 %v9305_v59  ;;  %7961 = vmatprep.mubr.bf16.mxu0 %v11054_v35 }
 0x27e   :  { %15741 = vst [vmem:[#allocation56_spill] sm:$0xff] %v11059_v22  ;;  %v1050_v32 = vsel %vm1030_vm0, %v15745_v31, %v15744_v49  ;;  %v11092_v31 = vpack.c.bf16 %v10651_v40, %v10648_v5  ;;  %v11096_v33 = vpack.c.bf16 %v10657_v20, %v10654_v48  ;;  %v15757_v5 = vrot.slane %v15708_v27, 7  ;;  %8026 = vmatpush3.bf16.msra.mxu0 %v9305_v59 }
 0x27f   :  { %v11082_v26 = vpack.c.bf16 %v1049_v25, %v1050_v32  ;;  %v1048_v49 = vsel %vm1030_vm0, %v15750_v55, %v15749_v58  ;;  %v15753_v32 = vld [vmem:[#allocation48_spill] sm:$0xff]  ;;  %v15756_v55 = vrot.slane %v15709_v3, 7  ;;  %v15759_v40 = vrot.slane %v15707_v61, 7  ;;  %8256 = vmatpush3.bf16.msra.mxu1 %v9288_v53  ;;  %v9290_v53 = vld [vmem:[%s15211_s2 + $0x118] sm:$0xff]  }
 0x280   :  { %15751 = vst [vmem:[#allocation58_spill] sm:$0xff] %v11092_v31  ;;  %15752 = vst [vmem:[#allocation59_spill] sm:$0xff] %v11096_v33  ;;  %v11106_v58 = vpack.c.bf16 %v1047_v4, %v1048_v49  ;;  %v15758_v20 = vmov %v15757_v5  ;;  %v9289_v4 = vld [vmem:[%s15211_s2 + $0x110] sm:$0xff]   ;;  %v15761_v25 = vrot.slane %v10759_v8, 7 }
 0x281   :  { %15748 = vst [vmem:[#allocation57_spill] sm:$0xff] %v11082_v26  ;;  %v1045_v48 = vsel %vm1030_vm0, %v15757_v5, %v15756_v55  ;;  %v1046_v9 = vsel %vm1030_vm0, %v15759_v40, %v15758_v20  ;;  %v15763_v55 = vmov %v15762_v47  ;;  %v11139_v20 = vpack.c.bf16 %v10663_v41, %v10660_v52  ;;  %8257 = vmatprep.subr.bf16.mxu1 %v9289_v4 }
 0x282   :  { %15755 = vst [vmem:[#allocation26_spill] sm:$0xff] %v11106_v58  ;;  %v11123_v49 = vpack.c.bf16 %v1045_v48, %v1046_v9  ;;  %v1043_v5 = vsel %vm1030_vm0, %v15762_v47, %v15761_v25  ;;  %v1044_v40 = vsel %vm1030_vm0, %v15764_v36, %v15763_v55  ;;  %v11145_v9 = vpack.c.bf16 %v10669_v21, %v10666_v45 }
 0x283   :  { %15765 = vst [vmem:[#allocation61_spill] sm:$0xff] %v11139_v20  ;;  %v11141_v48 = vpack.c.bf16 %v1043_v5, %v1044_v40  ;;  %v15769_v47 = vrot.slane %v10762_v2, 7  ;;  %v15771_v36 = vrot.slane %v10759_v8, 7  ;;  %v15773_v40 = vrot.slane %v15753_v32, 7  ;;  %8226 = vmatmul.mubr.msk.bf16.gmra.mrb[4].mxu1 %vm11001_vm4, %v11040_v56 }
 0x284   :  { %15760 = vst [vmem:[#allocation60_spill] sm:$0xff] %v11123_v49  ;;  %15767 = vst [vmem:[#allocation63_spill] sm:$0xff] %v11145_v9  ;;  %v15768_v49 = vrot.slane %v15691_v15, 7  ;;  %8229 = vmatprep.mubr.msk.bf16.mxu1 %vm11001_vm4, %v11059_v22  ;;  %8258 = vmatpush3.bf16.msra.mxu1 %v9289_v4  ;;  %v11291_v22 = vpack.c.bf16 %v10723_v16, %v10720_v10 }
 0x285   :  { %15766 = vst [vmem:[#allocation62_spill] sm:$0xff] %v11141_v48  ;;  %v15770_v28 = vmov %v15769_v47  ;;  %v15774_v48 = vrot.slane %v15692_v63, 7  ;;  %8259 = vmatprep.subr.bf16.mxu1 %v9290_v53  ;;  %7962 = vmatmul.mubr.bf16.gmra.mrb[76].mxu0 %v11092_v31 }
 0x286   :  { %v1041_v25 = vsel %vm1030_vm0, %v15769_v47, %v15768_v49  ;;  %v1042_v55 = vsel %vm1030_vm0, %v15771_v36, %v15770_v28  ;;  %v11175_v28 = vpack.c.bf16 %v10675_v39, %v10672_v37  ;;  %v15794_v37 = vld [vmem:[#allocation36_spill] sm:$0xff]  ;;  %15819 = vst [vmem:[#allocation75_spill] sm:$0xff] %v11291_v22  ;;  %7965 = vmatprep.mubr.bf16.mxu0 %v11096_v33  ;;  %v15834_v33 = vld [vmem:[#allocation21_spill] sm:$0xff] }
 0x287   :  { %v11159_v5 = vpack.c.bf16 %v1041_v25, %v1042_v55  ;;  %v1039_v9 = vsel %vm1030_vm0, %v15774_v48, %v15773_v40  ;;  %v15775_v45 = vmov %v15774_v48  ;;  %v11183_v48 = vpack.c.bf16 %v10681_v46, %v10678_v51  ;;  %v15793_v46 = vld [vmem:[#allocation35_spill] sm:$0xff] }
 0x288   :  { %v1040_v47 = vsel %vm1030_vm0, %v15768_v49, %v15775_v45  ;;  %15776 = vst [vmem:[#allocation65_spill] sm:$0xff] %v11175_v28  ;;  %v15780_v55 = vrot.slane %v10782_v44, 7  ;;  %v15781_v45 = vrot.slane %v15777_v54, 7  ;;  %v15782_v49 = vld [vmem:[#allocation17_spill] sm:$0xff]  ;;  %v11224_v39 = vpack.c.bf16 %v15794_v37, %v15793_v46  ;;  %8260 = vmatpush3.bf16.msra.mxu1 %v9290_v53  ;;  %v9292_v53 = vld [vmem:[%s15211_s2 + $0x128] sm:$0xff]  }
 0x289   :  { %15772 = vst [vmem:[#allocation64_spill] sm:$0xff] %v11159_v5  ;;  %v11179_v36 = vpack.c.bf16 %v1039_v9, %v1040_v47  ;;  %15779 = vst [vmem:[#allocation67_spill] sm:$0xff] %v11183_v48  ;;  %v2633_v5 = vrot.slane %v15782_v49, 7  ;;  %v15784_v47 = vrot.slane %v15753_v32, 7 }
 0x28a   :  { %v1037_v40 = vsel %vm1030_vm0, %v15781_v45, %v15780_v55  ;;  %v15783_v9 = vmov %v15781_v45  ;;  %v15786_v55 = vrot.slane %v10785_v17, 7  ;;  %15795 = vst [vmem:[#allocation71_spill] sm:$0xff] %v11224_v39  ;;  %v15804_v39 = vld [vmem:[#allocation51_spill] sm:$0xff] }
 0x28b   :  { %15778 = vst [vmem:[#allocation66_spill] sm:$0xff] %v11179_v36  ;;  %v1038_v25 = vsel %vm1030_vm0, %v15784_v47, %v15783_v9  ;;  %v15788_v36 = vrot.slane %v10782_v44, 7  ;;  %v15791_v9 = vld [vmem:[#allocation34_spill] sm:$0xff]  ;;  %8230 = vmatmul.mubr.msk.bf16.gmra.mrb[8].mxu1 %vm11001_vm4, %v11082_v26  ;;  %v15849_v26 = vrot.slane %v10627_v23, 7 }
 0x28c   :  { %v1035_v45 = vsel %vm1030_vm0, %v15786_v55, %v15785_v43  ;;  %v15787_v35 = vmov %v15786_v55  ;;  %v11214_v28 = vpack.c.bf16 %v1037_v40, %v1038_v25  ;;  %v11220_v47 = vpack.c.bf16 %v15791_v9, %v10684_v50  ;;  %v9306_v43 = vld [vmem:[%s15211_s2 + $0x38] sm:$0xff]   ;;  %8233 = vmatprep.mubr.msk.bf16.mxu1 %vm11001_vm4, %v11106_v58 }
 0x28d   :  { %v1036_v48 = vsel %vm1030_vm0, %v15788_v36, %v15787_v35  ;;  %v15796_v35 = vld [vmem:[#allocation15_spill] sm:$0xff]  ;;  %v15798_v36 = vld [vmem:[#allocation18_spill] sm:$0xff]  ;;  %v15810_v50 = vld [vmem:[#allocation37_spill] sm:$0xff]  ;;  %8027 = vmatprep.subr.bf16.mxu0 %v9306_v43  ;;  %7966 = vmatmul.mubr.bf16.gmra.mrb[80].mxu0 %v11139_v20 }
 0x28e   :  { %15789 = vst [vmem:[#allocation68_spill] sm:$0xff] %v11214_v28  ;;  %v11216_v51 = vpack.c.bf16 %v1035_v45, %v1036_v48  ;;  %15792 = vst [vmem:[#allocation70_spill] sm:$0xff] %v11220_v47  ;;  %v15797_v25 = vrot.slane %v15796_v35, 7  ;;  %v15799_v48 = vrot.slane %v15798_v36, 7  ;;  %v15801_v45 = vrot.slane %v10788_v7, 7  ;;  %8028 = vmatpush3.bf16.msra.mxu0 %v9306_v43 }
 0x28f   :  { %v15805_v47 = vrot.slane %v15804_v39, 7  ;;  %v15833_v43 = vrot.slane %v10621_v12, 7 }
 0x290   :  { %15790 = vst [vmem:[#allocation69_spill] sm:$0xff] %v11216_v51  ;;  %v1033_v40 = vsel %vm1030_vm0, %v15799_v48, %v15797_v25  ;;  %v15800_v55 = vmov %v15799_v48  ;;  %v15802_v51 = vld [vmem:[#allocation4_spill] sm:$0xff]  ;;  %v15807_v37 = vmov %v15797_v25 }
 0x291   :  { %v1034_v59 = vsel %vm1030_vm0, %v15801_v45, %v15800_v55  ;;  %v15803_v28 = vrot.slane %v15802_v51, 7  ;;  %v15806_v46 = vmov %v15805_v47  ;;  %v15815_v4 = vrot.slane %v15802_v51, 7 }
 0x292   :  { %v1032_v25 = vsel %vm1030_vm0, %v15807_v37, %v15806_v46  ;;  %v11260_v55 = vpack.c.bf16 %v1033_v40, %v1034_v59  ;;  %v9291_v37 = vld [vmem:[%s15211_s2 + $0x120] sm:$0xff]   ;;  %v15813_v46 = vld [vmem:[#allocation52_spill] sm:$0xff]  ;;  %v11281_v40 = vpack.c.bf16 %v15703_v29, %v15702_v38  ;;  %v11285_v59 = vpack.c.bf16 %v10717_v6, %v10714_v11 }
 0x293   :  { %v1031_v56 = vsel %vm1030_vm0, %v15805_v47, %v15803_v28  ;;  %v15811_v28 = vld [vmem:[#allocation38_spill] sm:$0xff]  ;;  %v15814_v48 = vrot.slane %v15813_v46, 7  ;;  %8261 = vmatprep.subr.bf16.mxu1 %v9291_v37 }
 0x294   :  { %15808 = vst [vmem:[#allocation72_spill] sm:$0xff] %v11260_v55  ;;  %v11262_v45 = vpack.c.bf16 %v1031_v56, %v1032_v25  ;;  %v11266_v47 = vpack.c.bf16 %v15811_v28, %v15810_v50  ;;  %v2635_v56 = vsel %vm1030_vm0, %v15815_v4, %v2633_v5  ;;  %15816 = vst [vmem:[#allocation38_spill] sm:$0xff] %v11281_v40  ;;  %v15840_v40 = vld [vmem:[#allocation24_spill] sm:$0xff]  ;;  %8262 = vmatpush3.bf16.msra.mxu1 %v9291_v37 }
 0x295   :  { %v2634_v9 = vsel %vm1030_vm0, %v2633_v5, %v15814_v48  ;;  %15817 = vst [vmem:[#allocation52_spill] sm:$0xff] %v11285_v59  ;;  %v11295_v48 = vpack.c.bf16 %v10729_v14, %v10726_v19  ;;  %v11299_v5 = vpack.c.bf16 %v10735_v24, %v10732_v18  ;;  %v11303_v4 = vpack.c.bf16 %v15705_v0, %v15704_v1 }
 0x296   :  { %15809 = vst [vmem:[#allocation73_spill] sm:$0xff] %v11262_v45  ;;  %15812 = vst [vmem:[#allocation37_spill] sm:$0xff] %v11266_v47  ;;  %v11287_v25 = vpack.c.bf16 %v2634_v9, %v2635_v56  ;;  %v11307_v9 = vpack.c.bf16 %v15707_v61, %v15706_v13  ;;  %v11311_v56 = vpack.c.bf16 %v15709_v3, %v15708_v27  ;;  %v15841_v51 = vrot.slane %v15840_v40, 7 }
 0x297   :  { %15820 = vst [vmem:[#allocation76_spill] sm:$0xff] %v11295_v48  ;;  %15821 = vst [vmem:[#allocation77_spill] sm:$0xff] %v11299_v5  ;;  %v11315_v48 = vpack.c.bf16 %v10759_v8, %v10756_v62  ;;  %v11339_v5 = vpack.c.bf16 %v10788_v7, %v10785_v17  ;;  %v15846_v7 = vld [vmem:[#allocation23_spill] sm:$0xff]  ;;  %8263 = vmatprep.subr.bf16.mxu1 %v9292_v53  ;;  %v15917_v3 = vrot.slane %v15811_v28, 7 }
 0x298   :  { %15818 = vst [vmem:[#allocation74_spill] sm:$0xff] %v11287_v25  ;;  %15822 = vst [vmem:[#allocation78_spill] sm:$0xff] %v11303_v4  ;;  %v11321_v4 = vpack.c.bf16 %v15691_v15, %v10762_v2  ;;  %v15837_v25 = vld [vmem:[#allocation19_spill] sm:$0xff]  ;;  %8264 = vmatpush3.bf16.msra.mxu1 %v9292_v53  ;;  %v9294_v53 = vld [vmem:[%s15211_s2 + $0x138] sm:$0xff]  }
 0x299   :  { %15823 = vst [vmem:[#allocation79_spill] sm:$0xff] %v11307_v9  ;;  %15824 = vst [vmem:[#allocation80_spill] sm:$0xff] %v11311_v56  ;;  %v11325_v9 = vpack.c.bf16 %v15753_v32, %v15692_v63  ;;  %v11329_v56 = vpack.c.bf16 %v10782_v44, %v15777_v54  ;;  %v15838_v59 = vrot.slane %v15837_v25, 7  ;;  %v15869_v54 = vld [vmem:[#allocation10_spill] sm:$0xff]  ;;  %v15902_v2 = vld [vmem:[#allocation60_spill] sm:$0xff] }
 0x29a   :  { %15825 = vst [vmem:[#allocation81_spill] sm:$0xff] %v11315_v48  ;;  %15826 = vst [vmem:[#allocation82_spill] sm:$0xff] %v11321_v4  ;;  %v15835_v4 = vrot.slane %v15834_v33, 7  ;;  %8234 = vmatmul.mubr.msk.bf16.gmra.mrb[12].mxu1 %vm11001_vm4, %v15902_v2 }
 0x29b   :  { %15827 = vst [vmem:[#allocation83_spill] sm:$0xff] %v11325_v9  ;;  %15828 = vst [vmem:[#allocation84_spill] sm:$0xff] %v11329_v56  ;;  %v11343_v9 = vpack.c.bf16 %v15796_v35, %v15798_v36  ;;  %v15831_v56 = vld [vmem:[#allocation39_spill] sm:$0xff]  ;;  %v15847_v36 = vrot.slane %v15846_v7, 7  ;;  %v15864_v35 = vld [vmem:[#allocation5_spill] sm:$0xff] }
 0x29c   :  { %15829 = vst [vmem:[#allocation85_spill] sm:$0xff] %v11339_v5  ;;  %v11347_v48 = vpack.c.bf16 %v15713_v30, %v15831_v56  ;;  %v1087_v31 = vsel %vm1030_vm0, %v15835_v4, %v15833_v43  ;;  %v15836_v22 = vmov %v15835_v4  ;;  %v15843_v4 = vmov %v15841_v51 }
 0x29d   :  { %15830 = vst [vmem:[#allocation86_spill] sm:$0xff] %v11343_v9  ;;  %v1088_v5 = vsel %vm1030_vm0, %v15838_v59, %v15836_v22  ;;  %v15839_v9 = vrot.slane %v10627_v23, 7  ;;  %v1086_v22 = vsel %vm1030_vm0, %v15833_v43, %v15843_v4  ;;  %v15844_v59 = vld [vmem:[#allocation25_spill] sm:$0xff]  ;;  %v15865_v44 = vrot.slane %v15864_v35, 7 }
 0x29e   :  { %15832 = vst [vmem:[#allocation39_spill] sm:$0xff] %v11347_v48  ;;  %v11370_v45 = vpack.c.bf16 %v1087_v31, %v1088_v5  ;;  %v15845_v55 = vrot.slane %v15844_v59, 7  ;;  %v15855_v37 = vrot.slane %v15844_v59, 7 }
 0x29f   :  { %v1085_v48 = vsel %vm1030_vm0, %v15841_v51, %v15839_v9  ;;  %v15848_v9 = vmov %v15847_v36 }
 0x2a0   :  { %15842 = vst [vmem:[#allocation21_spill] sm:$0xff] %v11370_v45  ;;  %v1083_v51 = vsel %vm1030_vm0, %v15847_v36, %v15845_v55  ;;  %v1084_v31 = vsel %vm1030_vm0, %v15849_v26, %v15848_v9  ;;  %v11394_v12 = vpack.c.bf16 %v1085_v48, %v1086_v22  ;;  %v15852_v36 = vrot.slane %v10639_v57, 7  ;;  %v9293_v26 = vld [vmem:[%s15211_s2 + $0x130] sm:$0xff]   ;;  %v15856_v22 = vld [vmem:[#allocation3_spill] sm:$0xff] }
 0x2a1   :  { %v11396_v4 = vpack.c.bf16 %v1083_v51, %v1084_v31  ;;  %v15853_v55 = vrot.slane %v10636_v42, 7  ;;  %v15857_v51 = vrot.slane %v15856_v22, 7  ;;  %v15858_v31 = vld [vmem:[#allocation2_spill] sm:$0xff]  ;;  %8265 = vmatprep.subr.bf16.mxu1 %v9293_v26 }
 0x2a2   :  { %15850 = vst [vmem:[#allocation19_spill] sm:$0xff] %v11394_v12  ;;  %v15859_v5 = vrot.slane %v15858_v31, 7  ;;  %v15862_v12 = vld [vmem:[#allocation6_spill] sm:$0xff]  ;;  %8266 = vmatpush3.bf16.msra.mxu1 %v9293_v26 }
 0x2a3   :  { %15851 = vst [vmem:[#allocation24_spill] sm:$0xff] %v11396_v4  ;;  %v1081_v43 = vsel %vm1030_vm0, %v15853_v55, %v15852_v36  ;;  %v15854_v9 = vmov %v15853_v55  ;;  %v15861_v55 = vrot.slane %v10639_v57, 7  ;;  %v15863_v45 = vrot.slane %v15862_v12, 7  ;;  %8267 = vmatprep.subr.bf16.mxu1 %v9294_v53  ;;  %v11562_v26 = vld [vmem:[%s15211_s2 + $0x140] sm:$0xff]  }
 0x2a4   :  { %v1082_v48 = vsel %vm1030_vm0, %v15855_v37, %v15854_v9  ;;  %v1079_v58 = vsel %vm1030_vm0, %v15859_v5, %v15857_v51  ;;  %v15860_v36 = vmov %v15859_v5  ;;  %v15868_v5 = vmov %v15865_v44 }
 0x2a5   :  { %v1080_v4 = vsel %vm1030_vm0, %v15861_v55, %v15860_v36  ;;  %v1077_v9 = vsel %vm1030_vm0, %v15865_v44, %v15863_v45  ;;  %v11431_v37 = vpack.c.bf16 %v1081_v43, %v1082_v48  ;;  %v1078_v32 = vsel %vm1030_vm0, %v15857_v51, %v15868_v5  ;;  %v15871_v55 = vld [vmem:[#allocation8_spill] sm:$0xff] }
 0x2a6   :  { %v11433_v17 = vpack.c.bf16 %v1079_v58, %v1080_v4  ;;  %v15870_v36 = vrot.slane %v15869_v54, 7  ;;  %v15872_v15 = vrot.slane %v15871_v55, 7  ;;  %v11447_v47 = vpack.c.bf16 %v1077_v9, %v1078_v32  ;;  %8268 = vmatpush3.bf16.msra.mxu1 %v9294_v53 }
 0x2a7   :  { %15866 = vst [vmem:[#allocation25_spill] sm:$0xff] %v11431_v37  ;;  %v15875_v58 = vmov %v15863_v45  ;;  %v15876_v4 = vrot.slane %v10663_v41, 7  ;;  %v15877_v43 = vrot.slane %v10660_v52, 7  ;;  %v15893_v9 = vrot.slane %v10669_v21, 7  ;;  %8333 = vmatprep.subr.bf16.mxu1 %v11562_v26 }
 0x2a8   :  { %15867 = vst [vmem:[#allocation23_spill] sm:$0xff] %v11433_v17  ;;  %v1075_v63 = vsel %vm1030_vm0, %v15872_v15, %v15870_v36  ;;  %15873 = vst [vmem:[#allocation3_spill] sm:$0xff] %v11447_v47  ;;  %v15874_v44 = vmov %v15872_v15  ;;  %v15879_v15 = vmov %v15870_v36  ;;  %v15885_v17 = vld [vmem:[#allocation63_spill] sm:$0xff] }
 0x2a9   :  { %v1076_v45 = vsel %vm1030_vm0, %v15875_v58, %v15874_v44  ;;  %v1073_v48 = vsel %vm1030_vm0, %v15877_v43, %v15876_v4  ;;  %v15878_v5 = vmov %v15877_v43  ;;  %v15882_v44 = vrot.slane %v10669_v21, 7  ;;  %v15883_v58 = vld [vmem:[#allocation27_spill] sm:$0xff]  ;;  %7969 = vmatprep.mubr.bf16.mxu0 %v15885_v17  ;;  %v15896_v17 = vld [vmem:[#allocation32_spill] sm:$0xff] }
 0x2aa   :  { %v1074_v32 = vsel %vm1030_vm0, %v15879_v15, %v15878_v5  ;;  %v11469_v51 = vpack.c.bf16 %v1075_v63, %v1076_v45  ;;  %v15884_v4 = vrot.slane %v15883_v58, 7  ;;  %v15887_v45 = vrot.slane %v10663_v41, 7  ;;  %v15888_v5 = vld [vmem:[#allocation30_spill] sm:$0xff] }
 0x2ab   :  { %v11471_v36 = vpack.c.bf16 %v1073_v48, %v1074_v32  ;;  %v15889_v15 = vrot.slane %v15888_v5, 7  ;;  %v15890_v32 = vld [vmem:[#allocation29_spill] sm:$0xff] }
 0x2ac   :  { %15880 = vst [vmem:[#allocation2_spill] sm:$0xff] %v11469_v51  ;;  %v1071_v43 = vsel %vm1030_vm0, %v15884_v4, %v15882_v44  ;;  %v15886_v63 = vmov %v15884_v4  ;;  %v15891_v44 = vrot.slane %v15890_v32, 7 }
 0x2ad   :  { %15881 = vst [vmem:[#allocation6_spill] sm:$0xff] %v11471_v36  ;;  %v1072_v48 = vsel %vm1030_vm0, %v15887_v45, %v15886_v63  ;;  %v15897_v63 = vrot.slane %v15896_v17, 7  ;;  %v15898_v45 = vld [vmem:[#allocation31_spill] sm:$0xff] }
 0x2ae   :  { %v1069_v4 = vsel %vm1030_vm0, %v15891_v44, %v15889_v15  ;;  %v15892_v47 = vmov %v15891_v44  ;;  %v11502_v51 = vpack.c.bf16 %v1071_v43, %v1072_v48  ;;  %v15899_v20 = vrot.slane %v15898_v45, 7  ;;  %v15906_v43 = vld [vmem:[#allocation33_spill] sm:$0xff] }
 0x2af   :  { %v1070_v36 = vsel %vm1030_vm0, %v15893_v9, %v15892_v47  ;;  %v15901_v44 = vrot.slane %v15888_v5, 7  ;;  %v15904_v9 = vld [vmem:[#allocation34_spill] sm:$0xff]  ;;  %v15907_v48 = vrot.slane %v15906_v43, 7 }
 0x2b0   :  { %15894 = vst [vmem:[#allocation5_spill] sm:$0xff] %v11502_v51  ;;  %v11504_v37 = vpack.c.bf16 %v1069_v4, %v1070_v36  ;;  %v1067_v39 = vsel %vm1030_vm0, %v15899_v20, %v15897_v63  ;;  %v15900_v15 = vmov %v15899_v20  ;;  %v15905_v36 = vrot.slane %v15904_v9, 7  ;;  %v15911_v51 = vld [vmem:[#allocation35_spill] sm:$0xff] }
 0x2b1   :  { %v1068_v8 = vsel %vm1030_vm0, %v15901_v44, %v15900_v15  ;;  %v15908_v4 = vmov %v15907_v48  ;;  %v15909_v44 = vld [vmem:[#allocation36_spill] sm:$0xff]  ;;  %v15912_v2 = vrot.slane %v15911_v51, 7 }
 0x2b2   :  { %15895 = vst [vmem:[#allocation10_spill] sm:$0xff] %v11504_v37  ;;  %v11521_v47 = vpack.c.bf16 %v1067_v39, %v1068_v8  ;;  %v1065_v20 = vsel %vm1030_vm0, %v15907_v48, %v15905_v36  ;;  %v1066_v15 = vsel %vm1030_vm0, %v15897_v63, %v15908_v4  ;;  %v15910_v37 = vrot.slane %v15909_v44, 7 }
 0x2b3   :  { %v11545_v36 = vpack.c.bf16 %v1065_v20, %v1066_v15  ;;  %v15915_v48 = vmov %v15912_v2  ;;  %v15916_v4 = vrot.slane %v15904_v9, 7  ;;  %v15921_v8 = vrot.slane %v15909_v44, 7 }
 0x2b4   :  { %15903 = vst [vmem:[#allocation8_spill] sm:$0xff] %v11521_v47  ;;  %v1063_v39 = vsel %vm1030_vm0, %v15912_v2, %v15910_v37  ;;  %v15913_v47 = vld [vmem:[#allocation62_spill] sm:$0xff]  ;;  %v15918_v2 = vrot.slane %v15810_v50, 7 }
 0x2b5   :  { %8237 = vmatprep.mubr.msk.bf16.mxu1 %vm11001_vm4, %v15913_v47  ;;  %15914 = vst [vmem:[#allocation27_spill] sm:$0xff] %v11545_v36  ;;  %v1064_v63 = vsel %vm1030_vm0, %v15916_v4, %v15915_v48  ;;  %v11574_v4 = vpack.c.bf16 %v15813_v46, %v15782_v49 }
 0x2b6   :  { %v1061_v37 = vsel %vm1030_vm0, %v15918_v2, %v15917_v3  ;;  %v11564_v20 = vpack.c.bf16 %v1063_v39, %v1064_v63  ;;  %v15920_v15 = vmov %v15918_v2  ;;  %v15923_v3 = vrot.slane %v15834_v33, 1 }
 0x2b7   :  { %v1062_v48 = vsel %vm1030_vm0, %v15921_v8, %v15920_v15  ;;  %15922 = vst [vmem:[#allocation29_spill] sm:$0xff] %v11574_v4  ;;  %v15924_v2 = vrot.slane %v15837_v25, 1  ;;  %v15928_v15 = vrot.slane %v15846_v7, 1  ;;  %v15929_v4 = vrot.slane %v10627_v23, 1 }
 0x2b8   :  { %15919 = vst [vmem:[#allocation30_spill] sm:$0xff] %v11564_v20  ;;  %v11582_v39 = vpack.c.bf16 %v1061_v37, %v1062_v48  ;;  %v15926_v20 = vld [vmem:[#allocation22_spill] sm:$0xff] }
 0x2b9   :  { %v2114_v47 = vsel %vm2055_vm1, %v15924_v2, %v15923_v3  ;;  %v15925_v63 = vmov %v15924_v2  ;;  %v15927_v36 = vrot.slane %v15926_v20, 1  ;;  %v2110_v33 = vsel %vm2055_vm1, %v15929_v4, %v15928_v15 }
 0x2ba   :  { %v15930_v49 = vmov %v15929_v4  ;;  %v15931_v3 = vrot.slane %v15840_v40, 1  ;;  %v15933_v2 = vrot.slane %v15844_v59, 1  ;;  %v15935_v23 = vmov %v15928_v15 }
 0x2bb   :  { %v2115_v8 = vsel %vm2055_vm1, %v15927_v36, %v15925_v63  ;;  %v15932_v36 = vrot.slane %v10636_v42, 1  ;;  %v15937_v15 = vrot.slane %v15858_v31, 1  ;;  %v15950_v31 = vrot.slane %v10660_v52, 1 }
 0x2bc   :  { %v2111_v37 = vsel %vm2055_vm1, %v15931_v3, %v15930_v49  ;;  %v11602_v25 = vpack.c.bf16 %v2114_v47, %v2115_v8  ;;  %v15934_v4 = vmov %v15933_v2  ;;  %v3486_v49 = vrot.slane %v15713_v30, 1  ;;  %v15936_v47 = vld [vmem:[#allocation65_spill] sm:$0xff] }
 0x2bd   :  { %v11604_v48 = vpack.c.bf16 %v2110_v33, %v2111_v37  ;;  %v2108_v63 = vsel %vm2055_vm1, %v15933_v2, %v15932_v36  ;;  %v2109_v40 = vsel %vm2055_vm1, %v15935_v23, %v15934_v4  ;;  %7970 = vmatmul.mubr.bf16.gmra.mrb[84].mxu0 %v15936_v47  ;;  %v15938_v33 = vrot.slane %v10639_v57, 1  ;;  %v15941_v2 = vld [vmem:[#allocation67_spill] sm:$0xff] }
 0x2be   :  { %v11620_v8 = vpack.c.bf16 %v2108_v63, %v2109_v40  ;;  %v15940_v7 = vmov %v15932_v36  ;;  %v3487_v36 = vrot.slane %v15813_v46, 1  ;;  %7973 = vmatprep.mubr.bf16.mxu0 %v15941_v2  ;;  %v15942_v63 = vrot.slane %v15864_v35, 1 }
 0x2bf   :  { %v2106_v3 = vsel %vm2055_vm1, %v15938_v33, %v15937_v15  ;;  %v15939_v59 = vmov %v15938_v33  ;;  %v15943_v4 = vrot.slane %v15856_v22, 1  ;;  %v15945_v23 = vmov %v15937_v15 }
 0x2c0   :  { %v2107_v37 = vsel %vm2055_vm1, %v15940_v7, %v15939_v59  ;;  %v15946_v33 = vrot.slane %v15871_v55, 1 }
 0x2c1   :  { %v11637_v53 = vpack.c.bf16 %v2106_v3, %v2107_v37  ;;  %v2104_v57 = vsel %vm2055_vm1, %v15943_v4, %v15942_v63  ;;  %v15944_v42 = vmov %v15943_v4  ;;  %v15947_v3 = vrot.slane %v15862_v12, 1 }
 0x2c2   :  { %v2105_v40 = vsel %vm2055_vm1, %v15945_v23, %v15944_v42  ;;  %v15949_v37 = vmov %v15942_v63  ;;  %v15951_v63 = vrot.slane %v15869_v54, 1  ;;  %v15954_v35 = vmov %v15946_v33  ;;  %v15959_v54 = vld [vmem:[#allocation66_spill] sm:$0xff] }
 0x2c3   :  { %v11651_v15 = vpack.c.bf16 %v2104_v57, %v2105_v40  ;;  %v2102_v59 = vsel %vm2055_vm1, %v15947_v3, %v15946_v33  ;;  %v15948_v7 = vmov %v15947_v3  ;;  %v15952_v57 = vld [vmem:[#allocation64_spill] sm:$0xff]  ;;  %v15955_v40 = vrot.slane %v15883_v58, 1 }
 0x2c4   :  { %v2103_v22 = vsel %vm2055_vm1, %v15949_v37, %v15948_v7  ;;  %v2100_v4 = vsel %vm2055_vm1, %v15951_v63, %v15950_v31  ;;  %8238 = vmatmul.mubr.msk.bf16.gmra.mrb[16].mxu1 %vm11001_vm4, %v15952_v57  ;;  %v15953_v12 = vmov %v15951_v63  ;;  %v15956_v33 = vrot.slane %v10663_v41, 1 }
 0x2c5   :  { %v11674_v42 = vpack.c.bf16 %v2102_v59, %v2103_v22  ;;  %v2101_v23 = vsel %vm2055_vm1, %v15954_v35, %v15953_v12  ;;  %v15958_v37 = vmov %v15950_v31  ;;  %8241 = vmatprep.mubr.msk.bf16.mxu1 %vm11001_vm4, %v15959_v54  ;;  %v15960_v31 = vrot.slane %v15890_v32, 1 }
 0x2c6   :  { %v2098_v3 = vsel %vm2055_vm1, %v15956_v33, %v15955_v40  ;;  %v15957_v7 = vmov %v15956_v33  ;;  %v11697_v55 = vpack.c.bf16 %v2100_v4, %v2101_v23  ;;  %v15961_v63 = vrot.slane %v10669_v21, 1 }
 0x2c7   :  { %v2099_v59 = vsel %vm2055_vm1, %v15958_v37, %v15957_v7  ;;  %v15963_v12 = vmov %v15955_v40  ;;  %v15964_v4 = vrot.slane %v15898_v45, 1  ;;  %v15965_v23 = vrot.slane %v15888_v5, 1 }
 0x2c8   :  { %v11699_v22 = vpack.c.bf16 %v2098_v3, %v2099_v59  ;;  %v2096_v41 = vsel %vm2055_vm1, %v15961_v63, %v15960_v31  ;;  %v15962_v52 = vmov %v15961_v63  ;;  %v15967_v7 = vmov %v15960_v31 }
 0x2c9   :  { %v2097_v35 = vsel %vm2055_vm1, %v15963_v12, %v15962_v52  ;;  %v2094_v33 = vsel %vm2055_vm1, %v15965_v23, %v15964_v4  ;;  %v15966_v3 = vmov %v15965_v23  ;;  %v15968_v58 = vrot.slane %v15906_v43, 1 }
 0x2ca   :  { %v11713_v40 = vpack.c.bf16 %v2096_v41, %v2097_v35  ;;  %v2095_v21 = vsel %vm2055_vm1, %v15967_v7, %v15966_v3  ;;  %v15969_v37 = vrot.slane %v15896_v17, 1  ;;  %v15971_v41 = vmov %v15964_v4 }
 0x2cb   :  { %v11733_v31 = vpack.c.bf16 %v2094_v33, %v2095_v21  ;;  %v15972_v32 = vrot.slane %v15911_v51, 1  ;;  %v15973_v52 = vrot.slane %v15904_v9, 1  ;;  %v15975_v4 = vmov %v15968_v58 }
 0x2cc   :  { %v2092_v59 = vsel %vm2055_vm1, %v15969_v37, %v15968_v58  ;;  %v15970_v63 = vmov %v15969_v37  ;;  %v15976_v33 = vrot.slane %v15810_v50, 1  ;;  %v15977_v3 = vrot.slane %v15909_v44, 1  ;;  %v15980_v58 = vld [vmem:[#allocation70_spill] sm:$0xff] }
 0x2cd   :  { %v2093_v5 = vsel %vm2055_vm1, %v15971_v41, %v15970_v63  ;;  %v2090_v12 = vsel %vm2055_vm1, %v15973_v52, %v15972_v32  ;;  %v15974_v35 = vmov %v15973_v52  ;;  %v15979_v9 = vmov %v15972_v32  ;;  %7974 = vmatmul.mubr.bf16.gmra.mrb[88].mxu0 %v15980_v58 }
 0x2ce   :  { %v2091_v23 = vsel %vm2055_vm1, %v15975_v4, %v15974_v35  ;;  %v11753_v17 = vpack.c.bf16 %v2092_v59, %v2093_v5  ;;  %v2088_v7 = vsel %vm2055_vm1, %v15977_v3, %v15976_v33  ;;  %v15978_v21 = vmov %v15977_v3 }
 0x2cf   :  { %v11755_v45 = vpack.c.bf16 %v2090_v12, %v2091_v23  ;;  %v2089_v43 = vsel %vm2055_vm1, %v15979_v9, %v15978_v21  ;;  %v15981_v59 = vrot.slane %v15831_v56, 1  ;;  %v15982_v63 = vrot.slane %v15811_v28, 1  ;;  %v15986_v12 = vld [vmem:[#allocation71_spill] sm:$0xff] }
 0x2d0   :  { %v11770_v37 = vpack.c.bf16 %v2088_v7, %v2089_v43  ;;  %v15984_v44 = vmov %v15976_v33  ;;  %v15985_v32 = vrot.slane %v15702_v38, 1  ;;  %7977 = vmatprep.mubr.bf16.mxu0 %v15986_v12  ;;  %v15988_v33 = vrot.slane %v10714_v11, 1 }
 0x2d1   :  { %v2086_v41 = vsel %vm2055_vm1, %v15982_v63, %v15981_v59  ;;  %v15983_v5 = vmov %v15982_v63  ;;  %v15987_v4 = vmov %v15981_v59  ;;  %v15989_v50 = vrot.slane %v15703_v29, 1 }
 0x2d2   :  { %v2087_v51 = vsel %vm2055_vm1, %v15984_v44, %v15983_v5  ;;  %v3489_v52 = vsel %vm2055_vm1, %v3486_v49, %v15985_v32  ;;  %v3490_v23 = vsel %vm2055_vm1, %v15987_v4, %v3486_v49  ;;  %v15991_v21 = vmov %v15985_v32  ;;  %v15996_v44 = vld [vmem:[#allocation68_spill] sm:$0xff] }
 0x2d3   :  { %v11789_v35 = vpack.c.bf16 %v2086_v41, %v2087_v51  ;;  %v2084_v3 = vsel %vm2055_vm1, %v15989_v50, %v15988_v33  ;;  %v15990_v7 = vmov %v15989_v50  ;;  %v11807_v43 = vpack.c.bf16 %v3489_v52, %v3490_v23  ;;  %8242 = vmatmul.mubr.msk.bf16.gmra.mrb[20].mxu1 %vm11001_vm4, %v15996_v44 }
 0x2d4   :  { %v2085_v9 = vsel %vm2055_vm1, %v15991_v21, %v15990_v7  ;;  %v15992_v49 = vrot.slane %v10720_v10, 1  ;;  %v15993_v63 = vrot.slane %v10717_v6, 1  ;;  %v15995_v29 = vmov %v15988_v33  ;;  %v16003_v7 = vld [vmem:[#allocation69_spill] sm:$0xff] }
 0x2d5   :  { %v11809_v59 = vpack.c.bf16 %v2084_v3, %v2085_v9  ;;  %v15997_v32 = vrot.slane %v10726_v19, 1  ;;  %v15998_v52 = vrot.slane %v10723_v16, 1  ;;  %v16001_v33 = vrot.slane %v10732_v18, 1  ;;  %8245 = vmatprep.mubr.msk.bf16.mxu1 %vm11001_vm4, %v16003_v7 }
 0x2d6   :  { %v2082_v41 = vsel %vm2055_vm1, %v15993_v63, %v15992_v49  ;;  %v15994_v5 = vmov %v15993_v63  ;;  %v16000_v11 = vmov %v15992_v49  ;;  %v16002_v50 = vrot.slane %v10729_v14, 1 }
 0x2d7   :  { %v2083_v38 = vsel %vm2055_vm1, %v15995_v29, %v15994_v5  ;;  %v2080_v4 = vsel %vm2055_vm1, %v15998_v52, %v15997_v32  ;;  %v15999_v6 = vmov %v15998_v52  ;;  %v16005_v10 = vmov %v15997_v32 }
 0x2d8   :  { %v11826_v51 = vpack.c.bf16 %v2082_v41, %v2083_v38  ;;  %v2081_v23 = vsel %vm2055_vm1, %v16000_v11, %v15999_v6  ;;  %v2078_v3 = vsel %vm2055_vm1, %v16002_v50, %v16001_v33  ;;  %v16004_v16 = vmov %v16002_v50 }
 0x2d9   :  { %v11849_v21 = vpack.c.bf16 %v2080_v4, %v2081_v23  ;;  %v2079_v9 = vsel %vm2055_vm1, %v16005_v10, %v16004_v16  ;;  %v16006_v49 = vrot.slane %v15704_v1, 1  ;;  %v16007_v63 = vrot.slane %v10735_v24, 1  ;;  %v16019_v10 = vld [vmem:[#allocation9_spill] sm:$0xff] }
 0x2da   :  { %v16009_v29 = vmov %v16001_v33  ;;  %v11869_v14 = vpack.c.bf16 %v2078_v3, %v2079_v9  ;;  %v16010_v32 = vrot.slane %v15706_v13, 1  ;;  %v16011_v52 = vrot.slane %v15705_v0, 1  ;;  %v16023_v13 = vld [vmem:[#allocation14_spill] sm:$0xff] }
 0x2db   :  { %v2076_v41 = vsel %vm2055_vm1, %v16007_v63, %v16006_v49  ;;  %v16008_v5 = vmov %v16007_v63  ;;  %v16013_v24 = vmov %v16006_v49  ;;  %v16014_v23 = vrot.slane %v15708_v27, 1 }
 0x2dc   :  { %v2077_v38 = vsel %vm2055_vm1, %v16009_v29, %v16008_v5  ;;  %v2074_v4 = vsel %vm2055_vm1, %v16011_v52, %v16010_v32  ;;  %v16012_v6 = vmov %v16011_v52  ;;  %v16015_v33 = vrot.slane %v15707_v61, 1 }
 0x2dd   :  { %v11871_v19 = vpack.c.bf16 %v2076_v41, %v2077_v38  ;;  %v2075_v18 = vsel %vm2055_vm1, %v16013_v24, %v16012_v6  ;;  %v16017_v16 = vmov %v16010_v32  ;;  %v16018_v1 = vrot.slane %v10756_v62, 1  ;;  %v16025_v38 = vld [vmem:[#allocation12_spill] sm:$0xff] }
 0x2de   :  { %v11885_v11 = vpack.c.bf16 %v2074_v4, %v2075_v18  ;;  %v2072_v50 = vsel %vm2055_vm1, %v16015_v33, %v16014_v23  ;;  %v16016_v3 = vmov %v16015_v33  ;;  %v16020_v9 = vrot.slane %v16019_v10, 1  ;;  %v16029_v18 = vld [vmem:[#allocation37_spill] sm:$0xff]  ;;  %v16030_v33 = vld [vmem:[#allocation47_spill] sm:$0xff] }
 0x2df   :  { %v2073_v0 = vsel %vm2055_vm1, %v16017_v16, %v16016_v3  ;;  %v16022_v5 = vmov %v16014_v23  ;;  %v16024_v29 = vrot.slane %v16023_v13, 1  ;;  %v16026_v32 = vrot.slane %v16025_v38, 1  ;;  %7978 = vmatmul.mubr.bf16.gmra.mrb[92].mxu0 %v16029_v18  ;;  %v16032_v3 = vld [vmem:[#allocation11_spill] sm:$0xff] }
 0x2e0   :  { %v2070_v49 = vsel %vm2055_vm1, %v16020_v9, %v16018_v1  ;;  %v11905_v63 = vpack.c.bf16 %v2072_v50, %v2073_v0  ;;  %v16021_v41 = vmov %v16020_v9  ;;  %v16028_v6 = vmov %v16018_v1 }
 0x2e1   :  { %v2071_v61 = vsel %vm2055_vm1, %v16022_v5, %v16021_v41  ;;  %v2068_v52 = vsel %vm2055_vm1, %v16026_v32, %v16024_v29  ;;  %v16027_v4 = vmov %v16026_v32  ;;  %v16031_v50 = vrot.slane %v16030_v33, 1  ;;  %v16037_v41 = vld [vmem:[#allocation49_spill] sm:$0xff]  ;;  %v16049_v33 = vld [vmem:[#allocation18_spill] sm:$0xff] }
 0x2e2   :  { %v2069_v24 = vsel %vm2055_vm1, %v16028_v6, %v16027_v4  ;;  %v11926_v27 = vpack.c.bf16 %v2070_v49, %v2071_v61  ;;  %v16033_v16 = vrot.slane %v16032_v3, 1  ;;  %v16035_v62 = vmov %v16024_v29  ;;  %v16039_v61 = vld [vmem:[#allocation48_spill] sm:$0xff]  ;;  %v16043_v4 = vld [vmem:[#allocation13_spill] sm:$0xff] }
 0x2e3   :  { %v11928_v23 = vpack.c.bf16 %v2068_v52, %v2069_v24  ;;  %v16036_v9 = vmov 0.0|0.0   ;;  %v16038_v5 = vrot.slane %v16037_v41, 1  ;;  %v16040_v29 = vrot.slane %v16039_v61, 1  ;;  %v16045_v24 = vld [vmem:[#allocation50_spill] sm:$0xff] }
 0x2e4   :  { %v2066_v0 = vsel %vm2055_vm1, %v16033_v16, %v16031_v50  ;;  %v16034_v1 = vmov %v16033_v16  ;;  %7981 = vmatprep.mubr.bf16.mxu0 %v16036_v9  ;;  %v16042_v52 = vmov %v16031_v50  ;;  %v16044_v6 = vrot.slane %v16043_v4, 1 }
 0x2e5   :  { %v2067_v10 = vsel %vm2055_vm1, %v16035_v62, %v16034_v1  ;;  %v2064_v38 = vsel %vm2055_vm1, %v16040_v29, %v16038_v5  ;;  %v16041_v32 = vmov %v16040_v29  ;;  %v16046_v50 = vrot.slane %v16045_v24, 1  ;;  %v16056_v24 = vld [vmem:[#allocation51_spill] sm:$0xff] }
 0x2e6   :  { %v11943_v49 = vpack.c.bf16 %v2066_v0, %v2067_v10  ;;  %v2065_v13 = vsel %vm2055_vm1, %v16042_v52, %v16041_v32  ;;  %v16048_v1 = vmov %v16038_v5  ;;  %v16050_v10 = vrot.slane %v16049_v33, 1  ;;  %v16051_v5 = vld [vmem:[#allocation16_spill] sm:$0xff] }
 0x2e7   :  { %v2062_v3 = vsel %vm2055_vm1, %v16046_v50, %v16044_v6  ;;  %v11963_v16 = vpack.c.bf16 %v2064_v38, %v2065_v13  ;;  %v16047_v0 = vmov %v16046_v50  ;;  %v16052_v61 = vrot.slane %v16051_v5, 1  ;;  %v16055_v13 = vld [vmem:[#allocation72_spill] sm:$0xff] }
 0x2e8   :  { %v2063_v62 = vsel %vm2055_vm1, %v16048_v1, %v16047_v0  ;;  %v16054_v52 = vmov %v16044_v6  ;;  %8246 = vmatmul.mubr.msk.bf16.gmra.mrb[24].mxu1 %vm11001_vm4, %v16055_v13  ;;  %v16057_v50 = vrot.slane %v16056_v24, 1  ;;  %v16058_v0 = vld [vmem:[#allocation15_spill] sm:$0xff]  ;;  %v16061_v5 = vrot.slane %v16049_v33, 1 }
 0x2e9   :  { %v2060_v29 = vsel %vm2055_vm1, %v16052_v61, %v16050_v10  ;;  %v16053_v32 = vmov %v16052_v61  ;;  %v11986_v41 = vpack.c.bf16 %v2062_v3, %v2063_v62  ;;  %v16059_v1 = vrot.slane %v16058_v0, 1  ;;  %v16064_v62 = vld [vmem:[#allocation17_spill] sm:$0xff] }
 0x2ea   :  { %v2061_v38 = vsel %vm2055_vm1, %v16054_v52, %v16053_v32  ;;  %v16062_v32 = vld [vmem:[#allocation73_spill] sm:$0xff]  ;;  %v16066_v52 = vld [vmem:[#allocation4_spill] sm:$0xff]  ;;  %v16069_v33 = vrot.slane %v16056_v24, 1 }
 0x2eb   :  { %v11988_v6 = vpack.c.bf16 %v2060_v29, %v2061_v38  ;;  %v2058_v10 = vsel %vm2055_vm1, %v16059_v1, %v16057_v50  ;;  %v16060_v4 = vmov %v16059_v1  ;;  %8249 = vmatprep.mubr.msk.bf16.mxu1 %vm11001_vm4, %v16062_v32  ;;  %v16065_v29 = vrot.slane %v16064_v62, 1 }
 0x2ec   :  { %v2059_v61 = vsel %vm2055_vm1, %v16061_v5, %v16060_v4  ;;  %v16067_v38 = vrot.slane %v16066_v52, 1 }
 0x2ed   :  { %v12005_v3 = vpack.c.bf16 %v2058_v10, %v2059_v61  ;;  %v16070_v4 = vmov %v16065_v29  ;;  %v16072_v61 = vrot.slane %v15926_v20, 1 }
 0x2ee   :  { %v2056_v50 = vsel %vm2055_vm1, %v16067_v38, %v16065_v29  ;;  %v16068_v0 = vmov %v16067_v38  ;;  %v3488_v10 = vsel %vm2055_vm1, %v16070_v4, %v3487_v36  ;;  %v16073_v38 = vrot.slane %v15713_v30, 7  ;;  %v16081_v30 = vld [vmem:[#allocation74_spill] sm:$0xff] }
 0x2ef   :  { %16063 = vst [vmem:[#allocation32_spill] sm:$0xff] %v12005_v3  ;;  %v2057_v1 = vsel %vm2055_vm1, %v16069_v33, %v16068_v0  ;;  %v3491_v29 = vsel %vm2055_vm1, %v3487_v36, %v16072_v61  ;;  %v16074_v0 = vrot.slane %v15831_v56, 7  ;;  %v16076_v4 = vrot.slane %v15811_v28, 7  ;;  %v16080_v36 = vld [vmem:[#allocation52_spill] sm:$0xff]  ;;  %v16082_v61 = vld [vmem:[#allocation53_spill] sm:$0xff]  ;;  %v16083_v56 = vld [vmem:[#allocation75_spill] sm:$0xff] }
 0x2f0   :  { %v12025_v5 = vpack.c.bf16 %v2056_v50, %v2057_v1  ;;  %v12045_v20 = vpack.c.bf16 %v3491_v29, %v3488_v10  ;;  %v16079_v1 = vld [vmem:[#allocation38_spill] sm:$0xff]  ;;  %8250 = vmatmul.mubr.msk.bf16.gmra.mrb[28].mxu1 %vm11001_vm4, %v16081_v30  ;;  %v16084_v28 = vld [vmem:[#allocation76_spill] sm:$0xff]  ;;  %v9296_v10 = vld [vmem:[%s15211_s2 + $0x148] sm:$0xff]   ;;  %v12112_v3 = vpack.c.bf16 %v16066_v52, %v16056_v24 }
 0x2f1   :  { %v2636_v33 = vsel %vm1030_vm0, %v16074_v0, %v16073_v38  ;;  %v16075_v62 = vmov %v16074_v0  ;;  %7982 = vmatmul.mubr.bf16.gmra.mrb[96].mxu0 %v16079_v1  ;;  %8269 = vmatprep.mubr.bf16.mxu1 %v16082_v61  ;;  %v16085_v29 = vld [vmem:[#allocation20_spill] sm:$0xff]  ;;  %v16086_v38 = vld [vmem:[#allocation42_spill] sm:$0xff]  ;;  %v16093_v30 = vld [vmem:[#allocation55_spill] sm:$0xff] }
 0x2f2   :  { %16071 = vst [vmem:[#allocation31_spill] sm:$0xff] %v12025_v5  ;;  %v2637_v50 = vsel %vm1030_vm0, %v16076_v4, %v16075_v62  ;;  %16077 = vst [vmem:[#allocation34_spill] sm:$0xff] %v12045_v20  ;;  %7985 = vmatprep.mubr.bf16.mxu0 %v16080_v36  ;;  %v9298_v0 = vld [vmem:[%s15211_s2 + $0x150] sm:$0xff]   ;;  %v16088_v62 = vld [vmem:[#allocation78_spill] sm:$0xff] }
 0x2f3   :  { %v12047_v46 = vpack.c.bf16 %v2636_v33, %v2637_v50  ;;  %v16087_v33 = vld [vmem:[#allocation77_spill] sm:$0xff]  ;;  %v16089_v50 = vld [vmem:[#allocation43_spill] sm:$0xff]  ;;  %v9307_v61 = vld [vmem:[%s15211_s2 + $0x160] sm:$0xff]   ;;  %16104 = vst [vmem:[#allocation36_spill] sm:$0xff] %v12112_v3 }
 0x2f4   :  { %v9303_v4 = vld [vmem:[%s15211_s2 + $0x158] sm:$0xff]   ;;  %v16097_v20 = vld [vmem:[#allocation59_spill] sm:$0xff]  ;;  %v16100_v5 = vld [vmem:[#allocation84_spill] sm:$0xff] }
 0x2f5   :  { %16078 = vst [vmem:[#allocation33_spill] sm:$0xff] %v12047_v46  ;;  %v9310_v46 = vld [vmem:[%s15211_s2 + $0x178] sm:$0xff]   ;;  %v9316_v24 = vld [vmem:[%s15211_s2 + $0x90] sm:$0xff]   ;;  %v16107_v52 = vld [vmem:[#allocation39_spill] sm:$0xff] }
 0x2f8   :  { %8270 = vmatmul.mubr.bf16.vlgmr.msra.gmra.mrb[32].mxu1 %v16085_v29  ;;  %v9308_v29 = vld [vmem:[%s15211_s2 + $0x168] sm:$0xff]  }
 0x2f9   :  { %7986 = vmatmul.mubr.bf16.gmra.mrb[100].mxu0 %v16083_v56  ;;  %8334 = vmatpush3.bf16.msra.mxu1 %v11562_v26  ;;  %v16090_v26 = vld [vmem:[#allocation40_spill] sm:$0xff] }
 0x2fa   :  { %7989 = vmatprep.mubr.bf16.mxu0 %v16084_v28  ;;  %8273 = vmatprep.mubr.bf16.mxu1 %v16086_v38  ;;  %v16091_v38 = vld [vmem:[#allocation79_spill] sm:$0xff] }
 0x2fb   :  { %8335 = vmatprep.subr.bf16.mxu1 %v9296_v10 }
 0x2fd   :  { %8336 = vmatpush3.bf16.msra.mxu1 %v9296_v10  ;;  %v16092_v10 = vld [vmem:[#allocation80_spill] sm:$0xff] }
 0x2fe   :  { %8337 = vmatprep.subr.bf16.mxu1 %v9298_v0 }
 0x300   :  { %8274 = vmatmul.mubr.bf16.gmra.mrb[36].mxu1 %v16089_v50  ;;  %v16094_v50 = vld [vmem:[#allocation58_spill] sm:$0xff] }
 0x301   :  { %7990 = vmatmul.mubr.bf16.gmra.mrb[104].mxu0 %v16087_v33  ;;  %8277 = vmatprep.mubr.bf16.mxu1 %v16090_v26  ;;  %v16095_v26 = vld [vmem:[#allocation81_spill] sm:$0xff] }
 0x302   :  { %7993 = vmatprep.mubr.bf16.mxu0 %v16088_v62  ;;  %8338 = vmatpush3.bf16.msra.mxu1 %v9298_v0  ;;  %v9309_v0 = vld [vmem:[%s15211_s2 + $0x170] sm:$0xff]  }
 0x303   :  { %8339 = vmatprep.subr.bf16.mxu1 %v9303_v4 }
 0x306   :  { %8340 = vmatpush3.bf16.msra.mxu1 %v9303_v4  ;;  %v16096_v4 = vld [vmem:[#allocation82_spill] sm:$0xff] }
 0x307   :  { %8341 = vmatprep.subr.bf16.mxu1 %v9307_v61 }
 0x308   :  { %8278 = vmatmul.mubr.bf16.gmra.mrb[40].mxu1 %v16093_v30  ;;  %v16098_v30 = vld [vmem:[#allocation61_spill] sm:$0xff] }
 0x309   :  { %7994 = vmatmul.mubr.bf16.gmra.mrb[108].mxu0 %v16091_v38  ;;  %8281 = vmatprep.mubr.bf16.mxu1 %v16094_v50  ;;  %v16099_v50 = vld [vmem:[#allocation83_spill] sm:$0xff] }
 0x30a   :  { %7997 = vmatprep.mubr.bf16.mxu0 %v16092_v10  ;;  %8342 = vmatpush3.bf16.msra.mxu1 %v9307_v61  ;;  %v9313_v61 = vld [vmem:[%s15211_s2 + $0x80] sm:$0xff]  }
 0x30b   :  { %8343 = vmatprep.subr.bf16.mxu1 %v9308_v29  ;;  %8093 = vmatprep.subr.bf16.mxu0 %v9313_v61 }
 0x30e   :  { %8344 = vmatpush3.bf16.msra.mxu1 %v9308_v29  ;;  %v12099_v29 = vld [vmem:[%s15211_s2 + $0x180] sm:$0xff]  }
 0x30f   :  { %8345 = vmatprep.subr.bf16.mxu1 %v9309_v0 }
 0x310   :  { %8282 = vmatmul.mubr.bf16.gmra.mrb[44].mxu1 %v16097_v20  ;;  %v16103_v20 = vld [vmem:[#allocation86_spill] sm:$0xff] }
 0x311   :  { %7998 = vmatmul.mubr.bf16.gmra.mrb[112].mxu0 %v16095_v26  ;;  %8285 = vmatprep.mubr.bf16.mxu1 %v16098_v30  ;;  %v16101_v30 = vld [vmem:[#allocation63_spill] sm:$0xff] }
 0x312   :  { %8001 = vmatprep.mubr.bf16.mxu0 %v16096_v4  ;;  %8346 = vmatpush3.bf16.msra.mxu1 %v9309_v0  ;;  %v16102_v0 = vld [vmem:[#allocation85_spill] sm:$0xff] }
 0x313   :  { %8347 = vmatprep.subr.bf16.mxu1 %v9310_v46 }
 0x316   :  { %8348 = vmatpush3.bf16.msra.mxu1 %v9310_v46  ;;  %v9315_v46 = vld [vmem:[%s15211_s2 + $0x88] sm:$0xff]  }
 0x317   :  { %8413 = vmatprep.subr.bf16.mxu1 %v12099_v29 }
 0x318   :  { %8286 = vmatmul.mubr.bf16.gmra.mrb[48].mxu1 %v16101_v30  ;;  %v16131_v30 = vld [vmem:[#allocation60_spill] sm:$0xff] }
 0x319   :  { %8002 = vmatmul.mubr.bf16.gmra.mrb[116].mxu0 %v16099_v50  ;;  %8289 = vmatprep.mubr.bf16.mxu1 %v15936_v47  ;;  %v16105_v47 = vld [vmem:[#allocation54_spill] sm:$0xff] }
 0x31a   :  { %8005 = vmatprep.mubr.bf16.mxu0 %v16100_v5 }
 0x320   :  { %8290 = vmatmul.mubr.bf16.gmra.mrb[52].mxu1 %v15941_v2  ;;  %v16130_v2 = vld [vmem:[#allocation26_spill] sm:$0xff] }
 0x321   :  { %8006 = vmatmul.mubr.bf16.gmra.mrb[120].mxu0 %v16102_v0  ;;  %8293 = vmatprep.mubr.bf16.mxu1 %v15980_v58  ;;  %v16106_v58 = vld [vmem:[#allocation21_spill] sm:$0xff] }
 0x322   :  { %8009 = vmatprep.mubr.bf16.mxu0 %v16103_v20 }
 0x328   :  { %8294 = vmatmul.mubr.bf16.gmra.mrb[56].mxu1 %v15986_v12  ;;  %v16108_v12 = vld [vmem:[#allocation19_spill] sm:$0xff] }
 0x329   :  { %8010 = vmatmul.mubr.bf16.gmra.mrb[124].mxu0 %v12112_v3  ;;  %8297 = vmatprep.mubr.bf16.mxu1 %v16029_v18  ;;  %v9317_v18 = vld [vmem:[%s15211_s2 + $0x98] sm:$0xff]  }
 0x32a   :  { %8029 = vmatprep.mubr.bf16.mxu0 %v16036_v9 }
 0x330   :  { %8298 = vmatmul.mubr.bf16.gmra.mrb[60].mxu1 %v16107_v52  ;;  %v16110_v52 = vld [vmem:[#allocation25_spill] sm:$0xff] }
 0x331   :  { %8030 = vmatmul.mubr.msk.bf16.vlgmr.msra.gmra.mrb[64].mxu0 %vm11001_vm4, %v16105_v47  ;;  %8301 = vmatprep.mubr.bf16.mxu1 %v16079_v1  ;;  %v9318_v1 = vld [vmem:[%s15211_s2 + $0xa0] sm:$0xff]  }
 0x332   :  { %8033 = vmatprep.mubr.msk.bf16.mxu0 %vm11001_vm4, %v16106_v58  ;;  %8094 = vmatpush3.bf16.msra.mxu0 %v9313_v61  ;;  %v16109_v61 = vld [vmem:[#allocation24_spill] sm:$0xff] }
 0x333   :  { %8095 = vmatprep.subr.bf16.mxu0 %v9315_v46 }
 0x336   :  { %8096 = vmatpush3.bf16.msra.mxu0 %v9315_v46  ;;  %v9320_v46 = vld [vmem:[%s15211_s2 + $0xa8] sm:$0xff]  }
 0x337   :  { %8097 = vmatprep.subr.bf16.mxu0 %v9316_v24 }
 0x338   :  { %8302 = vmatmul.mubr.bf16.gmra.mrb[0].mxu1 %v16080_v36  ;;  %v16112_v36 = vld [vmem:[#allocation3_spill] sm:$0xff] }
 0x339   :  { %8034 = vmatmul.mubr.msk.bf16.gmra.mrb[68].mxu0 %vm11001_vm4, %v16108_v12  ;;  %8305 = vmatprep.mubr.bf16.mxu1 %v16083_v56  ;;  %v9321_v56 = vld [vmem:[%s15211_s2 + $0xb0] sm:$0xff]  }
 0x33a   :  { %8037 = vmatprep.mubr.msk.bf16.mxu0 %vm11001_vm4, %v16109_v61  ;;  %8098 = vmatpush3.bf16.msra.mxu0 %v9316_v24  ;;  %v16111_v24 = vld [vmem:[#allocation23_spill] sm:$0xff] }
 0x33b   :  { %8099 = vmatprep.subr.bf16.mxu0 %v9317_v18 }
 0x33e   :  { %8100 = vmatpush3.bf16.msra.mxu0 %v9317_v18  ;;  %v9322_v18 = vld [vmem:[%s15211_s2 + $0xb8] sm:$0xff]  }
 0x33f   :  { %8101 = vmatprep.subr.bf16.mxu0 %v9318_v1 }
 0x340   :  { %8306 = vmatmul.mubr.bf16.gmra.mrb[4].mxu1 %v16084_v28  ;;  %v16115_v28 = vld [vmem:[#allocation5_spill] sm:$0xff] }
 0x341   :  { %8038 = vmatmul.mubr.msk.bf16.gmra.mrb[72].mxu0 %vm11001_vm4, %v16110_v52  ;;  %8309 = vmatprep.mubr.bf16.mxu1 %v16087_v33  ;;  %v16114_v33 = vld [vmem:[#allocation6_spill] sm:$0xff] }
 0x342   :  { %8041 = vmatprep.mubr.msk.bf16.mxu0 %vm11001_vm4, %v16111_v24  ;;  %8102 = vmatpush3.bf16.msra.mxu0 %v9318_v1  ;;  %v16113_v1 = vld [vmem:[#allocation2_spill] sm:$0xff] }
 0x343   :  { %8103 = vmatprep.subr.bf16.mxu0 %v9320_v46 }
 0x346   :  { %8104 = vmatpush3.bf16.msra.mxu0 %v9320_v46  ;;  %v12174_v46 = vld [vmem:[%s15211_s2 + $0xc0] sm:$0xff]  }
 0x347   :  { %8105 = vmatprep.subr.bf16.mxu0 %v9321_v56 }
 0x348   :  { %8310 = vmatmul.mubr.bf16.gmra.mrb[8].mxu1 %v16088_v62  ;;  %v16119_v62 = vld [vmem:[#allocation30_spill] sm:$0xff] }
 0x349   :  { %8042 = vmatmul.mubr.msk.bf16.gmra.mrb[76].mxu0 %vm11001_vm4, %v16112_v36  ;;  %8313 = vmatprep.mubr.bf16.mxu1 %v16091_v38  ;;  %v16118_v38 = vld [vmem:[#allocation27_spill] sm:$0xff] }
 0x34a   :  { %8045 = vmatprep.mubr.msk.bf16.mxu0 %vm11001_vm4, %v16113_v1  ;;  %8106 = vmatpush3.bf16.msra.mxu0 %v9321_v56  ;;  %v16116_v56 = vld [vmem:[#allocation10_spill] sm:$0xff] }
 0x34b   :  { %8107 = vmatprep.subr.bf16.mxu0 %v9322_v18 }
 0x34e   :  { %8108 = vmatpush3.bf16.msra.mxu0 %v9322_v18  ;;  %v16117_v18 = vld [vmem:[#allocation8_spill] sm:$0xff] }
 0x34f   :  { %8173 = vmatprep.subr.bf16.mxu0 %v12174_v46 }
 0x350   :  { %8314 = vmatmul.mubr.bf16.gmra.mrb[12].mxu1 %v16092_v10  ;;  %v16129_v10 = vld [vmem:[#allocation57_spill] sm:$0xff] }
 0x351   :  { %8046 = vmatmul.mubr.msk.bf16.gmra.mrb[80].mxu0 %vm11001_vm4, %v16114_v33  ;;  %8317 = vmatprep.mubr.bf16.mxu1 %v16095_v26  ;;  %v967_v26 = vadd.s32 8, %v15629_v60  ;;  %v16123_v60 = vld [vmem:[#allocation46_spill] sm:$0xff] }
 0x352   :  { %8049 = vmatprep.mubr.msk.bf16.mxu0 %vm11001_vm4, %v16115_v28 }
 0x358   :  { %8318 = vmatmul.mubr.bf16.gmra.mrb[16].mxu1 %v16096_v4  ;;  %v16120_v4 = vld [vmem:[#allocation45_spill] sm:$0xff] }
 0x359   :  { %8050 = vmatmul.mubr.msk.bf16.gmra.mrb[84].mxu0 %vm11001_vm4, %v16116_v56  ;;  %8321 = vmatprep.mubr.bf16.mxu1 %v16099_v50  ;;  %v2117_v50 = vadd.s32 1, %v967_v26  ;;  %v16126_v26 = vld [vmem:[#allocation7_spill] sm:$0xff] }
 0x35a   :  { %8053 = vmatprep.mubr.msk.bf16.mxu0 %vm11001_vm4, %v16117_v18 }
 0x35b   :  { %vm2121_vm5 = vcmp.lt.s32.totalorder %v2117_v50, 16  ;;  %v16125_v50 = vld [vmem:[#allocation44_spill] sm:$0xff] }
 0x35c   :  { %vm12212_vm6 = vmpackc.low %vm2121_vm5, %vm9430_vm3 }
 0x360   :  { %8322 = vmatmul.mubr.bf16.gmra.mrb[20].mxu1 %v16100_v5  ;;  %v16124_v5 = vld [vmem:[#allocation29_spill] sm:$0xff] }
 0x361   :  { %8054 = vmatmul.mubr.msk.bf16.gmra.mrb[88].mxu0 %vm11001_vm4, %v16118_v38  ;;  %8325 = vmatprep.mubr.bf16.mxu1 %v16102_v0 }
 0x362   :  { %8057 = vmatprep.mubr.msk.bf16.mxu0 %vm11001_vm4, %v16119_v62 }
 0x368   :  { %8326 = vmatmul.mubr.bf16.gmra.mrb[24].mxu1 %v16103_v20  ;;  %v16128_v20 = vld [vmem:[#allocation56_spill] sm:$0xff] }
 0x369   :  { %8058 = vmatmul.mubr.msk.bf16.gmra.mrb[92].mxu0 %vm11001_vm4, %v11582_v39  ;;  %8329 = vmatprep.mubr.bf16.mxu1 %v12112_v3  ;;  %v16127_v3 = vld [vmem:[#allocation41_spill] sm:$0xff] }
 0x36a   :  { %8061 = vmatprep.mubr.bf16.mxu0 %v16036_v9 }
 0x370   :  { %8330 = vmatmul.mubr.bf16.gmra.mrb[28].mxu1 %v16124_v5  ;;  %v9314_v5 = vld [vmem:[%s15211_s2 + $0x190] sm:$0xff]  }
 0x371   :  { %8062 = vmatmul.mubr.msk.bf16.gmra.mrb[96].mxu0 %vm11001_vm4, %v16120_v4  ;;  %8349 = vmatprep.mubr.msk.bf16.mxu1 %vm12212_vm6, %v11602_v25  ;;  %v9312_v4 = vld [vmem:[%s15211_s2 + $0x188] sm:$0xff]  }
 0x372   :  { %8065 = vmatprep.mubr.msk.bf16.mxu0 %vm11001_vm4, %v16123_v60 }
 0x378   :  { %8350 = vmatmul.mubr.msk.bf16.vlgmr.msra.gmra.mrb[32].mxu1 %vm12212_vm6, %v16127_v3 }
 0x379   :  { %8066 = vmatmul.mubr.msk.bf16.gmra.mrb[100].mxu0 %vm11001_vm4, %v16125_v50  ;;  %8414 = vmatpush3.bf16.msra.mxu1 %v12099_v29  ;;  %v9319_v29 = vld [vmem:[%s15211_s2 + $0x198] sm:$0xff]  }
 0x37a   :  { %8069 = vmatprep.mubr.msk.bf16.mxu0 %vm11001_vm4, %v16126_v26  ;;  %8353 = vmatprep.mubr.msk.bf16.mxu1 %vm12212_vm6, %v11604_v48 }
 0x37b   :  { %8415 = vmatprep.subr.bf16.mxu1 %v9312_v4 }
 0x37d   :  { %8416 = vmatpush3.bf16.msra.mxu1 %v9312_v4  ;;  %v9323_v4 = vld [vmem:[%s15211_s2 + $0x1a0] sm:$0xff]  }
 0x37e   :  { %8417 = vmatprep.subr.bf16.mxu1 %v9314_v5 }
 0x380   :  { %8354 = vmatmul.mubr.msk.bf16.gmra.mrb[36].mxu1 %vm12212_vm6, %v11620_v8 }
 0x381   :  { %8070 = vmatmul.mubr.msk.bf16.gmra.mrb[104].mxu0 %vm11001_vm4, %v16128_v20  ;;  %8357 = vmatprep.mubr.msk.bf16.mxu1 %vm12212_vm6, %v11637_v53 }
 0x382   :  { %8073 = vmatprep.mubr.msk.bf16.mxu0 %vm11001_vm4, %v16129_v10  ;;  %8418 = vmatpush3.bf16.msra.mxu1 %v9314_v5  ;;  %v9324_v10 = vld [vmem:[%s15211_s2 + $0x1a8] sm:$0xff]   ;;  %v9325_v5 = vld [vmem:[%s15211_s2 + $0x1b0] sm:$0xff]  }
 0x383   :  { %8419 = vmatprep.subr.bf16.mxu1 %v9319_v29 }
 0x386   :  { %8420 = vmatpush3.bf16.msra.mxu1 %v9319_v29  ;;  %v16132_v29 = vld [vmem:[#allocation62_spill] sm:$0xff] }
 0x387   :  { %8421 = vmatprep.subr.bf16.mxu1 %v9323_v4 }
 0x388   :  { %8358 = vmatmul.mubr.msk.bf16.gmra.mrb[40].mxu1 %vm12212_vm6, %v11651_v15 }
 0x389   :  { %8074 = vmatmul.mubr.msk.bf16.gmra.mrb[108].mxu0 %vm11001_vm4, %v16130_v2  ;;  %8361 = vmatprep.mubr.msk.bf16.mxu1 %vm12212_vm6, %v11674_v42 }
 0x38a   :  { %8077 = vmatprep.mubr.msk.bf16.mxu0 %vm11001_vm4, %v16131_v30  ;;  %8422 = vmatpush3.bf16.msra.mxu1 %v9323_v4  ;;  %v9326_v30 = vld [vmem:[%s15211_s2 + $0x1b8] sm:$0xff]   ;;  %v9361_v4 = vld [vmem:[%s15211_s2 + $0xe0] sm:$0xff]  }
 0x38b   :  { %8423 = vmatprep.subr.bf16.mxu1 %v9324_v10 }
 0x38e   :  { %8424 = vmatpush3.bf16.msra.mxu1 %v9324_v10  ;;  %v12296_v10 = vld [vmem:[%s15211_s2 + $0x1c0] sm:$0xff]  }
 0x38f   :  { %8425 = vmatprep.subr.bf16.mxu1 %v9325_v5 }
 0x390   :  { %8362 = vmatmul.mubr.msk.bf16.gmra.mrb[44].mxu1 %vm12212_vm6, %v11697_v55 }
 0x391   :  { %8078 = vmatmul.mubr.msk.bf16.gmra.mrb[112].mxu0 %vm11001_vm4, %v16132_v29  ;;  %8365 = vmatprep.mubr.msk.bf16.mxu1 %vm12212_vm6, %v11699_v22 }
 0x392   :  { %8081 = vmatprep.mubr.msk.bf16.mxu0 %vm11001_vm4, %v15952_v57  ;;  %8426 = vmatpush3.bf16.msra.mxu1 %v9325_v5  ;;  %v9362_v5 = vld [vmem:[%s15211_s2 + $0xe8] sm:$0xff]  }
 0x393   :  { %8427 = vmatprep.subr.bf16.mxu1 %v9326_v30 }
 0x396   :  { %8428 = vmatpush3.bf16.msra.mxu1 %v9326_v30  ;;  %v9358_v30 = vld [vmem:[%s15211_s2 + $0xc8] sm:$0xff]  }
 0x397   :  { %8493 = vmatprep.subr.bf16.mxu1 %v12296_v10 }
 0x398   :  { %8366 = vmatmul.mubr.msk.bf16.gmra.mrb[48].mxu1 %vm12212_vm6, %v11713_v40 }
 0x399   :  { %8082 = vmatmul.mubr.msk.bf16.gmra.mrb[116].mxu0 %vm11001_vm4, %v15959_v54  ;;  %8369 = vmatprep.mubr.msk.bf16.mxu1 %vm12212_vm6, %v11733_v31 }
 0x39a   :  { %8085 = vmatprep.mubr.msk.bf16.mxu0 %vm11001_vm4, %v15996_v44 }
 0x3a0   :  { %8370 = vmatmul.mubr.msk.bf16.gmra.mrb[52].mxu1 %vm12212_vm6, %v11753_v17 }
 0x3a1   :  { %8086 = vmatmul.mubr.msk.bf16.gmra.mrb[120].mxu0 %vm11001_vm4, %v16003_v7  ;;  %8373 = vmatprep.mubr.msk.bf16.mxu1 %vm12212_vm6, %v11755_v45 }
 0x3a2   :  { %8089 = vmatprep.mubr.msk.bf16.mxu0 %vm11001_vm4, %v16055_v13 }
 0x3a8   :  { %8374 = vmatmul.mubr.msk.bf16.gmra.mrb[56].mxu1 %vm12212_vm6, %v11770_v37 }
 0x3a9   :  { %8090 = vmatmul.mubr.msk.bf16.gmra.mrb[124].mxu0 %vm11001_vm4, %v16062_v32  ;;  %8377 = vmatprep.mubr.msk.bf16.mxu1 %vm12212_vm6, %v11789_v35 }
 0x3aa   :  { %8109 = vmatprep.mubr.bf16.mxu0 %v16036_v9 }
 0x3b0   :  { %8378 = vmatmul.mubr.msk.bf16.gmra.mrb[60].mxu1 %vm12212_vm6, %v11807_v43 }
 0x3b1   :  { %8110 = vmatmul.mubr.msk.bf16.vlgmr.msra.gmra.mrb[64].mxu0 %vm12212_vm6, %v11602_v25  ;;  %8381 = vmatprep.mubr.msk.bf16.mxu1 %vm12212_vm6, %v11809_v59  ;;  %v9359_v25 = vld [vmem:[%s15211_s2 + $0xd0] sm:$0xff]  }
 0x3b2   :  { %8113 = vmatprep.mubr.msk.bf16.mxu0 %vm12212_vm6, %v16127_v3  ;;  %8174 = vmatpush3.bf16.msra.mxu0 %v12174_v46  ;;  %v9360_v46 = vld [vmem:[%s15211_s2 + $0xd8] sm:$0xff]  }
 0x3b3   :  { %8175 = vmatprep.subr.bf16.mxu0 %v9358_v30 }
 0x3b6   :  { %8176 = vmatpush3.bf16.msra.mxu0 %v9358_v30  ;;  %v9363_v30 = vld [vmem:[%s15211_s2 + $0xf0] sm:$0xff]  }
 0x3b7   :  { %8177 = vmatprep.subr.bf16.mxu0 %v9359_v25 }
 0x3b8   :  { %8382 = vmatmul.mubr.msk.bf16.gmra.mrb[0].mxu1 %vm12212_vm6, %v11826_v51 }
 0x3b9   :  { %8114 = vmatmul.mubr.msk.bf16.gmra.mrb[68].mxu0 %vm12212_vm6, %v11604_v48  ;;  %8385 = vmatprep.mubr.msk.bf16.mxu1 %vm12212_vm6, %v11849_v21 }
 0x3ba   :  { %8117 = vmatprep.mubr.msk.bf16.mxu0 %vm12212_vm6, %v11620_v8  ;;  %8178 = vmatpush3.bf16.msra.mxu0 %v9359_v25  ;;  %v9364_v25 = vld [vmem:[%s15211_s2 + $0xf8] sm:$0xff]  }
 0x3bb   :  { %8179 = vmatprep.subr.bf16.mxu0 %v9360_v46 }
 0x3be   :  { %8180 = vmatpush3.bf16.msra.mxu0 %v9360_v46  ;;  %v16133_v46 = vld [vmem:[#allocation32_spill] sm:$0xff] }
 0x3bf   :  { %8181 = vmatprep.subr.bf16.mxu0 %v9361_v4 }
 0x3c0   :  { %8386 = vmatmul.mubr.msk.bf16.gmra.mrb[4].mxu1 %vm12212_vm6, %v11869_v14 }
 0x3c1   :  { %8118 = vmatmul.mubr.msk.bf16.gmra.mrb[72].mxu0 %vm12212_vm6, %v11637_v53  ;;  %8389 = vmatprep.mubr.msk.bf16.mxu1 %vm12212_vm6, %v11871_v19 }
 0x3c2   :  { %8121 = vmatprep.mubr.msk.bf16.mxu0 %vm12212_vm6, %v11651_v15  ;;  %8182 = vmatpush3.bf16.msra.mxu0 %v9361_v4  ;;  %v16134_v4 = vld [vmem:[#allocation31_spill] sm:$0xff] }
 0x3c3   :  { %8183 = vmatprep.subr.bf16.mxu0 %v9362_v5 }
 0x3c6   :  { %8184 = vmatpush3.bf16.msra.mxu0 %v9362_v5  ;;  %v16135_v5 = vld [vmem:[#allocation34_spill] sm:$0xff] }
 0x3c7   :  { %8185 = vmatprep.subr.bf16.mxu0 %v9363_v30 }
 0x3c8   :  { %8390 = vmatmul.mubr.msk.bf16.gmra.mrb[8].mxu1 %vm12212_vm6, %v11885_v11 }
 0x3c9   :  { %8122 = vmatmul.mubr.msk.bf16.gmra.mrb[76].mxu0 %vm12212_vm6, %v11674_v42  ;;  %8393 = vmatprep.mubr.msk.bf16.mxu1 %vm12212_vm6, %v11905_v63 }
 0x3ca   :  { %8125 = vmatprep.mubr.msk.bf16.mxu0 %vm12212_vm6, %v11697_v55  ;;  %8186 = vmatpush3.bf16.msra.mxu0 %v9363_v30  ;;  %v9329_v30 = vld [vmem:[%s15211_s2 + $0x1d0] sm:$0xff]  }
 0x3cb   :  { %8187 = vmatprep.subr.bf16.mxu0 %v9364_v25 }
 0x3ce   :  { %8188 = vmatpush3.bf16.msra.mxu0 %v9364_v25  ;;  %v9331_v25 = vld [vmem:[%s15211_s2 + $0x1e0] sm:$0xff]  }
 0x3d0   :  { %8394 = vmatmul.mubr.msk.bf16.gmra.mrb[12].mxu1 %vm12212_vm6, %v11926_v27 }
 0x3d1   :  { %8126 = vmatmul.mubr.msk.bf16.gmra.mrb[80].mxu0 %vm12212_vm6, %v11699_v22  ;;  %8397 = vmatprep.mubr.msk.bf16.mxu1 %vm12212_vm6, %v11928_v23 }
 0x3d2   :  { %8129 = vmatprep.mubr.msk.bf16.mxu0 %vm12212_vm6, %v11713_v40 }
 0x3d8   :  { %8398 = vmatmul.mubr.msk.bf16.gmra.mrb[16].mxu1 %vm12212_vm6, %v11943_v49 }
 0x3d9   :  { %8130 = vmatmul.mubr.msk.bf16.gmra.mrb[84].mxu0 %vm12212_vm6, %v11733_v31  ;;  %8401 = vmatprep.mubr.msk.bf16.mxu1 %vm12212_vm6, %v11963_v16 }
 0x3da   :  { %8133 = vmatprep.mubr.msk.bf16.mxu0 %vm12212_vm6, %v11753_v17 }
 0x3e0   :  { %8402 = vmatmul.mubr.msk.bf16.gmra.mrb[20].mxu1 %vm12212_vm6, %v11986_v41 }
 0x3e1   :  { %8134 = vmatmul.mubr.msk.bf16.gmra.mrb[88].mxu0 %vm12212_vm6, %v11755_v45  ;;  %8405 = vmatprep.mubr.msk.bf16.mxu1 %vm12212_vm6, %v11988_v6 }
 0x3e2   :  { %8137 = vmatprep.mubr.msk.bf16.mxu0 %vm12212_vm6, %v11770_v37 }
 0x3e8   :  { %8406 = vmatmul.mubr.msk.bf16.gmra.mrb[24].mxu1 %vm12212_vm6, %v16133_v46 }
 0x3e9   :  { %8138 = vmatmul.mubr.msk.bf16.gmra.mrb[92].mxu0 %vm12212_vm6, %v11789_v35  ;;  %8409 = vmatprep.mubr.msk.bf16.mxu1 %vm12212_vm6, %v16134_v4 }
 0x3ea   :  { %8141 = vmatprep.mubr.bf16.mxu0 %v16036_v9 }
 0x3f0   :  { %8410 = vmatmul.mubr.msk.bf16.gmra.mrb[28].mxu1 %vm12212_vm6, %v16135_v5 }
 0x3f1   :  { %8142 = vmatmul.mubr.msk.bf16.gmra.mrb[96].mxu0 %vm12212_vm6, %v11809_v59  ;;  %8429 = vmatprep.mubr.msk.bf16.mxu1 %vm11001_vm4, %v16106_v58  ;;  %v9328_v59 = vld [vmem:[%s15211_s2 + $0x1c8] sm:$0xff]  }
 0x3f2   :  { %8145 = vmatprep.mubr.msk.bf16.mxu0 %vm12212_vm6, %v11826_v51 }
 0x3f8   :  { %8430 = vmatmul.mubr.msk.bf16.vlgmr.msra.gmra.mrb[32].mxu1 %vm11001_vm4, %v16108_v12 }
 0x3f9   :  { %8146 = vmatmul.mubr.msk.bf16.gmra.mrb[100].mxu0 %vm12212_vm6, %v11849_v21  ;;  %8494 = vmatpush3.bf16.msra.mxu1 %v12296_v10  ;;  %v9330_v10 = vld [vmem:[%s15211_s2 + $0x1d8] sm:$0xff]  }
 0x3fa   :  { %8149 = vmatprep.mubr.msk.bf16.mxu0 %vm12212_vm6, %v11869_v14  ;;  %8433 = vmatprep.mubr.msk.bf16.mxu1 %vm11001_vm4, %v16109_v61 }
 0x3fb   :  { %8495 = vmatprep.subr.bf16.mxu1 %v9328_v59 }
 0x3fd   :  { %8496 = vmatpush3.bf16.msra.mxu1 %v9328_v59  ;;  %v9332_v59 = vld [vmem:[%s15211_s2 + $0x1e8] sm:$0xff]  }
 0x3fe   :  { %8497 = vmatprep.subr.bf16.mxu1 %v9329_v30 }
 0x400   :  { %8434 = vmatmul.mubr.msk.bf16.gmra.mrb[36].mxu1 %vm11001_vm4, %v16110_v52 }
 0x401   :  { %8150 = vmatmul.mubr.msk.bf16.gmra.mrb[104].mxu0 %vm12212_vm6, %v11871_v19  ;;  %8437 = vmatprep.mubr.msk.bf16.mxu1 %vm11001_vm4, %v16111_v24 }
 0x402   :  { %8153 = vmatprep.mubr.msk.bf16.mxu0 %vm12212_vm6, %v11885_v11  ;;  %8498 = vmatpush3.bf16.msra.mxu1 %v9329_v30  ;;  %v9333_v30 = vld [vmem:[%s15211_s2 + $0x1f0] sm:$0xff]  }
 0x403   :  { %8499 = vmatprep.subr.bf16.mxu1 %v9330_v10 }
 0x406   :  { %8500 = vmatpush3.bf16.msra.mxu1 %v9330_v10  ;;  %v9334_v10 = vld [vmem:[%s15211_s2 + $0x1f8] sm:$0xff]  }
 0x407   :  { %8501 = vmatprep.subr.bf16.mxu1 %v9331_v25 }
 0x408   :  { %8438 = vmatmul.mubr.msk.bf16.gmra.mrb[40].mxu1 %vm11001_vm4, %v16112_v36 }
 0x409   :  { %8154 = vmatmul.mubr.msk.bf16.gmra.mrb[108].mxu0 %vm12212_vm6, %v11905_v63  ;;  %8441 = vmatprep.mubr.msk.bf16.mxu1 %vm11001_vm4, %v16113_v1 }
 0x40a   :  { %8157 = vmatprep.mubr.msk.bf16.mxu0 %vm12212_vm6, %v11926_v27  ;;  %8502 = vmatpush3.bf16.msra.mxu1 %v9331_v25  ;;  %v9335_v25 = vld [vmem:[%s15211_s2 + $0x200] sm:$0xff]  }
 0x40b   :  { %8503 = vmatprep.subr.bf16.mxu1 %v9332_v59 }
 0x40e   :  { %8504 = vmatpush3.bf16.msra.mxu1 %v9332_v59  ;;  %v16136_v59 = vld [vmem:[#allocation33_spill] sm:$0xff] }
 0x40f   :  { %8505 = vmatprep.subr.bf16.mxu1 %v9333_v30 }
 0x410   :  { %8442 = vmatmul.mubr.msk.bf16.gmra.mrb[44].mxu1 %vm11001_vm4, %v16114_v33 }
 0x411   :  { %8158 = vmatmul.mubr.msk.bf16.gmra.mrb[112].mxu0 %vm12212_vm6, %v11928_v23  ;;  %8445 = vmatprep.mubr.msk.bf16.mxu1 %vm11001_vm4, %v16115_v28 }
 0x412   :  { %8161 = vmatprep.mubr.msk.bf16.mxu0 %vm12212_vm6, %v11943_v49  ;;  %8506 = vmatpush3.bf16.msra.mxu1 %v9333_v30  ;;  %v16158_v30 = vld [vmem:[#allocation77_spill] sm:$0xff] }
 0x413   :  { %8507 = vmatprep.subr.bf16.mxu1 %v9334_v10 }
 0x416   :  { %8508 = vmatpush3.bf16.msra.mxu1 %v9334_v10 }
 0x417   :  { %8573 = vmatprep.subr.bf16.mxu1 %v9335_v25 }
 0x418   :  { %8446 = vmatmul.mubr.msk.bf16.gmra.mrb[48].mxu1 %vm11001_vm4, %v16116_v56 }
 0x419   :  { %8162 = vmatmul.mubr.msk.bf16.gmra.mrb[116].mxu0 %vm12212_vm6, %v11963_v16  ;;  %8449 = vmatprep.mubr.msk.bf16.mxu1 %vm11001_vm4, %v16117_v18 }
 0x41a   :  { %8165 = vmatprep.mubr.msk.bf16.mxu0 %vm12212_vm6, %v11986_v41 }
 0x420   :  { %8450 = vmatmul.mubr.msk.bf16.gmra.mrb[52].mxu1 %vm11001_vm4, %v16118_v38 }
 0x421   :  { %8166 = vmatmul.mubr.msk.bf16.gmra.mrb[120].mxu0 %vm12212_vm6, %v11988_v6  ;;  %8453 = vmatprep.mubr.msk.bf16.mxu1 %vm11001_vm4, %v16119_v62 }
 0x422   :  { %8169 = vmatprep.mubr.msk.bf16.mxu0 %vm12212_vm6, %v16133_v46 }
 0x428   :  { %8454 = vmatmul.mubr.msk.bf16.gmra.mrb[56].mxu1 %vm11001_vm4, %v11582_v39 }
 0x429   :  { %8170 = vmatmul.mubr.msk.bf16.gmra.mrb[124].mxu0 %vm12212_vm6, %v16134_v4  ;;  %8457 = vmatprep.mubr.msk.bf16.mxu1 %vm11001_vm4, %v16136_v59 }
 0x42a   :  { %8189 = vmatprep.mubr.msk.bf16.mxu0 %vm11001_vm4, %v16105_v47  ;;  %v16137_v47 = vld [vmem:[#allocation57_spill] sm:$0xff] }
 0x430   :  { %8458 = vmatmul.mubr.bf16.gmra.mrb[60].mxu1 %v16036_v9 }
 0x431   :  { %8190 = vmatmul.mubr.msk.bf16.vlgmr.msra.gmra.mrb[64].mxu0 %vm11001_vm4, %v16106_v58  ;;  %8461 = vmatprep.mubr.msk.bf16.mxu1 %vm11001_vm4, %v16123_v60  ;;  %v16138_v58 = vld [vmem:[#allocation60_spill] sm:$0xff]  ;;  %v16154_v60 = vld [vmem:[#allocation39_spill] sm:$0xff] }
 0x432   :  { %8193 = vmatprep.mubr.msk.bf16.mxu0 %vm11001_vm4, %v16108_v12  ;;  %v16142_v12 = vld [vmem:[#allocation43_spill] sm:$0xff] }
 0x438   :  { %8462 = vmatmul.mubr.msk.bf16.gmra.mrb[0].mxu1 %vm11001_vm4, %v16125_v50  ;;  %v16155_v50 = vld [vmem:[#allocation52_spill] sm:$0xff] }
 0x439   :  { %8194 = vmatmul.mubr.msk.bf16.gmra.mrb[68].mxu0 %vm11001_vm4, %v16109_v61  ;;  %8465 = vmatprep.mubr.msk.bf16.mxu1 %vm11001_vm4, %v16126_v26  ;;  %v16149_v61 = vld [vmem:[#allocation65_spill] sm:$0xff]  ;;  %v16156_v26 = vld [vmem:[#allocation75_spill] sm:$0xff] }
 0x43a   :  { %8197 = vmatprep.mubr.msk.bf16.mxu0 %vm11001_vm4, %v16110_v52  ;;  %v16148_v52 = vld [vmem:[#allocation63_spill] sm:$0xff] }
 0x440   :  { %8466 = vmatmul.mubr.msk.bf16.gmra.mrb[4].mxu1 %vm11001_vm4, %v16128_v20  ;;  %v9340_v20 = vld [vmem:[%s15211_s2 + $0x228] sm:$0xff]  }
 0x441   :  { %8198 = vmatmul.mubr.msk.bf16.gmra.mrb[72].mxu0 %vm11001_vm4, %v16111_v24  ;;  %8469 = vmatprep.mubr.msk.bf16.mxu1 %vm11001_vm4, %v16137_v47  ;;  %v16150_v24 = vld [vmem:[#allocation67_spill] sm:$0xff] }
 0x442   :  { %8201 = vmatprep.mubr.msk.bf16.mxu0 %vm11001_vm4, %v16112_v36  ;;  %v16145_v36 = vld [vmem:[#allocation58_spill] sm:$0xff] }
 0x448   :  { %8470 = vmatmul.mubr.msk.bf16.gmra.mrb[8].mxu1 %vm11001_vm4, %v16130_v2  ;;  %v16139_v2 = vld [vmem:[#allocation74_spill] sm:$0xff] }
 0x449   :  { %8202 = vmatmul.mubr.msk.bf16.gmra.mrb[76].mxu0 %vm11001_vm4, %v16113_v1  ;;  %8473 = vmatprep.mubr.msk.bf16.mxu1 %vm11001_vm4, %v16138_v58  ;;  %v16151_v1 = vld [vmem:[#allocation70_spill] sm:$0xff] }
 0x44a   :  { %8205 = vmatprep.mubr.msk.bf16.mxu0 %vm11001_vm4, %v16114_v33  ;;  %v9342_v33 = vld [vmem:[%s15211_s2 + $0x238] sm:$0xff]  }
 0x450   :  { %8474 = vmatmul.mubr.msk.bf16.gmra.mrb[12].mxu1 %vm11001_vm4, %v16132_v29  ;;  %v16157_v29 = vld [vmem:[#allocation76_spill] sm:$0xff] }
 0x451   :  { %8206 = vmatmul.mubr.msk.bf16.gmra.mrb[80].mxu0 %vm11001_vm4, %v16115_v28  ;;  %8477 = vmatprep.mubr.msk.bf16.mxu1 %vm11001_vm4, %v15952_v57  ;;  %v9336_v57 = vld [vmem:[%s15211_s2 + $0x208] sm:$0xff]  }
 0x452   :  { %8209 = vmatprep.mubr.msk.bf16.mxu0 %vm11001_vm4, %v16116_v56  ;;  %v16146_v28 = vld [vmem:[#allocation59_spill] sm:$0xff] }
 0x453   :  { %v16152_v56 = vld [vmem:[#allocation71_spill] sm:$0xff] }
 0x458   :  { %8478 = vmatmul.mubr.msk.bf16.gmra.mrb[16].mxu1 %vm11001_vm4, %v15959_v54  ;;  %v16141_v54 = vld [vmem:[#allocation42_spill] sm:$0xff] }
 0x459   :  { %8210 = vmatmul.mubr.msk.bf16.gmra.mrb[84].mxu0 %vm11001_vm4, %v16117_v18  ;;  %8481 = vmatprep.mubr.msk.bf16.mxu1 %vm11001_vm4, %v15996_v44  ;;  %v9337_v44 = vld [vmem:[%s15211_s2 + $0x210] sm:$0xff]   ;;  %v16153_v18 = vld [vmem:[#allocation37_spill] sm:$0xff] }
 0x45a   :  { %8213 = vmatprep.mubr.msk.bf16.mxu0 %vm11001_vm4, %v16118_v38  ;;  %v9341_v38 = vld [vmem:[%s15211_s2 + $0x230] sm:$0xff]  }
 0x460   :  { %8482 = vmatmul.mubr.msk.bf16.gmra.mrb[20].mxu1 %vm11001_vm4, %v16003_v7  ;;  %v16143_v7 = vld [vmem:[#allocation40_spill] sm:$0xff] }
 0x461   :  { %8214 = vmatmul.mubr.msk.bf16.gmra.mrb[88].mxu0 %vm11001_vm4, %v16119_v62  ;;  %8485 = vmatprep.mubr.msk.bf16.mxu1 %vm11001_vm4, %v16055_v13  ;;  %v16144_v13 = vld [vmem:[#allocation55_spill] sm:$0xff]  ;;  %v16147_v62 = vld [vmem:[#allocation61_spill] sm:$0xff] }
 0x462   :  { %8217 = vmatprep.mubr.msk.bf16.mxu0 %vm11001_vm4, %v11582_v39  ;;  %v16140_v39 = vld [vmem:[#allocation20_spill] sm:$0xff] }
 0x468   :  { %8486 = vmatmul.mubr.msk.bf16.gmra.mrb[24].mxu1 %vm11001_vm4, %v16062_v32  ;;  %v9339_v32 = vld [vmem:[%s15211_s2 + $0x220] sm:$0xff]  }
 0x469   :  { %8218 = vmatmul.mubr.msk.bf16.gmra.mrb[92].mxu0 %vm11001_vm4, %v16136_v59  ;;  %8489 = vmatprep.mubr.msk.bf16.mxu1 %vm11001_vm4, %v16139_v2  ;;  %v16160_v2 = vld [vmem:[#allocation79_spill] sm:$0xff] }
 0x470   :  { %8490 = vmatmul.mubr.bf16.gmra.mrb[28].mxu1 %v16036_v9 }
 0x471   :  { %8509 = vmatprep.mubr.bf16.mxu1 %v16140_v39 }
 0x478   :  { %8510 = vmatmul.mubr.bf16.vlgmr.msra.gmra.mrb[32].mxu1 %v16141_v54 }
 0x479   :  { %8574 = vmatpush3.bf16.msra.mxu1 %v9335_v25  ;;  %8513 = vmatprep.mubr.bf16.mxu1 %v16142_v12  ;;  %v16159_v25 = vld [vmem:[#allocation78_spill] sm:$0xff] }
 0x47a   :  { %8575 = vmatprep.subr.bf16.mxu1 %v9336_v57 }
 0x47d   :  { %8576 = vmatpush3.bf16.msra.mxu1 %v9336_v57  ;;  %v16161_v57 = vld [vmem:[#allocation80_spill] sm:$0xff] }
 0x47e   :  { %8577 = vmatprep.subr.bf16.mxu1 %v9337_v44 }
 0x480   :  { %8514 = vmatmul.mubr.bf16.gmra.mrb[36].mxu1 %v16143_v7 }
 0x481   :  { %8517 = vmatprep.mubr.bf16.mxu1 %v16144_v13  ;;  %8578 = vmatpush3.bf16.msra.mxu1 %v9337_v44  ;;  %v16163_v13 = vld [vmem:[#allocation82_spill] sm:$0xff] }
 0x482   :  { %8579 = vmatprep.subr.bf16.mxu1 %v9338_v34 }
 0x485   :  { %8580 = vmatpush3.bf16.msra.mxu1 %v9338_v34  ;;  %v16162_v34 = vld [vmem:[#allocation81_spill] sm:$0xff] }
 0x486   :  { %8581 = vmatprep.subr.bf16.mxu1 %v9339_v32 }
 0x488   :  { %8518 = vmatmul.mubr.bf16.gmra.mrb[40].mxu1 %v16145_v36 }
 0x489   :  { %8521 = vmatprep.mubr.bf16.mxu1 %v16146_v28  ;;  %8582 = vmatpush3.bf16.msra.mxu1 %v9339_v32  ;;  %v16164_v28 = vld [vmem:[#allocation83_spill] sm:$0xff] }
 0x48a   :  { %8583 = vmatprep.subr.bf16.mxu1 %v9340_v20 }
 0x48d   :  { %8584 = vmatpush3.bf16.msra.mxu1 %v9340_v20 }
 0x48e   :  { %8585 = vmatprep.subr.bf16.mxu1 %v9341_v38 }
 0x490   :  { %8522 = vmatmul.mubr.bf16.gmra.mrb[44].mxu1 %v16147_v62 }
 0x491   :  { %8525 = vmatprep.mubr.bf16.mxu1 %v16148_v52  ;;  %8586 = vmatpush3.bf16.msra.mxu1 %v9341_v38 }
 0x492   :  { %8587 = vmatprep.subr.bf16.mxu1 %v9342_v33 }
 0x495   :  { %8588 = vmatpush3.bf16.msra.mxu1 %v9342_v33  ;;  %v16165_v33 = vld [vmem:[#allocation84_spill] sm:$0xff] }
 0x498   :  { %8526 = vmatmul.mubr.bf16.gmra.mrb[48].mxu1 %v16149_v61 }
 0x499   :  { %8529 = vmatprep.mubr.bf16.mxu1 %v16150_v24  ;;  %v16166_v24 = vld [vmem:[#allocation85_spill] sm:$0xff] }
 0x4a0   :  { %8530 = vmatmul.mubr.bf16.gmra.mrb[52].mxu1 %v16151_v1 }
 0x4a1   :  { %8533 = vmatprep.mubr.bf16.mxu1 %v16152_v56  ;;  %v16168_v56 = vld [vmem:[#allocation86_spill] sm:$0xff] }
 0x4a8   :  { %8534 = vmatmul.mubr.bf16.gmra.mrb[56].mxu1 %v16153_v18 }
 0x4a9   :  { %8537 = vmatprep.mubr.bf16.mxu1 %v16154_v60 }
 0x4b0   :  { %8538 = vmatmul.mubr.bf16.gmra.mrb[60].mxu1 %v16036_v9 }
 0x4b1   :  { %8541 = vmatprep.mubr.bf16.mxu1 %v16155_v50 }
 0x4b8   :  { %8542 = vmatmul.mubr.bf16.gmra.mrb[0].mxu1 %v16156_v26  ;;  %v16172_v26 = vld [vmem:[#allocation36_spill] sm:$0xff] }
 0x4b9   :  { %8545 = vmatprep.mubr.bf16.mxu1 %v16157_v29 }
 0x4c0   :  { %8546 = vmatmul.mubr.bf16.gmra.mrb[4].mxu1 %v16158_v30  ;;  %v16174_v30 = vld [vmem:[#allocation29_spill] sm:$0xff] }
 0x4c1   :  { %8549 = vmatprep.mubr.bf16.mxu1 %v16159_v25 }
 0x4c4   :  { %v12703_v10 = vpop.f32.mrb[96].mxu0 }
 0x4c5   :  { %v12706_v59 = vpop.f32.mrb[97].mxu0 }
 0x4c6   :  { %v12708_v47 = vpop.f32.mrb[98].mxu0 }
 0x4c7   :  { %v12710_v58 = vpop.f32.mrb[99].mxu0 }
 0x4c8   :  { %8550 = vmatmul.mubr.bf16.gmra.mrb[8].mxu1 %v16160_v2 }
 0x4c9   :  { %8553 = vmatprep.mubr.bf16.mxu1 %v16161_v57 }
 0x4cc   :  { %v12713_v39 = vpop.f32.mrb[100].mxu0 }
 0x4cd   :  { %v12716_v54 = vpop.f32.mrb[101].mxu0 }
 0x4ce   :  { %v12718_v12 = vpop.f32.mrb[102].mxu0 }
 0x4cf   :  { %v12720_v44 = vpop.f32.mrb[103].mxu0 }
 0x4d0   :  { %8554 = vmatmul.mubr.bf16.gmra.mrb[12].mxu1 %v16162_v34 }
 0x4d1   :  { %8557 = vmatprep.mubr.bf16.mxu1 %v16163_v13 }
 0x4d4   :  { %v12723_v7 = vpop.f32.mrb[104].mxu0 }
 0x4d5   :  { %v12726_v32 = vpop.f32.mrb[105].mxu0 }
 0x4d6   :  { %v12728_v20 = vpop.f32.mrb[106].mxu0 }
 0x4d7   :  { %v12730_v36 = vpop.f32.mrb[107].mxu0 }
 0x4d8   :  { %8558 = vmatmul.mubr.bf16.gmra.mrb[16].mxu1 %v16164_v28 }
 0x4d9   :  { %8561 = vmatprep.mubr.bf16.mxu1 %v16165_v33 }
 0x4dc   :  { %v12733_v38 = vpop.f32.mrb[108].mxu0 }
 0x4dd   :  { %v12736_v62 = vpop.f32.mrb[109].mxu0 }
 0x4de   :  { %v12738_v52 = vpop.f32.mrb[110].mxu0 }
 0x4df   :  { %v12740_v61 = vpop.f32.mrb[111].mxu0 }
 0x4e0   :  { %8562 = vmatmul.mubr.bf16.gmra.mrb[20].mxu1 %v16166_v24 }
 0x4e1   :  { %8565 = vmatprep.mubr.bf16.mxu1 %v16168_v56 }
 0x4e4   :  { %v12743_v1 = vpop.f32.mrb[112].mxu0 }
 0x4e5   :  { %16167 = vst [vmem:[#allocation35_spill] sm:$0xff] %v12743_v1  ;;  %v12746_v18 = vpop.f32.mrb[113].mxu0 }
 0x4e6   :  { %16169 = vst [vmem:[#allocation22_spill] sm:$0xff] %v12746_v18  ;;  %v12748_v60 = vpop.f32.mrb[114].mxu0 }
 0x4e7   :  { %16170 = vst [vmem:[#allocation64_spill] sm:$0xff] %v12748_v60  ;;  %v12750_v50 = vpop.f32.mrb[115].mxu0 }
 0x4e8   :  { %16171 = vst [vmem:[#allocation66_spill] sm:$0xff] %v12750_v50  ;;  %8566 = vmatmul.mubr.bf16.gmra.mrb[24].mxu1 %v16172_v26 }
 0x4e9   :  { %8569 = vmatprep.mubr.bf16.mxu1 %v16174_v30 }
 0x4ec   :  { %v12753_v29 = vpop.f32.mrb[116].mxu0 }
 0x4ed   :  { %16173 = vst [vmem:[#allocation68_spill] sm:$0xff] %v12753_v29  ;;  %v12756_v25 = vpop.f32.mrb[117].mxu0 }
 0x4ee   :  { %16175 = vst [vmem:[#allocation69_spill] sm:$0xff] %v12756_v25  ;;  %v12758_v2 = vpop.f32.mrb[118].mxu0 }
 0x4ef   :  { %16176 = vst [vmem:[#allocation9_spill] sm:$0xff] %v12758_v2  ;;  %v12760_v57 = vpop.f32.mrb[119].mxu0 }
 0x4f0   :  { %16177 = vst [vmem:[#allocation14_spill] sm:$0xff] %v12760_v57  ;;  %8570 = vmatmul.mubr.bf16.gmra.mrb[28].mxu1 %v16036_v9 }
 0x4f1   :  { %8589 = vmatprep.mubr.msk.bf16.mxu1 %vm12212_vm6, %v16127_v3 }
 0x4f4   :  { %v12763_v34 = vpop.f32.mrb[120].mxu0 }
 0x4f5   :  { %16178 = vst [vmem:[#allocation12_spill] sm:$0xff] %v12763_v34  ;;  %v12768_v13 = vpop.f32.mrb[121].mxu0 }
 0x4f6   :  { %16179 = vst [vmem:[#allocation47_spill] sm:$0xff] %v12768_v13  ;;  %v12770_v28 = vpop.f32.mrb[122].mxu0 }
 0x4f7   :  { %16180 = vst [vmem:[#allocation11_spill] sm:$0xff] %v12770_v28  ;;  %v12772_v33 = vpop.f32.mrb[123].mxu0 }
 0x4f8   :  { %16181 = vst [vmem:[#allocation49_spill] sm:$0xff] %v12772_v33  ;;  %8590 = vmatmul.mubr.msk.bf16.vlgmr.msra.gmra.mrb[32].mxu1 %vm12212_vm6, %v11604_v48 }
 0x4f9   :  { %8593 = vmatprep.mubr.msk.bf16.mxu1 %vm12212_vm6, %v11620_v8 }
 0x4fc   :  { %v12777_v24 = vpop.f32.mrb[124].mxu0 }
 0x4fd   :  { %16182 = vst [vmem:[#allocation48_spill] sm:$0xff] %v12777_v24  ;;  %v12782_v56 = vpop.f32.mrb[125].mxu0 }
 0x4fe   :  { %16183 = vst [vmem:[#allocation13_spill] sm:$0xff] %v12782_v56  ;;  %v12784_v26 = vpop.f32.mrb[126].mxu0 }
 0x4ff   :  { %16184 = vst [vmem:[#allocation50_spill] sm:$0xff] %v12784_v26  ;;  %v12786_v3 = vpop.f32.mrb[127].mxu0 }
 0x500   :  { %16185 = vst [vmem:[#allocation18_spill] sm:$0xff] %v12786_v3  ;;  %8594 = vmatmul.mubr.msk.bf16.gmra.mrb[36].mxu1 %vm12212_vm6, %v11637_v53 }
 0x501   :  { %8597 = vmatprep.mubr.msk.bf16.mxu1 %vm12212_vm6, %v11651_v15 }
 0x504   :  { %v8191_v30 = vpop.f32.mrb[64].mxu0 }
 0x505   :  { %v2743_v48 = vpop.f32.mrb[65].mxu0 }
 0x506   :  { %v8192_v24 = vpop.f32.mrb[66].mxu0 }
 0x507   :  { %v12794_v33 = vpop.f32.mrb[67].mxu0 }
 0x508   :  { %8598 = vmatmul.mubr.msk.bf16.gmra.mrb[40].mxu1 %vm12212_vm6, %v11674_v42 }
 0x509   :  { %8601 = vmatprep.mubr.msk.bf16.mxu1 %vm12212_vm6, %v11697_v55 }
 0x50c   :  { %v12799_v8 = vpop.f32.mrb[68].mxu0 }
 0x50d   :  { %v12804_v53 = vpop.f32.mrb[69].mxu0 }
 0x50e   :  { %v12806_v3 = vpop.f32.mrb[70].mxu0 }
 0x50f   :  { %v12808_v26 = vpop.f32.mrb[71].mxu0 }
 0x510   :  { %8602 = vmatmul.mubr.msk.bf16.gmra.mrb[44].mxu1 %vm12212_vm6, %v11699_v22 }
 0x511   :  { %8605 = vmatprep.mubr.msk.bf16.mxu1 %vm12212_vm6, %v11713_v40 }
 0x514   :  { %v12813_v15 = vpop.f32.mrb[72].mxu0 }
 0x515   :  { %v12818_v42 = vpop.f32.mrb[73].mxu0 }
 0x516   :  { %v12820_v56 = vpop.f32.mrb[74].mxu0 }
 0x517   :  { %v12822_v55 = vpop.f32.mrb[75].mxu0 }
 0x518   :  { %8606 = vmatmul.mubr.msk.bf16.gmra.mrb[48].mxu1 %vm12212_vm6, %v11733_v31 }
 0x519   :  { %8609 = vmatprep.mubr.msk.bf16.mxu1 %vm12212_vm6, %v11753_v17 }
 0x51c   :  { %v12827_v28 = vpop.f32.mrb[76].mxu0 }
 0x51d   :  { %v12832_v22 = vpop.f32.mrb[77].mxu0 }
 0x51e   :  { %v12834_v13 = vpop.f32.mrb[78].mxu0 }
 0x51f   :  { %v12836_v40 = vpop.f32.mrb[79].mxu0 }
 0x520   :  { %8610 = vmatmul.mubr.msk.bf16.gmra.mrb[52].mxu1 %vm12212_vm6, %v11755_v45 }
 0x521   :  { %8613 = vmatprep.mubr.msk.bf16.mxu1 %vm12212_vm6, %v11770_v37 }
 0x524   :  { %v12841_v34 = vpop.f32.mrb[80].mxu0 }
 0x525   :  { %v12846_v31 = vpop.f32.mrb[81].mxu0 }
 0x526   :  { %v12848_v57 = vpop.f32.mrb[82].mxu0 }
 0x527   :  { %v12850_v17 = vpop.f32.mrb[83].mxu0 }
 0x528   :  { %8614 = vmatmul.mubr.msk.bf16.gmra.mrb[56].mxu1 %vm12212_vm6, %v11789_v35 }
 0x529   :  { %8617 = vmatprep.mubr.msk.bf16.mxu1 %vm12212_vm6, %v11807_v43 }
 0x52c   :  { %v12855_v2 = vpop.f32.mrb[84].mxu0 }
 0x52d   :  { %v12860_v45 = vpop.f32.mrb[85].mxu0 }
 0x52e   :  { %v12862_v25 = vpop.f32.mrb[86].mxu0 }
 0x52f   :  { %v12864_v37 = vpop.f32.mrb[87].mxu0 }
 0x530   :  { %8618 = vmatmul.mubr.bf16.gmra.mrb[60].mxu1 %v16036_v9 }
 0x531   :  { %8621 = vmatprep.mubr.msk.bf16.mxu1 %vm12212_vm6, %v11826_v51 }
 0x534   :  { %v12867_v29 = vpop.f32.mrb[88].mxu0 }
 0x535   :  { %v12872_v35 = vpop.f32.mrb[89].mxu0 }
 0x536   :  { %v12874_v50 = vpop.f32.mrb[90].mxu0 }
 0x537   :  { %v12876_v60 = vpop.f32.mrb[91].mxu0 }
 0x538   :  { %8622 = vmatmul.mubr.msk.bf16.gmra.mrb[0].mxu1 %vm12212_vm6, %v11849_v21 }
 0x539   :  { %8625 = vmatprep.mubr.msk.bf16.mxu1 %vm12212_vm6, %v11869_v14 }
 0x53c   :  { %v12881_v43 = vpop.f32.mrb[92].mxu0 }
 0x53d   :  { %v12886_v18 = vpop.f32.mrb[93].mxu0 }
 0x53e   :  { %v12888_v1 = vpop.f32.mrb[94].mxu0 }
 0x53f   :  { %v12890_v51 = vpop.f32.mrb[95].mxu0 }
 0x540   :  { %8626 = vmatmul.mubr.msk.bf16.gmra.mrb[4].mxu1 %vm12212_vm6, %v11871_v19 }
 0x541   :  { %8629 = vmatprep.mubr.msk.bf16.mxu1 %vm12212_vm6, %v11885_v11 }
 0x548   :  { %8630 = vmatmul.mubr.msk.bf16.gmra.mrb[8].mxu1 %vm12212_vm6, %v11905_v63 }
 0x549   :  { %8633 = vmatprep.mubr.msk.bf16.mxu1 %vm12212_vm6, %v11926_v27 }
 0x550   :  { %8634 = vmatmul.mubr.msk.bf16.gmra.mrb[12].mxu1 %vm12212_vm6, %v11928_v23 }
 0x551   :  { %8637 = vmatprep.mubr.msk.bf16.mxu1 %vm12212_vm6, %v11943_v49 }
 0x558   :  { %8638 = vmatmul.mubr.msk.bf16.gmra.mrb[16].mxu1 %vm12212_vm6, %v11963_v16 }
 0x559   :  { %8641 = vmatprep.mubr.msk.bf16.mxu1 %vm12212_vm6, %v11986_v41 }
 0x560   :  { %8642 = vmatmul.mubr.msk.bf16.gmra.mrb[20].mxu1 %vm12212_vm6, %v11988_v6 }
 0x561   :  { %8645 = vmatprep.mubr.msk.bf16.mxu1 %vm12212_vm6, %v16133_v46 }
 0x568   :  { %8646 = vmatmul.mubr.msk.bf16.gmra.mrb[24].mxu1 %vm12212_vm6, %v16134_v4 }
 0x569   :  { %8649 = vmatprep.mubr.msk.bf16.mxu1 %vm12212_vm6, %v16135_v5 }
 0x570   :  { %8650 = vmatmul.mubr.bf16.gmra.mrb[28].mxu1 %v16036_v9 }
 0x5cb   :  { %v8591_v21 = vpop.f32.mrb[32].mxu1 }
 0x5cc   :  { %v12929_v14 = vadd.f32 %v8591_v21, %v8191_v30  ;;  %v4851_v19 = vpop.f32.mrb[33].mxu1 }
 0x5cd   :  { %v12931_v11 = vadd.f32 %v4851_v19, %v2743_v48  ;;  %v8592_v63 = vpop.f32.mrb[34].mxu1 }
 0x5ce   :  { %16186 = vst [vmem:[#allocation16_spill] sm:$0xff] %v12929_v14  ;;  %v12933_v27 = vadd.f32 %v8592_v63, %v8192_v24  ;;  %v4854_v23 = vpop.f32.mrb[35].mxu1 }
 0x5cf   :  { %v12936_v49 = vadd.f32 %v4854_v23, %v12794_v33 }
 0x5d0   :  { %16187 = vst [vmem:[#allocation72_spill] sm:$0xff] %v12933_v27 }
 0x5d1   :  { %v5170_v16 = vadd.f32 %v12936_v49, %v12931_v11 }
 0x5d3   :  { %v5171_v41 = vadd.f32 %v12929_v14, %v5170_v16  ;;  %v8595_v6 = vpop.f32.mrb[36].mxu1 }
 0x5d4   :  { %v12942_v9 = vadd.f32 %v8595_v6, %v12799_v8  ;;  %v4867_v0 = vpop.f32.mrb[37].mxu1 }
 0x5d5   :  { %v12945_v46 = vadd.f32 %v4867_v0, %v12804_v53  ;;  %v5172_v4 = vadd.f32 %v12933_v27, %v5171_v41  ;;  %v8596_v5 = vpop.f32.mrb[38].mxu1 }
 0x5d6   :  { %v12949_v24 = vadd.f32 %v8596_v5, %v12806_v3  ;;  %v4870_v33 = vpop.f32.mrb[39].mxu1 }
 0x5d7   :  { %16188 = vst [vmem:[#allocation51_spill] sm:$0xff] %v12945_v46  ;;  %v5173_v30 = vadd.f32 %v12945_v46, %v5172_v4  ;;  %v12953_v48 = vadd.f32 %v4870_v33, %v12808_v26 }
 0x5d9   :  { %v5174_v21 = vadd.f32 %v12953_v48, %v5173_v30 }
 0x5db   :  { %v5175_v8 = vadd.f32 %v12942_v9, %v5174_v21  ;;  %v8599_v19 = vpop.f32.mrb[40].mxu1 }
 0x5dc   :  { %v12958_v53 = vadd.f32 %v8599_v19, %v12813_v15  ;;  %v4883_v63 = vpop.f32.mrb[41].mxu1 }
 0x5dd   :  { %v12961_v23 = vadd.f32 %v4883_v63, %v12818_v42  ;;  %v5176_v3 = vadd.f32 %v12949_v24, %v5175_v8  ;;  %v8600_v16 = vpop.f32.mrb[42].mxu1 }
 0x5de   :  { %v12965_v41 = vadd.f32 %v8600_v16, %v12820_v56  ;;  %v4886_v26 = vpop.f32.mrb[43].mxu1 }
 0x5df   :  { %v5177_v6 = vadd.f32 %v12961_v23, %v5176_v3  ;;  %v12969_v0 = vadd.f32 %v4886_v26, %v12822_v55 }
 0x5e1   :  { %v5178_v4 = vadd.f32 %v12969_v0, %v5177_v6 }
 0x5e3   :  { %v5179_v15 = vadd.f32 %v12958_v53, %v5178_v4  ;;  %v8603_v5 = vpop.f32.mrb[44].mxu1 }
 0x5e4   :  { %v12974_v42 = vadd.f32 %v8603_v5, %v12827_v28  ;;  %v4899_v33 = vpop.f32.mrb[45].mxu1 }
 0x5e5   :  { %v12977_v30 = vadd.f32 %v4899_v33, %v12832_v22  ;;  %v5180_v56 = vadd.f32 %v12965_v41, %v5179_v15  ;;  %v8604_v21 = vpop.f32.mrb[46].mxu1 }
 0x5e6   :  { %v12981_v8 = vadd.f32 %v8604_v21, %v12834_v13  ;;  %v4902_v55 = vpop.f32.mrb[47].mxu1 }
 0x5e7   :  { %v5181_v19 = vadd.f32 %v12977_v30, %v5180_v56  ;;  %v12985_v63 = vadd.f32 %v4902_v55, %v12836_v40 }
 0x5e9   :  { %v5182_v3 = vadd.f32 %v12985_v63, %v5181_v19 }
 0x5eb   :  { %v5183_v28 = vadd.f32 %v12974_v42, %v5182_v3  ;;  %v8607_v16 = vpop.f32.mrb[48].mxu1 }
 0x5ec   :  { %v12990_v22 = vadd.f32 %v8607_v16, %v12841_v34  ;;  %v4915_v26 = vpop.f32.mrb[49].mxu1 }
 0x5ed   :  { %v12993_v6 = vadd.f32 %v4915_v26, %v12846_v31  ;;  %v5184_v13 = vadd.f32 %v12981_v8, %v5183_v28  ;;  %v8608_v4 = vpop.f32.mrb[50].mxu1 }
 0x5ee   :  { %v12997_v15 = vadd.f32 %v8608_v4, %v12848_v57  ;;  %v4918_v40 = vpop.f32.mrb[51].mxu1 }
 0x5ef   :  { %v5185_v5 = vadd.f32 %v12993_v6, %v5184_v13  ;;  %v13001_v33 = vadd.f32 %v4918_v40, %v12850_v17 }
 0x5f1   :  { %v5186_v56 = vadd.f32 %v13001_v33, %v5185_v5 }
 0x5f3   :  { %v5187_v34 = vadd.f32 %v12990_v22, %v5186_v56  ;;  %v8611_v21 = vpop.f32.mrb[52].mxu1 }
 0x5f4   :  { %v13006_v31 = vadd.f32 %v8611_v21, %v12855_v2  ;;  %v4931_v55 = vpop.f32.mrb[53].mxu1 }
 0x5f5   :  { %v13009_v19 = vadd.f32 %v4931_v55, %v12860_v45  ;;  %v5188_v57 = vadd.f32 %v12997_v15, %v5187_v34  ;;  %v8612_v3 = vpop.f32.mrb[54].mxu1 }
 0x5f6   :  { %v13013_v28 = vadd.f32 %v8612_v3, %v12862_v25  ;;  %v4934_v17 = vpop.f32.mrb[55].mxu1 }
 0x5f7   :  { %v5189_v16 = vadd.f32 %v13009_v19, %v5188_v57  ;;  %v13017_v26 = vadd.f32 %v4934_v17, %v12864_v37 }
 0x5f9   :  { %v5190_v13 = vadd.f32 %v13017_v26, %v5189_v16 }
 0x5fb   :  { %v5191_v2 = vadd.f32 %v13006_v31, %v5190_v13  ;;  %v8615_v4 = vpop.f32.mrb[56].mxu1 }
 0x5fc   :  { %v13022_v45 = vadd.f32 %v8615_v4, %v12867_v29  ;;  %v4947_v40 = vpop.f32.mrb[57].mxu1 }
 0x5fd   :  { %v13025_v5 = vadd.f32 %v4947_v40, %v12872_v35  ;;  %v5192_v25 = vadd.f32 %v13013_v28, %v5191_v2  ;;  %v8616_v56 = vpop.f32.mrb[58].mxu1 }
 0x5fe   :  { %16189 = vst [vmem:[#allocation15_spill] sm:$0xff] %v13022_v45  ;;  %v13029_v34 = vadd.f32 %v8616_v56, %v12874_v50  ;;  %v4950_v37 = vpop.f32.mrb[59].mxu1 }
 0x5ff   :  { %v5193_v21 = vadd.f32 %v13025_v5, %v5192_v25  ;;  %v13033_v55 = vadd.f32 %v4950_v37, %v12876_v60 }
 0x600   :  { %16190 = vst [vmem:[#allocation73_spill] sm:$0xff] %v13029_v34 }
 0x601   :  { %v5194_v57 = vadd.f32 %v13033_v55, %v5193_v21 }
 0x603   :  { %v5195_v29 = vadd.f32 %v13022_v45, %v5194_v57  ;;  %v8619_v3 = vpop.f32.mrb[60].mxu1 }
 0x604   :  { %v13038_v35 = vadd.f32 %v8619_v3, %v12881_v43  ;;  %v4963_v17 = vpop.f32.mrb[61].mxu1 }
 0x605   :  { %v13041_v16 = vadd.f32 %v4963_v17, %v12886_v18  ;;  %v5196_v50 = vadd.f32 %v13029_v34, %v5195_v29  ;;  %v8620_v13 = vpop.f32.mrb[62].mxu1 }
 0x606   :  { %16191 = vst [vmem:[#allocation17_spill] sm:$0xff] %v13038_v35  ;;  %v13045_v2 = vadd.f32 %v8620_v13, %v12888_v1  ;;  %v4966_v60 = vpop.f32.mrb[63].mxu1 }
 0x607   :  { %16192 = vst [vmem:[#allocation4_spill] sm:$0xff] %v13041_v16  ;;  %v5197_v4 = vadd.f32 %v13041_v16, %v5196_v50  ;;  %v13049_v40 = vadd.f32 %v4966_v60, %v12890_v51 }
 0x608   :  { %16193 = vst [vmem:[#allocation38_spill] sm:$0xff] %v13045_v2 }
 0x609   :  { %16194 = vst [vmem:[#allocation53_spill] sm:$0xff] %v13049_v40  ;;  %v5198_v25 = vadd.f32 %v13049_v40, %v5197_v4 }
 0x60b   :  { %v5199_v43 = vadd.f32 %v13038_v35, %v5198_v25  ;;  %v8623_v56 = vpop.f32.mrb[0].mxu1 }
 0x60c   :  { %v13054_v18 = vadd.f32 %v8623_v56, %v12703_v10  ;;  %v4979_v37 = vpop.f32.mrb[1].mxu1 }
 0x60d   :  { %v13057_v21 = vadd.f32 %v4979_v37, %v12706_v59  ;;  %v5200_v1 = vadd.f32 %v13045_v2, %v5199_v43  ;;  %v8624_v57 = vpop.f32.mrb[2].mxu1 }
 0x60e   :  { %v13061_v29 = vadd.f32 %v8624_v57, %v12708_v47  ;;  %v4982_v51 = vpop.f32.mrb[3].mxu1 }
 0x60f   :  { %16195 = vst [vmem:[#allocation54_spill] sm:$0xff] %v13057_v21  ;;  %v5201_v3 = vadd.f32 %v13057_v21, %v5200_v1  ;;  %v13065_v17 = vadd.f32 %v4982_v51, %v12710_v58 }
 0x611   :  { %16196 = vst [vmem:[#allocation21_spill] sm:$0xff] %v13065_v17  ;;  %v5202_v50 = vadd.f32 %v13065_v17, %v5201_v3 }
 0x613   :  { %v5203_v10 = vadd.f32 %v13054_v18, %v5202_v50  ;;  %v8627_v13 = vpop.f32.mrb[4].mxu1 }
 0x614   :  { %v13070_v59 = vadd.f32 %v8627_v13, %v12713_v39  ;;  %v4995_v60 = vpop.f32.mrb[5].mxu1 }
 0x615   :  { %v13073_v4 = vadd.f32 %v4995_v60, %v12716_v54  ;;  %v5204_v47 = vadd.f32 %v13061_v29, %v5203_v10  ;;  %v8628_v25 = vpop.f32.mrb[6].mxu1 }
 0x616   :  { %v13077_v43 = vadd.f32 %v8628_v25, %v12718_v12  ;;  %v4998_v58 = vpop.f32.mrb[7].mxu1 }
 0x617   :  { %v5205_v56 = vadd.f32 %v13073_v4, %v5204_v47  ;;  %v13081_v37 = vadd.f32 %v4998_v58, %v12720_v44 }
 0x619   :  { %v5206_v1 = vadd.f32 %v13081_v37, %v5205_v56 }
 0x61b   :  { %v5207_v39 = vadd.f32 %v13070_v59, %v5206_v1  ;;  %v8631_v57 = vpop.f32.mrb[8].mxu1 }
 0x61c   :  { %v13086_v54 = vadd.f32 %v8631_v57, %v12723_v7  ;;  %v5011_v51 = vpop.f32.mrb[9].mxu1 }
 0x61d   :  { %v13089_v3 = vadd.f32 %v5011_v51, %v12726_v32  ;;  %v5208_v12 = vadd.f32 %v13077_v43, %v5207_v39  ;;  %v8632_v50 = vpop.f32.mrb[10].mxu1 }
 0x61e   :  { %v13093_v10 = vadd.f32 %v8632_v50, %v12728_v20  ;;  %v5014_v44 = vpop.f32.mrb[11].mxu1 }
 0x61f   :  { %v5209_v13 = vadd.f32 %v13089_v3, %v5208_v12  ;;  %v13097_v60 = vadd.f32 %v5014_v44, %v12730_v36  ;;  %v16200_v44 = vld [vmem:[#allocation35_spill] sm:$0xff] }
 0x621   :  { %v5210_v47 = vadd.f32 %v13097_v60, %v5209_v13 }
 0x623   :  { %v5211_v7 = vadd.f32 %v13086_v54, %v5210_v47  ;;  %v8635_v25 = vpop.f32.mrb[12].mxu1  ;;  %v16202_v47 = vld [vmem:[#allocation22_spill] sm:$0xff] }
 0x624   :  { %v13102_v32 = vadd.f32 %v8635_v25, %v12733_v38  ;;  %v5027_v58 = vpop.f32.mrb[13].mxu1 }
 0x625   :  { %v13105_v56 = vadd.f32 %v5027_v58, %v12736_v62  ;;  %v5212_v20 = vadd.f32 %v13093_v10, %v5211_v7  ;;  %v8636_v1 = vpop.f32.mrb[14].mxu1  ;;  %v16204_v58 = vld [vmem:[#allocation64_spill] sm:$0xff] }
 0x626   :  { %16197 = vst [vmem:[#allocation19_spill] sm:$0xff] %v13102_v32  ;;  %v13109_v39 = vadd.f32 %v8636_v1, %v12738_v52  ;;  %v5030_v36 = vpop.f32.mrb[15].mxu1 }
 0x627   :  { %v5213_v57 = vadd.f32 %v13105_v56, %v5212_v20  ;;  %v13113_v51 = vadd.f32 %v5030_v36, %v12740_v61  ;;  %v16206_v36 = vld [vmem:[#allocation66_spill] sm:$0xff] }
 0x628   :  { %16198 = vst [vmem:[#allocation24_spill] sm:$0xff] %v13109_v39 }
 0x629   :  { %16199 = vst [vmem:[#allocation25_spill] sm:$0xff] %v13113_v51  ;;  %v5214_v12 = vadd.f32 %v13113_v51, %v5213_v57  ;;  %v16212_v51 = vld [vmem:[#allocation9_spill] sm:$0xff] }
 0x62b   :  { %v5215_v38 = vadd.f32 %v13102_v32, %v5214_v12  ;;  %v8639_v50 = vpop.f32.mrb[16].mxu1  ;;  %v16208_v32 = vld [vmem:[#allocation68_spill] sm:$0xff] }
 0x62c   :  { %v13118_v62 = vadd.f32 %v8639_v50, %v16200_v44  ;;  %v5043_v13 = vpop.f32.mrb[17].mxu1 }
 0x62d   :  { %v13121_v7 = vadd.f32 %v5043_v13, %v16202_v47  ;;  %v5216_v52 = vadd.f32 %v13109_v39, %v5215_v38  ;;  %v8640_v25 = vpop.f32.mrb[18].mxu1  ;;  %v16210_v38 = vld [vmem:[#allocation69_spill] sm:$0xff] }
 0x62e   :  { %16201 = vst [vmem:[#allocation23_spill] sm:$0xff] %v13118_v62  ;;  %v13125_v20 = vadd.f32 %v8640_v25, %v16204_v58  ;;  %v5046_v61 = vpop.f32.mrb[19].mxu1 }
 0x62f   :  { %16203 = vst [vmem:[#allocation3_spill] sm:$0xff] %v13121_v7  ;;  %v5217_v1 = vadd.f32 %v13121_v7, %v5216_v52  ;;  %v13129_v57 = vadd.f32 %v5046_v61, %v16206_v36  ;;  %v16220_v7 = vld [vmem:[#allocation11_spill] sm:$0xff] }
 0x630   :  { %16205 = vst [vmem:[#allocation2_spill] sm:$0xff] %v13125_v20 }
 0x631   :  { %16207 = vst [vmem:[#allocation6_spill] sm:$0xff] %v13129_v57  ;;  %v5218_v12 = vadd.f32 %v13129_v57, %v5217_v1  ;;  %v16214_v1 = vld [vmem:[#allocation14_spill] sm:$0xff] }
 0x633   :  { %v5219_v50 = vadd.f32 %v13118_v62, %v5218_v12  ;;  %v8643_v44 = vpop.f32.mrb[20].mxu1  ;;  %v16216_v62 = vld [vmem:[#allocation12_spill] sm:$0xff] }
 0x634   :  { %v13134_v13 = vadd.f32 %v8643_v44, %v16208_v32  ;;  %v5059_v47 = vpop.f32.mrb[21].mxu1 }
 0x635   :  { %v13137_v39 = vadd.f32 %v5059_v47, %v16210_v38  ;;  %v5220_v25 = vadd.f32 %v13125_v20, %v5219_v50  ;;  %v8644_v58 = vpop.f32.mrb[22].mxu1  ;;  %v16218_v50 = vld [vmem:[#allocation47_spill] sm:$0xff] }
 0x636   :  { %16209 = vst [vmem:[#allocation5_spill] sm:$0xff] %v13134_v13  ;;  %v13141_v52 = vadd.f32 %v8644_v58, %v16212_v51  ;;  %v5062_v61 = vpop.f32.mrb[23].mxu1 }
 0x637   :  { %16211 = vst [vmem:[#allocation10_spill] sm:$0xff] %v13137_v39  ;;  %v5221_v36 = vadd.f32 %v13137_v39, %v5220_v25  ;;  %v13145_v57 = vadd.f32 %v5062_v61, %v16214_v1  ;;  %v16228_v39 = vld [vmem:[#allocation50_spill] sm:$0xff] }
 0x638   :  { %16213 = vst [vmem:[#allocation8_spill] sm:$0xff] %v13141_v52 }
 0x639   :  { %16215 = vst [vmem:[#allocation27_spill] sm:$0xff] %v13145_v57  ;;  %v5222_v12 = vadd.f32 %v13145_v57, %v5221_v36  ;;  %v16222_v36 = vld [vmem:[#allocation49_spill] sm:$0xff] }
 0x63b   :  { %v5223_v32 = vadd.f32 %v13134_v13, %v5222_v12  ;;  %v8647_v44 = vpop.f32.mrb[24].mxu1  ;;  %v16224_v13 = vld [vmem:[#allocation48_spill] sm:$0xff] }
 0x63c   :  { %v13150_v47 = vadd.f32 %v8647_v44, %v16216_v62  ;;  %v5075_v38 = vpop.f32.mrb[25].mxu1 }
 0x63d   :  { %v13153_v20 = vadd.f32 %v5075_v38, %v16218_v50  ;;  %v5224_v51 = vadd.f32 %v13141_v52, %v5223_v32  ;;  %v8648_v58 = vpop.f32.mrb[26].mxu1  ;;  %v16226_v32 = vld [vmem:[#allocation13_spill] sm:$0xff] }
 0x63e   :  { %16217 = vst [vmem:[#allocation30_spill] sm:$0xff] %v13150_v47  ;;  %v13157_v25 = vadd.f32 %v8648_v58, %v16220_v7  ;;  %v5078_v61 = vpop.f32.mrb[27].mxu1 }
 0x63f   :  { %16219 = vst [vmem:[#allocation45_spill] sm:$0xff] %v13153_v20  ;;  %v5225_v1 = vadd.f32 %v13153_v20, %v5224_v51  ;;  %v13161_v57 = vadd.f32 %v5078_v61, %v16222_v36  ;;  %v16229_v36 = vld [vmem:[#allocation18_spill] sm:$0xff] }
 0x640   :  { %16221 = vst [vmem:[#allocation46_spill] sm:$0xff] %v13157_v25 }
 0x641   :  { %16223 = vst [vmem:[#allocation44_spill] sm:$0xff] %v13161_v57  ;;  %v5226_v12 = vadd.f32 %v13161_v57, %v5225_v1 }
 0x643   :  { %v5227_v62 = vadd.f32 %v13150_v47, %v5226_v12  ;;  %v8651_v44 = vpop.f32.mrb[28].mxu1 }
 0x644   :  { %v13166_v38 = vadd.f32 %v8651_v44, %v16224_v13  ;;  %v5091_v50 = vpop.f32.mrb[29].mxu1 }
 0x645   :  { %v13169_v52 = vadd.f32 %v5091_v50, %v16226_v32  ;;  %v5228_v7 = vadd.f32 %v13157_v25, %v5227_v62  ;;  %v8652_v58 = vpop.f32.mrb[30].mxu1 }
 0x646   :  { %16225 = vst [vmem:[#allocation7_spill] sm:$0xff] %v13166_v38  ;;  %v13173_v51 = vadd.f32 %v8652_v58, %v16228_v39  ;;  %v5094_v61 = vpop.f32.mrb[31].mxu1 }
 0x647   :  { %16227 = vst [vmem:[#allocation41_spill] sm:$0xff] %v13169_v52  ;;  %v13176_v20 = vadd.f32 %v5094_v61, %v16229_v36  ;;  %v5229_v1 = vadd.f32 %v13169_v52, %v5228_v7 }
 0x649   :  { %v5230_v12 = vadd.f32 %v13176_v20, %v5229_v1 }
 0x64b   :  { %v5231_v13 = vadd.f32 %v13166_v38, %v5230_v12 }
 0x64d   :  { %v5232_v44 = vadd.f32 %v13173_v51, %v5231_v13 }
 0x64f   :  { %v5233_v50 = vrot.slane %v5232_v44, 4 }
 0x651   :  { %v5234_v32 = vadd.f32 %v5233_v50, %v5232_v44 }
 0x653   :  { %v5235_v47 = vrot.slane %v5234_v32, 2 }
 0x655   :  { %v5236_v62 = vadd.f32 %v5235_v47, %v5234_v32 }
 0x657   :  { %v5237_v25 = vrot.slane %v5236_v62, 1 }
 0x659   :  { %v5238_v57 = vadd.f32 %v5237_v25, %v5236_v62 }
 0x65b   :  { %v13182_v39 = vmul.f32 0.001953125, %v5238_v57 }
 0x65d   :  { %v5240_v58 = vsub.f32 %v12931_v11, %v13182_v39  ;;  %v5241_v7 = vsub.f32 %v12936_v49, %v13182_v39  ;;  %v5242_v61 = vsub.f32 %v12929_v14, %v13182_v39  ;;  %v5243_v12 = vsub.f32 %v12933_v27, %v13182_v39 }
 0x65e   :  { %v5244_v47 = vsub.f32 %v12945_v46, %v13182_v39  ;;  %v5245_v13 = vsub.f32 %v12953_v48, %v13182_v39  ;;  %v5246_v32 = vsub.f32 %v12942_v9, %v13182_v39  ;;  %v5248_v46 = vsub.f32 %v12961_v23, %v13182_v39 }
 0x65f   :  { %v5304_v36 = vmul.f32 %v5240_v58, %v5240_v58  ;;  %v5305_v1 = vmul.f32 %v5241_v7, %v5241_v7  ;;  %v5306_v25 = vmul.f32 %v5242_v61, %v5242_v61  ;;  %v5307_v44 = vmul.f32 %v5243_v12, %v5243_v12 }
 0x660   :  { %v5308_v62 = vmul.f32 %v5244_v47, %v5244_v47  ;;  %v5247_v58 = vsub.f32 %v12949_v24, %v13182_v39  ;;  %v5309_v7 = vmul.f32 %v5245_v13, %v5245_v13  ;;  %v5310_v61 = vmul.f32 %v5246_v32, %v5246_v32 }
 0x661   :  { %v5368_v57 = vadd.f32 %v5305_v1, %v5304_v36  ;;  %v5249_v1 = vsub.f32 %v12969_v0, %v13182_v39  ;;  %v5312_v47 = vmul.f32 %v5248_v46, %v5248_v46 }
 0x662   :  { %v5311_v12 = vmul.f32 %v5247_v58, %v5247_v58 }
 0x663   :  { %v5369_v50 = vadd.f32 %v5368_v57, %v5306_v25  ;;  %v5250_v57 = vsub.f32 %v12958_v53, %v13182_v39  ;;  %v5313_v13 = vmul.f32 %v5249_v1, %v5249_v1 }
 0x665   :  { %v5370_v14 = vadd.f32 %v5369_v50, %v5307_v44  ;;  %v5251_v50 = vsub.f32 %v12965_v41, %v13182_v39  ;;  %v5314_v32 = vmul.f32 %v5250_v57, %v5250_v57 }
 0x667   :  { %v5371_v27 = vadd.f32 %v5370_v14, %v5308_v62  ;;  %v5252_v62 = vsub.f32 %v12977_v30, %v13182_v39  ;;  %v5315_v58 = vmul.f32 %v5251_v50, %v5251_v50 }
 0x669   :  { %v5372_v36 = vadd.f32 %v5371_v27, %v5309_v7  ;;  %v5253_v7 = vsub.f32 %v12985_v63, %v13182_v39  ;;  %v5316_v46 = vmul.f32 %v5252_v62, %v5252_v62 }
 0x66b   :  { %v5373_v25 = vadd.f32 %v5372_v36, %v5310_v61  ;;  %v5254_v36 = vsub.f32 %v12974_v42, %v13182_v39  ;;  %v5317_v1 = vmul.f32 %v5253_v7, %v5253_v7 }
 0x66d   :  { %v5374_v44 = vadd.f32 %v5373_v25, %v5311_v12  ;;  %v5255_v25 = vsub.f32 %v12981_v8, %v13182_v39  ;;  %v5318_v57 = vmul.f32 %v5254_v36, %v5254_v36 }
 0x66f   :  { %v5375_v14 = vadd.f32 %v5374_v44, %v5312_v47  ;;  %v5256_v44 = vsub.f32 %v12993_v6, %v13182_v39  ;;  %v5319_v50 = vmul.f32 %v5255_v25, %v5255_v25  ;;  %v9343_v25 = vld [vmem:[%s15214_s3] sm:$0xff]  }
 0x670   :  { %8653 = vmatprep.subr.bf16.mxu0 %v9343_v25 }
 0x671   :  { %v5376_v27 = vadd.f32 %v5375_v14, %v5313_v13  ;;  %v5257_v14 = vsub.f32 %v13001_v33, %v13182_v39  ;;  %v5320_v62 = vmul.f32 %v5256_v44, %v5256_v44  ;;  %8654 = vmatpush3.bf16.msra.mxu0 %v9343_v25 }
 0x673   :  { %v5377_v61 = vadd.f32 %v5376_v27, %v5314_v32  ;;  %v5258_v27 = vsub.f32 %v12990_v22, %v13182_v39  ;;  %v5321_v7 = vmul.f32 %v5257_v14, %v5257_v14 }
 0x675   :  { %v5378_v12 = vadd.f32 %v5377_v61, %v5315_v58  ;;  %v5259_v61 = vsub.f32 %v12997_v15, %v13182_v39  ;;  %v5322_v36 = vmul.f32 %v5258_v27, %v5258_v27  ;;  %v5263_v27 = vsub.f32 %v13013_v28, %v13182_v39 }
 0x677   :  { %v5379_v47 = vadd.f32 %v5378_v12, %v5316_v46  ;;  %v5260_v12 = vsub.f32 %v13009_v19, %v13182_v39 }
 0x679   :  { %v5380_v13 = vadd.f32 %v5379_v47, %v5317_v1  ;;  %v5261_v47 = vsub.f32 %v13017_v26, %v13182_v39  ;;  %v5324_v14 = vmul.f32 %v5260_v12, %v5260_v12  ;;  %v9345_v12 = vld [vmem:[%s15214_s3 + $0x10] sm:$0xff]  }
 0x67b   :  { %v5381_v32 = vadd.f32 %v5380_v13, %v5318_v57  ;;  %v5323_v57 = vmul.f32 %v5259_v61, %v5259_v61  ;;  %v5262_v13 = vsub.f32 %v13006_v31, %v13182_v39  ;;  %v5264_v61 = vsub.f32 %v13025_v5, %v13182_v39 }
 0x67d   :  { %v5382_v58 = vadd.f32 %v5381_v32, %v5319_v50  ;;  %v9344_v32 = vld [vmem:[%s15214_s3 + $0x8] sm:$0xff]  }
 0x67e   :  { %8655 = vmatprep.subr.bf16.mxu0 %v9344_v32 }
 0x67f   :  { %v5383_v46 = vadd.f32 %v5382_v58, %v5320_v62  ;;  %v5325_v62 = vmul.f32 %v5261_v47, %v5261_v47  ;;  %8656 = vmatpush3.bf16.msra.mxu0 %v9344_v32  ;;  %v5266_v47 = vsub.f32 %v13022_v45, %v13182_v39 }
 0x680   :  { %8657 = vmatprep.subr.bf16.mxu0 %v9345_v12 }
 0x681   :  { %v5384_v1 = vadd.f32 %v5383_v46, %v5321_v7  ;;  %v5326_v7 = vmul.f32 %v5262_v13, %v5262_v13  ;;  %v9346_v13 = vld [vmem:[%s15214_s3 + $0x18] sm:$0xff]  }
 0x683   :  { %v5385_v44 = vadd.f32 %v5384_v1, %v5322_v36  ;;  %v5265_v36 = vsub.f32 %v13033_v55, %v13182_v39  ;;  %v5327_v1 = vmul.f32 %v5263_v27, %v5263_v27  ;;  %8658 = vmatpush3.bf16.msra.mxu0 %v9345_v12  ;;  %v5268_v27 = vsub.f32 %v13041_v16, %v13182_v39 }
 0x684   :  { %8659 = vmatprep.subr.bf16.mxu0 %v9346_v13 }
 0x685   :  { %v5386_v50 = vadd.f32 %v5385_v44, %v5323_v57  ;;  %v5328_v57 = vmul.f32 %v5264_v61, %v5264_v61  ;;  %v9347_v61 = vld [vmem:[%s15214_s3 + $0x20] sm:$0xff]  }
 0x687   :  { %v5387_v58 = vadd.f32 %v5386_v50, %v5324_v14  ;;  %v5267_v14 = vsub.f32 %v13029_v34, %v13182_v39  ;;  %v5329_v50 = vmul.f32 %v5265_v36, %v5265_v36  ;;  %8660 = vmatpush3.bf16.msra.mxu0 %v9346_v13 }
 0x688   :  { %8661 = vmatprep.subr.bf16.mxu0 %v9347_v61 }
 0x689   :  { %v5388_v46 = vadd.f32 %v5387_v58, %v5325_v62  ;;  %v5330_v62 = vmul.f32 %v5266_v47, %v5266_v47  ;;  %v5331_v12 = vmul.f32 %v5267_v14, %v5267_v14  ;;  %v5272_v14 = vsub.f32 %v13057_v21, %v13182_v39 }
 0x68b   :  { %v5389_v25 = vadd.f32 %v5388_v46, %v5326_v7  ;;  %v9348_v7 = vld [vmem:[%s15214_s3 + $0x28] sm:$0xff]   ;;  %v5269_v46 = vsub.f32 %v13049_v40, %v13182_v39  ;;  %8662 = vmatpush3.bf16.msra.mxu0 %v9347_v61 }
 0x68c   :  { %8663 = vmatprep.subr.bf16.mxu0 %v9348_v7 }
 0x68d   :  { %v5390_v44 = vadd.f32 %v5389_v25, %v5327_v1  ;;  %v5270_v1 = vsub.f32 %v13038_v35, %v13182_v39  ;;  %v5332_v25 = vmul.f32 %v5268_v27, %v5268_v27  ;;  %v5333_v13 = vmul.f32 %v5269_v46, %v5269_v46  ;;  %v9350_v27 = vld [vmem:[%s15214_s3 + $0x38] sm:$0xff]  }
 0x68e   :  { %v5274_v46 = vsub.f32 %v13054_v18, %v13182_v39 }
 0x68f   :  { %v5391_v32 = vadd.f32 %v5390_v44, %v5328_v57  ;;  %v9349_v57 = vld [vmem:[%s15214_s3 + $0x30] sm:$0xff]   ;;  %v5271_v44 = vsub.f32 %v13045_v2, %v13182_v39  ;;  %8664 = vmatpush3.bf16.msra.mxu0 %v9348_v7  ;;  %v5336_v7 = vmul.f32 %v5272_v14, %v5272_v14  ;;  %v5278_v14 = vsub.f32 %v13070_v59, %v13182_v39 }
 0x690   :  { %8665 = vmatprep.subr.bf16.mxu0 %v9349_v57 }
 0x691   :  { %v5392_v58 = vadd.f32 %v5391_v32, %v5329_v50  ;;  %v5334_v32 = vmul.f32 %v5270_v1, %v5270_v1  ;;  %v5335_v61 = vmul.f32 %v5271_v44, %v5271_v44  ;;  %v5275_v1 = vsub.f32 %v13061_v29, %v13182_v39 }
 0x693   :  { %v5393_v36 = vadd.f32 %v5392_v58, %v5330_v62  ;;  %v5273_v58 = vsub.f32 %v13065_v17, %v13182_v39  ;;  %8666 = vmatpush3.bf16.msra.mxu0 %v9349_v57  ;;  %v5277_v57 = vsub.f32 %v13081_v37, %v13182_v39  ;;  %v5339_v44 = vmul.f32 %v5275_v1, %v5275_v1 }
 0x694   :  { %8667 = vmatprep.subr.bf16.mxu0 %v9350_v27 }
 0x695   :  { %v5394_v47 = vadd.f32 %v5393_v36, %v5331_v12 }
 0x697   :  { %v5395_v50 = vadd.f32 %v5394_v47, %v5332_v25  ;;  %v5337_v25 = vmul.f32 %v5273_v58, %v5273_v58  ;;  %8668 = vmatpush3.bf16.msra.mxu0 %v9350_v27  ;;  %v5279_v58 = vsub.f32 %v13077_v43, %v13182_v39 }
 0x699   :  { %v5396_v62 = vadd.f32 %v5395_v50, %v5333_v13  ;;  %v5276_v13 = vsub.f32 %v13073_v4, %v13182_v39  ;;  %v5338_v50 = vmul.f32 %v5274_v46, %v5274_v46  ;;  %v5342_v46 = vmul.f32 %v5278_v14, %v5278_v14 }
 0x69a   :  { %v5343_v1 = vmul.f32 %v5279_v58, %v5279_v58 }
 0x69b   :  { %v5397_v12 = vadd.f32 %v5396_v62, %v5334_v32  ;;  %v5340_v62 = vmul.f32 %v5276_v13, %v5276_v13 }
 0x69d   :  { %v5398_v36 = vadd.f32 %v5397_v12, %v5335_v61  ;;  %v5341_v12 = vmul.f32 %v5277_v57, %v5277_v57 }
 0x69f   :  { %v5399_v47 = vadd.f32 %v5398_v36, %v5336_v7  ;;  %v5280_v7 = vsub.f32 %v13089_v3, %v13182_v39 }
 0x6a1   :  { %v5400_v17 = vadd.f32 %v5399_v47, %v5337_v25  ;;  %v5281_v25 = vsub.f32 %v13097_v60, %v13182_v39  ;;  %v5282_v47 = vsub.f32 %v13086_v54, %v13182_v39  ;;  %v5344_v13 = vmul.f32 %v5280_v7, %v5280_v7 }
 0x6a3   :  { %v5401_v32 = vadd.f32 %v5400_v17, %v5338_v50  ;;  %v5345_v57 = vmul.f32 %v5281_v25, %v5281_v25  ;;  %v5346_v14 = vmul.f32 %v5282_v47, %v5282_v47 }
 0x6a5   :  { %v5402_v61 = vadd.f32 %v5401_v32, %v5339_v44  ;;  %v5283_v44 = vsub.f32 %v13093_v10, %v13182_v39 }
 0x6a7   :  { %v5403_v27 = vadd.f32 %v5402_v61, %v5340_v62  ;;  %v5284_v62 = vsub.f32 %v13105_v56, %v13182_v39  ;;  %v5347_v58 = vmul.f32 %v5283_v44, %v5283_v44 }
 0x6a9   :  { %v5404_v36 = vadd.f32 %v5403_v27, %v5341_v12  ;;  %v16230_v12 = vld [vmem:[#allocation25_spill] sm:$0xff]  ;;  %v5348_v7 = vmul.f32 %v5284_v62, %v5284_v62 }
 0x6aa   :  { %v5285_v27 = vsub.f32 %v16230_v12, %v13182_v39 }
 0x6ab   :  { %v5405_v17 = vadd.f32 %v5404_v36, %v5342_v46  ;;  %v16231_v36 = vld [vmem:[#allocation19_spill] sm:$0xff] }
 0x6ac   :  { %v5286_v21 = vsub.f32 %v16231_v36, %v13182_v39  ;;  %v5349_v25 = vmul.f32 %v5285_v27, %v5285_v27 }
 0x6ad   :  { %v5406_v50 = vadd.f32 %v5405_v17, %v5343_v1  ;;  %v16232_v17 = vld [vmem:[#allocation24_spill] sm:$0xff] }
 0x6ae   :  { %v5287_v2 = vsub.f32 %v16232_v17, %v13182_v39  ;;  %v5350_v47 = vmul.f32 %v5286_v21, %v5286_v21 }
 0x6af   :  { %v5407_v32 = vadd.f32 %v5406_v50, %v5344_v13  ;;  %v16233_v50 = vld [vmem:[#allocation3_spill] sm:$0xff] }
 0x6b0   :  { %v5288_v35 = vsub.f32 %v16233_v50, %v13182_v39  ;;  %v5351_v44 = vmul.f32 %v5287_v2, %v5287_v2 }
 0x6b1   :  { %v5408_v61 = vadd.f32 %v5407_v32, %v5345_v57  ;;  %v16234_v32 = vld [vmem:[#allocation6_spill] sm:$0xff] }
 0x6b2   :  { %v5289_v40 = vsub.f32 %v16234_v32, %v13182_v39  ;;  %v5352_v62 = vmul.f32 %v5288_v35, %v5288_v35 }
 0x6b3   :  { %v5409_v46 = vadd.f32 %v5408_v61, %v5346_v14  ;;  %v16235_v61 = vld [vmem:[#allocation23_spill] sm:$0xff] }
 0x6b4   :  { %v5290_v16 = vsub.f32 %v16235_v61, %v13182_v39  ;;  %v5353_v27 = vmul.f32 %v5289_v40, %v5289_v40 }
 0x6b5   :  { %v5410_v1 = vadd.f32 %v5409_v46, %v5347_v58  ;;  %v16236_v46 = vld [vmem:[#allocation2_spill] sm:$0xff] }
 0x6b6   :  { %v5291_v34 = vsub.f32 %v16236_v46, %v13182_v39  ;;  %v5354_v21 = vmul.f32 %v5290_v16, %v5290_v16 }
 0x6b7   :  { %v5411_v13 = vadd.f32 %v5410_v1, %v5348_v7  ;;  %v16237_v1 = vld [vmem:[#allocation10_spill] sm:$0xff] }
 0x6b8   :  { %v5292_v45 = vsub.f32 %v16237_v1, %v13182_v39  ;;  %v5355_v2 = vmul.f32 %v5291_v34, %v5291_v34 }
 0x6b9   :  { %v5412_v57 = vadd.f32 %v5411_v13, %v5349_v25  ;;  %v16238_v13 = vld [vmem:[#allocation27_spill] sm:$0xff] }
 0x6ba   :  { %v5293_v32 = vsub.f32 %v16238_v13, %v13182_v39  ;;  %v5356_v35 = vmul.f32 %v5292_v45, %v5292_v45 }
 0x6bb   :  { %v5413_v14 = vadd.f32 %v5412_v57, %v5350_v47  ;;  %v16239_v57 = vld [vmem:[#allocation5_spill] sm:$0xff] }
 0x6bc   :  { %v5294_v61 = vsub.f32 %v16239_v57, %v13182_v39  ;;  %v5357_v40 = vmul.f32 %v5293_v32, %v5293_v32 }
 0x6bd   :  { %v5414_v58 = vadd.f32 %v5413_v14, %v5351_v44  ;;  %v16240_v14 = vld [vmem:[#allocation8_spill] sm:$0xff] }
 0x6be   :  { %v5295_v46 = vsub.f32 %v16240_v14, %v13182_v39  ;;  %v5358_v16 = vmul.f32 %v5294_v61, %v5294_v61 }
 0x6bf   :  { %v5415_v7 = vadd.f32 %v5414_v58, %v5352_v62  ;;  %v16241_v58 = vld [vmem:[#allocation45_spill] sm:$0xff] }
 0x6c0   :  { %v5296_v1 = vsub.f32 %v16241_v58, %v13182_v39  ;;  %v5359_v34 = vmul.f32 %v5295_v46, %v5295_v46 }
 0x6c1   :  { %v5416_v25 = vadd.f32 %v5415_v7, %v5353_v27  ;;  %v16242_v7 = vld [vmem:[#allocation44_spill] sm:$0xff] }
 0x6c2   :  { %v5297_v13 = vsub.f32 %v16242_v7, %v13182_v39  ;;  %v5360_v45 = vmul.f32 %v5296_v1, %v5296_v1 }
 0x6c3   :  { %v5417_v47 = vadd.f32 %v5416_v25, %v5354_v21  ;;  %v16243_v25 = vld [vmem:[#allocation30_spill] sm:$0xff] }
 0x6c4   :  { %v5298_v57 = vsub.f32 %v16243_v25, %v13182_v39  ;;  %v5361_v32 = vmul.f32 %v5297_v13, %v5297_v13 }
 0x6c5   :  { %v5418_v44 = vadd.f32 %v5417_v47, %v5355_v2  ;;  %v16244_v47 = vld [vmem:[#allocation46_spill] sm:$0xff] }
 0x6c6   :  { %v5299_v14 = vsub.f32 %v16244_v47, %v13182_v39  ;;  %v5362_v61 = vmul.f32 %v5298_v57, %v5298_v57 }
 0x6c7   :  { %v5419_v62 = vadd.f32 %v5418_v44, %v5356_v35  ;;  %v5300_v44 = vsub.f32 %v13169_v52, %v13182_v39 }
 0x6c8   :  { %v5363_v46 = vmul.f32 %v5299_v14, %v5299_v14 }
 0x6c9   :  { %v5420_v27 = vadd.f32 %v5419_v62, %v5357_v40  ;;  %v5301_v62 = vsub.f32 %v13176_v20, %v13182_v39  ;;  %v5364_v1 = vmul.f32 %v5300_v44, %v5300_v44 }
 0x6cb   :  { %v5421_v21 = vadd.f32 %v5420_v27, %v5358_v16  ;;  %v5302_v27 = vsub.f32 %v13166_v38, %v13182_v39  ;;  %v5365_v13 = vmul.f32 %v5301_v62, %v5301_v62  ;;  %v5438_v62 = vld [vmem:[%s15215_s6] sm:$0x1] }
 0x6cd   :  { %v5422_v2 = vadd.f32 %v5421_v21, %v5359_v34  ;;  %v5303_v21 = vsub.f32 %v13173_v51, %v13182_v39 }
 0x6cf   :  { %v5423_v35 = vadd.f32 %v5422_v2, %v5360_v45  ;;  %v5366_v2 = vmul.f32 %v5302_v27, %v5302_v27  ;;  %v5367_v52 = vmul.f32 %v5303_v21, %v5303_v21 }
 0x6d1   :  { %v5424_v40 = vadd.f32 %v5423_v35, %v5361_v32 }
 0x6d3   :  { %v5425_v16 = vadd.f32 %v5424_v40, %v5362_v61 }
 0x6d5   :  { %v5426_v34 = vadd.f32 %v5425_v16, %v5363_v46 }
 0x6d7   :  { %v5427_v45 = vadd.f32 %v5426_v34, %v5364_v1  ;;  %v16247_v34 = vld [vmem:[#allocation72_spill] sm:$0xff] }
 0x6d9   :  { %v5428_v47 = vadd.f32 %v5427_v45, %v5365_v13  ;;  %v16248_v13 = vld [vmem:[#allocation51_spill] sm:$0xff] }
 0x6db   :  { %v5429_v57 = vadd.f32 %v5428_v47, %v5366_v2  ;;  %v16245_v47 = vld [vmem:[#allocation28_spill] sm:$0xff] }
 0x6dd   :  { %v5430_v32 = vadd.f32 %v5429_v57, %v5367_v52  ;;  %v5442_v52 = vld [vmem:[%s15216_s7] sm:$0x1] }
 0x6df   :  { %v5431_v35 = vrot.slane %v5430_v32, 4 }
 0x6e1   :  { %v5432_v25 = vadd.f32 %v5431_v35, %v5430_v32 }
 0x6e3   :  { %v5433_v7 = vrot.slane %v5432_v25, 2 }
 0x6e5   :  { %v5434_v14 = vadd.f32 %v5433_v7, %v5432_v25 }
 0x6e7   :  { %v5435_v61 = vrot.slane %v5434_v14, 1 }
 0x6e9   :  { %v5436_v40 = vadd.f32 %v5435_v61, %v5434_v14 }
 0x6eb   :  { %v5437_v58 = vmul.f32 0.001953125, %v5436_v40 }
 0x6ed   :  { %v5439_v38 = vadd.f32 1e-05, %v5437_v58 }
 0x6ef   :  { %9353 = vrsqrt.f32 %v5439_v38 }
 0x6f9   :  { %v9354_v44 = vpop.eup %9353 }
 0x6fa   :  { %v5441_v46 = vmul.f32 %v9354_v44, %v5438_v62 }
 0x6fc   :  { %v5443_v16 = vmul.f32 %v5441_v46, %v13182_v39  ;;  %v13344_v27 = vrot.slane %v5441_v46, %v16245_v47  ;;  %v16246_v39 = vld [vmem:[#allocation16_spill] sm:$0xff] }
 0x6fe   :  { %v5444_v7 = vsub.f32 %v5442_v52, %v5443_v16  ;;  %v13348_v58 = vmul.f32 %v13176_v20, %v13344_v27  ;;  %v5451_v38 = vmul.f32 %v12931_v11, %v13344_v27  ;;  %v5452_v25 = vmul.f32 %v12936_v49, %v13344_v27 }
 0x6ff   :  { %v5453_v1 = vmul.f32 %v16246_v39, %v13344_v27  ;;  %v5454_v21 = vmul.f32 %v16247_v34, %v13344_v27  ;;  %v5455_v45 = vmul.f32 %v16248_v13, %v13344_v27  ;;  %v5456_v2 = vmul.f32 %v12953_v48, %v13344_v27 }
 0x700   :  { %v13363_v20 = vrot.slane %v5444_v7, %v16245_v47  ;;  %v5457_v11 = vmul.f32 %v12942_v9, %v13344_v27  ;;  %v5458_v49 = vmul.f32 %v12949_v24, %v13344_v27  ;;  %v5459_v57 = vmul.f32 %v12961_v23, %v13344_v27 }
 0x701   :  { %v5460_v32 = vmul.f32 %v12969_v0, %v13344_v27  ;;  %v5461_v35 = vmul.f32 %v12958_v53, %v13344_v27  ;;  %v5462_v48 = vmul.f32 %v12965_v41, %v13344_v27  ;;  %v5463_v14 = vmul.f32 %v12977_v30, %v13344_v27 }
 0x702   :  { %v5464_v9 = vmul.f32 %v12985_v63, %v13344_v27  ;;  %v5465_v24 = vmul.f32 %v12974_v42, %v13344_v27  ;;  %v5466_v23 = vmul.f32 %v12981_v8, %v13344_v27  ;;  %v5467_v0 = vmul.f32 %v12993_v6, %v13344_v27 }
 0x703   :  { %v5468_v53 = vmul.f32 %v13001_v33, %v13344_v27  ;;  %v13391_v41 = vmul.f32 %v12990_v22, %v13344_v27  ;;  %v13395_v30 = vmul.f32 %v12997_v15, %v13344_v27  ;;  %v13399_v42 = vmul.f32 %v13009_v19, %v13344_v27 }
 0x704   :  { %v13403_v8 = vmul.f32 %v13017_v26, %v13344_v27  ;;  %v13407_v63 = vmul.f32 %v13006_v31, %v13344_v27  ;;  %v13411_v22 = vmul.f32 %v13013_v28, %v13344_v27  ;;  %v13415_v6 = vmul.f32 %v13025_v5, %v13344_v27 }
 0x705   :  { %v13419_v15 = vmul.f32 %v13033_v55, %v13344_v27  ;;  %v13423_v33 = vmul.f32 %v13054_v18, %v13344_v27  ;;  %v5523_v19 = vadd.f32 %v13363_v20, %v5453_v1  ;;  %v5524_v31 = vadd.f32 %v13363_v20, %v5454_v21 }
 0x706   :  { %v5521_v26 = vadd.f32 %v13363_v20, %v5451_v38  ;;  %v5522_v28 = vadd.f32 %v13363_v20, %v5452_v25  ;;  %v5525_v61 = vadd.f32 %v13363_v20, %v5455_v45  ;;  %v5526_v5 = vadd.f32 %v13363_v20, %v5456_v2 }
 0x707   :  { %v13433_v55 = vmul.f32 %v13061_v29, %v13344_v27  ;;  %v13437_v18 = vmul.f32 %v13073_v4, %v13344_v27  ;;  %v5587_v40 = vmax.f32 %v5523_v19, 0.0  ;;  %v5588_v44 = vmax.f32 %v5524_v31, 0.0 }
 0x708   :  { %v5585_v62 = vmax.f32 %v5521_v26, 0.0  ;;  %v5586_v46 = vmax.f32 %v5522_v28, 0.0  ;;  %v5589_v16 = vmax.f32 %v5525_v61, 0.0  ;;  %v5590_v52 = vmax.f32 %v5526_v5, 0.0  ;;  %v16251_v28 = vld [vmem:[#allocation2_spill] sm:$0xff] }
 0x709   :  { %v13441_v7 = vmul.f32 %v13081_v37, %v13344_v27  ;;  %v13445_v38 = vmul.f32 %v13070_v59, %v13344_v27  ;;  %v13449_v29 = vmul.f32 %v13077_v43, %v13344_v27  ;;  %v5650_v4 = vpack.c.bf16 %v5588_v44, %v5587_v40 }
 0x70a   :  { %v5649_v25 = vpack.c.bf16 %v5586_v46, %v5585_v62  ;;  %v5527_v39 = vadd.f32 %v13363_v20, %v5457_v11  ;;  %v5528_v1 = vadd.f32 %v13363_v20, %v5458_v49  ;;  %v5529_v34 = vadd.f32 %v13363_v20, %v5459_v57  ;;  %v16254_v46 = vld [vmem:[#allocation5_spill] sm:$0xff] }
 0x70b   :  { %v13456_v37 = vmul.f32 %v13089_v3, %v13344_v27  ;;  %v13460_v59 = vmul.f32 %v13097_v60, %v13344_v27  ;;  %v13464_v43 = vmul.f32 %v13086_v54, %v13344_v27  ;;  %v5530_v21 = vadd.f32 %v13363_v20, %v5460_v32 }
 0x70c   :  { %v13469_v13 = vmul.f32 %v13093_v10, %v13344_v27  ;;  %v13473_v45 = vmul.f32 %v13105_v56, %v13344_v27  ;;  %v13477_v3 = vmul.f32 %v16230_v12, %v13344_v27  ;;  %8669 = vmatprep.mubr.bf16.mxu0 %v5649_v25  ;;  %v5651_v60 = vpack.c.bf16 %v5590_v52, %v5589_v16  ;;  %v16249_v56 = vld [vmem:[#allocation6_spill] sm:$0xff] }
 0x70d   :  { %v13481_v54 = vmul.f32 %v16231_v36, %v13344_v27  ;;  %v13485_v2 = vmul.f32 %v16232_v17, %v13344_v27  ;;  %v13489_v10 = vmul.f32 %v16233_v50, %v13344_v27  ;;  %v13493_v11 = vmul.f32 %v16249_v56, %v13344_v27  ;;  %8670 = vmatmul.mubr.bf16.vlgmr.msra.gmra.mrb[128].mxu0 %v5650_v4  ;;  %v16250_v50 = vld [vmem:[#allocation23_spill] sm:$0xff]  ;;  %v16256_v56 = vld [vmem:[#allocation45_spill] sm:$0xff] }
 0x70e   :  { %8673 = vmatprep.mubr.bf16.mxu0 %v5651_v60  ;;  %v5591_v12 = vmax.f32 %v5527_v39, 0.0  ;;  %v5592_v49 = vmax.f32 %v5528_v1, 0.0  ;;  %v5593_v57 = vmax.f32 %v5529_v34, 0.0  ;;  %v5531_v36 = vadd.f32 %v13363_v20, %v5461_v35  ;;  %v16252_v35 = vld [vmem:[#allocation10_spill] sm:$0xff] }
 0x70f   :  { %v5594_v32 = vmax.f32 %v5530_v21, 0.0  ;;  %v5532_v19 = vadd.f32 %v13363_v20, %v5462_v48  ;;  %v5533_v17 = vadd.f32 %v13363_v20, %v5463_v14  ;;  %v5534_v31 = vadd.f32 %v13363_v20, %v5464_v9  ;;  %v16253_v48 = vld [vmem:[#allocation27_spill] sm:$0xff] }
 0x710   :  { %v13501_v26 = vmul.f32 %v16250_v50, %v13344_v27  ;;  %v13505_v61 = vmul.f32 %v16251_v28, %v13344_v27  ;;  %v5535_v5 = vadd.f32 %v13363_v20, %v5465_v24  ;;  %v5536_v40 = vadd.f32 %v13363_v20, %v5466_v23  ;;  %v16255_v24 = vld [vmem:[#allocation8_spill] sm:$0xff] }
 0x711   :  { %v13511_v44 = vmul.f32 %v16252_v35, %v13344_v27  ;;  %v13515_v14 = vmul.f32 %v16253_v48, %v13344_v27  ;;  %v5537_v9 = vadd.f32 %v13363_v20, %v5467_v0  ;;  %v5538_v62 = vadd.f32 %v13363_v20, %v5468_v53  ;;  %v16257_v28 = vld [vmem:[#allocation44_spill] sm:$0xff] }
 0x712   :  { %v13521_v16 = vmul.f32 %v16254_v46, %v13344_v27  ;;  %v13525_v52 = vmul.f32 %v16255_v24, %v13344_v27  ;;  %v5652_v23 = vpack.c.bf16 %v5592_v49, %v5591_v12  ;;  %v5595_v4 = vmax.f32 %v5531_v36, 0.0  ;;  %v16258_v36 = vld [vmem:[#allocation30_spill] sm:$0xff] }
 0x713   :  { %v5653_v25 = vpack.c.bf16 %v5594_v32, %v5593_v57  ;;  %v5596_v39 = vmax.f32 %v5532_v19, 0.0  ;;  %v5597_v1 = vmax.f32 %v5533_v17, 0.0  ;;  %v5598_v34 = vmax.f32 %v5534_v31, 0.0  ;;  %v16260_v31 = vld [vmem:[#allocation41_spill] sm:$0xff] }
 0x714   :  { %v5599_v21 = vmax.f32 %v5535_v5, 0.0  ;;  %v5600_v60 = vmax.f32 %v5536_v40, 0.0  ;;  %v5539_v0 = vadd.f32 %v13363_v20, %v13391_v41  ;;  %v5540_v53 = vadd.f32 %v13363_v20, %v13395_v30  ;;  %v16259_v41 = vld [vmem:[#allocation46_spill] sm:$0xff]  ;;  %v16261_v40 = vld [vmem:[#allocation7_spill] sm:$0xff] }
 0x715   :  { %v13533_v50 = vmul.f32 %v16256_v56, %v13344_v27  ;;  %v13537_v12 = vmul.f32 %v16257_v28, %v13344_v27  ;;  %8674 = vmatmul.mubr.bf16.gmra.mrb[132].mxu0 %v5652_v23  ;;  %v5601_v49 = vmax.f32 %v5537_v9, 0.0  ;;  %v5602_v57 = vmax.f32 %v5538_v62, 0.0 }
 0x716   :  { %v13541_v32 = vmul.f32 %v16258_v36, %v13344_v27  ;;  %v13545_v19 = vmul.f32 %v16259_v41, %v13344_v27  ;;  %8677 = vmatprep.mubr.bf16.mxu0 %v5653_v25  ;;  %v13549_v30 = vadd.f32 %v13363_v20, %v13399_v42  ;;  %v13553_v17 = vadd.f32 %v13363_v20, %v13403_v8 }
 0x717   :  { %v13557_v5 = vmul.f32 %v16260_v31, %v13344_v27  ;;  %v13561_v35 = vmul.f32 %v16261_v40, %v13344_v27  ;;  %v13565_v48 = vmul.f32 %v13173_v51, %v13344_v27  ;;  %v5654_v9 = vpack.c.bf16 %v5596_v39, %v5595_v4 }
 0x718   :  { %v5655_v62 = vpack.c.bf16 %v5598_v34, %v5597_v1  ;;  %v5656_v42 = vpack.c.bf16 %v5600_v60, %v5599_v21  ;;  %v5603_v46 = vmax.f32 %v5539_v0, 0.0  ;;  %v5604_v24 = vmax.f32 %v5540_v53, 0.0 }
 0x719   :  { %v5657_v23 = vpack.c.bf16 %v5602_v57, %v5601_v49  ;;  %v13569_v8 = vadd.f32 %v13363_v20, %v13407_v63  ;;  %v5555_v25 = vadd.f32 %v13363_v20, %v13423_v33  ;;  %v5556_v56 = vadd.f32 %v13363_v20, %v13433_v55 }
 0x71a   :  { %v5605_v28 = vmax.f32 %v13549_v30, 0.0  ;;  %v5606_v51 = vmax.f32 %v13553_v17, 0.0  ;;  %v13579_v4 = vadd.f32 %v13363_v20, %v13411_v22  ;;  %v5557_v39 = vadd.f32 %v13363_v20, %v13437_v18 }
 0x71b   :  { %v13585_v63 = vadd.f32 %v13363_v20, %v13415_v6  ;;  %v5619_v1 = vmax.f32 %v5555_v25, 0.0  ;;  %v5620_v33 = vmax.f32 %v5556_v56, 0.0  ;;  %v5558_v55 = vadd.f32 %v13363_v20, %v13441_v7 }
 0x71c   :  { %v13589_v34 = vpack.c.bf16 %v5604_v24, %v5603_v46  ;;  %v5621_v21 = vmax.f32 %v5557_v39, 0.0  ;;  %v5559_v60 = vadd.f32 %v13363_v20, %v13445_v38  ;;  %v5560_v22 = vadd.f32 %v13363_v20, %v13449_v29 }
 0x71d   :  { %8678 = vmatmul.mubr.bf16.gmra.mrb[136].mxu0 %v5654_v9  ;;  %v13595_v18 = vpack.c.bf16 %v5620_v33, %v5619_v1  ;;  %v5622_v0 = vmax.f32 %v5558_v55, 0.0  ;;  %v5561_v6 = vadd.f32 %v13363_v20, %v13456_v37  ;;  %v5562_v53 = vadd.f32 %v13363_v20, %v13460_v59 }
 0x71e   :  { %8681 = vmatprep.mubr.bf16.mxu0 %v5655_v62  ;;  %v5623_v7 = vmax.f32 %v5559_v60, 0.0  ;;  %v5624_v49 = vmax.f32 %v5560_v22, 0.0  ;;  %v5563_v57 = vadd.f32 %v13363_v20, %v13464_v43  ;;  %v5564_v38 = vadd.f32 %v13363_v20, %v13469_v13 }
 0x71f   :  { %v13605_v29 = vpack.c.bf16 %v5622_v0, %v5621_v21  ;;  %v5625_v36 = vmax.f32 %v5561_v6, 0.0  ;;  %v5626_v41 = vmax.f32 %v5562_v53, 0.0  ;;  %v5565_v31 = vadd.f32 %v13363_v20, %v13473_v45 }
 0x720   :  { %v13609_v37 = vpack.c.bf16 %v5624_v49, %v5623_v7  ;;  %v5627_v40 = vmax.f32 %v5563_v57, 0.0  ;;  %v5628_v59 = vmax.f32 %v5564_v38, 0.0  ;;  %v5566_v9 = vadd.f32 %v13363_v20, %v13477_v3 }
 0x721   :  { %v13613_v62 = vpack.c.bf16 %v5626_v41, %v5625_v36  ;;  %v5629_v43 = vmax.f32 %v5565_v31, 0.0  ;;  %v5567_v13 = vadd.f32 %v13363_v20, %v13481_v54  ;;  %v5568_v46 = vadd.f32 %v13363_v20, %v13485_v2 }
 0x722   :  { %v13619_v24 = vpack.c.bf16 %v5628_v59, %v5627_v40  ;;  %v5630_v25 = vmax.f32 %v5566_v9, 0.0  ;;  %v5569_v45 = vadd.f32 %v13363_v20, %v13489_v10  ;;  %v5570_v56 = vadd.f32 %v13363_v20, %v13493_v11 }
 0x723   :  { %v5631_v39 = vmax.f32 %v5567_v13, 0.0  ;;  %v5632_v3 = vmax.f32 %v5568_v46, 0.0  ;;  %v5571_v1 = vadd.f32 %v13363_v20, %v13501_v26  ;;  %v5572_v54 = vadd.f32 %v13363_v20, %v13505_v61 }
 0x724   :  { %v13629_v33 = vpack.c.bf16 %v5630_v25, %v5629_v43  ;;  %v5633_v2 = vmax.f32 %v5569_v45, 0.0  ;;  %v5634_v55 = vmax.f32 %v5570_v56, 0.0  ;;  %v5573_v21 = vadd.f32 %v13363_v20, %v13511_v44 }
 0x725   :  { %8682 = vmatmul.mubr.bf16.gmra.mrb[140].mxu0 %v5656_v42  ;;  %v13633_v10 = vpack.c.bf16 %v5632_v3, %v5631_v39  ;;  %v5635_v60 = vmax.f32 %v5571_v1, 0.0  ;;  %v5636_v11 = vmax.f32 %v5572_v54, 0.0  ;;  %v5574_v22 = vadd.f32 %v13363_v20, %v13515_v14  ;;  %v16265_v3 = vld [vmem:[#allocation53_spill] sm:$0xff] }
 0x726   :  { %8685 = vmatprep.mubr.bf16.mxu0 %v5657_v23  ;;  %v13637_v26 = vpack.c.bf16 %v5634_v55, %v5633_v2  ;;  %v5637_v0 = vmax.f32 %v5573_v21, 0.0  ;;  %v5575_v61 = vadd.f32 %v13363_v20, %v13521_v16  ;;  %v5576_v6 = vadd.f32 %v13363_v20, %v13525_v52 }
 0x727   :  { %v13643_v53 = vpack.c.bf16 %v5636_v11, %v5635_v60  ;;  %v5638_v44 = vmax.f32 %v5574_v22, 0.0  ;;  %v5577_v42 = vadd.f32 %v13363_v20, %v13533_v50  ;;  %v5578_v7 = vadd.f32 %v13363_v20, %v13537_v12 }
 0x728   :  { %v5639_v14 = vmax.f32 %v5575_v61, 0.0  ;;  %v5640_v23 = vmax.f32 %v5576_v6, 0.0  ;;  %v5579_v49 = vadd.f32 %v13363_v20, %v13541_v32  ;;  %v5580_v16 = vadd.f32 %v13363_v20, %v13545_v19  ;;  %v16267_v6 = vld [vmem:[#allocation38_spill] sm:$0xff] }
 0x729   :  { %v13653_v57 = vpack.c.bf16 %v5638_v44, %v5637_v0  ;;  %v5641_v52 = vmax.f32 %v5577_v42, 0.0  ;;  %v5642_v38 = vmax.f32 %v5578_v7, 0.0  ;;  %v5581_v36 = vadd.f32 %v13363_v20, %v13557_v5  ;;  %v16266_v0 = vld [vmem:[#allocation17_spill] sm:$0xff]  ;;  %v16268_v42 = vld [vmem:[#allocation54_spill] sm:$0xff] }
 0x72a   :  { %v13657_v41 = vpack.c.bf16 %v5640_v23, %v5639_v14  ;;  %v5643_v50 = vmax.f32 %v5579_v49, 0.0  ;;  %v5644_v31 = vmax.f32 %v5580_v16, 0.0  ;;  %v5582_v12 = vadd.f32 %v13363_v20, %v13348_v58  ;;  %v16269_v14 = vld [vmem:[#allocation21_spill] sm:$0xff] }
 0x72b   :  { %v13661_v40 = vpack.c.bf16 %v5642_v38, %v5641_v52  ;;  %v5645_v32 = vmax.f32 %v5581_v36, 0.0  ;;  %v5583_v19 = vadd.f32 %v13363_v20, %v13561_v35  ;;  %v5584_v59 = vadd.f32 %v13363_v20, %v13565_v48 }
 0x72c   :  { %v5659_v5 = vpack.c.bf16 %v5606_v51, %v5605_v28  ;;  %v5546_v9 = vadd.f32 %v13363_v20, %v13419_v15  ;;  %v5678_v43 = vpack.c.bf16 %v5644_v31, %v5643_v50  ;;  %v5646_v13 = vmax.f32 %v5582_v12, 0.0  ;;  %v16262_v28 = vld [vmem:[#allocation15_spill] sm:$0xff]  ;;  %v16263_v15 = vld [vmem:[#allocation73_spill] sm:$0xff] }
 0x72d   :  { %8686 = vmatmul.mubr.bf16.gmra.mrb[144].mxu0 %v13589_v34  ;;  %v5647_v58 = vmax.f32 %v5583_v19, 0.0  ;;  %v5648_v46 = vmax.f32 %v5584_v59, 0.0  ;;  %v5607_v35 = vmax.f32 %v13569_v8, 0.0  ;;  %v5608_v48 = vmax.f32 %v13579_v4, 0.0  ;;  %v16264_v34 = vld [vmem:[#allocation4_spill] sm:$0xff] }
 0x72e   :  { %8689 = vmatprep.mubr.bf16.mxu0 %v5659_v5  ;;  %v5679_v25 = vpack.c.bf16 %v5646_v13, %v5645_v32  ;;  %v5609_v30 = vmax.f32 %v13585_v63, 0.0  ;;  %v5610_v17 = vmax.f32 %v5546_v9, 0.0  ;;  %v5477_v51 = vmul.f32 %v16262_v28, %v13344_v27 }
 0x72f   :  { %v5680_v45 = vpack.c.bf16 %v5648_v46, %v5647_v58  ;;  %v5478_v56 = vmul.f32 %v16263_v15, %v13344_v27  ;;  %v5479_v39 = vmul.f32 %v16264_v34, %v13344_v27  ;;  %v5480_v1 = vmul.f32 %v16265_v3, %v13344_v27 }
 0x730   :  { %v5660_v54 = vpack.c.bf16 %v5608_v48, %v5607_v35  ;;  %v5547_v8 = vadd.f32 %v13363_v20, %v5477_v51  ;;  %v5661_v2 = vpack.c.bf16 %v5610_v17, %v5609_v30  ;;  %v5481_v61 = vmul.f32 %v16266_v0, %v13344_v27 }
 0x731   :  { %v5548_v4 = vadd.f32 %v13363_v20, %v5478_v56  ;;  %v5549_v63 = vadd.f32 %v13363_v20, %v5479_v39  ;;  %v5550_v55 = vadd.f32 %v13363_v20, %v5480_v1  ;;  %v5482_v44 = vmul.f32 %v16267_v6, %v13344_v27 }
 0x732   :  { %v5611_v21 = vmax.f32 %v5547_v8, 0.0  ;;  %v5483_v7 = vmul.f32 %v16268_v42, %v13344_v27  ;;  %v5484_v23 = vmul.f32 %v16269_v14, %v13344_v27  ;;  %v5551_v16 = vadd.f32 %v13363_v20, %v5481_v61 }
 0x733   :  { %v5612_v60 = vmax.f32 %v5548_v4, 0.0  ;;  %v5613_v11 = vmax.f32 %v5549_v63, 0.0  ;;  %v5614_v22 = vmax.f32 %v5550_v55, 0.0  ;;  %v5552_v52 = vadd.f32 %v13363_v20, %v5482_v44 }
 0x734   :  { %v5553_v36 = vadd.f32 %v13363_v20, %v5483_v7  ;;  %v5554_v50 = vadd.f32 %v13363_v20, %v5484_v23  ;;  %v5615_v31 = vmax.f32 %v5551_v16, 0.0 }
 0x735   :  { %8690 = vmatmul.mubr.bf16.gmra.mrb[148].mxu0 %v5660_v54  ;;  %v5662_v49 = vpack.c.bf16 %v5612_v60, %v5611_v21  ;;  %v5663_v38 = vpack.c.bf16 %v5614_v22, %v5613_v11  ;;  %v5616_v12 = vmax.f32 %v5552_v52, 0.0 }
 0x736   :  { %8693 = vmatprep.mubr.bf16.mxu0 %v5661_v2  ;;  %v5617_v32 = vmax.f32 %v5553_v36, 0.0  ;;  %v5618_v19 = vmax.f32 %v5554_v50, 0.0 }
 0x737   :  { %v5664_v59 = vpack.c.bf16 %v5616_v12, %v5615_v31 }
 0x738   :  { %v5665_v5 = vpack.c.bf16 %v5618_v19, %v5617_v32 }
 0x73d   :  { %8694 = vmatmul.mubr.bf16.gmra.mrb[152].mxu0 %v5662_v49 }
 0x73e   :  { %8697 = vmatprep.mubr.bf16.mxu0 %v5663_v38 }
 0x745   :  { %8698 = vmatmul.mubr.bf16.gmra.mrb[156].mxu0 %v5664_v59 }
 0x746   :  { %8701 = vmatprep.mubr.bf16.mxu0 %v5665_v5 }
 0x74d   :  { %8702 = vmatmul.mubr.bf16.gmra.mrb[160].mxu0 %v13595_v18 }
 0x74e   :  { %8705 = vmatprep.mubr.bf16.mxu0 %v13605_v29 }
 0x755   :  { %8706 = vmatmul.mubr.bf16.gmra.mrb[164].mxu0 %v13609_v37 }
 0x756   :  { %8709 = vmatprep.mubr.bf16.mxu0 %v13613_v62 }
 0x75d   :  { %8710 = vmatmul.mubr.bf16.gmra.mrb[168].mxu0 %v13619_v24 }
 0x75e   :  { %8713 = vmatprep.mubr.bf16.mxu0 %v13629_v33 }
 0x765   :  { %8714 = vmatmul.mubr.bf16.gmra.mrb[172].mxu0 %v13633_v10 }
 0x766   :  { %8717 = vmatprep.mubr.bf16.mxu0 %v13637_v26 }
 0x76d   :  { %8718 = vmatmul.mubr.bf16.gmra.mrb[176].mxu0 %v13643_v53 }
 0x76e   :  { %8721 = vmatprep.mubr.bf16.mxu0 %v13653_v57 }
 0x775   :  { %8722 = vmatmul.mubr.bf16.gmra.mrb[180].mxu0 %v13657_v41 }
 0x776   :  { %8725 = vmatprep.mubr.bf16.mxu0 %v13661_v40 }
 0x77d   :  { %8726 = vmatmul.mubr.bf16.gmra.mrb[184].mxu0 %v5678_v43 }
 0x77e   :  { %8729 = vmatprep.mubr.bf16.mxu0 %v5679_v25 }
 0x785   :  { %8730 = vmatmul.mubr.bf16.gmra.mrb[188].mxu0 %v5680_v45 }
 0x7e0   :  { %v13713_v27 = vpop.f32.mrb[128].mxu0 }
 0x7e1   :  { %16270 = vst [vmem:[#allocation56_spill] sm:$0xff] %v13713_v27  ;;  %v13715_v20 = vpop.f32.mrb[129].mxu0 }
 0x7e2   :  { %v13717_v18 = vpop.f32.mrb[130].mxu0 }
 0x7e3   :  { %16271 = vst [vmem:[#allocation26_spill] sm:$0xff] %v13717_v18  ;;  %v13719_v29 = vpop.f32.mrb[131].mxu0 }
 0x7e4   :  { %16272 = vst [vmem:[#allocation62_spill] sm:$0xff] %v13719_v29  ;;  %v6034_v37 = vadd.f32 %v13719_v29, %v13715_v20 }
 0x7e6   :  { %v6035_v62 = vadd.f32 %v13713_v27, %v6034_v37 }
 0x7e8   :  { %v13724_v24 = vpop.f32.mrb[132].mxu0  ;;  %v6036_v33 = vadd.f32 %v13717_v18, %v6035_v62 }
 0x7e9   :  { %v13727_v10 = vpop.f32.mrb[133].mxu0 }
 0x7ea   :  { %16273 = vst [vmem:[#allocation32_spill] sm:$0xff] %v13727_v10  ;;  %v6037_v26 = vadd.f32 %v6036_v33, %v13727_v10  ;;  %v13730_v53 = vpop.f32.mrb[134].mxu0 }
 0x7eb   :  { %v13732_v57 = vpop.f32.mrb[135].mxu0 }
 0x7ec   :  { %v6038_v41 = vadd.f32 %v6037_v26, %v13732_v57 }
 0x7ee   :  { %v6039_v40 = vadd.f32 %v13724_v24, %v6038_v41 }
 0x7f0   :  { %v13736_v9 = vpop.f32.mrb[136].mxu0  ;;  %v6040_v43 = vadd.f32 %v13730_v53, %v6039_v40 }
 0x7f1   :  { %v13739_v13 = vpop.f32.mrb[137].mxu0 }
 0x7f2   :  { %v6041_v58 = vadd.f32 %v6040_v43, %v13739_v13  ;;  %v13742_v46 = vpop.f32.mrb[138].mxu0 }
 0x7f3   :  { %v13744_v25 = vpop.f32.mrb[139].mxu0 }
 0x7f4   :  { %v6042_v35 = vadd.f32 %v6041_v58, %v13744_v25 }
 0x7f6   :  { %v6043_v48 = vadd.f32 %v13736_v9, %v6042_v35 }
 0x7f8   :  { %v13748_v45 = vpop.f32.mrb[140].mxu0  ;;  %v6044_v30 = vadd.f32 %v13742_v46, %v6043_v48 }
 0x7f9   :  { %v13751_v17 = vpop.f32.mrb[141].mxu0 }
 0x7fa   :  { %v6045_v28 = vadd.f32 %v6044_v30, %v13751_v17  ;;  %v13754_v51 = vpop.f32.mrb[142].mxu0 }
 0x7fb   :  { %v13756_v15 = vpop.f32.mrb[143].mxu0 }
 0x7fc   :  { %v6046_v56 = vadd.f32 %v6045_v28, %v13756_v15 }
 0x7fe   :  { %v6047_v34 = vadd.f32 %v13748_v45, %v6046_v56 }
 0x800   :  { %v13760_v39 = vpop.f32.mrb[144].mxu0  ;;  %v6048_v3 = vadd.f32 %v13754_v51, %v6047_v34 }
 0x801   :  { %v13763_v1 = vpop.f32.mrb[145].mxu0 }
 0x802   :  { %v6049_v54 = vadd.f32 %v6048_v3, %v13763_v1  ;;  %v13766_v8 = vpop.f32.mrb[146].mxu0 }
 0x803   :  { %v13768_v4 = vpop.f32.mrb[147].mxu0 }
 0x804   :  { %v6050_v2 = vadd.f32 %v6049_v54, %v13768_v4 }
 0x806   :  { %v6051_v63 = vadd.f32 %v13760_v39, %v6050_v2 }
 0x808   :  { %v13772_v55 = vpop.f32.mrb[148].mxu0  ;;  %v6052_v21 = vadd.f32 %v13766_v8, %v6051_v63 }
 0x809   :  { %v13775_v60 = vpop.f32.mrb[149].mxu0 }
 0x80a   :  { %v6053_v11 = vadd.f32 %v6052_v21, %v13775_v60  ;;  %v13778_v22 = vpop.f32.mrb[150].mxu0 }
 0x80b   :  { %v13780_v0 = vpop.f32.mrb[151].mxu0 }
 0x80c   :  { %v6054_v61 = vadd.f32 %v6053_v11, %v13780_v0 }
 0x80e   :  { %v6055_v6 = vadd.f32 %v13772_v55, %v6054_v61 }
 0x810   :  { %v13784_v44 = vpop.f32.mrb[152].mxu0  ;;  %v6056_v42 = vadd.f32 %v13778_v22, %v6055_v6 }
 0x811   :  { %v13787_v7 = vpop.f32.mrb[153].mxu0 }
 0x812   :  { %v6057_v14 = vadd.f32 %v6056_v42, %v13787_v7  ;;  %v13790_v23 = vpop.f32.mrb[154].mxu0 }
 0x813   :  { %v13792_v49 = vpop.f32.mrb[155].mxu0 }
 0x814   :  { %v6058_v16 = vadd.f32 %v6057_v14, %v13792_v49 }
 0x816   :  { %v6059_v52 = vadd.f32 %v13784_v44, %v6058_v16 }
 0x818   :  { %v13796_v38 = vpop.f32.mrb[156].mxu0  ;;  %v6060_v36 = vadd.f32 %v13790_v23, %v6059_v52 }
 0x819   :  { %v13799_v50 = vpop.f32.mrb[157].mxu0 }
 0x81a   :  { %v6061_v31 = vadd.f32 %v6060_v36, %v13799_v50  ;;  %v13802_v12 = vpop.f32.mrb[158].mxu0 }
 0x81b   :  { %v13804_v32 = vpop.f32.mrb[159].mxu0 }
 0x81c   :  { %v6062_v19 = vadd.f32 %v6061_v31, %v13804_v32 }
 0x81e   :  { %v6063_v59 = vadd.f32 %v13796_v38, %v6062_v19 }
 0x820   :  { %v13808_v5 = vpop.f32.mrb[160].mxu0  ;;  %v6064_v37 = vadd.f32 %v13802_v12, %v6063_v59 }
 0x821   :  { %v13811_v62 = vpop.f32.mrb[161].mxu0 }
 0x822   :  { %v6065_v33 = vadd.f32 %v6064_v37, %v13811_v62  ;;  %v13814_v26 = vpop.f32.mrb[162].mxu0 }
 0x823   :  { %v13816_v41 = vpop.f32.mrb[163].mxu0 }
 0x824   :  { %v6066_v40 = vadd.f32 %v6065_v33, %v13816_v41 }
 0x826   :  { %v6067_v43 = vadd.f32 %v13808_v5, %v6066_v40 }
 0x828   :  { %v13820_v58 = vpop.f32.mrb[164].mxu0  ;;  %v6068_v35 = vadd.f32 %v13814_v26, %v6067_v43 }
 0x829   :  { %v13823_v48 = vpop.f32.mrb[165].mxu0 }
 0x82a   :  { %v6069_v30 = vadd.f32 %v6068_v35, %v13823_v48  ;;  %v13826_v28 = vpop.f32.mrb[166].mxu0 }
 0x82b   :  { %v13828_v56 = vpop.f32.mrb[167].mxu0 }
 0x82c   :  { %v6070_v34 = vadd.f32 %v6069_v30, %v13828_v56 }
 0x82e   :  { %v6071_v3 = vadd.f32 %v13820_v58, %v6070_v34 }
 0x830   :  { %v13832_v54 = vpop.f32.mrb[168].mxu0  ;;  %v6072_v2 = vadd.f32 %v13826_v28, %v6071_v3 }
 0x831   :  { %v13835_v63 = vpop.f32.mrb[169].mxu0 }
 0x832   :  { %v6073_v21 = vadd.f32 %v6072_v2, %v13835_v63  ;;  %v13838_v11 = vpop.f32.mrb[170].mxu0 }
 0x833   :  { %16274 = vst [vmem:[#allocation31_spill] sm:$0xff] %v13838_v11  ;;  %v13840_v61 = vpop.f32.mrb[171].mxu0 }
 0x834   :  { %v6074_v6 = vadd.f32 %v6073_v21, %v13840_v61 }
 0x836   :  { %v6075_v42 = vadd.f32 %v13832_v54, %v6074_v6 }
 0x838   :  { %v13844_v14 = vpop.f32.mrb[172].mxu0  ;;  %v6076_v16 = vadd.f32 %v13838_v11, %v6075_v42 }
 0x839   :  { %16275 = vst [vmem:[#allocation34_spill] sm:$0xff] %v13844_v14  ;;  %v13847_v52 = vpop.f32.mrb[173].mxu0 }
 0x83a   :  { %16276 = vst [vmem:[#allocation33_spill] sm:$0xff] %v13847_v52  ;;  %v6077_v36 = vadd.f32 %v6076_v16, %v13847_v52  ;;  %v13850_v31 = vpop.f32.mrb[174].mxu0 }
 0x83b   :  { %16277 = vst [vmem:[#allocation57_spill] sm:$0xff] %v13850_v31  ;;  %v13852_v19 = vpop.f32.mrb[175].mxu0 }
 0x83c   :  { %16278 = vst [vmem:[#allocation60_spill] sm:$0xff] %v13852_v19  ;;  %v6078_v59 = vadd.f32 %v6077_v36, %v13852_v19 }
 0x83e   :  { %v6079_v37 = vadd.f32 %v13844_v14, %v6078_v59 }
 0x840   :  { %v13856_v33 = vpop.f32.mrb[176].mxu0  ;;  %v6080_v40 = vadd.f32 %v13850_v31, %v6079_v37 }
 0x841   :  { %16279 = vst [vmem:[#allocation74_spill] sm:$0xff] %v13856_v33  ;;  %v13859_v43 = vpop.f32.mrb[177].mxu0 }
 0x842   :  { %16280 = vst [vmem:[#allocation20_spill] sm:$0xff] %v13859_v43  ;;  %v6081_v35 = vadd.f32 %v6080_v40, %v13859_v43  ;;  %v13862_v30 = vpop.f32.mrb[178].mxu0 }
 0x843   :  { %16281 = vst [vmem:[#allocation42_spill] sm:$0xff] %v13862_v30  ;;  %v13864_v34 = vpop.f32.mrb[179].mxu0 }
 0x844   :  { %16282 = vst [vmem:[#allocation43_spill] sm:$0xff] %v13864_v34  ;;  %v6082_v3 = vadd.f32 %v6081_v35, %v13864_v34 }
 0x846   :  { %v6083_v2 = vadd.f32 %v13856_v33, %v6082_v3 }
 0x848   :  { %v13868_v21 = vpop.f32.mrb[180].mxu0  ;;  %v6084_v6 = vadd.f32 %v13862_v30, %v6083_v2 }
 0x849   :  { %16283 = vst [vmem:[#allocation40_spill] sm:$0xff] %v13868_v21  ;;  %v13871_v42 = vpop.f32.mrb[181].mxu0 }
 0x84a   :  { %16284 = vst [vmem:[#allocation55_spill] sm:$0xff] %v13871_v42  ;;  %v6085_v16 = vadd.f32 %v6084_v6, %v13871_v42  ;;  %v13874_v36 = vpop.f32.mrb[182].mxu0 }
 0x84b   :  { %16285 = vst [vmem:[#allocation58_spill] sm:$0xff] %v13874_v36  ;;  %v13876_v59 = vpop.f32.mrb[183].mxu0 }
 0x84c   :  { %16286 = vst [vmem:[#allocation59_spill] sm:$0xff] %v13876_v59  ;;  %v6086_v37 = vadd.f32 %v6085_v16, %v13876_v59 }
 0x84e   :  { %v6087_v40 = vadd.f32 %v13868_v21, %v6086_v37 }
 0x850   :  { %v13880_v47 = vpop.f32.mrb[184].mxu0  ;;  %v6088_v35 = vadd.f32 %v13874_v36, %v6087_v40 }
 0x851   :  { %16287 = vst [vmem:[#allocation61_spill] sm:$0xff] %v13880_v47  ;;  %v13883_v3 = vpop.f32.mrb[185].mxu0 }
 0x852   :  { %16288 = vst [vmem:[#allocation63_spill] sm:$0xff] %v13883_v3  ;;  %v6089_v2 = vadd.f32 %v6088_v35, %v13883_v3  ;;  %v13886_v30 = vpop.f32.mrb[186].mxu0 }
 0x853   :  { %16289 = vst [vmem:[#allocation65_spill] sm:$0xff] %v13886_v30  ;;  %v13888_v33 = vpop.f32.mrb[187].mxu0 }
 0x854   :  { %16290 = vst [vmem:[#allocation67_spill] sm:$0xff] %v13888_v33  ;;  %v6090_v6 = vadd.f32 %v6089_v2, %v13888_v33 }
 0x856   :  { %v6091_v42 = vadd.f32 %v13880_v47, %v6090_v6 }
 0x858   :  { %v13892_v34 = vpop.f32.mrb[188].mxu0  ;;  %v6092_v16 = vadd.f32 %v13886_v30, %v6091_v42 }
 0x859   :  { %16291 = vst [vmem:[#allocation70_spill] sm:$0xff] %v13892_v34  ;;  %v13895_v37 = vpop.f32.mrb[189].mxu0 }
 0x85a   :  { %16292 = vst [vmem:[#allocation71_spill] sm:$0xff] %v13895_v37  ;;  %v6093_v40 = vadd.f32 %v6092_v16, %v13895_v37  ;;  %v13898_v36 = vpop.f32.mrb[190].mxu0 }
 0x85b   :  { %v13900_v21 = vpop.f32.mrb[191].mxu0 }
 0x85c   :  { %16293 = vst [vmem:[#allocation37_spill] sm:$0xff] %v13900_v21  ;;  %v6094_v35 = vadd.f32 %v6093_v40, %v13900_v21 }
 0x85e   :  { %v6095_v3 = vadd.f32 %v13892_v34, %v6094_v35 }
 0x860   :  { %v6096_v2 = vadd.f32 %v13898_v36, %v6095_v3 }
 0x862   :  { %v6097_v33 = vrot.slane %v6096_v2, 4 }
 0x864   :  { %v6098_v6 = vadd.f32 %v6097_v33, %v6096_v2 }
 0x866   :  { %v6099_v47 = vrot.slane %v6098_v6, 2 }
 0x868   :  { %v6100_v59 = vadd.f32 %v6099_v47, %v6098_v6 }
 0x86a   :  { %v6101_v43 = vrot.slane %v6100_v59, 1 }
 0x86c   :  { %v6102_v42 = vadd.f32 %v6101_v43, %v6100_v59 }
 0x86e   :  { %v13905_v30 = vmul.f32 0.001953125, %v6102_v42 }
 0x870   :  { %v6104_v16 = vsub.f32 %v13715_v20, %v13905_v30  ;;  %v6105_v37 = vsub.f32 %v13719_v29, %v13905_v30  ;;  %v6106_v40 = vsub.f32 %v13713_v27, %v13905_v30  ;;  %v6107_v33 = vsub.f32 %v13717_v18, %v13905_v30 }
 0x871   :  { %v6108_v47 = vsub.f32 %v13727_v10, %v13905_v30  ;;  %v6109_v3 = vsub.f32 %v13732_v57, %v13905_v30  ;;  %v6110_v42 = vsub.f32 %v13724_v24, %v13905_v30  ;;  %v6112_v10 = vsub.f32 %v13739_v13, %v13905_v30 }
 0x872   :  { %v6168_v35 = vmul.f32 %v6104_v16, %v6104_v16  ;;  %v6169_v34 = vmul.f32 %v6105_v37, %v6105_v37  ;;  %v6170_v43 = vmul.f32 %v6106_v40, %v6106_v40  ;;  %v6171_v2 = vmul.f32 %v6107_v33, %v6107_v33 }
 0x873   :  { %v6172_v29 = vmul.f32 %v6108_v47, %v6108_v47  ;;  %v6111_v37 = vsub.f32 %v13730_v53, %v13905_v30  ;;  %v6173_v16 = vmul.f32 %v6109_v3, %v6109_v3  ;;  %v6174_v40 = vmul.f32 %v6110_v42, %v6110_v42 }
 0x874   :  { %v6232_v59 = vadd.f32 %v6169_v34, %v6168_v35  ;;  %v6113_v35 = vsub.f32 %v13744_v25, %v13905_v30  ;;  %v6176_v47 = vmul.f32 %v6112_v10, %v6112_v10 }
 0x875   :  { %v6175_v33 = vmul.f32 %v6111_v37, %v6111_v37 }
 0x876   :  { %v6233_v6 = vadd.f32 %v6232_v59, %v6170_v43  ;;  %v6114_v59 = vsub.f32 %v13736_v9, %v13905_v30  ;;  %v6177_v3 = vmul.f32 %v6113_v35, %v6113_v35 }
 0x878   :  { %v6234_v27 = vadd.f32 %v6233_v6, %v6171_v2  ;;  %v6115_v6 = vsub.f32 %v13742_v46, %v13905_v30  ;;  %v6178_v42 = vmul.f32 %v6114_v59, %v6114_v59 }
 0x87a   :  { %v6235_v18 = vadd.f32 %v6234_v27, %v6172_v29  ;;  %v6116_v29 = vsub.f32 %v13751_v17, %v13905_v30  ;;  %v6179_v37 = vmul.f32 %v6115_v6, %v6115_v6 }
 0x87c   :  { %v6236_v34 = vadd.f32 %v6235_v18, %v6173_v16  ;;  %v6117_v16 = vsub.f32 %v13756_v15, %v13905_v30  ;;  %v6180_v10 = vmul.f32 %v6116_v29, %v6116_v29 }
 0x87e   :  { %v6237_v43 = vadd.f32 %v6236_v34, %v6174_v40  ;;  %v6118_v34 = vsub.f32 %v13748_v45, %v13905_v30  ;;  %v6181_v35 = vmul.f32 %v6117_v16, %v6117_v16 }
 0x880   :  { %v6238_v2 = vadd.f32 %v6237_v43, %v6175_v33  ;;  %v6119_v43 = vsub.f32 %v13754_v51, %v13905_v30  ;;  %v6182_v59 = vmul.f32 %v6118_v34, %v6118_v34 }
 0x882   :  { %v6239_v27 = vadd.f32 %v6238_v2, %v6176_v47  ;;  %v6120_v2 = vsub.f32 %v13763_v1, %v13905_v30  ;;  %v6183_v6 = vmul.f32 %v6119_v43, %v6119_v43 }
 0x884   :  { %v6240_v18 = vadd.f32 %v6239_v27, %v6177_v3  ;;  %v6121_v27 = vsub.f32 %v13768_v4, %v13905_v30  ;;  %v6184_v29 = vmul.f32 %v6120_v2, %v6120_v2 }
 0x886   :  { %v6241_v40 = vadd.f32 %v6240_v18, %v6178_v42  ;;  %v6122_v18 = vsub.f32 %v13760_v39, %v13905_v30  ;;  %v6185_v16 = vmul.f32 %v6121_v27, %v6121_v27 }
 0x888   :  { %v6242_v33 = vadd.f32 %v6241_v40, %v6179_v37  ;;  %v6123_v40 = vsub.f32 %v13766_v8, %v13905_v30  ;;  %v6186_v34 = vmul.f32 %v6122_v18, %v6122_v18 }
 0x88a   :  { %v6243_v47 = vadd.f32 %v6242_v33, %v6180_v10  ;;  %v6124_v33 = vsub.f32 %v13775_v60, %v13905_v30  ;;  %v6187_v43 = vmul.f32 %v6123_v40, %v6123_v40 }
 0x88c   :  { %v6244_v3 = vadd.f32 %v6243_v47, %v6181_v35  ;;  %v6125_v47 = vsub.f32 %v13780_v0, %v13905_v30  ;;  %v6188_v2 = vmul.f32 %v6124_v33, %v6124_v33 }
 0x88e   :  { %v6245_v42 = vadd.f32 %v6244_v3, %v6182_v59  ;;  %v6126_v3 = vsub.f32 %v13772_v55, %v13905_v30  ;;  %v6189_v27 = vmul.f32 %v6125_v47, %v6125_v47 }
 0x890   :  { %v6246_v37 = vadd.f32 %v6245_v42, %v6183_v6  ;;  %v6127_v42 = vsub.f32 %v13778_v22, %v13905_v30  ;;  %v6190_v18 = vmul.f32 %v6126_v3, %v6126_v3 }
 0x892   :  { %v6247_v10 = vadd.f32 %v6246_v37, %v6184_v29  ;;  %v6128_v37 = vsub.f32 %v13787_v7, %v13905_v30  ;;  %v6191_v40 = vmul.f32 %v6127_v42, %v6127_v42 }
 0x894   :  { %v6248_v35 = vadd.f32 %v6247_v10, %v6185_v16  ;;  %v6129_v10 = vsub.f32 %v13792_v49, %v13905_v30  ;;  %v6192_v33 = vmul.f32 %v6128_v37, %v6128_v37 }
 0x896   :  { %v6249_v59 = vadd.f32 %v6248_v35, %v6186_v34  ;;  %v6130_v35 = vsub.f32 %v13784_v44, %v13905_v30  ;;  %v6193_v47 = vmul.f32 %v6129_v10, %v6129_v10 }
 0x898   :  { %v6250_v6 = vadd.f32 %v6249_v59, %v6187_v43  ;;  %v6131_v59 = vsub.f32 %v13790_v23, %v13905_v30  ;;  %v6194_v3 = vmul.f32 %v6130_v35, %v6130_v35 }
 0x89a   :  { %v6251_v29 = vadd.f32 %v6250_v6, %v6188_v2  ;;  %v6132_v6 = vsub.f32 %v13799_v50, %v13905_v30  ;;  %v6195_v42 = vmul.f32 %v6131_v59, %v6131_v59 }
 0x89c   :  { %v6252_v16 = vadd.f32 %v6251_v29, %v6189_v27  ;;  %v6133_v29 = vsub.f32 %v13804_v32, %v13905_v30  ;;  %v6196_v37 = vmul.f32 %v6132_v6, %v6132_v6 }
 0x89e   :  { %v6253_v34 = vadd.f32 %v6252_v16, %v6190_v18  ;;  %v6134_v16 = vsub.f32 %v13796_v38, %v13905_v30  ;;  %v6197_v10 = vmul.f32 %v6133_v29, %v6133_v29 }
 0x8a0   :  { %v6254_v43 = vadd.f32 %v6253_v34, %v6191_v40  ;;  %v6135_v34 = vsub.f32 %v13802_v12, %v13905_v30  ;;  %v6198_v35 = vmul.f32 %v6134_v16, %v6134_v16 }
 0x8a2   :  { %v6255_v2 = vadd.f32 %v6254_v43, %v6192_v33  ;;  %v6136_v43 = vsub.f32 %v13811_v62, %v13905_v30  ;;  %v6199_v59 = vmul.f32 %v6135_v34, %v6135_v34 }
 0x8a4   :  { %v6256_v27 = vadd.f32 %v6255_v2, %v6193_v47  ;;  %v6137_v2 = vsub.f32 %v13816_v41, %v13905_v30  ;;  %v6200_v6 = vmul.f32 %v6136_v43, %v6136_v43 }
 0x8a6   :  { %v6257_v18 = vadd.f32 %v6256_v27, %v6194_v3  ;;  %v6138_v27 = vsub.f32 %v13808_v5, %v13905_v30  ;;  %v6201_v29 = vmul.f32 %v6137_v2, %v6137_v2 }
 0x8a8   :  { %v6258_v40 = vadd.f32 %v6257_v18, %v6195_v42  ;;  %v6139_v18 = vsub.f32 %v13814_v26, %v13905_v30  ;;  %v6202_v16 = vmul.f32 %v6138_v27, %v6138_v27 }
 0x8aa   :  { %v6259_v33 = vadd.f32 %v6258_v40, %v6196_v37  ;;  %v6140_v40 = vsub.f32 %v13823_v48, %v13905_v30  ;;  %v6203_v34 = vmul.f32 %v6139_v18, %v6139_v18 }
 0x8ac   :  { %v6260_v47 = vadd.f32 %v6259_v33, %v6197_v10  ;;  %v6141_v33 = vsub.f32 %v13828_v56, %v13905_v30  ;;  %v6204_v43 = vmul.f32 %v6140_v40, %v6140_v40 }
 0x8ae   :  { %v6261_v3 = vadd.f32 %v6260_v47, %v6198_v35  ;;  %v6142_v47 = vsub.f32 %v13820_v58, %v13905_v30  ;;  %v6205_v2 = vmul.f32 %v6141_v33, %v6141_v33 }
 0x8b0   :  { %v6262_v42 = vadd.f32 %v6261_v3, %v6199_v59  ;;  %v6143_v3 = vsub.f32 %v13826_v28, %v13905_v30  ;;  %v6206_v27 = vmul.f32 %v6142_v47, %v6142_v47 }
 0x8b2   :  { %v6263_v37 = vadd.f32 %v6262_v42, %v6200_v6  ;;  %v6144_v42 = vsub.f32 %v13835_v63, %v13905_v30  ;;  %v6207_v18 = vmul.f32 %v6143_v3, %v6143_v3 }
 0x8b4   :  { %v6264_v10 = vadd.f32 %v6263_v37, %v6201_v29  ;;  %v6145_v37 = vsub.f32 %v13840_v61, %v13905_v30  ;;  %v6208_v40 = vmul.f32 %v6144_v42, %v6144_v42 }
 0x8b6   :  { %v6265_v35 = vadd.f32 %v6264_v10, %v6202_v16  ;;  %v6146_v10 = vsub.f32 %v13832_v54, %v13905_v30  ;;  %v6209_v33 = vmul.f32 %v6145_v37, %v6145_v37 }
 0x8b8   :  { %v6266_v59 = vadd.f32 %v6265_v35, %v6203_v34  ;;  %v6147_v35 = vsub.f32 %v13838_v11, %v13905_v30  ;;  %v6210_v47 = vmul.f32 %v6146_v10, %v6146_v10 }
 0x8ba   :  { %v6267_v6 = vadd.f32 %v6266_v59, %v6204_v43  ;;  %v6148_v59 = vsub.f32 %v13847_v52, %v13905_v30  ;;  %v6211_v3 = vmul.f32 %v6147_v35, %v6147_v35 }
 0x8bc   :  { %v6268_v29 = vadd.f32 %v6267_v6, %v6205_v2  ;;  %v6149_v6 = vsub.f32 %v13852_v19, %v13905_v30  ;;  %v6212_v42 = vmul.f32 %v6148_v59, %v6148_v59 }
 0x8be   :  { %v6269_v16 = vadd.f32 %v6268_v29, %v6206_v27  ;;  %v6150_v29 = vsub.f32 %v13844_v14, %v13905_v30  ;;  %v6213_v37 = vmul.f32 %v6149_v6, %v6149_v6 }
 0x8c0   :  { %v6270_v34 = vadd.f32 %v6269_v16, %v6207_v18  ;;  %v6151_v16 = vsub.f32 %v13850_v31, %v13905_v30  ;;  %v6214_v10 = vmul.f32 %v6150_v29, %v6150_v29 }
 0x8c2   :  { %v6271_v43 = vadd.f32 %v6270_v34, %v6208_v40  ;;  %v16294_v34 = vld [vmem:[#allocation20_spill] sm:$0xff]  ;;  %v6215_v35 = vmul.f32 %v6151_v16, %v6151_v16 }
 0x8c3   :  { %v6152_v52 = vsub.f32 %v16294_v34, %v13905_v30 }
 0x8c4   :  { %v6272_v2 = vadd.f32 %v6271_v43, %v6209_v33  ;;  %v16295_v43 = vld [vmem:[#allocation43_spill] sm:$0xff] }
 0x8c5   :  { %v6153_v19 = vsub.f32 %v16295_v43, %v13905_v30  ;;  %v6216_v59 = vmul.f32 %v6152_v52, %v6152_v52 }
 0x8c6   :  { %v6273_v27 = vadd.f32 %v6272_v2, %v6210_v47  ;;  %v16296_v2 = vld [vmem:[#allocation74_spill] sm:$0xff] }
 0x8c7   :  { %v6154_v14 = vsub.f32 %v16296_v2, %v13905_v30  ;;  %v6217_v6 = vmul.f32 %v6153_v19, %v6153_v19 }
 0x8c8   :  { %v6274_v18 = vadd.f32 %v6273_v27, %v6211_v3  ;;  %v16297_v27 = vld [vmem:[#allocation42_spill] sm:$0xff] }
 0x8c9   :  { %v6155_v31 = vsub.f32 %v16297_v27, %v13905_v30  ;;  %v6218_v29 = vmul.f32 %v6154_v14, %v6154_v14 }
 0x8ca   :  { %v6275_v40 = vadd.f32 %v6274_v18, %v6212_v42  ;;  %v16298_v18 = vld [vmem:[#allocation55_spill] sm:$0xff] }
 0x8cb   :  { %v6156_v34 = vsub.f32 %v16298_v18, %v13905_v30  ;;  %v6219_v16 = vmul.f32 %v6155_v31, %v6155_v31 }
 0x8cc   :  { %v6276_v33 = vadd.f32 %v6275_v40, %v6213_v37  ;;  %v16299_v40 = vld [vmem:[#allocation59_spill] sm:$0xff] }
 0x8cd   :  { %v6157_v43 = vsub.f32 %v16299_v40, %v13905_v30  ;;  %v6220_v52 = vmul.f32 %v6156_v34, %v6156_v34 }
 0x8ce   :  { %v6277_v47 = vadd.f32 %v6276_v33, %v6214_v10  ;;  %v16300_v33 = vld [vmem:[#allocation40_spill] sm:$0xff] }
 0x8cf   :  { %v6158_v2 = vsub.f32 %v16300_v33, %v13905_v30  ;;  %v6221_v19 = vmul.f32 %v6157_v43, %v6157_v43 }
 0x8d0   :  { %v6278_v3 = vadd.f32 %v6277_v47, %v6215_v35  ;;  %v16301_v47 = vld [vmem:[#allocation58_spill] sm:$0xff] }
 0x8d1   :  { %v6159_v27 = vsub.f32 %v16301_v47, %v13905_v30  ;;  %v6222_v14 = vmul.f32 %v6158_v2, %v6158_v2 }
 0x8d2   :  { %v6279_v42 = vadd.f32 %v6278_v3, %v6216_v59  ;;  %v16302_v3 = vld [vmem:[#allocation63_spill] sm:$0xff] }
 0x8d3   :  { %v6160_v18 = vsub.f32 %v16302_v3, %v13905_v30  ;;  %v6223_v31 = vmul.f32 %v6159_v27, %v6159_v27 }
 0x8d4   :  { %v6280_v37 = vadd.f32 %v6279_v42, %v6217_v6  ;;  %v16303_v42 = vld [vmem:[#allocation67_spill] sm:$0xff] }
 0x8d5   :  { %v6161_v40 = vsub.f32 %v16303_v42, %v13905_v30  ;;  %v6224_v34 = vmul.f32 %v6160_v18, %v6160_v18 }
 0x8d6   :  { %v6281_v10 = vadd.f32 %v6280_v37, %v6218_v29  ;;  %v16304_v37 = vld [vmem:[#allocation61_spill] sm:$0xff] }
 0x8d7   :  { %v6162_v33 = vsub.f32 %v16304_v37, %v13905_v30  ;;  %v6225_v43 = vmul.f32 %v6161_v40, %v6161_v40 }
 0x8d8   :  { %v6282_v35 = vadd.f32 %v6281_v10, %v6219_v16  ;;  %v16305_v10 = vld [vmem:[#allocation65_spill] sm:$0xff] }
 0x8d9   :  { %v6163_v47 = vsub.f32 %v16305_v10, %v13905_v30  ;;  %v6226_v2 = vmul.f32 %v6162_v33, %v6162_v33 }
 0x8da   :  { %v6283_v59 = vadd.f32 %v6282_v35, %v6220_v52  ;;  %v16306_v35 = vld [vmem:[#allocation71_spill] sm:$0xff] }
 0x8db   :  { %v6164_v3 = vsub.f32 %v16306_v35, %v13905_v30  ;;  %v6227_v27 = vmul.f32 %v6163_v47, %v6163_v47 }
 0x8dc   :  { %v6284_v6 = vadd.f32 %v6283_v59, %v6221_v19  ;;  %v6165_v59 = vsub.f32 %v13900_v21, %v13905_v30 }
 0x8dd   :  { %v6228_v18 = vmul.f32 %v6164_v3, %v6164_v3  ;;  %v6302_v3 = vld [vmem:[%s15217_s8] sm:$0x1] }
 0x8de   :  { %v6285_v29 = vadd.f32 %v6284_v6, %v6222_v14  ;;  %v16307_v6 = vld [vmem:[#allocation70_spill] sm:$0xff]  ;;  %v6229_v40 = vmul.f32 %v6165_v59, %v6165_v59 }
 0x8df   :  { %v6166_v37 = vsub.f32 %v16307_v6, %v13905_v30 }
 0x8e0   :  { %v6286_v16 = vadd.f32 %v6285_v29, %v6223_v31  ;;  %v6167_v29 = vsub.f32 %v13898_v36, %v13905_v30 }
 0x8e2   :  { %v6287_v52 = vadd.f32 %v6286_v16, %v6224_v34  ;;  %v6230_v16 = vmul.f32 %v6166_v37, %v6166_v37  ;;  %v6231_v35 = vmul.f32 %v6167_v29, %v6167_v29  ;;  %v14041_v37 = vld [vmem:[%s15218_s9] sm:$0x1] }
 0x8e4   :  { %v6288_v19 = vadd.f32 %v6287_v52, %v6225_v43 }
 0x8e6   :  { %v6289_v14 = vadd.f32 %v6288_v19, %v6226_v2 }
 0x8e8   :  { %v6290_v31 = vadd.f32 %v6289_v14, %v6227_v27  ;;  %v16309_v14 = vld [vmem:[#allocation62_spill] sm:$0xff] }
 0x8ea   :  { %v6291_v34 = vadd.f32 %v6290_v31, %v6228_v18  ;;  %v16310_v18 = vld [vmem:[#allocation56_spill] sm:$0xff] }
 0x8ec   :  { %v6292_v10 = vadd.f32 %v6291_v34, %v6229_v40  ;;  %v16312_v40 = vld [vmem:[#allocation32_spill] sm:$0xff] }
 0x8ee   :  { %v6293_v33 = vadd.f32 %v6292_v10, %v6230_v16 }
 0x8f0   :  { %v6294_v43 = vadd.f32 %v6293_v33, %v6231_v35 }
 0x8f2   :  { %v6295_v52 = vrot.slane %v6294_v43, 4 }
 0x8f4   :  { %v6296_v42 = vadd.f32 %v6295_v52, %v6294_v43 }
 0x8f6   :  { %v6297_v21 = vrot.slane %v6296_v42, 2 }
 0x8f8   :  { %v6298_v47 = vadd.f32 %v6297_v21, %v6296_v42  ;;  %v16308_v21 = vld [vmem:[#allocation28_spill] sm:$0xff] }
 0x8fa   :  { %v6299_v2 = vrot.slane %v6298_v47, 1 }
 0x8fc   :  { %v6300_v19 = vadd.f32 %v6299_v2, %v6298_v47  ;;  %v16313_v47 = vld [vmem:[#allocation31_spill] sm:$0xff]  ;;  %v16314_v2 = vld [vmem:[#allocation33_spill] sm:$0xff] }
 0x8fe   :  { %v6301_v11 = vmul.f32 0.001953125, %v6300_v19  ;;  %v16315_v19 = vld [vmem:[#allocation60_spill] sm:$0xff] }
 0x900   :  { %v6303_v6 = vadd.f32 1e-05, %v6301_v11  ;;  %v16328_v11 = vld [vmem:[#allocation59_spill] sm:$0xff] }
 0x902   :  { %9355 = vrsqrt.f32 %v6303_v6 }
 0x90c   :  { %v9356_v59 = vpop.eup %9355 }
 0x90d   :  { %v6305_v27 = vmul.f32 %v9356_v59, %v6302_v3  ;;  %v16316_v3 = vld [vmem:[#allocation34_spill] sm:$0xff]  ;;  %v16317_v59 = vld [vmem:[#allocation57_spill] sm:$0xff] }
 0x90f   :  { %v14044_v10 = vmul.f32 %v6305_v27, %v13905_v30  ;;  %v14047_v42 = vrot.slane %v6305_v27, %v16308_v21  ;;  %v16311_v30 = vld [vmem:[#allocation26_spill] sm:$0xff]  ;;  %v16318_v27 = vld [vmem:[#allocation20_spill] sm:$0xff] }
 0x911   :  { %v14053_v35 = vmul.f32 %v14047_v42, %v13715_v20  ;;  %v14057_v6 = vmul.f32 %v14047_v42, %v16309_v14  ;;  %v14061_v31 = vmul.f32 %v16310_v18, %v14047_v42  ;;  %v14065_v29 = vmul.f32 %v16311_v30, %v14047_v42  ;;  %v16320_v18 = vld [vmem:[#allocation43_spill] sm:$0xff] }
 0x912   :  { %v14069_v34 = vmul.f32 %v14047_v42, %v16312_v40  ;;  %v14073_v20 = vmul.f32 %v14047_v42, %v13732_v57  ;;  %v14077_v16 = vmul.f32 %v13724_v24, %v14047_v42  ;;  %v14081_v33 = vmul.f32 %v13730_v53, %v14047_v42  ;;  %v16322_v40 = vld [vmem:[#allocation74_spill] sm:$0xff] }
 0x913   :  { %v14085_v43 = vmul.f32 %v14047_v42, %v13739_v13  ;;  %v14089_v52 = vmul.f32 %v14047_v42, %v13744_v25  ;;  %v14093_v57 = vmul.f32 %v13736_v9, %v14047_v42  ;;  %v14097_v24 = vmul.f32 %v13742_v46, %v14047_v42 }
 0x914   :  { %v14101_v53 = vmul.f32 %v14047_v42, %v13751_v17  ;;  %v14105_v13 = vmul.f32 %v14047_v42, %v13756_v15  ;;  %v14109_v25 = vmul.f32 %v13748_v45, %v14047_v42  ;;  %v14113_v9 = vmul.f32 %v13754_v51, %v14047_v42 }
 0x915   :  { %v14117_v46 = vmul.f32 %v14047_v42, %v13763_v1  ;;  %v14121_v17 = vmul.f32 %v14047_v42, %v13768_v4  ;;  %v14125_v15 = vmul.f32 %v13760_v39, %v14047_v42  ;;  %v14129_v45 = vmul.f32 %v13766_v8, %v14047_v42 }
 0x916   :  { %v14133_v51 = vmul.f32 %v14047_v42, %v13775_v60  ;;  %v14137_v1 = vmul.f32 %v14047_v42, %v13780_v0  ;;  %v14141_v4 = vmul.f32 %v13772_v55, %v14047_v42  ;;  %v14145_v39 = vmul.f32 %v13778_v22, %v14047_v42 }
 0x917   :  { %v14149_v8 = vmul.f32 %v14047_v42, %v13787_v7  ;;  %v14153_v60 = vmul.f32 %v14047_v42, %v13792_v49  ;;  %v14157_v0 = vmul.f32 %v13784_v44, %v14047_v42  ;;  %v14161_v55 = vmul.f32 %v13790_v23, %v14047_v42 }
 0x918   :  { %v14165_v22 = vmul.f32 %v14047_v42, %v13799_v50  ;;  %v14169_v7 = vmul.f32 %v14047_v42, %v13804_v32  ;;  %v14173_v49 = vmul.f32 %v13796_v38, %v14047_v42  ;;  %v14177_v44 = vmul.f32 %v13802_v12, %v14047_v42 }
 0x919   :  { %v14181_v23 = vmul.f32 %v14047_v42, %v13811_v62  ;;  %v14185_v50 = vmul.f32 %v14047_v42, %v13816_v41  ;;  %v14189_v32 = vmul.f32 %v13808_v5, %v14047_v42  ;;  %v14193_v38 = vmul.f32 %v13814_v26, %v14047_v42 }
 0x91a   :  { %v14197_v12 = vmul.f32 %v14047_v42, %v13823_v48  ;;  %v14201_v62 = vmul.f32 %v14047_v42, %v13828_v56  ;;  %v14205_v41 = vmul.f32 %v13820_v58, %v14047_v42  ;;  %v14209_v5 = vmul.f32 %v13826_v28, %v14047_v42 }
 0x91b   :  { %v14213_v26 = vmul.f32 %v14047_v42, %v13835_v63  ;;  %v14217_v48 = vmul.f32 %v14047_v42, %v13840_v61  ;;  %v14221_v56 = vmul.f32 %v13832_v54, %v14047_v42  ;;  %v14225_v58 = vmul.f32 %v16313_v47, %v14047_v42 }
 0x91c   :  { %v14229_v28 = vmul.f32 %v14047_v42, %v16314_v2  ;;  %v14233_v63 = vmul.f32 %v14047_v42, %v16315_v19  ;;  %v14237_v61 = vmul.f32 %v16316_v3, %v14047_v42  ;;  %v14241_v54 = vmul.f32 %v16317_v59, %v14047_v42  ;;  %v16324_v2 = vld [vmem:[#allocation42_spill] sm:$0xff]  ;;  %v16326_v3 = vld [vmem:[#allocation55_spill] sm:$0xff] }
 0x91d   :  { %v14245_v14 = vmul.f32 %v14047_v42, %v16318_v27  ;;  %v14249_v30 = vmul.f32 %v14047_v42, %v16320_v18  ;;  %v14253_v47 = vmul.f32 %v16322_v40, %v14047_v42  ;;  %v14257_v19 = vmul.f32 %v16324_v2, %v14047_v42 }
 0x91e   :  { %v14261_v59 = vmul.f32 %v14047_v42, %v16326_v3  ;;  %v14265_v27 = vmul.f32 %v14047_v42, %v16328_v11 }
 0x91f   :  { %16319 = vst [vmem:[#allocation39_spill] sm:$0xff] %v14245_v14  ;;  %16321 = vst [vmem:[#allocation52_spill] sm:$0xff] %v14249_v30  ;;  %v16330_v14 = vld [vmem:[#allocation40_spill] sm:$0xff]  ;;  %v16332_v30 = vld [vmem:[#allocation58_spill] sm:$0xff] }
 0x920   :  { %16323 = vst [vmem:[#allocation75_spill] sm:$0xff] %v14253_v47  ;;  %16325 = vst [vmem:[#allocation76_spill] sm:$0xff] %v14257_v19  ;;  %v14269_v18 = vmul.f32 %v16330_v14, %v14047_v42  ;;  %v14273_v40 = vmul.f32 %v16332_v30, %v14047_v42  ;;  %v16334_v47 = vld [vmem:[#allocation63_spill] sm:$0xff] }
 0x921   :  { %16327 = vst [vmem:[#allocation77_spill] sm:$0xff] %v14261_v59  ;;  %16329 = vst [vmem:[#allocation78_spill] sm:$0xff] %v14265_v27  ;;  %v14277_v2 = vmul.f32 %v14047_v42, %v16334_v47  ;;  %v16336_v19 = vld [vmem:[#allocation67_spill] sm:$0xff]  ;;  %v16337_v59 = vld [vmem:[#allocation61_spill] sm:$0xff] }
 0x922   :  { %16331 = vst [vmem:[#allocation79_spill] sm:$0xff] %v14269_v18  ;;  %16333 = vst [vmem:[#allocation80_spill] sm:$0xff] %v14273_v40  ;;  %v14281_v3 = vmul.f32 %v14047_v42, %v16336_v19  ;;  %v14285_v11 = vmul.f32 %v16337_v59, %v14047_v42  ;;  %v16338_v27 = vld [vmem:[#allocation65_spill] sm:$0xff]  ;;  %v16340_v18 = vld [vmem:[#allocation71_spill] sm:$0xff]  ;;  %v14305_v59 = vmul.f32 %v13898_v36, %v14047_v42 }
 0x923   :  { %16335 = vst [vmem:[#allocation81_spill] sm:$0xff] %v14277_v2  ;;  %v14289_v14 = vmul.f32 %v16338_v27, %v14047_v42  ;;  %v14293_v30 = vmul.f32 %v14047_v42, %v16340_v18  ;;  %v16341_v40 = vld [vmem:[#allocation37_spill] sm:$0xff]  ;;  %v16342_v2 = vld [vmem:[#allocation70_spill] sm:$0xff]  ;;  %v16343_v27 = vsub.f32 %v14041_v37, %v14044_v10 }
 0x924   :  { %v14297_v47 = vmul.f32 %v14047_v42, %v16341_v40  ;;  %v14301_v19 = vmul.f32 %v16342_v2, %v14047_v42 }
 0x925   :  { %16339 = vst [vmem:[#allocation82_spill] sm:$0xff] %v14289_v14  ;;  %v14311_v14 = vrot.slane %v16343_v27, %v16308_v21 }
 0x927   :  { %v14315_v18 = vadd.f32 %v14311_v14, %v14053_v35  ;;  %v14319_v40 = vadd.f32 %v14311_v14, %v14057_v6  ;;  %v14323_v2 = vadd.f32 %v14311_v14, %v14061_v31  ;;  %v14327_v36 = vadd.f32 %v14311_v14, %v14065_v29  ;;  %v16352_v27 = vld [vmem:[#allocation76_spill] sm:$0xff] }
 0x928   :  { %v14331_v37 = vadd.f32 %v14311_v14, %v14069_v34  ;;  %v14335_v10 = vadd.f32 %v14311_v14, %v14073_v20  ;;  %v14339_v21 = vadd.f32 %v14311_v14, %v14077_v16  ;;  %v14343_v42 = vadd.f32 %v14311_v14, %v14081_v33 }
 0x929   :  { %v14347_v35 = vadd.f32 %v14311_v14, %v14085_v43  ;;  %v14351_v6 = vadd.f32 %v14311_v14, %v14089_v52  ;;  %v14355_v31 = vadd.f32 %v14311_v14, %v14093_v57  ;;  %v14359_v29 = vadd.f32 %v14311_v14, %v14097_v24 }
 0x92a   :  { %v14363_v34 = vadd.f32 %v14311_v14, %v14101_v53  ;;  %v14367_v20 = vadd.f32 %v14311_v14, %v14105_v13  ;;  %v14371_v16 = vadd.f32 %v14311_v14, %v14109_v25  ;;  %v14375_v33 = vadd.f32 %v14311_v14, %v14113_v9 }
 0x92b   :  { %v14379_v43 = vadd.f32 %v14311_v14, %v14117_v46  ;;  %v14383_v52 = vadd.f32 %v14311_v14, %v14121_v17  ;;  %v14387_v57 = vadd.f32 %v14311_v14, %v14125_v15  ;;  %v14391_v24 = vadd.f32 %v14311_v14, %v14129_v45 }
 0x92c   :  { %v14395_v53 = vadd.f32 %v14311_v14, %v14133_v51  ;;  %v14399_v13 = vadd.f32 %v14311_v14, %v14137_v1  ;;  %v14403_v25 = vadd.f32 %v14311_v14, %v14141_v4  ;;  %v14407_v9 = vadd.f32 %v14311_v14, %v14145_v39 }
 0x92d   :  { %v14411_v46 = vadd.f32 %v14311_v14, %v14149_v8  ;;  %v14415_v17 = vadd.f32 %v14311_v14, %v14153_v60  ;;  %v14419_v15 = vadd.f32 %v14311_v14, %v14157_v0  ;;  %v14423_v45 = vadd.f32 %v14311_v14, %v14161_v55 }
 0x92e   :  { %v14427_v51 = vadd.f32 %v14311_v14, %v14165_v22  ;;  %v14431_v1 = vadd.f32 %v14311_v14, %v14169_v7  ;;  %v14435_v4 = vadd.f32 %v14311_v14, %v14173_v49  ;;  %v14439_v39 = vadd.f32 %v14311_v14, %v14177_v44 }
 0x92f   :  { %v14443_v8 = vadd.f32 %v14311_v14, %v14181_v23  ;;  %v14447_v60 = vadd.f32 %v14311_v14, %v14185_v50  ;;  %v14451_v0 = vadd.f32 %v14311_v14, %v14189_v32  ;;  %v14455_v55 = vadd.f32 %v14311_v14, %v14193_v38 }
 0x930   :  { %v14459_v22 = vadd.f32 %v14311_v14, %v14197_v12  ;;  %v14463_v7 = vadd.f32 %v14311_v14, %v14201_v62  ;;  %v14467_v49 = vadd.f32 %v14311_v14, %v14205_v41  ;;  %v14471_v44 = vadd.f32 %v14311_v14, %v14209_v5 }
 0x931   :  { %v14475_v23 = vadd.f32 %v14311_v14, %v14213_v26  ;;  %v14479_v50 = vadd.f32 %v14311_v14, %v14217_v48  ;;  %v14483_v32 = vadd.f32 %v14311_v14, %v14221_v56  ;;  %v14487_v38 = vadd.f32 %v14311_v14, %v14225_v58  ;;  %v16346_v26 = vld [vmem:[#allocation39_spill] sm:$0xff]  ;;  %v16348_v56 = vld [vmem:[#allocation52_spill] sm:$0xff] }
 0x932   :  { %v14491_v12 = vadd.f32 %v14311_v14, %v14229_v28  ;;  %v14495_v62 = vadd.f32 %v14311_v14, %v14233_v63  ;;  %v14499_v41 = vadd.f32 %v14311_v14, %v14237_v61  ;;  %v14503_v5 = vadd.f32 %v14311_v14, %v14241_v54  ;;  %v16350_v28 = vld [vmem:[#allocation75_spill] sm:$0xff] }
 0x933   :  { %v14507_v48 = vadd.f32 %v14311_v14, %v16346_v26  ;;  %v14511_v58 = vadd.f32 %v14311_v14, %v16348_v56  ;;  %v14515_v63 = vadd.f32 %v14311_v14, %v16350_v28  ;;  %v14519_v61 = vadd.f32 %v14311_v14, %v16352_v27 }
 0x934   :  { %16344 = vst [vmem:[#allocation83_spill] sm:$0xff] %v14499_v41  ;;  %16345 = vst [vmem:[#allocation84_spill] sm:$0xff] %v14503_v5  ;;  %v16353_v41 = vld [vmem:[#allocation77_spill] sm:$0xff]  ;;  %v16354_v5 = vld [vmem:[#allocation78_spill] sm:$0xff] }
 0x935   :  { %16347 = vst [vmem:[#allocation85_spill] sm:$0xff] %v14507_v48  ;;  %16349 = vst [vmem:[#allocation86_spill] sm:$0xff] %v14511_v58  ;;  %v14523_v54 = vadd.f32 %v14311_v14, %v16353_v41  ;;  %v14527_v26 = vadd.f32 %v14311_v14, %v16354_v5  ;;  %v16356_v48 = vld [vmem:[#allocation79_spill] sm:$0xff]  ;;  %v16357_v58 = vld [vmem:[#allocation80_spill] sm:$0xff]  ;;  %v14543_v41 = vadd.f32 %v14311_v14, %v14281_v3 }
 0x936   :  { %16351 = vst [vmem:[#allocation36_spill] sm:$0xff] %v14515_v63  ;;  %v14531_v56 = vadd.f32 %v14311_v14, %v16356_v48  ;;  %v14535_v28 = vadd.f32 %v14311_v14, %v16357_v58  ;;  %v16358_v63 = vld [vmem:[#allocation81_spill] sm:$0xff]  ;;  %v14547_v5 = vadd.f32 %v14311_v14, %v14285_v11  ;;  %v14555_v58 = vadd.f32 %v14311_v14, %v14293_v30  ;;  %v9366_v30 = vld [vmem:[%s15210_s0 + $0x8] sm:$0xff] }
 0x937   :  { %16355 = vst [vmem:[#allocation29_spill] sm:$0xff] %v14527_v26  ;;  %v14539_v27 = vadd.f32 %v14311_v14, %v16358_v63  ;;  %v16359_v26 = vld [vmem:[#allocation82_spill] sm:$0xff]  ;;  %v14559_v63 = vadd.f32 %v14311_v14, %v14297_v47  ;;  %v14563_v3 = vadd.f32 %v14311_v14, %v14301_v19  ;;  %v14567_v11 = vadd.f32 %v14311_v14, %v14305_v59  ;;  %v9367_v19 = vld [vmem:[%s15210_s0 + $0x10] sm:$0xff]  ;;  %v9368_v59 = vld [vmem:[%s15210_s0 + $0x18] sm:$0xff] }
 0x938   :  { %v14551_v48 = vadd.f32 %v14311_v14, %v16359_v26  ;;  %v9365_v26 = vld [vmem:[%s15210_s0] sm:$0xff]  ;;  %v14579_v47 = vadd.f32 %v9366_v30, %v14319_v40  ;;  %v14585_v14 = vadd.f32 %v9367_v19, %v14323_v2  ;;  %v9370_v30 = vld [vmem:[%s15210_s0 + $0x28] sm:$0xff]  ;;  %v9371_v19 = vld [vmem:[%s15210_s0 + $0x30] sm:$0xff] }
 0x939   :  { %v14603_v2 = vadd.f32 %v9370_v30, %v14335_v10  ;;  %v9374_v30 = vld [vmem:[%s15210_s0 + $0x48] sm:$0xff] }
 0x93a   :  { %16360 = vst [vmem:[#allocation35_spill] sm:$0xff] %v14551_v48  ;;  %v14573_v48 = vadd.f32 %v9365_v26, %v14315_v18  ;;  %v14591_v18 = vadd.f32 %v9368_v59, %v14327_v36  ;;  %v9369_v26 = vld [vmem:[%s15210_s0 + $0x20] sm:$0xff]  ;;  %v14609_v36 = vadd.f32 %v9371_v19, %v14339_v21  ;;  %v9372_v59 = vld [vmem:[%s15210_s0 + $0x38] sm:$0xff]  ;;  %v14627_v21 = vadd.f32 %v9374_v30, %v14351_v6  ;;  %v9375_v19 = vld [vmem:[%s15210_s0 + $0x50] sm:$0xff] }
 0x93b   :  { %v14597_v40 = vadd.f32 %v9369_v26, %v14331_v37  ;;  %v14615_v37 = vadd.f32 %v9372_v59, %v14343_v42  ;;  %v9373_v26 = vld [vmem:[%s15210_s0 + $0x40] sm:$0xff]  ;;  %v14633_v42 = vadd.f32 %v9375_v19, %v14355_v31  ;;  %v9376_v59 = vld [vmem:[%s15210_s0 + $0x58] sm:$0xff]  ;;  %v9378_v30 = vld [vmem:[%s15210_s0 + $0x68] sm:$0xff] }
 0x93c   :  { %v14621_v10 = vadd.f32 %v9373_v26, %v14347_v35  ;;  %v14639_v35 = vadd.f32 %v9376_v59, %v14359_v29  ;;  %v9377_v26 = vld [vmem:[%s15210_s0 + $0x60] sm:$0xff]  ;;  %v14651_v31 = vadd.f32 %v9378_v30, %v14367_v20  ;;  %v9379_v19 = vld [vmem:[%s15210_s0 + $0x70] sm:$0xff]  ;;  %v9380_v59 = vld [vmem:[%s15210_s0 + $0x78] sm:$0xff] }
 0x93d   :  { %v14645_v6 = vadd.f32 %v9377_v26, %v14363_v34  ;;  %v14657_v29 = vadd.f32 %v9379_v19, %v14371_v16  ;;  %v14663_v34 = vadd.f32 %v9380_v59, %v14375_v33  ;;  %v9381_v26 = vld [vmem:[%s15210_s0 + $0x80] sm:$0xff]  ;;  %v9382_v30 = vld [vmem:[%s15210_s0 + $0x88] sm:$0xff]  ;;  %v9383_v19 = vld [vmem:[%s15210_s0 + $0x90] sm:$0xff] }
 0x93e   :  { %v14669_v20 = vadd.f32 %v9381_v26, %v14379_v43  ;;  %v14675_v16 = vadd.f32 %v9382_v30, %v14383_v52  ;;  %v14681_v33 = vadd.f32 %v9383_v19, %v14387_v57  ;;  %v9384_v59 = vld [vmem:[%s15210_s0 + $0x98] sm:$0xff]  ;;  %v9385_v26 = vld [vmem:[%s15210_s0 + $0xa0] sm:$0xff]  ;;  %v9386_v30 = vld [vmem:[%s15210_s0 + $0xa8] sm:$0xff] }
 0x93f   :  { %v14687_v43 = vadd.f32 %v9384_v59, %v14391_v24  ;;  %v14693_v52 = vadd.f32 %v9385_v26, %v14395_v53  ;;  %v14699_v57 = vadd.f32 %v9386_v30, %v14399_v13  ;;  %v9387_v19 = vld [vmem:[%s15210_s0 + $0xb0] sm:$0xff]  ;;  %v9388_v59 = vld [vmem:[%s15210_s0 + $0xb8] sm:$0xff]  ;;  %v9389_v26 = vld [vmem:[%s15210_s0 + $0xc0] sm:$0xff] }
 0x940   :  { %v14705_v24 = vadd.f32 %v9387_v19, %v14403_v25  ;;  %v14711_v53 = vadd.f32 %v9388_v59, %v14407_v9  ;;  %v14717_v13 = vadd.f32 %v9389_v26, %v14411_v46  ;;  %v9390_v30 = vld [vmem:[%s15210_s0 + $0xc8] sm:$0xff]  ;;  %v9391_v19 = vld [vmem:[%s15210_s0 + $0xd0] sm:$0xff]  ;;  %v9392_v59 = vld [vmem:[%s15210_s0 + $0xd8] sm:$0xff] }
 0x941   :  { %v14723_v25 = vadd.f32 %v9390_v30, %v14415_v17  ;;  %v14729_v9 = vadd.f32 %v9391_v19, %v14419_v15  ;;  %v14735_v46 = vadd.f32 %v9392_v59, %v14423_v45  ;;  %v9393_v26 = vld [vmem:[%s15210_s0 + $0xe0] sm:$0xff]  ;;  %v9394_v30 = vld [vmem:[%s15210_s0 + $0xe8] sm:$0xff]  ;;  %v9395_v19 = vld [vmem:[%s15210_s0 + $0xf0] sm:$0xff] }
 0x942   :  { %v14741_v17 = vadd.f32 %v9393_v26, %v14427_v51  ;;  %v14747_v15 = vadd.f32 %v9394_v30, %v14431_v1  ;;  %v14753_v45 = vadd.f32 %v9395_v19, %v14435_v4  ;;  %v9396_v59 = vld [vmem:[%s15210_s0 + $0xf8] sm:$0xff]  ;;  %v9397_v26 = vld [vmem:[%s15210_s0 + $0x100] sm:$0xff]  ;;  %v9398_v30 = vld [vmem:[%s15210_s0 + $0x108] sm:$0xff] }
 0x943   :  { %v14759_v51 = vadd.f32 %v9396_v59, %v14439_v39  ;;  %v14765_v1 = vadd.f32 %v9397_v26, %v14443_v8  ;;  %v14771_v4 = vadd.f32 %v9398_v30, %v14447_v60  ;;  %v9399_v19 = vld [vmem:[%s15210_s0 + $0x110] sm:$0xff]  ;;  %v9400_v59 = vld [vmem:[%s15210_s0 + $0x118] sm:$0xff]  ;;  %v9401_v26 = vld [vmem:[%s15210_s0 + $0x120] sm:$0xff] }
 0x944   :  { %v14777_v39 = vadd.f32 %v9399_v19, %v14451_v0  ;;  %v14783_v8 = vadd.f32 %v9400_v59, %v14455_v55  ;;  %v14789_v60 = vadd.f32 %v9401_v26, %v14459_v22  ;;  %v9402_v30 = vld [vmem:[%s15210_s0 + $0x128] sm:$0xff]  ;;  %v9403_v19 = vld [vmem:[%s15210_s0 + $0x130] sm:$0xff]  ;;  %v9404_v59 = vld [vmem:[%s15210_s0 + $0x138] sm:$0xff] }
 0x945   :  { %v14795_v0 = vadd.f32 %v9402_v30, %v14463_v7  ;;  %v14801_v55 = vadd.f32 %v9403_v19, %v14467_v49  ;;  %v14807_v22 = vadd.f32 %v9404_v59, %v14471_v44  ;;  %v9405_v26 = vld [vmem:[%s15210_s0 + $0x140] sm:$0xff]  ;;  %v9406_v30 = vld [vmem:[%s15210_s0 + $0x148] sm:$0xff]  ;;  %v9407_v19 = vld [vmem:[%s15210_s0 + $0x150] sm:$0xff] }
 0x946   :  { %v14813_v7 = vadd.f32 %v9405_v26, %v14475_v23  ;;  %v14819_v49 = vadd.f32 %v9406_v30, %v14479_v50  ;;  %v14825_v44 = vadd.f32 %v9407_v19, %v14483_v32  ;;  %v9408_v59 = vld [vmem:[%s15210_s0 + $0x158] sm:$0xff]  ;;  %v9409_v26 = vld [vmem:[%s15210_s0 + $0x160] sm:$0xff]  ;;  %v9410_v30 = vld [vmem:[%s15210_s0 + $0x168] sm:$0xff] }
 0x947   :  { %v14831_v23 = vadd.f32 %v9408_v59, %v14487_v38  ;;  %v14837_v50 = vadd.f32 %v9409_v26, %v14491_v12  ;;  %v14843_v32 = vadd.f32 %v9410_v30, %v14495_v62  ;;  %v9411_v19 = vld [vmem:[%s15210_s0 + $0x170] sm:$0xff]  ;;  %v16364_v38 = vld [vmem:[#allocation83_spill] sm:$0xff]  ;;  %v16368_v62 = vld [vmem:[#allocation85_spill] sm:$0xff] }
 0x948   :  { %v14849_v59 = vadd.f32 %v9411_v19, %v16364_v38  ;;  %v16366_v12 = vld [vmem:[#allocation84_spill] sm:$0xff]  ;;  %v16369_v19 = vld [vmem:[#allocation86_spill] sm:$0xff] }
 0x949   :  { %16361 = vst [vmem:[#allocation22_spill] sm:$0xff] %v14831_v23  ;;  %16362 = vst [vmem:[#allocation64_spill] sm:$0xff] %v14837_v50  ;;  %v9412_v23 = vld [vmem:[%s15210_s0 + $0x178] sm:$0xff]  ;;  %v9413_v50 = vld [vmem:[%s15210_s0 + $0x180] sm:$0xff] }
 0x94a   :  { %16363 = vst [vmem:[#allocation66_spill] sm:$0xff] %v14843_v32  ;;  %16365 = vst [vmem:[#allocation68_spill] sm:$0xff] %v14849_v59  ;;  %v14855_v26 = vadd.f32 %v9412_v23, %v16366_v12  ;;  %v14861_v30 = vadd.f32 %v9413_v50, %v16368_v62  ;;  %v9414_v32 = vld [vmem:[%s15210_s0 + $0x188] sm:$0xff]  ;;  %v9415_v59 = vld [vmem:[%s15210_s0 + $0x190] sm:$0xff] }
 0x94b   :  { %v14867_v38 = vadd.f32 %v9414_v32, %v16369_v19  ;;  %v16370_v23 = vld [vmem:[#allocation36_spill] sm:$0xff]  ;;  %v9417_v62 = vld [vmem:[%s15210_s0 + $0x1a0] sm:$0xff]  ;;  %v9418_v19 = vld [vmem:[%s15210_s0 + $0x1a8] sm:$0xff] }
 0x94c   :  { %16367 = vst [vmem:[#allocation69_spill] sm:$0xff] %v14855_v26  ;;  %v14873_v12 = vadd.f32 %v9415_v59, %v16370_v23  ;;  %v9416_v26 = vld [vmem:[%s15210_s0 + $0x198] sm:$0xff]  ;;  %v14885_v32 = vadd.f32 %v9417_v62, %v14523_v54  ;;  %v9421_v62 = vld [vmem:[%s15210_s0 + $0x1c0] sm:$0xff] }
 0x94d   :  { %v14879_v50 = vadd.f32 %v9416_v26, %v14519_v61  ;;  %v16372_v59 = vld [vmem:[#allocation29_spill] sm:$0xff] }
 0x94e   :  { %16371 = vst [vmem:[#allocation9_spill] sm:$0xff] %v14873_v12  ;;  %v14891_v23 = vadd.f32 %v9418_v19, %v16372_v59  ;;  %v9419_v12 = vld [vmem:[%s15210_s0 + $0x1b0] sm:$0xff]  ;;  %v9420_v26 = vld [vmem:[%s15210_s0 + $0x1b8] sm:$0xff]  ;;  %v14909_v19 = vadd.f32 %v9421_v62, %v14539_v27  ;;  %v9422_v59 = vld [vmem:[%s15210_s0 + $0x1c8] sm:$0xff] }
 0x94f   :  { %v14897_v61 = vadd.f32 %v9419_v12, %v14531_v56  ;;  %v14903_v54 = vadd.f32 %v9420_v26, %v14535_v28  ;;  %v14915_v56 = vadd.f32 %v9422_v59, %v14543_v41  ;;  %v9423_v12 = vld [vmem:[%s15210_s0 + $0x1d0] sm:$0xff]  ;;  %v9424_v26 = vld [vmem:[%s15210_s0 + $0x1d8] sm:$0xff]  ;;  %v16374_v27 = vld [vmem:[#allocation35_spill] sm:$0xff] }
 0x950   :  { %16373 = vst [vmem:[#allocation14_spill] sm:$0xff] %v14909_v19  ;;  %v14921_v28 = vadd.f32 %v9423_v12, %v14547_v5  ;;  %v14927_v62 = vadd.f32 %v9424_v26, %v16374_v27  ;;  %v9425_v19 = vld [vmem:[%s15210_s0 + $0x1e0] sm:$0xff]  ;;  %v9426_v59 = vld [vmem:[%s15210_s0 + $0x1e8] sm:$0xff]  ;;  %v9427_v12 = vld [vmem:[%s15210_s0 + $0x1f0] sm:$0xff] }
 0x951   :  { %v14933_v41 = vadd.f32 %v9425_v19, %v14555_v58  ;;  %v14939_v5 = vadd.f32 %v9426_v59, %v14559_v63  ;;  %v14945_v26 = vadd.f32 %v9427_v12, %v14563_v3  ;;  %v9428_v27 = vld [vmem:[%s15210_s0 + $0x1f8] sm:$0xff]  ;;  %v6513_v19 = vmax.f32 %v14573_v48, 0.0 }
 0x952   :  { %16375 = vst [vmem:[#allocation12_spill] sm:$0xff] %v14927_v62  ;;  %v14951_v58 = vadd.f32 %v9428_v27, %v14567_v11  ;;  %v6515_v63 = vmax.f32 %v14585_v14, 0.0  ;;  %v6516_v59 = vmax.f32 %v14591_v18, 0.0  ;;  %v6518_v3 = vmax.f32 %v14603_v2, 0.0 }
 0x953   :  { %16376 = vst [vmem:[#allocation47_spill] sm:$0xff] %v14933_v41  ;;  %16377 = vst [vmem:[#allocation11_spill] sm:$0xff] %v14939_v5  ;;  %v6514_v41 = vmax.f32 %v14579_v47, 0.0  ;;  %v6517_v5 = vmax.f32 %v14597_v40, 0.0  ;;  %v6519_v12 = vmax.f32 %v14609_v36, 0.0  ;;  %v6521_v62 = vmax.f32 %v14621_v10, 0.0 }
 0x954   :  { %16378 = vst [vmem:[#allocation49_spill] sm:$0xff] %v14945_v26  ;;  %v6520_v26 = vmax.f32 %v14615_v37, 0.0  ;;  %v6522_v11 = vmax.f32 %v14627_v21, 0.0  ;;  %v6523_v48 = vmax.f32 %v14633_v42, 0.0  ;;  %v6524_v47 = vmax.f32 %v14639_v35, 0.0  ;;  %6577 = vst [vmem:[%s15219_s10] sm:$0xff] %v6513_v19 }
 0x955   :  { %6578 = vst [vmem:[%s15219_s10 + $0x8] sm:$0xff] %v6514_v41  ;;  %6579 = vst [vmem:[%s15219_s10 + $0x10] sm:$0xff] %v6515_v63  ;;  %v6525_v14 = vmax.f32 %v14645_v6, 0.0  ;;  %v6526_v18 = vmax.f32 %v14651_v31, 0.0  ;;  %v6527_v40 = vmax.f32 %v14657_v29, 0.0  ;;  %v6528_v2 = vmax.f32 %v14663_v34, 0.0 }
 0x956   :  { %6580 = vst [vmem:[%s15219_s10 + $0x18] sm:$0xff] %v6516_v59  ;;  %6581 = vst [vmem:[%s15219_s10 + $0x20] sm:$0xff] %v6517_v5  ;;  %v6529_v36 = vmax.f32 %v14669_v20, 0.0  ;;  %v6530_v37 = vmax.f32 %v14675_v16, 0.0  ;;  %v6531_v10 = vmax.f32 %v14681_v33, 0.0  ;;  %v6532_v21 = vmax.f32 %v14687_v43, 0.0 }
 0x957   :  { %6582 = vst [vmem:[%s15219_s10 + $0x28] sm:$0xff] %v6518_v3  ;;  %6583 = vst [vmem:[%s15219_s10 + $0x30] sm:$0xff] %v6519_v12  ;;  %v6533_v42 = vmax.f32 %v14693_v52, 0.0  ;;  %v6534_v35 = vmax.f32 %v14699_v57, 0.0  ;;  %v6535_v6 = vmax.f32 %v14705_v24, 0.0  ;;  %v6536_v31 = vmax.f32 %v14711_v53, 0.0 }
 0x958   :  { %6584 = vst [vmem:[%s15219_s10 + $0x38] sm:$0xff] %v6520_v26  ;;  %6585 = vst [vmem:[%s15219_s10 + $0x40] sm:$0xff] %v6521_v62  ;;  %v6537_v29 = vmax.f32 %v14717_v13, 0.0  ;;  %v6538_v34 = vmax.f32 %v14723_v25, 0.0  ;;  %v6539_v20 = vmax.f32 %v14729_v9, 0.0  ;;  %v6540_v16 = vmax.f32 %v14735_v46, 0.0 }
 0x959   :  { %6586 = vst [vmem:[%s15219_s10 + $0x48] sm:$0xff] %v6522_v11  ;;  %6587 = vst [vmem:[%s15219_s10 + $0x50] sm:$0xff] %v6523_v48  ;;  %v6541_v33 = vmax.f32 %v14741_v17, 0.0  ;;  %v6542_v43 = vmax.f32 %v14747_v15, 0.0  ;;  %v6543_v52 = vmax.f32 %v14753_v45, 0.0  ;;  %v6544_v57 = vmax.f32 %v14759_v51, 0.0 }
 0x95a   :  { %6588 = vst [vmem:[%s15219_s10 + $0x58] sm:$0xff] %v6524_v47  ;;  %6589 = vst [vmem:[%s15219_s10 + $0x60] sm:$0xff] %v6525_v14  ;;  %v6545_v24 = vmax.f32 %v14765_v1, 0.0  ;;  %v6546_v53 = vmax.f32 %v14771_v4, 0.0  ;;  %v6547_v13 = vmax.f32 %v14777_v39, 0.0  ;;  %v6548_v25 = vmax.f32 %v14783_v8, 0.0 }
 0x95b   :  { %6590 = vst [vmem:[%s15219_s10 + $0x68] sm:$0xff] %v6526_v18  ;;  %6591 = vst [vmem:[%s15219_s10 + $0x70] sm:$0xff] %v6527_v40  ;;  %v6549_v9 = vmax.f32 %v14789_v60, 0.0  ;;  %v6550_v46 = vmax.f32 %v14795_v0, 0.0  ;;  %v6551_v17 = vmax.f32 %v14801_v55, 0.0  ;;  %v6552_v15 = vmax.f32 %v14807_v22, 0.0 }
 0x95c   :  { %6592 = vst [vmem:[%s15219_s10 + $0x78] sm:$0xff] %v6528_v2  ;;  %6593 = vst [vmem:[%s15219_s10 + $0x80] sm:$0xff] %v6529_v36  ;;  %v6553_v45 = vmax.f32 %v14813_v7, 0.0  ;;  %v6554_v51 = vmax.f32 %v14819_v49, 0.0  ;;  %v6555_v1 = vmax.f32 %v14825_v44, 0.0  ;;  %v16379_v4 = vld [vmem:[#allocation22_spill] sm:$0xff] }
 0x95d   :  { %6594 = vst [vmem:[%s15219_s10 + $0x88] sm:$0xff] %v6530_v37  ;;  %6595 = vst [vmem:[%s15219_s10 + $0x90] sm:$0xff] %v6531_v10  ;;  %v6556_v39 = vmax.f32 %v16379_v4, 0.0  ;;  %v16380_v8 = vld [vmem:[#allocation64_spill] sm:$0xff]  ;;  %v16381_v0 = vld [vmem:[#allocation66_spill] sm:$0xff]  ;;  %v6561_v62 = vmax.f32 %v14861_v30, 0.0 }
 0x95e   :  { %6596 = vst [vmem:[%s15219_s10 + $0x98] sm:$0xff] %v6532_v21  ;;  %6597 = vst [vmem:[%s15219_s10 + $0xa0] sm:$0xff] %v6533_v42  ;;  %v6557_v60 = vmax.f32 %v16380_v8, 0.0  ;;  %v6558_v55 = vmax.f32 %v16381_v0, 0.0  ;;  %v16382_v22 = vld [vmem:[#allocation68_spill] sm:$0xff]  ;;  %v16383_v49 = vld [vmem:[#allocation69_spill] sm:$0xff] }
 0x95f   :  { %6598 = vst [vmem:[%s15219_s10 + $0xa8] sm:$0xff] %v6534_v35  ;;  %6599 = vst [vmem:[%s15219_s10 + $0xb0] sm:$0xff] %v6535_v6  ;;  %v6559_v7 = vmax.f32 %v16382_v22, 0.0  ;;  %v6560_v44 = vmax.f32 %v16383_v49, 0.0  ;;  %v6562_v41 = vmax.f32 %v14867_v38, 0.0  ;;  %v16384_v5 = vld [vmem:[#allocation9_spill] sm:$0xff] }
 0x960   :  { %6600 = vst [vmem:[%s15219_s10 + $0xb8] sm:$0xff] %v6536_v31  ;;  %6601 = vst [vmem:[%s15219_s10 + $0xc0] sm:$0xff] %v6537_v29  ;;  %v6563_v26 = vmax.f32 %v16384_v5, 0.0  ;;  %v6564_v27 = vmax.f32 %v14879_v50, 0.0  ;;  %v6565_v30 = vmax.f32 %v14885_v32, 0.0  ;;  %v6566_v38 = vmax.f32 %v14891_v23, 0.0 }
 0x961   :  { %6602 = vst [vmem:[%s15219_s10 + $0xc8] sm:$0xff] %v6538_v34  ;;  %6603 = vst [vmem:[%s15219_s10 + $0xd0] sm:$0xff] %v6539_v20  ;;  %v6567_v50 = vmax.f32 %v14897_v61, 0.0  ;;  %v6568_v19 = vmax.f32 %v14903_v54, 0.0  ;;  %v16385_v32 = vld [vmem:[#allocation14_spill] sm:$0xff]  ;;  %v6570_v61 = vmax.f32 %v14915_v56, 0.0 }
 0x962   :  { %6604 = vst [vmem:[%s15219_s10 + $0xd8] sm:$0xff] %v6540_v16  ;;  %6605 = vst [vmem:[%s15219_s10 + $0xe0] sm:$0xff] %v6541_v33  ;;  %v6569_v23 = vmax.f32 %v16385_v32, 0.0  ;;  %v6571_v54 = vmax.f32 %v14921_v28, 0.0  ;;  %v16386_v63 = vld [vmem:[#allocation12_spill] sm:$0xff]  ;;  %v16387_v56 = vld [vmem:[#allocation47_spill] sm:$0xff] }
 0x963   :  { %6606 = vst [vmem:[%s15219_s10 + $0xe8] sm:$0xff] %v6542_v43  ;;  %6607 = vst [vmem:[%s15219_s10 + $0xf0] sm:$0xff] %v6543_v52  ;;  %v6572_v59 = vmax.f32 %v16386_v63, 0.0  ;;  %v6573_v28 = vmax.f32 %v16387_v56, 0.0  ;;  %v16388_v3 = vld [vmem:[#allocation11_spill] sm:$0xff]  ;;  %v16389_v11 = vld [vmem:[#allocation49_spill] sm:$0xff] }
 0x964   :  { %6608 = vst [vmem:[%s15219_s10 + $0xf8] sm:$0xff] %v6544_v57  ;;  %6609 = vst [vmem:[%s15219_s10 + $0x100] sm:$0xff] %v6545_v24  ;;  %v6574_v12 = vmax.f32 %v16388_v3, 0.0  ;;  %v6575_v48 = vmax.f32 %v16389_v11, 0.0  ;;  %v6576_v47 = vmax.f32 %v14951_v58, 0.0 }
 0x965   :  { %6610 = vst [vmem:[%s15219_s10 + $0x108] sm:$0xff] %v6546_v53  ;;  %6611 = vst [vmem:[%s15219_s10 + $0x110] sm:$0xff] %v6547_v13 }
 0x966   :  { %6612 = vst [vmem:[%s15219_s10 + $0x118] sm:$0xff] %v6548_v25  ;;  %6613 = vst [vmem:[%s15219_s10 + $0x120] sm:$0xff] %v6549_v9 }
 0x967   :  { %6614 = vst [vmem:[%s15219_s10 + $0x128] sm:$0xff] %v6550_v46  ;;  %6615 = vst [vmem:[%s15219_s10 + $0x130] sm:$0xff] %v6551_v17 }
 0x968   :  { %6616 = vst [vmem:[%s15219_s10 + $0x138] sm:$0xff] %v6552_v15  ;;  %6617 = vst [vmem:[%s15219_s10 + $0x140] sm:$0xff] %v6553_v45 }
 0x969   :  { %6618 = vst [vmem:[%s15219_s10 + $0x148] sm:$0xff] %v6554_v51  ;;  %6619 = vst [vmem:[%s15219_s10 + $0x150] sm:$0xff] %v6555_v1 }
 0x96a   :  { %6620 = vst [vmem:[%s15219_s10 + $0x158] sm:$0xff] %v6556_v39  ;;  %6621 = vst [vmem:[%s15219_s10 + $0x160] sm:$0xff] %v6557_v60 }
 0x96b   :  { %6622 = vst [vmem:[%s15219_s10 + $0x168] sm:$0xff] %v6558_v55  ;;  %6623 = vst [vmem:[%s15219_s10 + $0x170] sm:$0xff] %v6559_v7 }
 0x96c   :  { %6624 = vst [vmem:[%s15219_s10 + $0x178] sm:$0xff] %v6560_v44  ;;  %6625 = vst [vmem:[%s15219_s10 + $0x180] sm:$0xff] %v6561_v62 }
 0x96d   :  { %6626 = vst [vmem:[%s15219_s10 + $0x188] sm:$0xff] %v6562_v41  ;;  %6627 = vst [vmem:[%s15219_s10 + $0x190] sm:$0xff] %v6563_v26 }
 0x96e   :  { %6628 = vst [vmem:[%s15219_s10 + $0x198] sm:$0xff] %v6564_v27  ;;  %6629 = vst [vmem:[%s15219_s10 + $0x1a0] sm:$0xff] %v6565_v30 }
 0x96f   :  { %6630 = vst [vmem:[%s15219_s10 + $0x1a8] sm:$0xff] %v6566_v38  ;;  %6631 = vst [vmem:[%s15219_s10 + $0x1b0] sm:$0xff] %v6567_v50 }
 0x970   :  { %6632 = vst [vmem:[%s15219_s10 + $0x1b8] sm:$0xff] %v6568_v19  ;;  %6633 = vst [vmem:[%s15219_s10 + $0x1c0] sm:$0xff] %v6569_v23 }
 0x971   :  { %6634 = vst [vmem:[%s15219_s10 + $0x1c8] sm:$0xff] %v6570_v61  ;;  %6635 = vst [vmem:[%s15219_s10 + $0x1d0] sm:$0xff] %v6571_v54 }
 0x972   :  { %6636 = vst [vmem:[%s15219_s10 + $0x1d8] sm:$0xff] %v6572_v59  ;;  %6637 = vst [vmem:[%s15219_s10 + $0x1e0] sm:$0xff] %v6573_v28 }
 0x973   :  { %6638 = vst [vmem:[%s15219_s10 + $0x1e8] sm:$0xff] %v6574_v12  ;;  %6639 = vst [vmem:[%s15219_s10 + $0x1f0] sm:$0xff] %v6575_v48 }
 0x974   :  { %6640 = vst [vmem:[%s15219_s10 + $0x1f8] sm:$0xff] %v6576_v47 }

</bundles_post_ra>
